<compile_context>
chip_gen: v7x
topology: tpu7x:2x2x1
jax: 0.10.0
libtpu: 0.0.40
codegen_flags: <defaults>
</compile_context>

<pallas_src>
import jax
import jax.numpy as jnp
from jax.experimental import pallas as pl
from jax.experimental.pallas import tpu as pltpu


def _round_up(x, m):
    return ((x + m - 1) // m) * m


def _full_spec(arr):
    """Whole-array (non-tiled) BlockSpec; block index 0 on every grid step."""
    nd = arr.ndim
    return pl.BlockSpec(arr.shape, lambda *_: (0,) * nd)


def _vmem_limit(tile_bytes):
    """Scoped-VMEM budget from actual tile bytes (double-buffered + headroom),
    capped at v7x's 64 MiB physical VMEM."""
    est = 2 * int(tile_bytes) + (8 << 20)
    return int(min(max(est, 32 << 20), 64 << 20))


def _cost_estimate(rows, weights, io_arrays):
    mm = sum(2 * int(w.shape[0]) * int(w.shape[1]) for w in weights
             if w.ndim == 2 and w.shape[0] > 1)
    return pl.CostEstimate(
        flops=int(3 * rows * mm),
        transcendentals=int(rows * 32),
        bytes_accessed=int(sum(a.size * a.dtype.itemsize for a in io_arrays)))


def _bf(x):
    return x.astype(jnp.bfloat16)


# --------------------------------------------------------------------------
# In-kernel GVP math (traced helpers, shared by all kernels)
# --------------------------------------------------------------------------
def _gvp_apply(s, v3, wh, ws_s, ws_v, ws_b, wv, wsv_w, wsv_b, *,
               scalar_act, vector_act):
    """One GVP (vector_gate=True).  s: [R, si] f32; v3: [3R, vi] f32 with the
    x/y/z components stacked along rows.  Matmuls: bf16 operands, f32 acc."""
    R = s.shape[0]
    vh = jnp.dot(_bf(v3), wh, preferred_element_type=jnp.float32)        # [3R, h]
    vhx, vhy, vhz = vh[:R], vh[R:2 * R], vh[2 * R:]
    vn = jnp.sqrt(jnp.maximum(vhx * vhx + vhy * vhy + vhz * vhz, 1e-8))  # [R, h]
    s_pre = (jnp.dot(_bf(s), ws_s, preferred_element_type=jnp.float32)
             + jnp.dot(_bf(vn), ws_v, preferred_element_type=jnp.float32)
             + ws_b)                                                      # [R, so]
    vwv = jnp.dot(_bf(vh), wv, preferred_element_type=jnp.float32)       # [3R, vo]
    gate_in = jax.nn.sigmoid(s_pre) if vector_act else s_pre
    gate = jax.nn.sigmoid(
        jnp.dot(_bf(gate_in), wsv_w, preferred_element_type=jnp.float32) + wsv_b)
    v_out = vwv * jnp.concatenate([gate, gate, gate], axis=0)             # [3R, vo]
    s_out = jnp.maximum(s_pre, 0.0) if scalar_act else s_pre
    return s_out, v_out


def _run_gvp_chain(s, v3, w_refs):
    """Chain of GVPs; 7 weight refs per layer (wh, ws_s, ws_v, ws_b, wv,
    wsv_w, wsv_b).  Last layer has no activations (matches nn.Sequential)."""
    n_layers = len(w_refs) // 7
    for li in range(n_layers):
        wh, ws_s, ws_v, ws_b, wv, wsv_w, wsv_b = (
            w_refs[7 * li + k][...] for k in range(7))
        last = li == n_layers - 1
        s, v3 = _gvp_apply(s, v3, wh, ws_s, ws_v, ws_b, wv, wsv_w, wsv_b,
                           scalar_act=not last, vector_act=not last)
    return s, v3


def _residual_layernorm_store(s_in, ds, v_in, dv, gamma, beta,
                              s_out_ref, v_out_ref):
    """Residual add + GVP LayerNorm (scalar LN; vector RMS over channels)."""
    s = s_in + ds
    mu = jnp.mean(s, axis=-1, keepdims=True)
    var = jnp.mean((s - mu) * (s - mu), axis=-1, keepdims=True)
    s_out_ref[...] = (s - mu) * jax.lax.rsqrt(var + 1e-5) * gamma + beta
    v = [v_in[d] + dv[d] for d in range(3)]
    sq = jnp.maximum(v[0] * v[0] + v[1] * v[1] + v[2] * v[2], 1e-8)       # [R, nv]
    inv = jax.lax.rsqrt(jnp.mean(sq, axis=-1, keepdims=True))              # [R, 1]
    for d in range(3):
        v_out_ref[d] = v[d] * inv


# --------------------------------------------------------------------------
# Pallas kernels
# --------------------------------------------------------------------------
def _message_kernel(*refs):
    """Fused GVPConv message chain on one edge tile.  Emits one lane-dense
    packed slab [et, ns + 3*nv + 1] = [s | vx | vy | vz | ones] in bf16."""
    s_ref, v_ref = refs[0], refs[1]
    w_refs = refs[2:-1]
    out_ref = refs[-1]
    R = s_ref.shape[0]
    v3 = jnp.concatenate([v_ref[0], v_ref[1], v_ref[2]], axis=0)          # [3R, vi]
    s, v3 = _run_gvp_chain(s_ref[...], v3, w_refs)
    ones = jnp.ones((R, 1), jnp.float32)                                  # edge count
    packed = jnp.concatenate([s, v3[:R], v3[R:2 * R], v3[2 * R:], ones], axis=-1)
    out_ref[...] = packed.astype(out_ref.dtype)


def _aggr_norm_kernel(dst_ref, msg_ref, s_ref, v_ref, g_ref, b_ref,
                      s_out_ref, v_out_ref, acc_ref):
    """Mean-aggregate packed messages onto target nodes (one-hot built
    in-kernel, single bf16 matmul per block), fused residual + LayerNorm on
    the final edge step."""
    e_idx = pl.program_id(1)

    @pl.when(e_idx == 0)
    def _init():
        acc_ref[...] = jnp.zeros_like(acc_ref)

    nt = acc_ref.shape[0]
    node_ids = (pl.program_id(0) * nt
                + jax.lax.broadcasted_iota(jnp.int32, (nt, 1), 0))        # [nt, 1]
    onehot = (dst_ref[...] == node_ids)                                   # [nt, et]
    onehot = onehot.astype(jnp.float32).astype(jnp.bfloat16)
    acc_ref[...] += jnp.dot(onehot, msg_ref[...],
                            preferred_element_type=jnp.float32)

    @pl.when(e_idx == pl.num_programs(1) - 1)
    def _flush():
        ns = s_ref.shape[-1]
        nv = v_ref.shape[-1]
        acc = acc_ref[...]
        inv_cnt = 1.0 / jnp.maximum(acc[:, ns + 3 * nv:], 1.0)            # [nt, 1]
        ds = acc[:, :ns] * inv_cnt
        dv = [acc[:, ns + d * nv: ns + (d + 1) * nv] * inv_cnt for d in range(3)]
        v_in = [v_ref[d] for d in range(3)]
        _residual_layernorm_store(s_ref[...], ds, v_in, dv,
                                  g_ref[...], b_ref[...], s_out_ref, v_out_ref)


def _ff_norm_kernel(*refs):
    """Fused pointwise feedforward GVP chain + residual + LayerNorm."""
    s_ref, v_ref = refs[0], refs[1]
    w_refs = refs[2:-4]
    g_ref, b_ref, s_out_ref, v_out_ref = refs[-4:]
    R = s_ref.shape[0]
    s_in = s_ref[...]
    v_in = [v_ref[d] for d in range(3)]
    v3 = jnp.concatenate(v_in, axis=0)                                    # [3R, nv]
    ds, dv3 = _run_gvp_chain(s_in, v3, w_refs)
    dv = [dv3[d * R:(d + 1) * R] for d in range(3)]
    _residual_layernorm_store(s_in, ds, v_in, dv, g_ref[...], b_ref[...],
                              s_out_ref, v_out_ref)


# --------------------------------------------------------------------------
# Pallas-call wrappers
# --------------------------------------------------------------------------
def _run_message_conv(s_cat, v_cat, w_flat, edge_tile, ns_out, nv_out):
    E_pad = s_cat.shape[0]
    P = ns_out + 3 * nv_out + 1
    ge = E_pad // edge_tile
    in_specs = ([pl.BlockSpec((edge_tile, s_cat.shape[1]), lambda e: (e, 0)),
                 pl.BlockSpec((3, edge_tile, v_cat.shape[2]), lambda e: (0, e, 0))]
                + [_full_spec(w) for w in w_flat])
    out_specs = pl.BlockSpec((edge_tile, P), lambda e: (e, 0))
    out_shape = jax.ShapeDtypeStruct((E_pad, P), jnp.bfloat16)
    tile_bytes = (edge_tile * s_cat.shape[1] * 4
                  + 3 * edge_tile * v_cat.shape[2] * 4
                  + edge_tile * P * 2
                  + sum(w.size * w.dtype.itemsize for w in w_flat))
    return pl.pallas_call(
        _message_kernel, grid=(ge,), out_shape=out_shape,
        in_specs=in_specs, out_specs=out_specs,
        compiler_params=pltpu.CompilerParams(
            dimension_semantics=("parallel",),
            vmem_limit_bytes=_vmem_limit(tile_bytes)),
        cost_estimate=_cost_estimate(E_pad, w_flat, [s_cat, v_cat]),
    )(s_cat, v_cat, *w_flat)


def _run_aggregate_norm(dst_agg, msg, s_pad, v_pad, gamma, beta,
                        node_tile, edge_tile):
    N_pad, ns = s_pad.shape
    nv = v_pad.shape[2]
    E_pad, P = msg.shape
    gn, ge = N_pad // node_tile, E_pad // edge_tile
    in_specs = [
        pl.BlockSpec((1, edge_tile), lambda n, e: (0, e)),
        pl.BlockSpec((edge_tile, P), lambda n, e: (e, 0)),
        pl.BlockSpec((node_tile, ns), lambda n, e: (n, 0)),
        pl.BlockSpec((3, node_tile, nv), lambda n, e: (0, n, 0)),
        _full_spec(gamma), _full_spec(beta),
    ]
    out_specs = (pl.BlockSpec((node_tile, ns), lambda n, e: (n, 0)),
                 pl.BlockSpec((3, node_tile, nv), lambda n, e: (0, n, 0)))
    out_shape = (jax.ShapeDtypeStruct((N_pad, ns), jnp.float32),
                 jax.ShapeDtypeStruct((3, N_pad, nv), jnp.float32))
    scratch = [pltpu.VMEM((node_tile, P), jnp.float32)]
    tile_bytes = (edge_tile * 4 + edge_tile * P * 2
                  + 2 * node_tile * ns * 4 + 6 * node_tile * nv * 4
                  + node_tile * P * 4)
    bytes_acc = int(sum(a.size * a.dtype.itemsize
                        for a in (dst_agg, msg, s_pad, v_pad)))
    return pl.pallas_call(
        _aggr_norm_kernel, grid=(gn, ge), out_shape=out_shape,
        in_specs=in_specs, out_specs=out_specs, scratch_shapes=scratch,
        compiler_params=pltpu.CompilerParams(
            dimension_semantics=("parallel", "arbitrary"),
            vmem_limit_bytes=_vmem_limit(tile_bytes)),
        cost_estimate=pl.CostEstimate(flops=int(2 * N_pad * E_pad * P),
                                      transcendentals=0,
                                      bytes_accessed=bytes_acc),
    )(dst_agg, msg, s_pad, v_pad, gamma, beta)


def _run_ff_norm(s1, v1, w_flat, gamma, beta, node_tile):
    N_pad, ns = s1.shape
    nv = v1.shape[2]
    gn = N_pad // node_tile
    in_specs = ([pl.BlockSpec((node_tile, ns), lambda n: (n, 0)),
                 pl.BlockSpec((3, node_tile, nv), lambda n: (0, n, 0))]
                + [_full_spec(w) for w in w_flat]
                + [_full_spec(gamma), _full_spec(beta)])
    out_specs = (pl.BlockSpec((node_tile, ns), lambda n: (n, 0)),
                 pl.BlockSpec((3, node_tile, nv), lambda n: (0, n, 0)))
    out_shape = (jax.ShapeDtypeStruct((N_pad, ns), jnp.float32),
                 jax.ShapeDtypeStruct((3, N_pad, nv), jnp.float32))
    tile_bytes = (2 * node_tile * ns * 4 + 6 * node_tile * nv * 4
                  + sum(w.size * w.dtype.itemsize for w in w_flat))
    return pl.pallas_call(
        _ff_norm_kernel, grid=(gn,), out_shape=out_shape,
        in_specs=in_specs, out_specs=out_specs,
        compiler_params=pltpu.CompilerParams(
            dimension_semantics=("parallel",),
            vmem_limit_bytes=_vmem_limit(tile_bytes)),
        cost_estimate=_cost_estimate(N_pad, w_flat, [s1, v1]),
    )(s1, v1, *w_flat, gamma, beta)


# --------------------------------------------------------------------------
# Parameter initialization (deterministic, torch-Linear-style uniform)
# --------------------------------------------------------------------------
def _init_linear(key, in_dim, out_dim, bias=True):
    k1, k2 = jax.random.split(key)
    scale = 1.0 / jnp.sqrt(in_dim)
    w = jax.random.uniform(k1, (in_dim, out_dim), jnp.float32, -scale, scale)
    b = (jax.random.uniform(k2, (1, out_dim), jnp.float32, -scale, scale)
         if bias else None)
    return w, b


def _init_gvp(key, si, vi, so, vo):
    """GVP params; ws is split (weight side, zero runtime cost) into rows for
    the scalar input (ws_s) and rows for the vector norms (ws_v)."""
    h = max(vi, vo)
    k = jax.random.split(key, 4)
    wh, _ = _init_linear(k[0], vi, h, bias=False)      # Linear(vi, h, bias=False)
    wv, _ = _init_linear(k[1], h, vo, bias=False)      # Linear(h, vo, bias=False)
    ws_w, ws_b = _init_linear(k[2], si + h, so)        # Linear(si + h, so)
    wsv_w, wsv_b = _init_linear(k[3], so, vo)          # Linear(so, vo)
    return dict(wh=wh, ws_s=ws_w[:si], ws_v=ws_w[si:], ws_b=ws_b,
                wv=wv, wsv_w=wsv_w, wsv_b=wsv_b)


def init_gvp_conv_layer_params(key, node_dims, edge_dims, n_message, n_feedforward):
    ns, nv = node_dims
    es, ev = edge_dims
    keys = jax.random.split(key, n_message + n_feedforward)

    # message GVPs: (2ns+es, 2nv+ev) -> node_dims -> ... -> node_dims
    conv = [_init_gvp(keys[0], 2 * ns + es, 2 * nv + ev, ns, nv)]
    for i in range(1, n_message):
        conv.append(_init_gvp(keys[i], ns, nv, ns, nv))

    # feedforward GVPs
    ff = []
    if n_feedforward == 1:
        ff.append(_init_gvp(keys[n_message], ns, nv, ns, nv))
    else:
        hs, hv = 4 * ns, 2 * nv
        ff.append(_init_gvp(keys[n_message], ns, nv, hs, hv))
        for i in range(1, n_feedforward - 1):
            ff.append(_init_gvp(keys[n_message + i], hs, hv, hs, hv))
        ff.append(_init_gvp(keys[n_message + n_feedforward - 1], hs, hv, ns, nv))

    return dict(conv_gvps=conv, ff_gvps=ff,
                norm0_g=jnp.ones((1, ns), jnp.float32),
                norm0_b=jnp.zeros((1, ns), jnp.float32),
                norm1_g=jnp.ones((1, ns), jnp.float32),
                norm1_b=jnp.zeros((1, ns), jnp.float32))


def _flatten_gvp_chain(layers):
    """Flat, MXU-ready weight list (7 arrays per GVP).  Matmul weights are
    pre-cast to bf16 once here; biases stay f32 (added post-matmul in f32)."""
    flat = []
    for p in layers:
        flat.extend([_bf(p["wh"]), _bf(p["ws_s"]), _bf(p["ws_v"]), p["ws_b"],
                     _bf(p["wv"]), _bf(p["wsv_w"]), p["wsv_b"]])
    return flat


# --------------------------------------------------------------------------
# GVPConvLayer forward
# --------------------------------------------------------------------------
def gvp_conv_layer_forward(params, s, v, edge_index, edge_s, edge_v,
                           node_tile=1024, edge_tile=2048):
    N, ns = s.shape
    nv = v.shape[1]
    E = edge_index.shape[1]

    # sublane/lane-aligned tiles; keep >=2 node tiles when N allows so the
    # leading "parallel" node axis can split across v7x's two TensorCores.
    node_tile = max(8, min(node_tile, _round_up(N, 8)))
    if N <= node_tile and node_tile >= 16:
        node_tile = _round_up((node_tile + 1) // 2, 8)
    edge_tile = max(128, min(edge_tile, _round_up(E, 128)))
    N_pad = _round_up(N, node_tile)
    E_pad = _round_up(E, edge_tile)
    pad_n, pad_e = N_pad - N, E_pad - E

    src, dst = edge_index[0], edge_index[1]            # j (source), i (target)
    v3 = jnp.transpose(v, (2, 0, 1))                   # [3, N, nv] component-major
    ev3 = jnp.transpose(edge_v, (2, 0, 1))             # [3, E, ev]

    # pad edges: gather indices padded with 0 (valid row), scatter dst with -1
    src_p = jnp.pad(src, (0, pad_e))
    dst_p = jnp.pad(dst, (0, pad_e))
    dst_agg = jnp.pad(dst, (0, pad_e), constant_values=-1)
    dst_agg = dst_agg.astype(jnp.int32).reshape(1, E_pad)

    # TODO(synk): the neighbour gather + concat stays in XLA (fuses into one
    # gather); moving it into the message kernel needs scalar-prefetched
    # edge_index with pl.Element / manual-DMA row gathers.
    s_cat = jnp.concatenate(
        [jnp.take(s, src_p, axis=0),
         jnp.pad(edge_s, ((0, pad_e), (0, 0))),
         jnp.take(s, dst_p, axis=0)], axis=-1)                      # [E_pad, 2ns+es]
    v_cat = jnp.concatenate(
        [jnp.take(v3, src_p, axis=1),
         jnp.pad(ev3, ((0, 0), (0, pad_e), (0, 0))),
         jnp.take(v3, dst_p, axis=1)], axis=-1)                     # [3, E_pad, 2nv+ev]

    # --- fused GVPConv message chain (edge-tiled, packed bf16 output) ---
    conv_flat = _flatten_gvp_chain(params["conv_gvps"])
    msg = _run_message_conv(s_cat, v_cat, conv_flat, edge_tile, ns, nv)

    # --- fused mean-aggregation + residual + LayerNorm 0 ---
    # TODO(synk): for very large graphs, sort edges by dst and scalar-prefetch
    # per-node-tile edge ranges so each node tile only streams its own edge
    # blocks instead of the dense (node_tile x edge_tile) sweep.
    s_pad = jnp.pad(s, ((0, pad_n), (0, 0)))
    v_pad = jnp.pad(v3, ((0, 0), (0, pad_n), (0, 0)))
    s1, v1 = _run_aggregate_norm(dst_agg, msg, s_pad, v_pad,
                                 params["norm0_g"], params["norm0_b"],
                                 node_tile, edge_tile)

    # --- fused feedforward GVP chain + residual + LayerNorm 1 ---
    ff_flat = _flatten_gvp_chain(params["ff_gvps"])
    s2, v2 = _run_ff_norm(s1, v1, ff_flat,
                          params["norm1_g"], params["norm1_b"], node_tile)

    out_s = s2[:N]
    out_v = jnp.transpose(v2[:, :N, :], (1, 2, 0))     # back to [N, nv, 3]
    return out_s, out_v


# --------------------------------------------------------------------------
# Plain-JAX reference (same math; matmul operands cast to bf16 with f32
# accumulation to mirror the kernel's MXU numerics -> tight tolerance check)
# --------------------------------------------------------------------------
def _reference_forward(params, s, v, edge_index, edge_s, edge_v):
    def mm(a, b):
        return jnp.dot(a.astype(jnp.bfloat16), b.astype(jnp.bfloat16),
                       preferred_element_type=jnp.float32)

    src, dst = edge_index[0], edge_index[1]
    N = s.shape[0]

    def gvp(p, s_in, v_in, scalar_act, vector_act):
        vT = jnp.swapaxes(v_in, -1, -2)                       # [R, 3, vi]
        vh = mm(vT, p["wh"])                                  # [R, 3, h]
        vn = jnp.sqrt(jnp.maximum(jnp.sum(vh * vh, axis=-2), 1e-8))
        s_pre = mm(s_in, p["ws_s"]) + mm(vn, p["ws_v"]) + p["ws_b"]
        vwv = mm(vh, p["wv"])                                 # [R, 3, vo]
        gate_in = jax.nn.sigmoid(s_pre) if vector_act else s_pre
        gate = jax.nn.sigmoid(mm(gate_in, p["wsv_w"]) + p["wsv_b"])
        v_out = jnp.swapaxes(vwv, -1, -2) * gate[..., None]
        s_out = jnp.maximum(s_pre, 0.0) if scalar_act else s_pre
        return s_out, v_out

    def chain(layers, s_in, v_in):
        nl = len(layers)
        for i, p in enumerate(layers):
            last = i == nl - 1
            s_in, v_in = gvp(p, s_in, v_in, not last, not last)
        return s_in, v_in

    def norm(s_in, v_in, g, b):
        mu = jnp.mean(s_in, -1, keepdims=True)
        var = jnp.mean((s_in - mu) ** 2, -1, keepdims=True)
        s_o = (s_in - mu) * jax.lax.rsqrt(var + 1e-5) * g + b
        vn2 = jnp.maximum(jnp.sum(v_in * v_in, axis=-1), 1e-8)
        vnorm = jnp.sqrt(jnp.mean(vn2, axis=-1, keepdims=True))
        return s_o, v_in / vnorm[..., None]

    s_msg = jnp.concatenate([s[src], edge_s, s[dst]], axis=-1)
    v_msg = jnp.concatenate([v[src], edge_v, v[dst]], axis=1)
    ms, mv = chain(params["conv_gvps"], s_msg, v_msg)
    # mirror the bf16 packed-message intermediate between the two kernels
    ms = ms.astype(jnp.bfloat16).astype(jnp.float32)
    mv = mv.astype(jnp.bfloat16).astype(jnp.float32)

    cnt = jnp.zeros((N,), jnp.float32).at[dst].add(1.0)
    cnt = jnp.maximum(cnt, 1.0)
    agg_s = jnp.zeros((N, ms.shape[1]), jnp.float32).at[dst].add(ms) / cnt[:, None]
    agg_v = (jnp.zeros((N,) + mv.shape[1:], jnp.float32).at[dst].add(mv)
             / cnt[:, None, None])

    s1, v1 = norm(s + agg_s, v + agg_v, params["norm0_g"], params["norm0_b"])
    fs, fv = chain(params["ff_gvps"], s1, v1)
    return norm(s1 + fs, v1 + fv, params["norm1_g"], params["norm1_b"])


# --------------------------------------------------------------------------
if __name__ == "__main__":
    key = jax.random.PRNGKey(0)
    N, E = 8, 16
    ns, nv = 16, 4        # node dims (scalar, vector)
    es, ev = 8, 2         # edge dims (scalar, vector)
    n_message, n_feedforward = 3, 2

    keys = jax.random.split(key, 7)
    s = jax.random.normal(keys[0], (N, ns), jnp.float32)
    v = jax.random.normal(keys[1], (N, nv, 3), jnp.float32)
    edge_s = jax.random.normal(keys[2], (E, es), jnp.float32)
    edge_v = jax.random.normal(keys[3], (E, ev, 3), jnp.float32)
    src = jax.random.randint(keys[4], (E,), 0, N)
    dst = jax.random.randint(keys[5], (E,), 0, N)
    edge_index = jnp.stack([src, dst]).astype(jnp.int32)

    params = init_gvp_conv_layer_params(keys[6], (ns, nv), (es, ev),
                                        n_message, n_feedforward)

    fwd = jax.jit(gvp_conv_layer_forward)
    out_s, out_v = fwd(params, s, v, edge_index, edge_s, edge_v)
    jax.block_until_ready((out_s, out_v))

    assert out_s.shape == (N, ns) and out_v.shape == (N, nv, 3)
    assert bool(jnp.all(jnp.isfinite(out_s))) and bool(jnp.all(jnp.isfinite(out_v)))

    ref_s, ref_v = _reference_forward(params, s, v, edge_index, edge_s, edge_v)
    # tolerance covers bf16-MXU rounding (reference mirrors the operand casts)
    assert float(jnp.max(jnp.abs(out_s - ref_s))) < 2e-2
    assert float(jnp.max(jnp.abs(out_v - ref_v))) < 2e-2

    print("KERNEL_OK")
</pallas_src>

<mosaic_0001>
module attributes {stable_mosaic.version = 11 : i64} {
  func.func @_message_kernel(%arg0: i32, %arg1: memref<128x40xf32, #tpu.memory_space<vmem>>, %arg2: memref<3x128x10xf32, #tpu.memory_space<vmem>>, %arg3: memref<10x10xbf16, #tpu.memory_space<vmem>>, %arg4: memref<40x16xbf16, #tpu.memory_space<vmem>>, %arg5: memref<10x16xbf16, #tpu.memory_space<vmem>>, %arg6: memref<1x16xf32, #tpu.memory_space<vmem>>, %arg7: memref<10x4xbf16, #tpu.memory_space<vmem>>, %arg8: memref<16x4xbf16, #tpu.memory_space<vmem>>, %arg9: memref<1x4xf32, #tpu.memory_space<vmem>>, %arg10: memref<4x4xbf16, #tpu.memory_space<vmem>>, %arg11: memref<16x16xbf16, #tpu.memory_space<vmem>>, %arg12: memref<4x16xbf16, #tpu.memory_space<vmem>>, %arg13: memref<1x16xf32, #tpu.memory_space<vmem>>, %arg14: memref<4x4xbf16, #tpu.memory_space<vmem>>, %arg15: memref<16x4xbf16, #tpu.memory_space<vmem>>, %arg16: memref<1x4xf32, #tpu.memory_space<vmem>>, %arg17: memref<4x4xbf16, #tpu.memory_space<vmem>>, %arg18: memref<16x16xbf16, #tpu.memory_space<vmem>>, %arg19: memref<4x16xbf16, #tpu.memory_space<vmem>>, %arg20: memref<1x16xf32, #tpu.memory_space<vmem>>, %arg21: memref<4x4xbf16, #tpu.memory_space<vmem>>, %arg22: memref<16x4xbf16, #tpu.memory_space<vmem>>, %arg23: memref<1x4xf32, #tpu.memory_space<vmem>>, %arg24: memref<128x29xbf16, #tpu.memory_space<vmem>>) attributes {dimension_semantics = [#tpu.dimension_semantics<parallel>], iteration_bounds = array<i64: 1>, scalar_prefetch = 0 : i64, scratch_operands = 0 : i64, tpu.core_type = #tpu.core_type<tc>, window_params = [{transform_indices = @transform_0, window_bounds = array<i64: 128, 40>}, {transform_indices = @transform_1, window_bounds = array<i64: 3, 128, 10>}, {pipeline_mode = #tpu.pipeline_mode<synchronous>, transform_indices = @transform_2, window_bounds = array<i64: 10, 10>}, {pipeline_mode = #tpu.pipeline_mode<synchronous>, transform_indices = @transform_3, window_bounds = array<i64: 40, 16>}, {pipeline_mode = #tpu.pipeline_mode<synchronous>, transform_indices = @transform_4, window_bounds = array<i64: 10, 16>}, {pipeline_mode = #tpu.pipeline_mode<synchronous>, transform_indices = @transform_5, window_bounds = array<i64: 1, 16>}, {pipeline_mode = #tpu.pipeline_mode<synchronous>, transform_indices = @transform_6, window_bounds = array<i64: 10, 4>}, {pipeline_mode = #tpu.pipeline_mode<synchronous>, transform_indices = @transform_7, window_bounds = array<i64: 16, 4>}, {pipeline_mode = #tpu.pipeline_mode<synchronous>, transform_indices = @transform_8, window_bounds = array<i64: 1, 4>}, {pipeline_mode = #tpu.pipeline_mode<synchronous>, transform_indices = @transform_9, window_bounds = array<i64: 4, 4>}, {pipeline_mode = #tpu.pipeline_mode<synchronous>, transform_indices = @transform_10, window_bounds = array<i64: 16, 16>}, {pipeline_mode = #tpu.pipeline_mode<synchronous>, transform_indices = @transform_11, window_bounds = array<i64: 4, 16>}, {pipeline_mode = #tpu.pipeline_mode<synchronous>, transform_indices = @transform_12, window_bounds = array<i64: 1, 16>}, {pipeline_mode = #tpu.pipeline_mode<synchronous>, transform_indices = @transform_13, window_bounds = array<i64: 4, 4>}, {pipeline_mode = #tpu.pipeline_mode<synchronous>, transform_indices = @transform_14, window_bounds = array<i64: 16, 4>}, {pipeline_mode = #tpu.pipeline_mode<synchronous>, transform_indices = @transform_15, window_bounds = array<i64: 1, 4>}, {pipeline_mode = #tpu.pipeline_mode<synchronous>, transform_indices = @transform_16, window_bounds = array<i64: 4, 4>}, {pipeline_mode = #tpu.pipeline_mode<synchronous>, transform_indices = @transform_17, window_bounds = array<i64: 16, 16>}, {pipeline_mode = #tpu.pipeline_mode<synchronous>, transform_indices = @transform_18, window_bounds = array<i64: 4, 16>}, {pipeline_mode = #tpu.pipeline_mode<synchronous>, transform_indices = @transform_19, window_bounds = array<i64: 1, 16>}, {pipeline_mode = #tpu.pipeline_mode<synchronous>, transform_indices = @transform_20, window_bounds = array<i64: 4, 4>}, {pipeline_mode = #tpu.pipeline_mode<synchronous>, transform_indices = @transform_21, window_bounds = array<i64: 16, 4>}, {pipeline_mode = #tpu.pipeline_mode<synchronous>, transform_indices = @transform_22, window_bounds = array<i64: 1, 4>}, {transform_indices = @transform_23, window_bounds = array<i64: 128, 29>}]} {
    %c0 = arith.constant 0 : index
    %c0_0 = arith.constant 0 : index
    %c0_1 = arith.constant 0 : index
    %0 = vector.load %arg2[%c0, %c0_0, %c0_1] : memref<3x128x10xf32, #tpu.memory_space<vmem>>, vector<1x128x10xf32>
    %1 = vector.shape_cast %0 : vector<1x128x10xf32> to vector<128x10xf32>
    %c1 = arith.constant 1 : index
    %c0_2 = arith.constant 0 : index
    %c0_3 = arith.constant 0 : index
    %2 = vector.load %arg2[%c1, %c0_2, %c0_3] : memref<3x128x10xf32, #tpu.memory_space<vmem>>, vector<1x128x10xf32>
    %3 = vector.shape_cast %2 : vector<1x128x10xf32> to vector<128x10xf32>
    %c2 = arith.constant 2 : index
    %c0_4 = arith.constant 0 : index
    %c0_5 = arith.constant 0 : index
    %4 = vector.load %arg2[%c2, %c0_4, %c0_5] : memref<3x128x10xf32, #tpu.memory_space<vmem>>, vector<1x128x10xf32>
    %5 = vector.shape_cast %4 : vector<1x128x10xf32> to vector<128x10xf32>
    %6 = tpu.concatenate %1, %3, %5 in 0 : vector<128x10xf32>, vector<128x10xf32>, vector<128x10xf32> -> vector<384x10xf32>
    %c0_6 = arith.constant 0 : index
    %c0_7 = arith.constant 0 : index
    %7 = vector.load %arg1[%c0_6, %c0_7] : memref<128x40xf32, #tpu.memory_space<vmem>>, vector<128x40xf32>
    %c0_8 = arith.constant 0 : index
    %c0_9 = arith.constant 0 : index
    %8 = vector.load %arg3[%c0_8, %c0_9] : memref<10x10xbf16, #tpu.memory_space<vmem>>, vector<10x10xbf16>
    %c0_10 = arith.constant 0 : index
    %c0_11 = arith.constant 0 : index
    %9 = vector.load %arg4[%c0_10, %c0_11] : memref<40x16xbf16, #tpu.memory_space<vmem>>, vector<40x16xbf16>
    %c0_12 = arith.constant 0 : index
    %c0_13 = arith.constant 0 : index
    %10 = vector.load %arg5[%c0_12, %c0_13] : memref<10x16xbf16, #tpu.memory_space<vmem>>, vector<10x16xbf16>
    %c0_14 = arith.constant 0 : index
    %c0_15 = arith.constant 0 : index
    %11 = vector.load %arg6[%c0_14, %c0_15] : memref<1x16xf32, #tpu.memory_space<vmem>>, vector<1x16xf32>
    %c0_16 = arith.constant 0 : index
    %c0_17 = arith.constant 0 : index
    %12 = vector.load %arg7[%c0_16, %c0_17] : memref<10x4xbf16, #tpu.memory_space<vmem>>, vector<10x4xbf16>
    %c0_18 = arith.constant 0 : index
    %c0_19 = arith.constant 0 : index
    %13 = vector.load %arg8[%c0_18, %c0_19] : memref<16x4xbf16, #tpu.memory_space<vmem>>, vector<16x4xbf16>
    %c0_20 = arith.constant 0 : index
    %c0_21 = arith.constant 0 : index
    %14 = vector.load %arg9[%c0_20, %c0_21] : memref<1x4xf32, #tpu.memory_space<vmem>>, vector<1x4xf32>
    %15 = arith.truncf %6 : vector<384x10xf32> to vector<384x10xbf16>
    %cst = arith.constant dense<0.000000e+00> : vector<384x10xf32>
    %16 = tpu.matmul %15, %8, %cst {dimension_numbers = #tpu.dot_dimension_numbers<[1], [0], [0], [1], [0, 0, 1, 1], [], []>} : vector<384x10xbf16>, vector<10x10xbf16>, vector<384x10xf32> -> vector<384x10xf32>
    %17 = vector.extract_strided_slice %16 {offsets = [0, 0], sizes = [128, 10], strides = [1, 1]} : vector<384x10xf32> to vector<128x10xf32>
    %18 = vector.extract_strided_slice %16 {offsets = [128, 0], sizes = [128, 10], strides = [1, 1]} : vector<384x10xf32> to vector<128x10xf32>
    %19 = vector.extract_strided_slice %16 {offsets = [256, 0], sizes = [128, 10], strides = [1, 1]} : vector<384x10xf32> to vector<128x10xf32>
    %20 = arith.mulf %17, %17 : vector<128x10xf32>
    %21 = arith.mulf %18, %18 : vector<128x10xf32>
    %22 = arith.addf %20, %21 : vector<128x10xf32>
    %23 = arith.mulf %19, %19 : vector<128x10xf32>
    %24 = arith.addf %22, %23 : vector<128x10xf32>
    %cst_22 = arith.constant 9.99999993E-9 : f32
    %25 = vector.broadcast %cst_22 : f32 to vector<128x10xf32>
    %26 = arith.maximumf %24, %25 : vector<128x10xf32>
    %27 = math.sqrt %26 : vector<128x10xf32>
    %28 = arith.truncf %7 : vector<128x40xf32> to vector<128x40xbf16>
    %cst_23 = arith.constant dense<0.000000e+00> : vector<128x16xf32>
    %29 = tpu.matmul %28, %9, %cst_23 {dimension_numbers = #tpu.dot_dimension_numbers<[1], [0], [0], [1], [0, 0, 1, 1], [], []>} : vector<128x40xbf16>, vector<40x16xbf16>, vector<128x16xf32> -> vector<128x16xf32>
    %30 = arith.truncf %27 : vector<128x10xf32> to vector<128x10xbf16>
    %cst_24 = arith.constant dense<0.000000e+00> : vector<128x16xf32>
    %31 = tpu.matmul %30, %10, %cst_24 {dimension_numbers = #tpu.dot_dimension_numbers<[1], [0], [0], [1], [0, 0, 1, 1], [], []>} : vector<128x10xbf16>, vector<10x16xbf16>, vector<128x16xf32> -> vector<128x16xf32>
    %32 = arith.addf %29, %31 : vector<128x16xf32>
    %33 = vector.broadcast %11 : vector<1x16xf32> to vector<128x16xf32>
    %34 = arith.addf %32, %33 : vector<128x16xf32>
    %35 = arith.truncf %16 : vector<384x10xf32> to vector<384x10xbf16>
    %cst_25 = arith.constant dense<0.000000e+00> : vector<384x4xf32>
    %36 = tpu.matmul %35, %12, %cst_25 {dimension_numbers = #tpu.dot_dimension_numbers<[1], [0], [0], [1], [0, 0, 1, 1], [], []>} : vector<384x10xbf16>, vector<10x4xbf16>, vector<384x4xf32> -> vector<384x4xf32>
    %37 = arith.negf %34 : vector<128x16xf32>
    %38 = math.exp %37 : vector<128x16xf32>
    %cst_26 = arith.constant 1.000000e+00 : f32
    %39 = vector.broadcast %cst_26 : f32 to vector<128x16xf32>
    %40 = arith.addf %39, %38 : vector<128x16xf32>
    %41 = arith.divf %39, %40 : vector<128x16xf32>
    %42 = arith.truncf %41 : vector<128x16xf32> to vector<128x16xbf16>
    %cst_27 = arith.constant dense<0.000000e+00> : vector<128x4xf32>
    %43 = tpu.matmul %42, %13, %cst_27 {dimension_numbers = #tpu.dot_dimension_numbers<[1], [0], [0], [1], [0, 0, 1, 1], [], []>} : vector<128x16xbf16>, vector<16x4xbf16>, vector<128x4xf32> -> vector<128x4xf32>
    %44 = vector.broadcast %14 : vector<1x4xf32> to vector<128x4xf32>
    %45 = arith.addf %43, %44 : vector<128x4xf32>
    %46 = arith.negf %45 : vector<128x4xf32>
    %47 = math.exp %46 : vector<128x4xf32>
    %cst_28 = arith.constant 1.000000e+00 : f32
    %48 = vector.broadcast %cst_28 : f32 to vector<128x4xf32>
    %49 = arith.addf %48, %47 : vector<128x4xf32>
    %50 = arith.divf %48, %49 : vector<128x4xf32>
    %51 = tpu.concatenate %50, %50, %50 in 0 : vector<128x4xf32>, vector<128x4xf32>, vector<128x4xf32> -> vector<384x4xf32>
    %52 = arith.mulf %36, %51 : vector<384x4xf32>
    %cst_29 = arith.constant 0.000000e+00 : f32
    %53 = vector.broadcast %cst_29 : f32 to vector<128x16xf32>
    %54 = arith.maximumf %34, %53 : vector<128x16xf32>
    %c0_30 = arith.constant 0 : index
    %c0_31 = arith.constant 0 : index
    %55 = vector.load %arg10[%c0_30, %c0_31] : memref<4x4xbf16, #tpu.memory_space<vmem>>, vector<4x4xbf16>
    %c0_32 = arith.constant 0 : index
    %c0_33 = arith.constant 0 : index
    %56 = vector.load %arg11[%c0_32, %c0_33] : memref<16x16xbf16, #tpu.memory_space<vmem>>, vector<16x16xbf16>
    %c0_34 = arith.constant 0 : index
    %c0_35 = arith.constant 0 : index
    %57 = vector.load %arg12[%c0_34, %c0_35] : memref<4x16xbf16, #tpu.memory_space<vmem>>, vector<4x16xbf16>
    %c0_36 = arith.constant 0 : index
    %c0_37 = arith.constant 0 : index
    %58 = vector.load %arg13[%c0_36, %c0_37] : memref<1x16xf32, #tpu.memory_space<vmem>>, vector<1x16xf32>
    %c0_38 = arith.constant 0 : index
    %c0_39 = arith.constant 0 : index
    %59 = vector.load %arg14[%c0_38, %c0_39] : memref<4x4xbf16, #tpu.memory_space<vmem>>, vector<4x4xbf16>
    %c0_40 = arith.constant 0 : index
    %c0_41 = arith.constant 0 : index
    %60 = vector.load %arg15[%c0_40, %c0_41] : memref<16x4xbf16, #tpu.memory_space<vmem>>, vector<16x4xbf16>
    %c0_42 = arith.constant 0 : index
    %c0_43 = arith.constant 0 : index
    %61 = vector.load %arg16[%c0_42, %c0_43] : memref<1x4xf32, #tpu.memory_space<vmem>>, vector<1x4xf32>
    %62 = arith.truncf %52 : vector<384x4xf32> to vector<384x4xbf16>
    %cst_44 = arith.constant dense<0.000000e+00> : vector<384x4xf32>
    %63 = tpu.matmul %62, %55, %cst_44 {dimension_numbers = #tpu.dot_dimension_numbers<[1], [0], [0], [1], [0, 0, 1, 1], [], []>} : vector<384x4xbf16>, vector<4x4xbf16>, vector<384x4xf32> -> vector<384x4xf32>
    %64 = vector.extract_strided_slice %63 {offsets = [0, 0], sizes = [128, 4], strides = [1, 1]} : vector<384x4xf32> to vector<128x4xf32>
    %65 = vector.extract_strided_slice %63 {offsets = [128, 0], sizes = [128, 4], strides = [1, 1]} : vector<384x4xf32> to vector<128x4xf32>
    %66 = vector.extract_strided_slice %63 {offsets = [256, 0], sizes = [128, 4], strides = [1, 1]} : vector<384x4xf32> to vector<128x4xf32>
    %67 = arith.mulf %64, %64 : vector<128x4xf32>
    %68 = arith.mulf %65, %65 : vector<128x4xf32>
    %69 = arith.addf %67, %68 : vector<128x4xf32>
    %70 = arith.mulf %66, %66 : vector<128x4xf32>
    %71 = arith.addf %69, %70 : vector<128x4xf32>
    %cst_45 = arith.constant 9.99999993E-9 : f32
    %72 = vector.broadcast %cst_45 : f32 to vector<128x4xf32>
    %73 = arith.maximumf %71, %72 : vector<128x4xf32>
    %74 = math.sqrt %73 : vector<128x4xf32>
    %75 = arith.truncf %54 : vector<128x16xf32> to vector<128x16xbf16>
    %cst_46 = arith.constant dense<0.000000e+00> : vector<128x16xf32>
    %76 = tpu.matmul %75, %56, %cst_46 {dimension_numbers = #tpu.dot_dimension_numbers<[1], [0], [0], [1], [0, 0, 1, 1], [], []>} : vector<128x16xbf16>, vector<16x16xbf16>, vector<128x16xf32> -> vector<128x16xf32>
    %77 = arith.truncf %74 : vector<128x4xf32> to vector<128x4xbf16>
    %cst_47 = arith.constant dense<0.000000e+00> : vector<128x16xf32>
    %78 = tpu.matmul %77, %57, %cst_47 {dimension_numbers = #tpu.dot_dimension_numbers<[1], [0], [0], [1], [0, 0, 1, 1], [], []>} : vector<128x4xbf16>, vector<4x16xbf16>, vector<128x16xf32> -> vector<128x16xf32>
    %79 = arith.addf %76, %78 : vector<128x16xf32>
    %80 = vector.broadcast %58 : vector<1x16xf32> to vector<128x16xf32>
    %81 = arith.addf %79, %80 : vector<128x16xf32>
    %82 = arith.truncf %63 : vector<384x4xf32> to vector<384x4xbf16>
    %cst_48 = arith.constant dense<0.000000e+00> : vector<384x4xf32>
    %83 = tpu.matmul %82, %59, %cst_48 {dimension_numbers = #tpu.dot_dimension_numbers<[1], [0], [0], [1], [0, 0, 1, 1], [], []>} : vector<384x4xbf16>, vector<4x4xbf16>, vector<384x4xf32> -> vector<384x4xf32>
    %84 = arith.negf %81 : vector<128x16xf32>
    %85 = math.exp %84 : vector<128x16xf32>
    %cst_49 = arith.constant 1.000000e+00 : f32
    %86 = vector.broadcast %cst_49 : f32 to vector<128x16xf32>
    %87 = arith.addf %86, %85 : vector<128x16xf32>
    %88 = arith.divf %86, %87 : vector<128x16xf32>
    %89 = arith.truncf %88 : vector<128x16xf32> to vector<128x16xbf16>
    %cst_50 = arith.constant dense<0.000000e+00> : vector<128x4xf32>
    %90 = tpu.matmul %89, %60, %cst_50 {dimension_numbers = #tpu.dot_dimension_numbers<[1], [0], [0], [1], [0, 0, 1, 1], [], []>} : vector<128x16xbf16>, vector<16x4xbf16>, vector<128x4xf32> -> vector<128x4xf32>
    %91 = vector.broadcast %61 : vector<1x4xf32> to vector<128x4xf32>
    %92 = arith.addf %90, %91 : vector<128x4xf32>
    %93 = arith.negf %92 : vector<128x4xf32>
    %94 = math.exp %93 : vector<128x4xf32>
    %cst_51 = arith.constant 1.000000e+00 : f32
    %95 = vector.broadcast %cst_51 : f32 to vector<128x4xf32>
    %96 = arith.addf %95, %94 : vector<128x4xf32>
    %97 = arith.divf %95, %96 : vector<128x4xf32>
    %98 = tpu.concatenate %97, %97, %97 in 0 : vector<128x4xf32>, vector<128x4xf32>, vector<128x4xf32> -> vector<384x4xf32>
    %99 = arith.mulf %83, %98 : vector<384x4xf32>
    %cst_52 = arith.constant 0.000000e+00 : f32
    %100 = vector.broadcast %cst_52 : f32 to vector<128x16xf32>
    %101 = arith.maximumf %81, %100 : vector<128x16xf32>
    %c0_53 = arith.constant 0 : index
    %c0_54 = arith.constant 0 : index
    %102 = vector.load %arg17[%c0_53, %c0_54] : memref<4x4xbf16, #tpu.memory_space<vmem>>, vector<4x4xbf16>
    %c0_55 = arith.constant 0 : index
    %c0_56 = arith.constant 0 : index
    %103 = vector.load %arg18[%c0_55, %c0_56] : memref<16x16xbf16, #tpu.memory_space<vmem>>, vector<16x16xbf16>
    %c0_57 = arith.constant 0 : index
    %c0_58 = arith.constant 0 : index
    %104 = vector.load %arg19[%c0_57, %c0_58] : memref<4x16xbf16, #tpu.memory_space<vmem>>, vector<4x16xbf16>
    %c0_59 = arith.constant 0 : index
    %c0_60 = arith.constant 0 : index
    %105 = vector.load %arg20[%c0_59, %c0_60] : memref<1x16xf32, #tpu.memory_space<vmem>>, vector<1x16xf32>
    %c0_61 = arith.constant 0 : index
    %c0_62 = arith.constant 0 : index
    %106 = vector.load %arg21[%c0_61, %c0_62] : memref<4x4xbf16, #tpu.memory_space<vmem>>, vector<4x4xbf16>
    %c0_63 = arith.constant 0 : index
    %c0_64 = arith.constant 0 : index
    %107 = vector.load %arg22[%c0_63, %c0_64] : memref<16x4xbf16, #tpu.memory_space<vmem>>, vector<16x4xbf16>
    %c0_65 = arith.constant 0 : index
    %c0_66 = arith.constant 0 : index
    %108 = vector.load %arg23[%c0_65, %c0_66] : memref<1x4xf32, #tpu.memory_space<vmem>>, vector<1x4xf32>
    %109 = arith.truncf %99 : vector<384x4xf32> to vector<384x4xbf16>
    %cst_67 = arith.constant dense<0.000000e+00> : vector<384x4xf32>
    %110 = tpu.matmul %109, %102, %cst_67 {dimension_numbers = #tpu.dot_dimension_numbers<[1], [0], [0], [1], [0, 0, 1, 1], [], []>} : vector<384x4xbf16>, vector<4x4xbf16>, vector<384x4xf32> -> vector<384x4xf32>
    %111 = vector.extract_strided_slice %110 {offsets = [0, 0], sizes = [128, 4], strides = [1, 1]} : vector<384x4xf32> to vector<128x4xf32>
    %112 = vector.extract_strided_slice %110 {offsets = [128, 0], sizes = [128, 4], strides = [1, 1]} : vector<384x4xf32> to vector<128x4xf32>
    %113 = vector.extract_strided_slice %110 {offsets = [256, 0], sizes = [128, 4], strides = [1, 1]} : vector<384x4xf32> to vector<128x4xf32>
    %114 = arith.mulf %111, %111 : vector<128x4xf32>
    %115 = arith.mulf %112, %112 : vector<128x4xf32>
    %116 = arith.addf %114, %115 : vector<128x4xf32>
    %117 = arith.mulf %113, %113 : vector<128x4xf32>
    %118 = arith.addf %116, %117 : vector<128x4xf32>
    %cst_68 = arith.constant 9.99999993E-9 : f32
    %119 = vector.broadcast %cst_68 : f32 to vector<128x4xf32>
    %120 = arith.maximumf %118, %119 : vector<128x4xf32>
    %121 = math.sqrt %120 : vector<128x4xf32>
    %122 = arith.truncf %101 : vector<128x16xf32> to vector<128x16xbf16>
    %cst_69 = arith.constant dense<0.000000e+00> : vector<128x16xf32>
    %123 = tpu.matmul %122, %103, %cst_69 {dimension_numbers = #tpu.dot_dimension_numbers<[1], [0], [0], [1], [0, 0, 1, 1], [], []>} : vector<128x16xbf16>, vector<16x16xbf16>, vector<128x16xf32> -> vector<128x16xf32>
    %124 = arith.truncf %121 : vector<128x4xf32> to vector<128x4xbf16>
    %cst_70 = arith.constant dense<0.000000e+00> : vector<128x16xf32>
    %125 = tpu.matmul %124, %104, %cst_70 {dimension_numbers = #tpu.dot_dimension_numbers<[1], [0], [0], [1], [0, 0, 1, 1], [], []>} : vector<128x4xbf16>, vector<4x16xbf16>, vector<128x16xf32> -> vector<128x16xf32>
    %126 = arith.addf %123, %125 : vector<128x16xf32>
    %127 = vector.broadcast %105 : vector<1x16xf32> to vector<128x16xf32>
    %128 = arith.addf %126, %127 : vector<128x16xf32>
    %129 = arith.truncf %110 : vector<384x4xf32> to vector<384x4xbf16>
    %cst_71 = arith.constant dense<0.000000e+00> : vector<384x4xf32>
    %130 = tpu.matmul %129, %106, %cst_71 {dimension_numbers = #tpu.dot_dimension_numbers<[1], [0], [0], [1], [0, 0, 1, 1], [], []>} : vector<384x4xbf16>, vector<4x4xbf16>, vector<384x4xf32> -> vector<384x4xf32>
    %131 = arith.truncf %128 : vector<128x16xf32> to vector<128x16xbf16>
    %cst_72 = arith.constant dense<0.000000e+00> : vector<128x4xf32>
    %132 = tpu.matmul %131, %107, %cst_72 {dimension_numbers = #tpu.dot_dimension_numbers<[1], [0], [0], [1], [0, 0, 1, 1], [], []>} : vector<128x16xbf16>, vector<16x4xbf16>, vector<128x4xf32> -> vector<128x4xf32>
    %133 = vector.broadcast %108 : vector<1x4xf32> to vector<128x4xf32>
    %134 = arith.addf %132, %133 : vector<128x4xf32>
    %135 = arith.negf %134 : vector<128x4xf32>
    %136 = math.exp %135 : vector<128x4xf32>
    %cst_73 = arith.constant 1.000000e+00 : f32
    %137 = vector.broadcast %cst_73 : f32 to vector<128x4xf32>
    %138 = arith.addf %137, %136 : vector<128x4xf32>
    %139 = arith.divf %137, %138 : vector<128x4xf32>
    %140 = tpu.concatenate %139, %139, %139 in 0 : vector<128x4xf32>, vector<128x4xf32>, vector<128x4xf32> -> vector<384x4xf32>
    %141 = arith.mulf %130, %140 : vector<384x4xf32>
    %cst_74 = arith.constant 1.000000e+00 : f32
    %142 = vector.broadcast %cst_74 : f32 to vector<128x1xf32>
    %143 = vector.extract_strided_slice %141 {offsets = [0, 0], sizes = [128, 4], strides = [1, 1]} : vector<384x4xf32> to vector<128x4xf32>
    %144 = vector.extract_strided_slice %141 {offsets = [128, 0], sizes = [128, 4], strides = [1, 1]} : vector<384x4xf32> to vector<128x4xf32>
    %145 = vector.extract_strided_slice %141 {offsets = [256, 0], sizes = [128, 4], strides = [1, 1]} : vector<384x4xf32> to vector<128x4xf32>
    %146 = tpu.concatenate %128, %143, %144, %145, %142 in 1 : vector<128x16xf32>, vector<128x4xf32>, vector<128x4xf32>, vector<128x4xf32>, vector<128x1xf32> -> vector<128x29xf32>
    %147 = arith.truncf %146 : vector<128x29xf32> to vector<128x29xbf16>
    %c0_75 = arith.constant 0 : index
    %c0_76 = arith.constant 0 : index
    %148 = vector.load %arg24[%c0_75, %c0_76] : memref<128x29xbf16, #tpu.memory_space<vmem>>, vector<128x29xbf16>
    tpu.vector_store %arg24[%c0_75, %c0_76], %147 {strides = array<i32>} : memref<128x29xbf16, #tpu.memory_space<vmem>>, vector<128x29xbf16>,
    return
  }
  func.func @transform_0(%arg0: i32) -> (i32, i32) {
    %c0_i32 = arith.constant 0 : i32
    %c0_i32_0 = arith.constant 0 : i32
    return %arg0, %c0_i32 : i32, i32
  }
  func.func @transform_1(%arg0: i32) -> (i32, i32, i32) {
    %c0_i32 = arith.constant 0 : i32
    %c0_i32_0 = arith.constant 0 : i32
    %c0_i32_1 = arith.constant 0 : i32
    return %c0_i32, %arg0, %c0_i32_0 : i32, i32, i32
  }
  func.func @transform_2(%arg0: i32) -> (i32, i32) {
    %c0_i32 = arith.constant 0 : i32
    %c0_i32_0 = arith.constant 0 : i32
    %c0_i32_1 = arith.constant 0 : i32
    return %c0_i32, %c0_i32_0 : i32, i32
  }
  func.func @transform_3(%arg0: i32) -> (i32, i32) {
    %c0_i32 = arith.constant 0 : i32
    %c0_i32_0 = arith.constant 0 : i32
    %c0_i32_1 = arith.constant 0 : i32
    return %c0_i32, %c0_i32_0 : i32, i32
  }
  func.func @transform_4(%arg0: i32) -> (i32, i32) {
    %c0_i32 = arith.constant 0 : i32
    %c0_i32_0 = arith.constant 0 : i32
    %c0_i32_1 = arith.constant 0 : i32
    return %c0_i32, %c0_i32_0 : i32, i32
  }
  func.func @transform_5(%arg0: i32) -> (i32, i32) {
    %c0_i32 = arith.constant 0 : i32
    %c0_i32_0 = arith.constant 0 : i32
    %c0_i32_1 = arith.constant 0 : i32
    return %c0_i32, %c0_i32_0 : i32, i32
  }
  func.func @transform_6(%arg0: i32) -> (i32, i32) {
    %c0_i32 = arith.constant 0 : i32
    %c0_i32_0 = arith.constant 0 : i32
    %c0_i32_1 = arith.constant 0 : i32
    return %c0_i32, %c0_i32_0 : i32, i32
  }
  func.func @transform_7(%arg0: i32) -> (i32, i32) {
    %c0_i32 = arith.constant 0 : i32
    %c0_i32_0 = arith.constant 0 : i32
    %c0_i32_1 = arith.constant 0 : i32
    return %c0_i32, %c0_i32_0 : i32, i32
  }
  func.func @transform_8(%arg0: i32) -> (i32, i32) {
    %c0_i32 = arith.constant 0 : i32
    %c0_i32_0 = arith.constant 0 : i32
    %c0_i32_1 = arith.constant 0 : i32
    return %c0_i32, %c0_i32_0 : i32, i32
  }
  func.func @transform_9(%arg0: i32) -> (i32, i32) {
    %c0_i32 = arith.constant 0 : i32
    %c0_i32_0 = arith.constant 0 : i32
    %c0_i32_1 = arith.constant 0 : i32
    return %c0_i32, %c0_i32_0 : i32, i32
  }
  func.func @transform_10(%arg0: i32) -> (i32, i32) {
    %c0_i32 = arith.constant 0 : i32
    %c0_i32_0 = arith.constant 0 : i32
    %c0_i32_1 = arith.constant 0 : i32
    return %c0_i32, %c0_i32_0 : i32, i32
  }
  func.func @transform_11(%arg0: i32) -> (i32, i32) {
    %c0_i32 = arith.constant 0 : i32
    %c0_i32_0 = arith.constant 0 : i32
    %c0_i32_1 = arith.constant 0 : i32
    return %c0_i32, %c0_i32_0 : i32, i32
  }
  func.func @transform_12(%arg0: i32) -> (i32, i32) {
    %c0_i32 = arith.constant 0 : i32
    %c0_i32_0 = arith.constant 0 : i32
    %c0_i32_1 = arith.constant 0 : i32
    return %c0_i32, %c0_i32_0 : i32, i32
  }
  func.func @transform_13(%arg0: i32) -> (i32, i32) {
    %c0_i32 = arith.constant 0 : i32
    %c0_i32_0 = arith.constant 0 : i32
    %c0_i32_1 = arith.constant 0 : i32
    return %c0_i32, %c0_i32_0 : i32, i32
  }
  func.func @transform_14(%arg0: i32) -> (i32, i32) {
    %c0_i32 = arith.constant 0 : i32
    %c0_i32_0 = arith.constant 0 : i32
    %c0_i32_1 = arith.constant 0 : i32
    return %c0_i32, %c0_i32_0 : i32, i32
  }
  func.func @transform_15(%arg0: i32) -> (i32, i32) {
    %c0_i32 = arith.constant 0 : i32
    %c0_i32_0 = arith.constant 0 : i32
    %c0_i32_1 = arith.constant 0 : i32
    return %c0_i32, %c0_i32_0 : i32, i32
  }
  func.func @transform_16(%arg0: i32) -> (i32, i32) {
    %c0_i32 = arith.constant 0 : i32
    %c0_i32_0 = arith.constant 0 : i32
    %c0_i32_1 = arith.constant 0 : i32
    return %c0_i32, %c0_i32_0 : i32, i32
  }
  func.func @transform_17(%arg0: i32) -> (i32, i32) {
    %c0_i32 = arith.constant 0 : i32
    %c0_i32_0 = arith.constant 0 : i32
    %c0_i32_1 = arith.constant 0 : i32
    return %c0_i32, %c0_i32_0 : i32, i32
  }
  func.func @transform_18(%arg0: i32) -> (i32, i32) {
    %c0_i32 = arith.constant 0 : i32
    %c0_i32_0 = arith.constant 0 : i32
    %c0_i32_1 = arith.constant 0 : i32
    return %c0_i32, %c0_i32_0 : i32, i32
  }
  func.func @transform_19(%arg0: i32) -> (i32, i32) {
    %c0_i32 = arith.constant 0 : i32
    %c0_i32_0 = arith.constant 0 : i32
    %c0_i32_1 = arith.constant 0 : i32
    return %c0_i32, %c0_i32_0 : i32, i32
  }
  func.func @transform_20(%arg0: i32) -> (i32, i32) {
    %c0_i32 = arith.constant 0 : i32
    %c0_i32_0 = arith.constant 0 : i32
    %c0_i32_1 = arith.constant 0 : i32
    return %c0_i32, %c0_i32_0 : i32, i32
  }
  func.func @transform_21(%arg0: i32) -> (i32, i32) {
    %c0_i32 = arith.constant 0 : i32
    %c0_i32_0 = arith.constant 0 : i32
    %c0_i32_1 = arith.constant 0 : i32
    return %c0_i32, %c0_i32_0 : i32, i32
  }
  func.func @transform_22(%arg0: i32) -> (i32, i32) {
    %c0_i32 = arith.constant 0 : i32
    %c0_i32_0 = arith.constant 0 : i32
    %c0_i32_1 = arith.constant 0 : i32
    return %c0_i32, %c0_i32_0 : i32, i32
  }
  func.func @transform_23(%arg0: i32) -> (i32, i32) {
    %c0_i32 = arith.constant 0 : i32
    %c0_i32_0 = arith.constant 0 : i32
    return %arg0, %c0_i32 : i32, i32
  }
}

module attributes {stable_mosaic.version = 11 : i64} {
  func.func @_aggr_norm_kernel(%arg0: i32, %arg1: i32, %arg2: memref<1x128xi32, #tpu.memory_space<vmem>>, %arg3: memref<128x29xbf16, #tpu.memory_space<vmem>>, %arg4: memref<8x16xf32, #tpu.memory_space<vmem>>, %arg5: memref<3x8x4xf32, #tpu.memory_space<vmem>>, %arg6: memref<1x16xf32, #tpu.memory_space<vmem>>, %arg7: memref<1x16xf32, #tpu.memory_space<vmem>>, %arg8: memref<8x16xf32, #tpu.memory_space<vmem>>, %arg9: memref<3x8x4xf32, #tpu.memory_space<vmem>>, %arg10: memref<8x29xf32, #tpu.memory_space<vmem>>) attributes {dimension_semantics = [#tpu.dimension_semantics<parallel>, #tpu.dimension_semantics<arbitrary>], iteration_bounds = array<i64: 1, 1>, scalar_prefetch = 0 : i64, scratch_operands = 1 : i64, tpu.core_type = #tpu.core_type<tc>, window_params = [{transform_indices = @transform_0, window_bounds = array<i64: 1, 128>}, {transform_indices = @transform_1, window_bounds = array<i64: 128, 29>}, {transform_indices = @transform_2, window_bounds = array<i64: 8, 16>}, {transform_indices = @transform_3, window_bounds = array<i64: 3, 8, 4>}, {pipeline_mode = #tpu.pipeline_mode<synchronous>, transform_indices = @transform_4, window_bounds = array<i64: 1, 16>}, {pipeline_mode = #tpu.pipeline_mode<synchronous>, transform_indices = @transform_5, window_bounds = array<i64: 1, 16>}, {transform_indices = @transform_6, window_bounds = array<i64: 8, 16>}, {transform_indices = @transform_7, window_bounds = array<i64: 3, 8, 4>}]} {
    %c0_i32 = arith.constant 0 : i32
    %0 = arith.cmpi eq, %arg1, %c0_i32 : i32
    %1 = arith.extui %0 : i1 to i32
    %c0_i32_0 = arith.constant 0 : i32
    %2 = arith.cmpi ne, %1, %c0_i32_0 : i32
    scf.if %2 {
      %cst_10 = arith.constant 0.000000e+00 : f32
      %22 = vector.broadcast %cst_10 : f32 to vector<8x29xf32>
      %c0_11 = arith.constant 0 : index
      %c0_12 = arith.constant 0 : index
      %23 = vector.load %arg10[%c0_11, %c0_12] : memref<8x29xf32, #tpu.memory_space<vmem>>, vector<8x29xf32>
      tpu.vector_store %arg10[%c0_11, %c0_12], %22 {strides = array<i32>} : memref<8x29xf32, #tpu.memory_space<vmem>>, vector<8x29xf32>,
    } else {
    }
    %c8_i32 = arith.constant 8 : i32
    %3 = arith.muli %arg0, %c8_i32 : i32
    %4 = tpu.iota {dimensions = array<i32: 0>} : vector<8x1xi32>
    %5 = vector.broadcast %3 : i32 to vector<8x1xi32>
    %6 = arith.addi %5, %4 : vector<8x1xi32>
    %c0 = arith.constant 0 : index
    %c0_1 = arith.constant 0 : index
    %7 = vector.load %arg2[%c0, %c0_1] : memref<1x128xi32, #tpu.memory_space<vmem>>, vector<1x128xi32>
    %8 = vector.broadcast %7 : vector<1x128xi32> to vector<8x128xi32>
    %9 = vector.broadcast %6 : vector<8x1xi32> to vector<8x128xi32>
    %10 = arith.cmpi eq, %8, %9 : vector<8x128xi32>
    %11 = arith.extui %10 : vector<8x128xi1> to vector<8x128xi32>
    %12 = arith.sitofp %11 : vector<8x128xi32> to vector<8x128xf32>
    %13 = arith.truncf %12 : vector<8x128xf32> to vector<8x128xbf16>
    %c0_2 = arith.constant 0 : index
    %c0_3 = arith.constant 0 : index
    %14 = vector.load %arg10[%c0_2, %c0_3] : memref<8x29xf32, #tpu.memory_space<vmem>>, vector<8x29xf32>
    %c0_4 = arith.constant 0 : index
    %c0_5 = arith.constant 0 : index
    %15 = vector.load %arg3[%c0_4, %c0_5] : memref<128x29xbf16, #tpu.memory_space<vmem>>, vector<128x29xbf16>
    %cst = arith.constant dense<0.000000e+00> : vector<8x29xf32>
    %16 = tpu.matmul %13, %15, %cst {dimension_numbers = #tpu.dot_dimension_numbers<[1], [0], [0], [1], [0, 0, 1, 1], [], []>} : vector<8x128xbf16>, vector<128x29xbf16>, vector<8x29xf32> -> vector<8x29xf32>
    %17 = arith.addf %14, %16 : vector<8x29xf32>
    %c0_6 = arith.constant 0 : index
    %c0_7 = arith.constant 0 : index
    %18 = vector.load %arg10[%c0_6, %c0_7] : memref<8x29xf32, #tpu.memory_space<vmem>>, vector<8x29xf32>
    tpu.vector_store %arg10[%c0_6, %c0_7], %17 {strides = array<i32>} : memref<8x29xf32, #tpu.memory_space<vmem>>, vector<8x29xf32>,
    %c0_i32_8 = arith.constant 0 : i32
    %19 = arith.cmpi eq, %arg1, %c0_i32_8 : i32
    %20 = arith.extui %19 : i1 to i32
    %c0_i32_9 = arith.constant 0 : i32
    %21 = arith.cmpi ne, %20, %c0_i32_9 : i32
    scf.if %21 {
      %c0_10 = arith.constant 0 : index
      %c0_11 = arith.constant 0 : index
      %22 = vector.load %arg10[%c0_10, %c0_11] : memref<8x29xf32, #tpu.memory_space<vmem>>, vector<8x29xf32>
      %23 = vector.extract_strided_slice %22 {offsets = [0, 28], sizes = [8, 1], strides = [1, 1]} : vector<8x29xf32> to vector<8x1xf32>
      %cst_12 = arith.constant 1.000000e+00 : f32
      %24 = vector.broadcast %cst_12 : f32 to vector<8x1xf32>
      %25 = arith.maximumf %23, %24 : vector<8x1xf32>
      %cst_13 = arith.constant 1.000000e+00 : f32
      %26 = vector.broadcast %cst_13 : f32 to vector<8x1xf32>
      %27 = arith.divf %26, %25 : vector<8x1xf32>
      %28 = vector.extract_strided_slice %22 {offsets = [0, 0], sizes = [8, 16], strides = [1, 1]} : vector<8x29xf32> to vector<8x16xf32>
      %29 = vector.broadcast %27 : vector<8x1xf32> to vector<8x16xf32>
      %30 = arith.mulf %28, %29 : vector<8x16xf32>
      %31 = vector.extract_strided_slice %22 {offsets = [0, 16], sizes = [8, 4], strides = [1, 1]} : vector<8x29xf32> to vector<8x4xf32>
      %32 = vector.broadcast %27 : vector<8x1xf32> to vector<8x4xf32>
      %33 = arith.mulf %31, %32 : vector<8x4xf32>
      %34 = vector.extract_strided_slice %22 {offsets = [0, 20], sizes = [8, 4], strides = [1, 1]} : vector<8x29xf32> to vector<8x4xf32>
      %35 = vector.broadcast %27 : vector<8x1xf32> to vector<8x4xf32>
      %36 = arith.mulf %34, %35 : vector<8x4xf32>
      %37 = vector.extract_strided_slice %22 {offsets = [0, 24], sizes = [8, 4], strides = [1, 1]} : vector<8x29xf32> to vector<8x4xf32>
      %38 = vector.broadcast %27 : vector<8x1xf32> to vector<8x4xf32>
      %39 = arith.mulf %37, %38 : vector<8x4xf32>
      %c0_14 = arith.constant 0 : index
      %c0_15 = arith.constant 0 : index
      %c0_16 = arith.constant 0 : index
      %40 = vector.load %arg5[%c0_14, %c0_15, %c0_16] : memref<3x8x4xf32, #tpu.memory_space<vmem>>, vector<1x8x4xf32>
      %41 = vector.shape_cast %40 : vector<1x8x4xf32> to vector<8x4xf32>
      %c1 = arith.constant 1 : index
      %c0_17 = arith.constant 0 : index
      %c0_18 = arith.constant 0 : index
      %42 = vector.load %arg5[%c1, %c0_17, %c0_18] : memref<3x8x4xf32, #tpu.memory_space<vmem>>, vector<1x8x4xf32>
      %43 = vector.shape_cast %42 : vector<1x8x4xf32> to vector<8x4xf32>
      %c2 = arith.constant 2 : index
      %c0_19 = arith.constant 0 : index
      %c0_20 = arith.constant 0 : index
      %44 = vector.load %arg5[%c2, %c0_19, %c0_20] : memref<3x8x4xf32, #tpu.memory_space<vmem>>, vector<1x8x4xf32>
      %45 = vector.shape_cast %44 : vector<1x8x4xf32> to vector<8x4xf32>
      %c0_21 = arith.constant 0 : index
      %c0_22 = arith.constant 0 : index
      %46 = vector.load %arg4[%c0_21, %c0_22] : memref<8x16xf32, #tpu.memory_space<vmem>>, vector<8x16xf32>
      %c0_23 = arith.constant 0 : index
      %c0_24 = arith.constant 0 : index
      %47 = vector.load %arg6[%c0_23, %c0_24] : memref<1x16xf32, #tpu.memory_space<vmem>>, vector<1x16xf32>
      %c0_25 = arith.constant 0 : index
      %c0_26 = arith.constant 0 : index
      %48 = vector.load %arg7[%c0_25, %c0_26] : memref<1x16xf32, #tpu.memory_space<vmem>>, vector<1x16xf32>
      %49 = arith.addf %46, %30 : vector<8x16xf32>
      %cst_27 = arith.constant dense<0.000000e+00> : vector<8xf32>
      %50 = vector.multi_reduction <add>, %49, %cst_27 [1] : vector<8x16xf32> to vector<8xf32>
      %51 = vector.shape_cast %50 : vector<8xf32> to vector<8x1xf32>
      %cst_28 = arith.constant 1.600000e+01 : f32
      %52 = vector.broadcast %cst_28 : f32 to vector<8x1xf32>
      %53 = arith.divf %51, %52 : vector<8x1xf32>
      %54 = vector.broadcast %53 : vector<8x1xf32> to vector<8x16xf32>
      %55 = arith.subf %49, %54 : vector<8x16xf32>
      %56 = vector.broadcast %53 : vector<8x1xf32> to vector<8x16xf32>
      %57 = arith.subf %49, %56 : vector<8x16xf32>
      %58 = arith.mulf %55, %57 : vector<8x16xf32>
      %cst_29 = arith.constant dense<0.000000e+00> : vector<8xf32>
      %59 = vector.multi_reduction <add>, %58, %cst_29 [1] : vector<8x16xf32> to vector<8xf32>
      %60 = vector.shape_cast %59 : vector<8xf32> to vector<8x1xf32>
      %cst_30 = arith.constant 1.600000e+01 : f32
      %61 = vector.broadcast %cst_30 : f32 to vector<8x1xf32>
      %62 = arith.divf %60, %61 : vector<8x1xf32>
      %63 = vector.broadcast %53 : vector<8x1xf32> to vector<8x16xf32>
      %64 = arith.subf %49, %63 : vector<8x16xf32>
      %cst_31 = arith.constant 9.99999974E-6 : f32
      %65 = vector.broadcast %cst_31 : f32 to vector<8x1xf32>
      %66 = arith.addf %62, %65 : vector<8x1xf32>
      %67 = math.rsqrt %66 : vector<8x1xf32>
      %68 = vector.broadcast %67 : vector<8x1xf32> to vector<8x16xf32>
      %69 = arith.mulf %64, %68 : vector<8x16xf32>
      %70 = vector.broadcast %47 : vector<1x16xf32> to vector<8x16xf32>
      %71 = arith.mulf %69, %70 : vector<8x16xf32>
      %72 = vector.broadcast %48 : vector<1x16xf32> to vector<8x16xf32>
      %73 = arith.addf %71, %72 : vector<8x16xf32>
      %c0_32 = arith.constant 0 : index
      %c0_33 = arith.constant 0 : index
      %74 = vector.load %arg8[%c0_32, %c0_33] : memref<8x16xf32, #tpu.memory_space<vmem>>, vector<8x16xf32>
      tpu.vector_store %arg8[%c0_32, %c0_33], %73 {strides = array<i32>} : memref<8x16xf32, #tpu.memory_space<vmem>>, vector<8x16xf32>,
      %75 = arith.addf %41, %33 : vector<8x4xf32>
      %76 = arith.addf %43, %36 : vector<8x4xf32>
      %77 = arith.addf %45, %39 : vector<8x4xf32>
      %78 = arith.mulf %75, %75 : vector<8x4xf32>
      %79 = arith.mulf %76, %76 : vector<8x4xf32>
      %80 = arith.addf %78, %79 : vector<8x4xf32>
      %81 = arith.mulf %77, %77 : vector<8x4xf32>
      %82 = arith.addf %80, %81 : vector<8x4xf32>
      %cst_34 = arith.constant 9.99999993E-9 : f32
      %83 = vector.broadcast %cst_34 : f32 to vector<8x4xf32>
      %84 = arith.maximumf %82, %83 : vector<8x4xf32>
      %cst_35 = arith.constant dense<0.000000e+00> : vector<8xf32>
      %85 = vector.multi_reduction <add>, %84, %cst_35 [1] : vector<8x4xf32> to vector<8xf32>
      %86 = vector.shape_cast %85 : vector<8xf32> to vector<8x1xf32>
      %cst_36 = arith.constant 4.000000e+00 : f32
      %87 = vector.broadcast %cst_36 : f32 to vector<8x1xf32>
      %88 = arith.divf %86, %87 : vector<8x1xf32>
      %89 = math.rsqrt %88 : vector<8x1xf32>
      %90 = vector.broadcast %89 : vector<8x1xf32> to vector<8x4xf32>
      %91 = arith.mulf %75, %90 : vector<8x4xf32>
      %c0_37 = arith.constant 0 : index
      %c0_38 = arith.constant 0 : index
      %c0_39 = arith.constant 0 : index
      %92 = vector.load %arg9[%c0_37, %c0_38, %c0_39] : memref<3x8x4xf32, #tpu.memory_space<vmem>>, vector<1x8x4xf32>
      %93 = vector.shape_cast %92 : vector<1x8x4xf32> to vector<8x4xf32>
      %94 = vector.shape_cast %91 : vector<8x4xf32> to vector<1x8x4xf32>
      tpu.vector_store %arg9[%c0_37, %c0_38, %c0_39], %94 {strides = array<i32>} : memref<3x8x4xf32, #tpu.memory_space<vmem>>, vector<1x8x4xf32>,
      %95 = vector.broadcast %89 : vector<8x1xf32> to vector<8x4xf32>
      %96 = arith.mulf %76, %95 : vector<8x4xf32>
      %c1_40 = arith.constant 1 : index
      %c0_41 = arith.constant 0 : index
      %c0_42 = arith.constant 0 : index
      %97 = vector.load %arg9[%c1_40, %c0_41, %c0_42] : memref<3x8x4xf32, #tpu.memory_space<vmem>>, vector<1x8x4xf32>
      %98 = vector.shape_cast %97 : vector<1x8x4xf32> to vector<8x4xf32>
      %99 = vector.shape_cast %96 : vector<8x4xf32> to vector<1x8x4xf32>
      tpu.vector_store %arg9[%c1_40, %c0_41, %c0_42], %99 {strides = array<i32>} : memref<3x8x4xf32, #tpu.memory_space<vmem>>, vector<1x8x4xf32>,
      %100 = vector.broadcast %89 : vector<8x1xf32> to vector<8x4xf32>
      %101 = arith.mulf %77, %100 : vector<8x4xf32>
      %c2_43 = arith.constant 2 : index
      %c0_44 = arith.constant 0 : index
      %c0_45 = arith.constant 0 : index
      %102 = vector.load %arg9[%c2_43, %c0_44, %c0_45] : memref<3x8x4xf32, #tpu.memory_space<vmem>>, vector<1x8x4xf32>
      %103 = vector.shape_cast %102 : vector<1x8x4xf32> to vector<8x4xf32>
      %104 = vector.shape_cast %101 : vector<8x4xf32> to vector<1x8x4xf32>
      tpu.vector_store %arg9[%c2_43, %c0_44, %c0_45], %104 {strides = array<i32>} : memref<3x8x4xf32, #tpu.memory_space<vmem>>, vector<1x8x4xf32>,
    } else {
    }
    return
  }
  func.func @transform_0(%arg0: i32, %arg1: i32) -> (i32, i32) {
    %c0_i32 = arith.constant 0 : i32
    %c0_i32_0 = arith.constant 0 : i32
    return %c0_i32, %arg1 : i32, i32
  }
  func.func @transform_1(%arg0: i32, %arg1: i32) -> (i32, i32) {
    %c0_i32 = arith.constant 0 : i32
    %c0_i32_0 = arith.constant 0 : i32
    return %arg1, %c0_i32 : i32, i32
  }
  func.func @transform_2(%arg0: i32, %arg1: i32) -> (i32, i32) {
    %c0_i32 = arith.constant 0 : i32
    %c0_i32_0 = arith.constant 0 : i32
    return %arg0, %c0_i32 : i32, i32
  }
  func.func @transform_3(%arg0: i32, %arg1: i32) -> (i32, i32, i32) {
    %c0_i32 = arith.constant 0 : i32
    %c0_i32_0 = arith.constant 0 : i32
    %c0_i32_1 = arith.constant 0 : i32
    return %c0_i32, %arg0, %c0_i32_0 : i32, i32, i32
  }
  func.func @transform_4(%arg0: i32, %arg1: i32) -> (i32, i32) {
    %c0_i32 = arith.constant 0 : i32
    %c0_i32_0 = arith.constant 0 : i32
    %c0_i32_1 = arith.constant 0 : i32
    return %c0_i32, %c0_i32_0 : i32, i32
  }
  func.func @transform_5(%arg0: i32, %arg1: i32) -> (i32, i32) {
    %c0_i32 = arith.constant 0 : i32
    %c0_i32_0 = arith.constant 0 : i32
    %c0_i32_1 = arith.constant 0 : i32
    return %c0_i32, %c0_i32_0 : i32, i32
  }
  func.func @transform_6(%arg0: i32, %arg1: i32) -> (i32, i32) {
    %c0_i32 = arith.constant 0 : i32
    %c0_i32_0 = arith.constant 0 : i32
    return %arg0, %c0_i32 : i32, i32
  }
  func.func @transform_7(%arg0: i32, %arg1: i32) -> (i32, i32, i32) {
    %c0_i32 = arith.constant 0 : i32
    %c0_i32_0 = arith.constant 0 : i32
    %c0_i32_1 = arith.constant 0 : i32
    return %c0_i32, %arg0, %c0_i32_0 : i32, i32, i32
  }
}

module attributes {stable_mosaic.version = 11 : i64} {
  func.func @_ff_norm_kernel(%arg0: i32, %arg1: memref<8x16xf32, #tpu.memory_space<vmem>>, %arg2: memref<3x8x4xf32, #tpu.memory_space<vmem>>, %arg3: memref<4x8xbf16, #tpu.memory_space<vmem>>, %arg4: memref<16x64xbf16, #tpu.memory_space<vmem>>, %arg5: memref<8x64xbf16, #tpu.memory_space<vmem>>, %arg6: memref<1x64xf32, #tpu.memory_space<vmem>>, %arg7: memref<8x8xbf16, #tpu.memory_space<vmem>>, %arg8: memref<64x8xbf16, #tpu.memory_space<vmem>>, %arg9: memref<1x8xf32, #tpu.memory_space<vmem>>, %arg10: memref<8x8xbf16, #tpu.memory_space<vmem>>, %arg11: memref<64x16xbf16, #tpu.memory_space<vmem>>, %arg12: memref<8x16xbf16, #tpu.memory_space<vmem>>, %arg13: memref<1x16xf32, #tpu.memory_space<vmem>>, %arg14: memref<8x4xbf16, #tpu.memory_space<vmem>>, %arg15: memref<16x4xbf16, #tpu.memory_space<vmem>>, %arg16: memref<1x4xf32, #tpu.memory_space<vmem>>, %arg17: memref<1x16xf32, #tpu.memory_space<vmem>>, %arg18: memref<1x16xf32, #tpu.memory_space<vmem>>, %arg19: memref<8x16xf32, #tpu.memory_space<vmem>>, %arg20: memref<3x8x4xf32, #tpu.memory_space<vmem>>) attributes {dimension_semantics = [#tpu.dimension_semantics<parallel>], iteration_bounds = array<i64: 1>, scalar_prefetch = 0 : i64, scratch_operands = 0 : i64, tpu.core_type = #tpu.core_type<tc>, window_params = [{transform_indices = @transform_0, window_bounds = array<i64: 8, 16>}, {transform_indices = @transform_1, window_bounds = array<i64: 3, 8, 4>}, {pipeline_mode = #tpu.pipeline_mode<synchronous>, transform_indices = @transform_2, window_bounds = array<i64: 4, 8>}, {pipeline_mode = #tpu.pipeline_mode<synchronous>, transform_indices = @transform_3, window_bounds = array<i64: 16, 64>}, {pipeline_mode = #tpu.pipeline_mode<synchronous>, transform_indices = @transform_4, window_bounds = array<i64: 8, 64>}, {pipeline_mode = #tpu.pipeline_mode<synchronous>, transform_indices = @transform_5, window_bounds = array<i64: 1, 64>}, {pipeline_mode = #tpu.pipeline_mode<synchronous>, transform_indices = @transform_6, window_bounds = array<i64: 8, 8>}, {pipeline_mode = #tpu.pipeline_mode<synchronous>, transform_indices = @transform_7, window_bounds = array<i64: 64, 8>}, {pipeline_mode = #tpu.pipeline_mode<synchronous>, transform_indices = @transform_8, window_bounds = array<i64: 1, 8>}, {pipeline_mode = #tpu.pipeline_mode<synchronous>, transform_indices = @transform_9, window_bounds = array<i64: 8, 8>}, {pipeline_mode = #tpu.pipeline_mode<synchronous>, transform_indices = @transform_10, window_bounds = array<i64: 64, 16>}, {pipeline_mode = #tpu.pipeline_mode<synchronous>, transform_indices = @transform_11, window_bounds = array<i64: 8, 16>}, {pipeline_mode = #tpu.pipeline_mode<synchronous>, transform_indices = @transform_12, window_bounds = array<i64: 1, 16>}, {pipeline_mode = #tpu.pipeline_mode<synchronous>, transform_indices = @transform_13, window_bounds = array<i64: 8, 4>}, {pipeline_mode = #tpu.pipeline_mode<synchronous>, transform_indices = @transform_14, window_bounds = array<i64: 16, 4>}, {pipeline_mode = #tpu.pipeline_mode<synchronous>, transform_indices = @transform_15, window_bounds = array<i64: 1, 4>}, {pipeline_mode = #tpu.pipeline_mode<synchronous>, transform_indices = @transform_16, window_bounds = array<i64: 1, 16>}, {pipeline_mode = #tpu.pipeline_mode<synchronous>, transform_indices = @transform_17, window_bounds = array<i64: 1, 16>}, {transform_indices = @transform_18, window_bounds = array<i64: 8, 16>}, {transform_indices = @transform_19, window_bounds = array<i64: 3, 8, 4>}]} {
    %c0 = arith.constant 0 : index
    %c0_0 = arith.constant 0 : index
    %0 = vector.load %arg1[%c0, %c0_0] : memref<8x16xf32, #tpu.memory_space<vmem>>, vector<8x16xf32>
    %c0_1 = arith.constant 0 : index
    %c0_2 = arith.constant 0 : index
    %c0_3 = arith.constant 0 : index
    %1 = vector.load %arg2[%c0_1, %c0_2, %c0_3] : memref<3x8x4xf32, #tpu.memory_space<vmem>>, vector<1x8x4xf32>
    %2 = vector.shape_cast %1 : vector<1x8x4xf32> to vector<8x4xf32>
    %c1 = arith.constant 1 : index
    %c0_4 = arith.constant 0 : index
    %c0_5 = arith.constant 0 : index
    %3 = vector.load %arg2[%c1, %c0_4, %c0_5] : memref<3x8x4xf32, #tpu.memory_space<vmem>>, vector<1x8x4xf32>
    %4 = vector.shape_cast %3 : vector<1x8x4xf32> to vector<8x4xf32>
    %c2 = arith.constant 2 : index
    %c0_6 = arith.constant 0 : index
    %c0_7 = arith.constant 0 : index
    %5 = vector.load %arg2[%c2, %c0_6, %c0_7] : memref<3x8x4xf32, #tpu.memory_space<vmem>>, vector<1x8x4xf32>
    %6 = vector.shape_cast %5 : vector<1x8x4xf32> to vector<8x4xf32>
    %7 = tpu.concatenate %2, %4, %6 in 0 : vector<8x4xf32>, vector<8x4xf32>, vector<8x4xf32> -> vector<24x4xf32>
    %c0_8 = arith.constant 0 : index
    %c0_9 = arith.constant 0 : index
    %8 = vector.load %arg3[%c0_8, %c0_9] : memref<4x8xbf16, #tpu.memory_space<vmem>>, vector<4x8xbf16>
    %c0_10 = arith.constant 0 : index
    %c0_11 = arith.constant 0 : index
    %9 = vector.load %arg4[%c0_10, %c0_11] : memref<16x64xbf16, #tpu.memory_space<vmem>>, vector<16x64xbf16>
    %c0_12 = arith.constant 0 : index
    %c0_13 = arith.constant 0 : index
    %10 = vector.load %arg5[%c0_12, %c0_13] : memref<8x64xbf16, #tpu.memory_space<vmem>>, vector<8x64xbf16>
    %c0_14 = arith.constant 0 : index
    %c0_15 = arith.constant 0 : index
    %11 = vector.load %arg6[%c0_14, %c0_15] : memref<1x64xf32, #tpu.memory_space<vmem>>, vector<1x64xf32>
    %c0_16 = arith.constant 0 : index
    %c0_17 = arith.constant 0 : index
    %12 = vector.load %arg7[%c0_16, %c0_17] : memref<8x8xbf16, #tpu.memory_space<vmem>>, vector<8x8xbf16>
    %c0_18 = arith.constant 0 : index
    %c0_19 = arith.constant 0 : index
    %13 = vector.load %arg8[%c0_18, %c0_19] : memref<64x8xbf16, #tpu.memory_space<vmem>>, vector<64x8xbf16>
    %c0_20 = arith.constant 0 : index
    %c0_21 = arith.constant 0 : index
    %14 = vector.load %arg9[%c0_20, %c0_21] : memref<1x8xf32, #tpu.memory_space<vmem>>, vector<1x8xf32>
    %15 = arith.truncf %7 : vector<24x4xf32> to vector<24x4xbf16>
    %cst = arith.constant dense<0.000000e+00> : vector<24x8xf32>
    %16 = tpu.matmul %15, %8, %cst {dimension_numbers = #tpu.dot_dimension_numbers<[1], [0], [0], [1], [0, 0, 1, 1], [], []>} : vector<24x4xbf16>, vector<4x8xbf16>, vector<24x8xf32> -> vector<24x8xf32>
    %17 = vector.extract_strided_slice %16 {offsets = [0, 0], sizes = [8, 8], strides = [1, 1]} : vector<24x8xf32> to vector<8x8xf32>
    %18 = vector.extract_strided_slice %16 {offsets = [8, 0], sizes = [8, 8], strides = [1, 1]} : vector<24x8xf32> to vector<8x8xf32>
    %19 = vector.extract_strided_slice %16 {offsets = [16, 0], sizes = [8, 8], strides = [1, 1]} : vector<24x8xf32> to vector<8x8xf32>
    %20 = arith.mulf %17, %17 : vector<8x8xf32>
    %21 = arith.mulf %18, %18 : vector<8x8xf32>
    %22 = arith.addf %20, %21 : vector<8x8xf32>
    %23 = arith.mulf %19, %19 : vector<8x8xf32>
    %24 = arith.addf %22, %23 : vector<8x8xf32>
    %cst_22 = arith.constant 9.99999993E-9 : f32
    %25 = vector.broadcast %cst_22 : f32 to vector<8x8xf32>
    %26 = arith.maximumf %24, %25 : vector<8x8xf32>
    %27 = math.sqrt %26 : vector<8x8xf32>
    %28 = arith.truncf %0 : vector<8x16xf32> to vector<8x16xbf16>
    %cst_23 = arith.constant dense<0.000000e+00> : vector<8x64xf32>
    %29 = tpu.matmul %28, %9, %cst_23 {dimension_numbers = #tpu.dot_dimension_numbers<[1], [0], [0], [1], [0, 0, 1, 1], [], []>} : vector<8x16xbf16>, vector<16x64xbf16>, vector<8x64xf32> -> vector<8x64xf32>
    %30 = arith.truncf %27 : vector<8x8xf32> to vector<8x8xbf16>
    %cst_24 = arith.constant dense<0.000000e+00> : vector<8x64xf32>
    %31 = tpu.matmul %30, %10, %cst_24 {dimension_numbers = #tpu.dot_dimension_numbers<[1], [0], [0], [1], [0, 0, 1, 1], [], []>} : vector<8x8xbf16>, vector<8x64xbf16>, vector<8x64xf32> -> vector<8x64xf32>
    %32 = arith.addf %29, %31 : vector<8x64xf32>
    %33 = vector.broadcast %11 : vector<1x64xf32> to vector<8x64xf32>
    %34 = arith.addf %32, %33 : vector<8x64xf32>
    %35 = arith.truncf %16 : vector<24x8xf32> to vector<24x8xbf16>
    %cst_25 = arith.constant dense<0.000000e+00> : vector<24x8xf32>
    %36 = tpu.matmul %35, %12, %cst_25 {dimension_numbers = #tpu.dot_dimension_numbers<[1], [0], [0], [1], [0, 0, 1, 1], [], []>} : vector<24x8xbf16>, vector<8x8xbf16>, vector<24x8xf32> -> vector<24x8xf32>
    %37 = arith.negf %34 : vector<8x64xf32>
    %38 = math.exp %37 : vector<8x64xf32>
    %cst_26 = arith.constant 1.000000e+00 : f32
    %39 = vector.broadcast %cst_26 : f32 to vector<8x64xf32>
    %40 = arith.addf %39, %38 : vector<8x64xf32>
    %41 = arith.divf %39, %40 : vector<8x64xf32>
    %42 = arith.truncf %41 : vector<8x64xf32> to vector<8x64xbf16>
    %cst_27 = arith.constant dense<0.000000e+00> : vector<8x8xf32>
    %43 = tpu.matmul %42, %13, %cst_27 {dimension_numbers = #tpu.dot_dimension_numbers<[1], [0], [0], [1], [0, 0, 1, 1], [], []>} : vector<8x64xbf16>, vector<64x8xbf16>, vector<8x8xf32> -> vector<8x8xf32>
    %44 = vector.broadcast %14 : vector<1x8xf32> to vector<8x8xf32>
    %45 = arith.addf %43, %44 : vector<8x8xf32>
    %46 = arith.negf %45 : vector<8x8xf32>
    %47 = math.exp %46 : vector<8x8xf32>
    %cst_28 = arith.constant 1.000000e+00 : f32
    %48 = vector.broadcast %cst_28 : f32 to vector<8x8xf32>
    %49 = arith.addf %48, %47 : vector<8x8xf32>
    %50 = arith.divf %48, %49 : vector<8x8xf32>
    %51 = tpu.concatenate %50, %50, %50 in 0 : vector<8x8xf32>, vector<8x8xf32>, vector<8x8xf32> -> vector<24x8xf32>
    %52 = arith.mulf %36, %51 : vector<24x8xf32>
    %cst_29 = arith.constant 0.000000e+00 : f32
    %53 = vector.broadcast %cst_29 : f32 to vector<8x64xf32>
    %54 = arith.maximumf %34, %53 : vector<8x64xf32>
    %c0_30 = arith.constant 0 : index
    %c0_31 = arith.constant 0 : index
    %55 = vector.load %arg10[%c0_30, %c0_31] : memref<8x8xbf16, #tpu.memory_space<vmem>>, vector<8x8xbf16>
    %c0_32 = arith.constant 0 : index
    %c0_33 = arith.constant 0 : index
    %56 = vector.load %arg11[%c0_32, %c0_33] : memref<64x16xbf16, #tpu.memory_space<vmem>>, vector<64x16xbf16>
    %c0_34 = arith.constant 0 : index
    %c0_35 = arith.constant 0 : index
    %57 = vector.load %arg12[%c0_34, %c0_35] : memref<8x16xbf16, #tpu.memory_space<vmem>>, vector<8x16xbf16>
    %c0_36 = arith.constant 0 : index
    %c0_37 = arith.constant 0 : index
    %58 = vector.load %arg13[%c0_36, %c0_37] : memref<1x16xf32, #tpu.memory_space<vmem>>, vector<1x16xf32>
    %c0_38 = arith.constant 0 : index
    %c0_39 = arith.constant 0 : index
    %59 = vector.load %arg14[%c0_38, %c0_39] : memref<8x4xbf16, #tpu.memory_space<vmem>>, vector<8x4xbf16>
    %c0_40 = arith.constant 0 : index
    %c0_41 = arith.constant 0 : index
    %60 = vector.load %arg15[%c0_40, %c0_41] : memref<16x4xbf16, #tpu.memory_space<vmem>>, vector<16x4xbf16>
    %c0_42 = arith.constant 0 : index
    %c0_43 = arith.constant 0 : index
    %61 = vector.load %arg16[%c0_42, %c0_43] : memref<1x4xf32, #tpu.memory_space<vmem>>, vector<1x4xf32>
    %62 = arith.truncf %52 : vector<24x8xf32> to vector<24x8xbf16>
    %cst_44 = arith.constant dense<0.000000e+00> : vector<24x8xf32>
    %63 = tpu.matmul %62, %55, %cst_44 {dimension_numbers = #tpu.dot_dimension_numbers<[1], [0], [0], [1], [0, 0, 1, 1], [], []>} : vector<24x8xbf16>, vector<8x8xbf16>, vector<24x8xf32> -> vector<24x8xf32>
    %64 = vector.extract_strided_slice %63 {offsets = [0, 0], sizes = [8, 8], strides = [1, 1]} : vector<24x8xf32> to vector<8x8xf32>
    %65 = vector.extract_strided_slice %63 {offsets = [8, 0], sizes = [8, 8], strides = [1, 1]} : vector<24x8xf32> to vector<8x8xf32>
    %66 = vector.extract_strided_slice %63 {offsets = [16, 0], sizes = [8, 8], strides = [1, 1]} : vector<24x8xf32> to vector<8x8xf32>
    %67 = arith.mulf %64, %64 : vector<8x8xf32>
    %68 = arith.mulf %65, %65 : vector<8x8xf32>
    %69 = arith.addf %67, %68 : vector<8x8xf32>
    %70 = arith.mulf %66, %66 : vector<8x8xf32>
    %71 = arith.addf %69, %70 : vector<8x8xf32>
    %cst_45 = arith.constant 9.99999993E-9 : f32
    %72 = vector.broadcast %cst_45 : f32 to vector<8x8xf32>
    %73 = arith.maximumf %71, %72 : vector<8x8xf32>
    %74 = math.sqrt %73 : vector<8x8xf32>
    %75 = arith.truncf %54 : vector<8x64xf32> to vector<8x64xbf16>
    %cst_46 = arith.constant dense<0.000000e+00> : vector<8x16xf32>
    %76 = tpu.matmul %75, %56, %cst_46 {dimension_numbers = #tpu.dot_dimension_numbers<[1], [0], [0], [1], [0, 0, 1, 1], [], []>} : vector<8x64xbf16>, vector<64x16xbf16>, vector<8x16xf32> -> vector<8x16xf32>
    %77 = arith.truncf %74 : vector<8x8xf32> to vector<8x8xbf16>
    %cst_47 = arith.constant dense<0.000000e+00> : vector<8x16xf32>
    %78 = tpu.matmul %77, %57, %cst_47 {dimension_numbers = #tpu.dot_dimension_numbers<[1], [0], [0], [1], [0, 0, 1, 1], [], []>} : vector<8x8xbf16>, vector<8x16xbf16>, vector<8x16xf32> -> vector<8x16xf32>
    %79 = arith.addf %76, %78 : vector<8x16xf32>
    %80 = vector.broadcast %58 : vector<1x16xf32> to vector<8x16xf32>
    %81 = arith.addf %79, %80 : vector<8x16xf32>
    %82 = arith.truncf %63 : vector<24x8xf32> to vector<24x8xbf16>
    %cst_48 = arith.constant dense<0.000000e+00> : vector<24x4xf32>
    %83 = tpu.matmul %82, %59, %cst_48 {dimension_numbers = #tpu.dot_dimension_numbers<[1], [0], [0], [1], [0, 0, 1, 1], [], []>} : vector<24x8xbf16>, vector<8x4xbf16>, vector<24x4xf32> -> vector<24x4xf32>
    %84 = arith.truncf %81 : vector<8x16xf32> to vector<8x16xbf16>
    %cst_49 = arith.constant dense<0.000000e+00> : vector<8x4xf32>
    %85 = tpu.matmul %84, %60, %cst_49 {dimension_numbers = #tpu.dot_dimension_numbers<[1], [0], [0], [1], [0, 0, 1, 1], [], []>} : vector<8x16xbf16>, vector<16x4xbf16>, vector<8x4xf32> -> vector<8x4xf32>
    %86 = vector.broadcast %61 : vector<1x4xf32> to vector<8x4xf32>
    %87 = arith.addf %85, %86 : vector<8x4xf32>
    %88 = arith.negf %87 : vector<8x4xf32>
    %89 = math.exp %88 : vector<8x4xf32>
    %cst_50 = arith.constant 1.000000e+00 : f32
    %90 = vector.broadcast %cst_50 : f32 to vector<8x4xf32>
    %91 = arith.addf %90, %89 : vector<8x4xf32>
    %92 = arith.divf %90, %91 : vector<8x4xf32>
    %93 = tpu.concatenate %92, %92, %92 in 0 : vector<8x4xf32>, vector<8x4xf32>, vector<8x4xf32> -> vector<24x4xf32>
    %94 = arith.mulf %83, %93 : vector<24x4xf32>
    %95 = vector.extract_strided_slice %94 {offsets = [0, 0], sizes = [8, 4], strides = [1, 1]} : vector<24x4xf32> to vector<8x4xf32>
    %96 = vector.extract_strided_slice %94 {offsets = [8, 0], sizes = [8, 4], strides = [1, 1]} : vector<24x4xf32> to vector<8x4xf32>
    %97 = vector.extract_strided_slice %94 {offsets = [16, 0], sizes = [8, 4], strides = [1, 1]} : vector<24x4xf32> to vector<8x4xf32>
    %c0_51 = arith.constant 0 : index
    %c0_52 = arith.constant 0 : index
    %98 = vector.load %arg17[%c0_51, %c0_52] : memref<1x16xf32, #tpu.memory_space<vmem>>, vector<1x16xf32>
    %c0_53 = arith.constant 0 : index
    %c0_54 = arith.constant 0 : index
    %99 = vector.load %arg18[%c0_53, %c0_54] : memref<1x16xf32, #tpu.memory_space<vmem>>, vector<1x16xf32>
    %100 = arith.addf %0, %81 : vector<8x16xf32>
    %cst_55 = arith.constant dense<0.000000e+00> : vector<8xf32>
    %101 = vector.multi_reduction <add>, %100, %cst_55 [1] : vector<8x16xf32> to vector<8xf32>
    %102 = vector.shape_cast %101 : vector<8xf32> to vector<8x1xf32>
    %cst_56 = arith.constant 1.600000e+01 : f32
    %103 = vector.broadcast %cst_56 : f32 to vector<8x1xf32>
    %104 = arith.divf %102, %103 : vector<8x1xf32>
    %105 = vector.broadcast %104 : vector<8x1xf32> to vector<8x16xf32>
    %106 = arith.subf %100, %105 : vector<8x16xf32>
    %107 = vector.broadcast %104 : vector<8x1xf32> to vector<8x16xf32>
    %108 = arith.subf %100, %107 : vector<8x16xf32>
    %109 = arith.mulf %106, %108 : vector<8x16xf32>
    %cst_57 = arith.constant dense<0.000000e+00> : vector<8xf32>
    %110 = vector.multi_reduction <add>, %109, %cst_57 [1] : vector<8x16xf32> to vector<8xf32>
    %111 = vector.shape_cast %110 : vector<8xf32> to vector<8x1xf32>
    %cst_58 = arith.constant 1.600000e+01 : f32
    %112 = vector.broadcast %cst_58 : f32 to vector<8x1xf32>
    %113 = arith.divf %111, %112 : vector<8x1xf32>
    %114 = vector.broadcast %104 : vector<8x1xf32> to vector<8x16xf32>
    %115 = arith.subf %100, %114 : vector<8x16xf32>
    %cst_59 = arith.constant 9.99999974E-6 : f32
    %116 = vector.broadcast %cst_59 : f32 to vector<8x1xf32>
    %117 = arith.addf %113, %116 : vector<8x1xf32>
    %118 = math.rsqrt %117 : vector<8x1xf32>
    %119 = vector.broadcast %118 : vector<8x1xf32> to vector<8x16xf32>
    %120 = arith.mulf %115, %119 : vector<8x16xf32>
    %121 = vector.broadcast %98 : vector<1x16xf32> to vector<8x16xf32>
    %122 = arith.mulf %120, %121 : vector<8x16xf32>
    %123 = vector.broadcast %99 : vector<1x16xf32> to vector<8x16xf32>
    %124 = arith.addf %122, %123 : vector<8x16xf32>
    %c0_60 = arith.constant 0 : index
    %c0_61 = arith.constant 0 : index
    %125 = vector.load %arg19[%c0_60, %c0_61] : memref<8x16xf32, #tpu.memory_space<vmem>>, vector<8x16xf32>
    tpu.vector_store %arg19[%c0_60, %c0_61], %124 {strides = array<i32>} : memref<8x16xf32, #tpu.memory_space<vmem>>, vector<8x16xf32>,
    %126 = arith.addf %2, %95 : vector<8x4xf32>
    %127 = arith.addf %4, %96 : vector<8x4xf32>
    %128 = arith.addf %6, %97 : vector<8x4xf32>
    %129 = arith.mulf %126, %126 : vector<8x4xf32>
    %130 = arith.mulf %127, %127 : vector<8x4xf32>
    %131 = arith.addf %129, %130 : vector<8x4xf32>
    %132 = arith.mulf %128, %128 : vector<8x4xf32>
    %133 = arith.addf %131, %132 : vector<8x4xf32>
    %cst_62 = arith.constant 9.99999993E-9 : f32
    %134 = vector.broadcast %cst_62 : f32 to vector<8x4xf32>
    %135 = arith.maximumf %133, %134 : vector<8x4xf32>
    %cst_63 = arith.constant dense<0.000000e+00> : vector<8xf32>
    %136 = vector.multi_reduction <add>, %135, %cst_63 [1] : vector<8x4xf32> to vector<8xf32>
    %137 = vector.shape_cast %136 : vector<8xf32> to vector<8x1xf32>
    %cst_64 = arith.constant 4.000000e+00 : f32
    %138 = vector.broadcast %cst_64 : f32 to vector<8x1xf32>
    %139 = arith.divf %137, %138 : vector<8x1xf32>
    %140 = math.rsqrt %139 : vector<8x1xf32>
    %141 = vector.broadcast %140 : vector<8x1xf32> to vector<8x4xf32>
    %142 = arith.mulf %126, %141 : vector<8x4xf32>
    %c0_65 = arith.constant 0 : index
    %c0_66 = arith.constant 0 : index
    %c0_67 = arith.constant 0 : index
    %143 = vector.load %arg20[%c0_65, %c0_66, %c0_67] : memref<3x8x4xf32, #tpu.memory_space<vmem>>, vector<1x8x4xf32>
    %144 = vector.shape_cast %143 : vector<1x8x4xf32> to vector<8x4xf32>
    %145 = vector.shape_cast %142 : vector<8x4xf32> to vector<1x8x4xf32>
    tpu.vector_store %arg20[%c0_65, %c0_66, %c0_67], %145 {strides = array<i32>} : memref<3x8x4xf32, #tpu.memory_space<vmem>>, vector<1x8x4xf32>,
    %146 = vector.broadcast %140 : vector<8x1xf32> to vector<8x4xf32>
    %147 = arith.mulf %127, %146 : vector<8x4xf32>
    %c1_68 = arith.constant 1 : index
    %c0_69 = arith.constant 0 : index
    %c0_70 = arith.constant 0 : index
    %148 = vector.load %arg20[%c1_68, %c0_69, %c0_70] : memref<3x8x4xf32, #tpu.memory_space<vmem>>, vector<1x8x4xf32>
    %149 = vector.shape_cast %148 : vector<1x8x4xf32> to vector<8x4xf32>
    %150 = vector.shape_cast %147 : vector<8x4xf32> to vector<1x8x4xf32>
    tpu.vector_store %arg20[%c1_68, %c0_69, %c0_70], %150 {strides = array<i32>} : memref<3x8x4xf32, #tpu.memory_space<vmem>>, vector<1x8x4xf32>,
    %151 = vector.broadcast %140 : vector<8x1xf32> to vector<8x4xf32>
    %152 = arith.mulf %128, %151 : vector<8x4xf32>
    %c2_71 = arith.constant 2 : index
    %c0_72 = arith.constant 0 : index
    %c0_73 = arith.constant 0 : index
    %153 = vector.load %arg20[%c2_71, %c0_72, %c0_73] : memref<3x8x4xf32, #tpu.memory_space<vmem>>, vector<1x8x4xf32>
    %154 = vector.shape_cast %153 : vector<1x8x4xf32> to vector<8x4xf32>
    %155 = vector.shape_cast %152 : vector<8x4xf32> to vector<1x8x4xf32>
    tpu.vector_store %arg20[%c2_71, %c0_72, %c0_73], %155 {strides = array<i32>} : memref<3x8x4xf32, #tpu.memory_space<vmem>>, vector<1x8x4xf32>,
    return
  }
  func.func @transform_0(%arg0: i32) -> (i32, i32) {
    %c0_i32 = arith.constant 0 : i32
    %c0_i32_0 = arith.constant 0 : i32
    return %arg0, %c0_i32 : i32, i32
  }
  func.func @transform_1(%arg0: i32) -> (i32, i32, i32) {
    %c0_i32 = arith.constant 0 : i32
    %c0_i32_0 = arith.constant 0 : i32
    %c0_i32_1 = arith.constant 0 : i32
    return %c0_i32, %arg0, %c0_i32_0 : i32, i32, i32
  }
  func.func @transform_2(%arg0: i32) -> (i32, i32) {
    %c0_i32 = arith.constant 0 : i32
    %c0_i32_0 = arith.constant 0 : i32
    %c0_i32_1 = arith.constant 0 : i32
    return %c0_i32, %c0_i32_0 : i32, i32
  }
  func.func @transform_3(%arg0: i32) -> (i32, i32) {
    %c0_i32 = arith.constant 0 : i32
    %c0_i32_0 = arith.constant 0 : i32
    %c0_i32_1 = arith.constant 0 : i32
    return %c0_i32, %c0_i32_0 : i32, i32
  }
  func.func @transform_4(%arg0: i32) -> (i32, i32) {
    %c0_i32 = arith.constant 0 : i32
    %c0_i32_0 = arith.constant 0 : i32
    %c0_i32_1 = arith.constant 0 : i32
    return %c0_i32, %c0_i32_0 : i32, i32
  }
  func.func @transform_5(%arg0: i32) -> (i32, i32) {
    %c0_i32 = arith.constant 0 : i32
    %c0_i32_0 = arith.constant 0 : i32
    %c0_i32_1 = arith.constant 0 : i32
    return %c0_i32, %c0_i32_0 : i32, i32
  }
  func.func @transform_6(%arg0: i32) -> (i32, i32) {
    %c0_i32 = arith.constant 0 : i32
    %c0_i32_0 = arith.constant 0 : i32
    %c0_i32_1 = arith.constant 0 : i32
    return %c0_i32, %c0_i32_0 : i32, i32
  }
  func.func @transform_7(%arg0: i32) -> (i32, i32) {
    %c0_i32 = arith.constant 0 : i32
    %c0_i32_0 = arith.constant 0 : i32
    %c0_i32_1 = arith.constant 0 : i32
    return %c0_i32, %c0_i32_0 : i32, i32
  }
  func.func @transform_8(%arg0: i32) -> (i32, i32) {
    %c0_i32 = arith.constant 0 : i32
    %c0_i32_0 = arith.constant 0 : i32
    %c0_i32_1 = arith.constant 0 : i32
    return %c0_i32, %c0_i32_0 : i32, i32
  }
  func.func @transform_9(%arg0: i32) -> (i32, i32) {
    %c0_i32 = arith.constant 0 : i32
    %c0_i32_0 = arith.constant 0 : i32
    %c0_i32_1 = arith.constant 0 : i32
    return %c0_i32, %c0_i32_0 : i32, i32
  }
  func.func @transform_10(%arg0: i32) -> (i32, i32) {
    %c0_i32 = arith.constant 0 : i32
    %c0_i32_0 = arith.constant 0 : i32
    %c0_i32_1 = arith.constant 0 : i32
    return %c0_i32, %c0_i32_0 : i32, i32
  }
  func.func @transform_11(%arg0: i32) -> (i32, i32) {
    %c0_i32 = arith.constant 0 : i32
    %c0_i32_0 = arith.constant 0 : i32
    %c0_i32_1 = arith.constant 0 : i32
    return %c0_i32, %c0_i32_0 : i32, i32
  }
  func.func @transform_12(%arg0: i32) -> (i32, i32) {
    %c0_i32 = arith.constant 0 : i32
    %c0_i32_0 = arith.constant 0 : i32
    %c0_i32_1 = arith.constant 0 : i32
    return %c0_i32, %c0_i32_0 : i32, i32
  }
  func.func @transform_13(%arg0: i32) -> (i32, i32) {
    %c0_i32 = arith.constant 0 : i32
    %c0_i32_0 = arith.constant 0 : i32
    %c0_i32_1 = arith.constant 0 : i32
    return %c0_i32, %c0_i32_0 : i32, i32
  }
  func.func @transform_14(%arg0: i32) -> (i32, i32) {
    %c0_i32 = arith.constant 0 : i32
    %c0_i32_0 = arith.constant 0 : i32
    %c0_i32_1 = arith.constant 0 : i32
    return %c0_i32, %c0_i32_0 : i32, i32
  }
  func.func @transform_15(%arg0: i32) -> (i32, i32) {
    %c0_i32 = arith.constant 0 : i32
    %c0_i32_0 = arith.constant 0 : i32
    %c0_i32_1 = arith.constant 0 : i32
    return %c0_i32, %c0_i32_0 : i32, i32
  }
  func.func @transform_16(%arg0: i32) -> (i32, i32) {
    %c0_i32 = arith.constant 0 : i32
    %c0_i32_0 = arith.constant 0 : i32
    %c0_i32_1 = arith.constant 0 : i32
    return %c0_i32, %c0_i32_0 : i32, i32
  }
  func.func @transform_17(%arg0: i32) -> (i32, i32) {
    %c0_i32 = arith.constant 0 : i32
    %c0_i32_0 = arith.constant 0 : i32
    %c0_i32_1 = arith.constant 0 : i32
    return %c0_i32, %c0_i32_0 : i32, i32
  }
  func.func @transform_18(%arg0: i32) -> (i32, i32) {
    %c0_i32 = arith.constant 0 : i32
    %c0_i32_0 = arith.constant 0 : i32
    return %arg0, %c0_i32 : i32, i32
  }
  func.func @transform_19(%arg0: i32) -> (i32, i32, i32) {
    %c0_i32 = arith.constant 0 : i32
    %c0_i32_0 = arith.constant 0 : i32
    %c0_i32_1 = arith.constant 0 : i32
    return %c0_i32, %arg0, %c0_i32_0 : i32, i32, i32
  }
}

</mosaic_0001>

<bundles_post_ra>
// kernel: gvp_conv_layer_forward.4
= control target key start
LH: loop header
LB: loop body
LE: loop exit
PB: predicated region body
PF: predicated region fallthrough
CT: control target
= control target key end

     0   :  { %v317_v0 = vmov 0.0   ;;  %vm318_vm0 = vmmov 0   ;;  %vm30_vm1 = vcmask 236544   ;;  %v33_v7 = vlaneseq  ;;  %s321_s19 = smov 112   ;;  %s322_s20 = smov 108   ;;  %s430_s1 = inlined_call_operand.vmem [shape: bf16[128,29], index: 1, kind: input, shape index: {}]   ;;  %s431_s0 = inlined_call_operand.vmem [shape: s32[1,128], index: 0, kind: input, shape index: {}]   ;;  %s432_s2 = inlined_call_operand.vmem [shape: f32[8,16], index: 2, kind: input, shape index: {}]   ;;  %s433_s3 = inlined_call_operand.vmem [shape: f32[3,8,4], index: 3, kind: input, shape index: {}]   ;;  %s434_s7 = inlined_call_operand.vmem [shape: f32[3,8,4], index: 7, kind: output, shape index: {1}]   ;;  %s435_s4 = inlined_call_operand.vmem [shape: f32[1,16], index: 4, kind: input, shape index: {}]   ;;  %s436_s5 = inlined_call_operand.vmem [shape: f32[1,16], index: 5, kind: input, shape index: {}]   ;;  %s437_s6 = inlined_call_operand.vmem [shape: f32[8,16], index: 6, kind: output, shape index: {0}]  }
   0x1   :  { %275 = vmatprep.subr.bf16.mxu0 %v317_v0  ;;  %v303_v1 = vld [vmem:[%s430_s1] sm:$0xff]   ;;  %291 = vmatprep.mubr.msk.bf16.mxu0 %vm318_vm0, %v317_v0  ;;  %31 = vst.msk [vmem:[#allocation2] sm:$0xff] %vm30_vm1, %v317_v0  ;;  %v304_v2 = vld [vmem:[%s430_s1 + $0x8] sm:$0xff]   ;;  %v305_v3 = vld [vmem:[%s430_s1 + $0x10] sm:$0xff]   ;;  %v319_v12 = vmov 1.0|1.0  }
   0x2   :  { %276 = vmatpush3.bf16.msra.mxu0 %v303_v1  ;;  %v306_v4 = vld [vmem:[%s430_s1 + $0x18] sm:$0xff]   ;;  %v307_v5 = vld [vmem:[%s430_s1 + $0x20] sm:$0xff]   ;;  %v308_v6 = vld [vmem:[%s430_s1 + $0x28] sm:$0xff]   ;;  %v34_v9 = vshrl.u32 %v33_v7, 7  ;;  %v320_v13 = vmov 28   ;;  %vm176_vm4 = vcmask 130048  }
   0x3   :  { %277 = vmatprep.subr.bf16.mxu0 %v317_v0  ;;  %v309_v8 = vld [vmem:[%s430_s1 + $0x30] sm:$0xff]   ;;  %v248_v10 = vld [vmem:[%s431_s0] ss:$0 sm:$0xff]  ;;  %v310_v11 = vld [vmem:[%s430_s1 + $0x38] sm:$0xff]   ;;  %302 = vset.pattern.permute.xlu0 %v320_v13  ;;  %s323_s21 = smov 104   ;;  %vm225_vm5 = vcmask 31744  }
   0x4   :  { %vm42_vm2 = vcmp.eq.s32.totalorder %v248_v10, %v34_v9  ;;  %v172_v24 = vld [vmem:[%s432_s2] sm:$0xff]  ;;  %v260_v30 = vld [vmem:[%s433_s3 + $0x8] sm:$0xff]  ;;  %v261_v34 = vld [vmem:[%s433_s3 + $0x10] sm:$0xff] }
   0x5   :  { %vm258_vm3 = vmpackc.low %vm42_vm2, %vm42_vm2  ;;  %v167_v29 = vld [vmem:[%s433_s3] sm:$0xff] }
   0x6   :  { %278 = vmatpush3.bf16.msra.mxu0 %v304_v2  ;;  %v262_v59 = vld [vmem:[%s435_s4] ss:$0 sm:$0xff] }
   0x7   :  { %279 = vmatprep.subr.bf16.mxu0 %v317_v0  ;;  %v263_v61 = vld [vmem:[%s436_s5] ss:$0 sm:$0xff] }
   0x8   :  { %v46_v14 = vld [vmem:[#allocation2] sm:$0xff] }
   0xa   :  { %280 = vmatpush3.bf16.msra.mxu0 %v305_v3 }
   0xb   :  { %281 = vmatprep.subr.bf16.mxu0 %v317_v0 }
   0xe   :  { %282 = vmatpush3.bf16.msra.mxu0 %v306_v4 }
   0xf   :  { %283 = vmatprep.subr.bf16.mxu0 %v317_v0 }
  0x12   :  { %284 = vmatpush3.bf16.msra.mxu0 %v307_v5 }
  0x13   :  { %285 = vmatprep.subr.bf16.mxu0 %v317_v0 }
  0x16   :  { %286 = vmatpush3.bf16.msra.mxu0 %v308_v6 }
  0x17   :  { %287 = vmatprep.subr.bf16.mxu0 %v317_v0 }
  0x1a   :  { %288 = vmatpush3.bf16.msra.mxu0 %v309_v8 }
  0x1b   :  { %289 = vmatprep.subr.bf16.mxu0 %v317_v0 }
  0x1e   :  { %290 = vmatpush3.bf16.msra.mxu0 %v310_v11 }
  0x21   :  { %292 = vmatmul.mubr.msk.bf16.vlgmr.msra.gmra.mrb[0].mxu0 %vm258_vm3, %v319_v12 }
  0xf4   :  { %v145_v15 = vpop.f32.mrb[0].mxu0 }
  0xf5   :  { %v151_v16 = vadd.f32 %v145_v15, %v46_v14  ;;  %v293_v17 = vpop.f32.mrb[1].mxu0 }
  0xf6   :  { %v148_v18 = vpop.f32.mrb[2].mxu0 }
  0xf7   :  { %153 = vst.msk [vmem:[#allocation2] sm:$0xff] %vm30_vm1, %v151_v16  ;;  %v294_v19 = vpop.f32.mrb[3].mxu0 }
  0xfe   :  { %v157_v20 = vld [vmem:[#allocation2] sm:$0xff] }
  0xff   :  { %v158_v21 = vmax.f32 %v157_v20, 1.0 }
 0x101   :  { %311 = vrcp.f32 %v158_v21 }
 0x10b   :  { %v312_v22 = vpop.eup %311 }
 0x10c   :  { %163 = vperm.xlu0 %302, %v312_v22  }
 0x18b   :  { %v164_v23 = vpop.permute.xlu0 %163 }
 0x18c   :  { %v166_v25 = vmul.f32 %v164_v23, %v157_v20 }
 0x18e   :  { %207 = vrot.lane.b32.xlu1 %v166_v25, %s321_s19  ;;  %v175_v26 = vadd.f32 %v172_v24, %v166_v25 }
 0x190   :  { %v177_v27 = vsel %vm176_vm4, %v175_v26, 0.0 }
 0x191   :  { %178 = vadd.xlane.f32.xlu0 %v177_v27 }
 0x192   :  { %211 = vrot.lane.b32.xlu1 %v166_v25, %s322_s20 }
 0x196   :  { %215 = vrot.lane.b32.xlu1 %v166_v25, %s323_s21 }
 0x200   :  { %v208_v28 = vpop.permute.xlu1 %207 }
 0x201   :  { %v210_v32 = vadd.f32 %v208_v28, %v167_v29 }
 0x203   :  { %v219_v37 = vmul.f32 %v210_v32, %v210_v32 }
 0x204   :  { %v212_v31 = vpop.permute.xlu1 %211 }
 0x205   :  { %v214_v33 = vadd.f32 %v260_v30, %v212_v31 }
 0x207   :  { %v220_v35 = vmul.f32 %v214_v33, %v214_v33 }
 0x208   :  { %v216_v36 = vpop.permute.xlu1 %215 }
 0x209   :  { %v218_v38 = vadd.f32 %v261_v34, %v216_v36  ;;  %v221_v39 = vadd.f32 %v220_v35, %v219_v37 }
 0x20b   :  { %v222_v40 = vmul.f32 %v218_v38, %v218_v38 }
 0x20d   :  { %v223_v41 = vadd.f32 %v222_v40, %v221_v39 }
 0x20f   :  { %v224_v42 = vmax.f32 %v223_v41, 1e-08 }
 0x211   :  { %v226_v43 = vsel %vm225_vm5, %v224_v42, 0.0 }
 0x212   :  { %227 = vadd.xlane.f32.xlu0 %v226_v43 }
 0x21e   :  { %v179_v44 = vpop.xlane.xlu0 %178 }
 0x21f   :  { %v181_v45 = vmul.f32 0.0625, %v179_v44 }
 0x221   :  { %v182_v46 = vsub.f32 %v175_v26, %v181_v45 }
 0x223   :  { %v183_v47 = vmul.f32 %v182_v46, %v182_v46 }
 0x225   :  { %v184_v48 = vsel %vm176_vm4, %v183_v47, 0.0 }
 0x226   :  { %185 = vadd.xlane.f32.xlu1 %v184_v48 }
 0x29f   :  { %v228_v49 = vpop.xlane.xlu0 %227 }
 0x2a0   :  { %v230_v50 = vmul.f32 0.25, %v228_v49 }
 0x2a2   :  { %313 = vrsqrt.f32 %v230_v50 }
 0x2ac   :  { %v314_v51 = vpop.eup %313 }
 0x2ad   :  { %v232_v52 = vmul.f32 %v314_v51, %v210_v32  ;;  %v234_v53 = vmul.f32 %v314_v51, %v214_v33  ;;  %v237_v54 = vmul.f32 %v314_v51, %v218_v38 }
 0x2af   :  { %233 = vst.msk [vmem:[%s434_s7] sm:$0xff] %vm225_vm5, %v232_v52  ;;  %264 = vst.msk [vmem:[%s434_s7 + $0x8] sm:$0xff] %vm225_vm5, %v234_v53 }
 0x2b0   :  { %265 = vst.msk [vmem:[%s434_s7 + $0x10] sm:$0xff] %vm225_vm5, %v237_v54 }
 0x2b3   :  { %v186_v55 = vpop.xlane.xlu1 %185 }
 0x2b4   :  { %v187_v56 = vmul.f32 0.0625, %v186_v55 }
 0x2b6   :  { %v188_v57 = vadd.f32 1e-05, %v187_v56 }
 0x2b8   :  { %315 = vrsqrt.f32 %v188_v57 }
 0x2c2   :  { %v316_v58 = vpop.eup %315 }
 0x2c3   :  { %v190_v60 = vmul.f32 %v316_v58, %v182_v46 }
 0x2c5   :  { %v197_v62 = vmul.f32 %v262_v59, %v190_v60 }
 0x2c7   :  { %v204_v63 = vadd.f32 %v263_v61, %v197_v62 }
 0x2c9   :  { %205 = vst.msk [vmem:[%s437_s6] sm:$0xff] %vm176_vm4, %v204_v63 }

// kernel: gvp_conv_layer_forward.5
= control target key start
LH: loop header
LB: loop body
LE: loop exit
PB: predicated region body
PF: predicated region fallthrough
CT: control target
= control target key end

     0   :  { %s1294_s0 = inlined_call_operand.vmem [shape: f32[8,16], index: 0, kind: input, shape index: {}]   ;;  %s1295_s1 = inlined_call_operand.vmem [shape: f32[3,8,4], index: 1, kind: input, shape index: {}]   ;;  %s1296_s2 = inlined_call_operand.vmem [shape: bf16[4,8], index: 2, kind: input, shape index: {}]   ;;  %s1297_s3 = inlined_call_operand.vmem [shape: bf16[16,64], index: 3, kind: input, shape index: {}]   ;;  %s1298_s4 = inlined_call_operand.vmem [shape: bf16[8,64], index: 4, kind: input, shape index: {}]   ;;  %s1299_s5 = inlined_call_operand.vmem [shape: f32[1,64], index: 5, kind: input, shape index: {}]   ;;  %s1300_s6 = inlined_call_operand.vmem [shape: bf16[8,8], index: 6, kind: input, shape index: {}]   ;;  %s1301_s7 = inlined_call_operand.vmem [shape: bf16[64,8], index: 7, kind: input, shape index: {}]   ;;  %s1302_s8 = inlined_call_operand.vmem [shape: f32[1,8], index: 8, kind: input, shape index: {}]   ;;  %s1303_s9 = inlined_call_operand.vmem [shape: bf16[8,8], index: 9, kind: input, shape index: {}]   ;;  %s1304_s10 = inlined_call_operand.vmem [shape: bf16[64,16], index: 10, kind: input, shape index: {}]   ;;  %s1305_s11 = inlined_call_operand.vmem [shape: bf16[8,16], index: 11, kind: input, shape index: {}]   ;;  %s1306_s12 = inlined_call_operand.vmem [shape: f32[1,16], index: 12, kind: input, shape index: {}]   ;;  %s1307_s13 = inlined_call_operand.vmem [shape: bf16[8,4], index: 13, kind: input, shape index: {}]   ;;  %s1308_s14 = inlined_call_operand.vmem [shape: bf16[16,4], index: 14, kind: input, shape index: {}]   ;;  %s1309_s15 = inlined_call_operand.vmem [shape: f32[1,4], index: 15, kind: input, shape index: {}]   ;;  %s1310_s16 = inlined_call_operand.vmem [shape: f32[1,16], index: 16, kind: input, shape index: {}]   ;;  %s1311_s17 = inlined_call_operand.vmem [shape: f32[1,16], index: 17, kind: input, shape index: {}]   ;;  %s1312_s18 = inlined_call_operand.hbm [shape: f32[8,16], index: 18, kind: output, shape index: {0}]   ;;  %s1313_s19 = inlined_call_operand.vmem [shape: f32[3,8,4], index: 19, kind: output, shape index: {1}]  }
   0x1   :  { %1315 = sst [smem:[#allocation5_spill]] %s1294_s0 }
   0x2   :  { %1316 = sst [smem:[#allocation6_spill]] %s1295_s1 }
   0x3   :  { %1317 = sst [smem:[#allocation7_spill]] %s1296_s2 }
   0x4   :  { %1318 = sst [smem:[#allocation8_spill]] %s1297_s3 }
   0x5   :  { %s1319_s20 = sld [smem:[#allocation7_spill]]  ;;  %vm93_vm0 = vcmask 1041408   ;;  %s1320_s22 = sld [smem:[#allocation6_spill]]  ;;  %vm86_vm1 = vcmask 31744  }
   0xb   :  { %v69_v0 = vld [vmem:[%s1319_s20] sm:$0x3]  ;;  %v1135_v2 = vld [vmem:[%s1320_s22 + $0x8] sm:$0xff]  ;;  %v1142_v5 = vld [vmem:[%s1320_s22 + $0x10] sm:$0xff] }
   0xc   :  { %v1130_v1 = vld [vmem:[%s1320_s22] sm:$0xff]  ;;  %960 = vmatprep.subr.msk.bf16.mxu0 %vm93_vm0, %v69_v0  ;;  %v95_v3 = vsel %vm93_vm0, %v69_v0, 0  ;;  %v85_v6 = vpack.c.bf16 %v1142_v5, %v1142_v5 }
   0xd   :  { %v84_v4 = vpack.c.bf16 %v1135_v2, %v1130_v1  ;;  %889 = vmatpush3.bf16.msra.mxu0 %v95_v3 }
   0xf   :  { %890 = vmatprep.mubr.msk.bf16.mxu0 %vm86_vm1, %v84_v4 }
  0x10   :  { %891 = vmatmul.mubr.msk.bf16.vlgmr.msra.gmra.mrb[0].mxu0 %vm86_vm1, %v85_v6 }
  0x11   :  { %25 = vsyncpa [#allocation3], 0  ;;  %s1321_s27 = sld [smem:[#allocation8_spill]]  ;;  %v72_v8 = vld [vmem:[%s1298_s4] sm:$0xf]  ;;  %vm164_vm2 = vcmask 1043456  }
  0x12   :  { %v1021_v9 = vmov 0.0   ;;  %v166_v10 = vsel %vm164_vm2, %v72_v8, 0  ;;  %s1322_s20 = sld [smem:[#allocation5_spill]]  ;;  %vm1022_vm3 = vmmov 0   ;;  %vm214_vm4 = vcmask 130048   ;;  %v968_v37 = vld [vmem:[%s1301_s7] sm:$0xff]  }
  0x13   :  { %900 = vmatprep.subr.bf16.mxu0 %v1021_v9  ;;  %894 = vmatprep.subr.bf16.mxu1 %v1021_v9  ;;  %v74_v13 = vld [vmem:[%s1300_s6] sm:$0xf]  ;;  %vm160_vm7 = vcmask 64512   ;;  %v969_v38 = vld [vmem:[%s1301_s7 + $0x8] sm:$0xff]   ;;  %v970_v39 = vld [vmem:[%s1301_s7 + $0x10] sm:$0xff]   ;;  %vm361_vm8 = vcmask 523264  }
  0x14   :  { %902 = vmatprep.mubr.msk.bf16.mxu0 %vm1022_vm3, %v1021_v9  ;;  %895 = vmatpush3.bf16.msra.mxu1 %v166_v10  ;;  %v274_v31 = vsel %vm164_vm2, %v74_v13, 0  ;;  %v971_v40 = vld [vmem:[%s1301_s7 + $0x18] sm:$0xff]   ;;  %v828_v41 = vld [vmem:[%s1299_s5] ss:$0 sm:$0xff]  ;;  %v973_v58 = vld [vmem:[%s1304_s10 + $0x8] sm:$0xff]  }
  0x15   :  { %896 = vmatprep.mubr.msk.bf16.mxu1 %vm1022_vm3, %v1021_v9  ;;  %961 = vmatprep.subr.msk.bf16.mxu1 %vm164_vm2, %v74_v13  ;;  %v972_v56 = vld [vmem:[%s1304_s10] sm:$0xff]   ;;  %v974_v59 = vld [vmem:[%s1304_s10 + $0x10] sm:$0xff]   ;;  %v975_v60 = vld [vmem:[%s1304_s10 + $0x18] sm:$0xff]  }
  0x16   :  { %v415_v63 = vld [vmem:[%s1303_s9] sm:$0xf] }
  0x17   :  { %v967_v7 = vld [vmem:[%s1321_s27] sm:$0xff]   ;;  %v439_v0 = vsel %vm164_vm2, %v415_v63, 0  ;;  %s1023_s27 = smov [#allocation2]  }
  0x18   :  { %v1160_v11 = vld [vmem:[%s1322_s20] sm:$0xff]  ;;  %901 = vmatpush3.bf16.msra.mxu0 %v967_v7  ;;  %s809_s7 = sshll.u32 %s1023_s27, 4  ;;  %s810_s7 = int_to_ptr.vmem [resolvable:$true] %s809_s7 }
  0x19   :  { %v158_v12 = vpack.c.bf16 %v1160_v11, %v1160_v11  ;;  %912 = vmatprep.subr.bf16.mxu0 %v1021_v9  ;;  %v832_v3 = vld [vmem:[%s1302_s8] ss:$0 sm:$0xff]  ;;  %s997_s28 = scalar_lea.vmem %s810_s7, 128  ;;  %p1002_p1 = scmp.lt.s32.totalorder %s810_s7, %s810_s7 }
  0x1a   :  { %p998_p0 = scmp.ne.s32.totalorder %s810_s7, %s997_s28  ;;  %p1003_p2 = scmp.lt.s32.totalorder %s997_s28, %s997_s28 }
  0x1b   :  { %903 = vmatmul.mubr.msk.bf16.vlgmr.msra.gmra.mrb[4].mxu0 %vm214_vm4, %v158_v12 }
  0x1c   :  { %920 = vmatprep.mubr.msk.bf16.mxu0 %vm1022_vm3, %v1021_v9  ;;  %913 = vmatpush3.bf16.msra.mxu0 %v968_v37  ;;  %p1004_p3 = por %p1003_p2, %p1002_p1 }
  0x1d   :  { %914 = vmatprep.subr.bf16.mxu0 %v1021_v9 }
  0x1e   :  { %p1005_p4 = pnand %p1004_p3, %p998_p0 }
  0x20   :  { %915 = vmatpush3.bf16.msra.mxu0 %v969_v38 }
  0x21   :  { %916 = vmatprep.subr.bf16.mxu0 %v1021_v9 }
  0x24   :  { %917 = vmatpush3.bf16.msra.mxu0 %v970_v39 }
  0x25   :  { %918 = vmatprep.subr.bf16.mxu0 %v1021_v9 }
  0x28   :  { %919 = vmatpush3.bf16.msra.mxu0 %v971_v40 }
  0x29   :  { %936 = vmatprep.subr.bf16.mxu0 %v1021_v9 }
  0xe3   :  { %v892_v14 = vpop.f32.mrb[0].mxu0 }
  0xe4   :  { %v131_v15 = vpop.f32.mrb[1].mxu0  ;;  %v148_v21 = vmul.f32 %v892_v14, %v892_v14  ;;  %v266_v32 = vpack.c.bf16 %v892_v14, %v892_v14 }
  0xe5   :  { %v893_v16 = vpop.f32.mrb[2].mxu0  ;;  %v145_v18 = vmul.f32 %v131_v15, %v131_v15 }
  0xe6   :  { %v134_v17 = vpop.f32.mrb[3].mxu0 }
  0xe7   :  { %v146_v19 = vmul.f32 %v134_v17, %v134_v17  ;;  %v265_v20 = vpack.c.bf16 %v134_v17, %v131_v15 }
  0xe9   :  { %v147_v22 = vadd.f32 %v146_v19, %v145_v18 }
  0xeb   :  { %v149_v23 = vadd.f32 %v148_v21, %v147_v22 }
  0xed   :  { %v150_v24 = vmax.f32 %v149_v23, 1e-08 }
  0xee   :  { %v252_v33 = vpop.f32.mrb[4].mxu0 }
  0xef   :  { %977 = vrsqrt.f32 %v150_v24  ;;  %vm153_vm5 = vcmp.eq.f32.partialorder %v150_v24, inf  ;;  %v156_v27 = vand.u32 2147483648, %v150_v24  ;;  %vm155_vm6 = vcmp.eq.f32.partialorder %v150_v24, 0.0  ;;  %v904_v34 = vpop.f32.mrb[5].mxu0 }
  0xf0   :  { %v255_v35 = vpop.f32.mrb[6].mxu0 }
  0xf1   :  { %v905_v36 = vpop.f32.mrb[7].mxu0 }
  0xf9   :  { %v978_v25 = vpop.eup %977 }
  0xfa   :  { %v152_v26 = vmul.f32 %v978_v25, %v150_v24  ;;  %v424_v25 = vld [vmem:[%s1305_s11] sm:$0xf] }
  0xfc   :  { %v154_v28 = vsel %vm153_vm5, %v150_v24, %v152_v26  ;;  %v508_v26 = vsel %vm164_vm2, %v424_v25, 0 }
  0xfd   :  { %v157_v29 = vsel %vm155_vm6, %v156_v27, %v154_v28  ;;  %v426_v27 = vld [vmem:[%s1307_s13] sm:$0xf] }
  0xfe   :  { %v159_v30 = vpack.c.bf16 %v157_v29, %v157_v29 }
 0x100   :  { %897 = vmatmul.mubr.msk.bf16.vlgmr.msra.gmra.mrb[0].mxu1 %vm160_vm7, %v159_v30 }
 0x101   :  { %908 = vmatprep.mubr.msk.bf16.mxu1 %vm160_vm7, %v265_v20  ;;  %907 = vmatpush3.bf16.msra.mxu1 %v274_v31 }
 0x102   :  { %962 = vmatprep.subr.msk.bf16.mxu1 %vm164_vm2, %v415_v63 }
 0x108   :  { %909 = vmatmul.mubr.msk.bf16.vlgmr.msra.gmra.mrb[4].mxu1 %vm160_vm7, %v266_v32 }
 0x109   :  { %925 = vmatpush3.bf16.msra.mxu1 %v439_v0 }
 0x10a   :  { %930 = vmatprep.subr.bf16.mxu1 %v1021_v9 }
 0x1d3   :  { %v202_v42 = vpop.f32.mrb[0].mxu1 }
 0x1d4   :  { %v253_v43 = vadd.f32 %v252_v33, %v202_v42  ;;  %v898_v44 = vpop.f32.mrb[1].mxu1 }
 0x1d5   :  { %v205_v45 = vpop.f32.mrb[2].mxu1 }
 0x1d6   :  { %v264_v46 = vadd.f32 %v828_v41, %v253_v43  ;;  %v899_v47 = vpop.f32.mrb[3].mxu1  ;;  %v633_v45 = vsel %vm164_vm2, %v426_v27, 0 }
 0x1d8   :  { %v831_v48 = vmul.f32 -1.442695, %v264_v46  ;;  %v414_v61 = vmax.f32 %v264_v46, 0.0  ;;  %v976_v46 = vld [vmem:[%s1308_s14] sm:$0xff]  }
 0x1da   :  { %979 = vpow2.f32 %v831_v48  ;;  %v502_v62 = vpack.c.bf16 %v414_v61, %v414_v61  ;;  %v847_v48 = vld [vmem:[%s1306_s12] ss:$0 sm:$0xff] }
 0x1db   :  { %v910_v49 = vpop.f32.mrb[4].mxu1 }
 0x1dc   :  { %v310_v50 = vpop.f32.mrb[5].mxu1 }
 0x1dd   :  { %v911_v51 = vpop.f32.mrb[6].mxu1 }
 0x1de   :  { %v313_v52 = vpop.f32.mrb[7].mxu1 }
 0x1e4   :  { %v980_v53 = vpop.eup %979 }
 0x1e5   :  { %v327_v54 = vadd.f32 1.0, %v980_v53 }
 0x1e7   :  { %981 = vrcp.f32 %v327_v54 }
 0x1f1   :  { %v982_v55 = vpop.eup %981 }
 0x1f2   :  { %v330_v57 = vpack.c.bf16 %v982_v55, %v982_v55 }
 0x1f4   :  { %921 = vmatmul.mubr.msk.bf16.vlgmr.msra.gmra.mrb[8].mxu0 %vm361_vm8, %v330_v57 }
 0x1f5   :  { %937 = vmatpush3.bf16.msra.mxu0 %v972_v56  ;;  %944 = vmatprep.mubr.msk.bf16.mxu0 %vm1022_vm3, %v1021_v9 }
 0x1f6   :  { %938 = vmatprep.subr.bf16.mxu0 %v1021_v9 }
 0x1f9   :  { %939 = vmatpush3.bf16.msra.mxu0 %v973_v58 }
 0x1fa   :  { %940 = vmatprep.subr.bf16.mxu0 %v1021_v9 }
 0x1fd   :  { %941 = vmatpush3.bf16.msra.mxu0 %v974_v59 }
 0x1fe   :  { %942 = vmatprep.subr.bf16.mxu0 %v1021_v9 }
 0x201   :  { %943 = vmatpush3.bf16.msra.mxu0 %v975_v60 }
 0x204   :  { %945 = vmatmul.mubr.msk.bf16.vlgmr.msra.gmra.mrb[12].mxu0 %vm361_vm8, %v502_v62 }
 0x2c7   :  { %v399_v4 = vpop.f32.mrb[8].mxu0 }
 0x2c8   :  { %v400_v6 = vadd.f32 %v832_v3, %v399_v4  ;;  %v922_v7 = vpop.f32.mrb[9].mxu0 }
 0x2c9   :  { %v402_v8 = vpop.f32.mrb[10].mxu0 }
 0x2ca   :  { %v838_v10 = vmul.f32 -1.442695, %v400_v6  ;;  %v923_v12 = vpop.f32.mrb[11].mxu0 }
 0x2cc   :  { %983 = vpow2.f32 %v838_v10 }
 0x2d6   :  { %v984_v13 = vpop.eup %983 }
 0x2d7   :  { %v408_v14 = vadd.f32 1.0, %v984_v13  ;;  %v611_v15 = vpop.f32.mrb[12].mxu0 }
 0x2d8   :  { %v946_v16 = vpop.f32.mrb[13].mxu0 }
 0x2d9   :  { %985 = vrcp.f32 %v408_v14  ;;  %v614_v17 = vpop.f32.mrb[14].mxu0 }
 0x2da   :  { %v947_v18 = vpop.f32.mrb[15].mxu0 }
 0x2e3   :  { %v986_v19 = vpop.eup %985 }
 0x2e4   :  { %v411_v20 = vmul.f32 %v986_v19, %v310_v50  ;;  %v412_v21 = vmul.f32 %v986_v19, %v313_v52  ;;  %v413_v22 = vmul.f32 %v986_v19, %v910_v49 }
 0x2e6   :  { %v430_v23 = vpack.c.bf16 %v412_v21, %v411_v20  ;;  %v431_v24 = vpack.c.bf16 %v413_v22, %v413_v22 }
 0x2e8   :  { %926 = vmatprep.mubr.msk.bf16.mxu1 %vm160_vm7, %v430_v23 }
 0x2e9   :  { %927 = vmatmul.mubr.msk.bf16.vlgmr.msra.gmra.mrb[8].mxu1 %vm160_vm7, %v431_v24 }
 0x2ea   :  { %932 = vmatprep.mubr.msk.bf16.mxu1 %vm1022_vm3, %v1021_v9  ;;  %931 = vmatpush3.bf16.msra.mxu1 %v508_v26 }
 0x2eb   :  { %963 = vmatprep.subr.msk.bf16.mxu1 %vm164_vm2, %v426_v27 }
 0x3bc   :  { %v928_v28 = vpop.f32.mrb[8].mxu1 }
 0x3bd   :  { %v475_v29 = vpop.f32.mrb[9].mxu1  ;;  %v492_v35 = vmul.f32 %v928_v28, %v928_v28  ;;  %v625_v47 = vpack.c.bf16 %v928_v28, %v928_v28 }
 0x3be   :  { %v929_v30 = vpop.f32.mrb[10].mxu1  ;;  %v489_v32 = vmul.f32 %v475_v29, %v475_v29 }
 0x3bf   :  { %v478_v31 = vpop.f32.mrb[11].mxu1 }
 0x3c0   :  { %v490_v33 = vmul.f32 %v478_v31, %v478_v31  ;;  %v624_v34 = vpack.c.bf16 %v478_v31, %v475_v29 }
 0x3c2   :  { %v491_v36 = vadd.f32 %v490_v33, %v489_v32 }
 0x3c4   :  { %v493_v37 = vadd.f32 %v492_v35, %v491_v36 }
 0x3c6   :  { %v494_v38 = vmax.f32 %v493_v37, 1e-08 }
 0x3c8   :  { %987 = vrsqrt.f32 %v494_v38  ;;  %vm497_vm9 = vcmp.eq.f32.partialorder %v494_v38, inf  ;;  %v500_v41 = vand.u32 2147483648, %v494_v38  ;;  %vm499_vm10 = vcmp.eq.f32.partialorder %v494_v38, 0.0 }
 0x3d2   :  { %v988_v39 = vpop.eup %987 }
 0x3d3   :  { %v496_v40 = vmul.f32 %v988_v39, %v494_v38 }
 0x3d5   :  { %v498_v42 = vsel %vm497_vm9, %v494_v38, %v496_v40 }
 0x3d6   :  { %v501_v43 = vsel %vm499_vm10, %v500_v41, %v498_v42 }
 0x3d7   :  { %v503_v44 = vpack.c.bf16 %v501_v43, %v501_v43 }
 0x3d9   :  { %933 = vmatmul.mubr.msk.bf16.vlgmr.msra.gmra.mrb[12].mxu1 %vm160_vm7, %v503_v44 }
 0x3da   :  { %950 = vmatprep.mubr.msk.bf16.mxu1 %vm160_vm7, %v624_v34  ;;  %949 = vmatpush3.bf16.msra.mxu1 %v633_v45 }
 0x3db   :  { %954 = vmatprep.subr.bf16.mxu1 %v1021_v9 }
 0x3e1   :  { %951 = vmatmul.mubr.msk.bf16.vlgmr.msra.gmra.mrb[16].mxu1 %vm160_vm7, %v625_v47 }
 0x3e2   :  { %955 = vmatpush3.bf16.msra.mxu1 %v976_v46  ;;  %956 = vmatprep.mubr.msk.bf16.mxu1 %vm1022_vm3, %v1021_v9 }
 0x4ac   :  { %v544_v49 = vpop.f32.mrb[12].mxu1 }
 0x4ad   :  { %v612_v50 = vadd.f32 %v611_v15, %v544_v49  ;;  %v934_v51 = vpop.f32.mrb[13].mxu1 }
 0x4ae   :  { %v547_v52 = vpop.f32.mrb[14].mxu1 }
 0x4af   :  { %v623_v53 = vadd.f32 %v847_v48, %v612_v50  ;;  %v935_v54 = vpop.f32.mrb[15].mxu1 }
 0x4b1   :  { %v683_v55 = vpack.c.bf16 %v623_v53, %v623_v53  ;;  %v750_v56 = vadd.f32 %v623_v53, %v1160_v11  ;;  %v850_v11 = vld [vmem:[%s1309_s15] ss:$0 sm:$0xff] }
 0x4b3   :  { %957 = vmatmul.mubr.msk.bf16.vlgmr.msra.gmra.mrb[20].mxu1 %vm214_vm4, %v683_v55  ;;  %v751_v57 = vsel %vm214_vm4, %v750_v56, 0.0 }
 0x4b4   :  { %v952_v58 = vpop.f32.mrb[16].mxu1  ;;  %752 = vadd.xlane.f32.xlu0 %v751_v57 }
 0x4b5   :  { %v669_v9 = vpop.f32.mrb[17].mxu1 }
 0x4b6   :  { %v953_v59 = vpop.f32.mrb[18].mxu1 }
 0x4b7   :  { %v672_v60 = vpop.f32.mrb[19].mxu1 }
 0x541   :  { %v753_v61 = vpop.xlane.xlu0 %752 }
 0x542   :  { %v755_v62 = vmul.f32 0.0625, %v753_v61 }
 0x544   :  { %v756_v63 = vsub.f32 %v750_v56, %v755_v62 }
 0x546   :  { %v757_v0 = vmul.f32 %v756_v63, %v756_v63 }
 0x548   :  { %v758_v3 = vsel %vm214_vm4, %v757_v0, 0.0 }
 0x549   :  { %759 = vadd.xlane.f32.xlu0 %v758_v3 }
 0x586   :  { %v733_v4 = vpop.f32.mrb[20].mxu1 }
 0x587   :  { %v734_v6 = vadd.f32 %v850_v11, %v733_v4  ;;  %v958_v7 = vpop.f32.mrb[21].mxu1 }
 0x588   :  { %v736_v8 = vpop.f32.mrb[22].mxu1 }
 0x589   :  { %v853_v10 = vmul.f32 -1.442695, %v734_v6  ;;  %v959_v12 = vpop.f32.mrb[23].mxu1 }
 0x58b   :  { %989 = vpow2.f32 %v853_v10 }
 0x595   :  { %v990_v13 = vpop.eup %989 }
 0x596   :  { %v742_v14 = vadd.f32 1.0, %v990_v13 }
 0x598   :  { %991 = vrcp.f32 %v742_v14 }
 0x5a2   :  { %v992_v15 = vpop.eup %991 }
 0x5a3   :  { %v745_v16 = vmul.f32 %v992_v15, %v669_v9  ;;  %v746_v17 = vmul.f32 %v992_v15, %v672_v60  ;;  %v747_v18 = vmul.f32 %v992_v15, %v952_v58 }
 0x5a5   :  { %v780_v19 = vadd.f32 %v745_v16, %v1130_v1  ;;  %v781_v20 = vadd.f32 %v1135_v2, %v746_v17  ;;  %v782_v21 = vadd.f32 %v1142_v5, %v747_v18  ;;  %v854_v1 = vld [vmem:[%s1310_s16] ss:$0 sm:$0xff] }
 0x5a6   :  { %v855_v5 = vld [vmem:[%s1311_s17] ss:$0 sm:$0xff] }
 0x5a7   :  { %v783_v22 = vmul.f32 %v780_v19, %v780_v19  ;;  %v784_v23 = vmul.f32 %v781_v20, %v781_v20  ;;  %v786_v25 = vmul.f32 %v782_v21, %v782_v21 }
 0x5a9   :  { %v785_v24 = vadd.f32 %v784_v23, %v783_v22 }
 0x5ab   :  { %v787_v26 = vadd.f32 %v786_v25, %v785_v24 }
 0x5ad   :  { %v788_v27 = vmax.f32 %v787_v26, 1e-08 }
 0x5af   :  { %v789_v28 = vsel %vm86_vm1, %v788_v27, 0.0 }
 0x5b0   :  { %790 = vadd.xlane.f32.xlu1 %v789_v28 }
 0x5d6   :  { %v760_v29 = vpop.xlane.xlu0 %759 }
 0x5d7   :  { %v761_v30 = vmul.f32 0.0625, %v760_v29 }
 0x5d9   :  { %v762_v31 = vadd.f32 1e-05, %v761_v30 }
 0x5db   :  { %993 = vrsqrt.f32 %v762_v31 }
 0x5e5   :  { %v994_v32 = vpop.eup %993 }
 0x5e6   :  { %v764_v2 = vmul.f32 %v994_v32, %v756_v63 }
 0x5e8   :  { %v771_v33 = vmul.f32 %v854_v1, %v764_v2 }
 0x5ea   :  { %v778_v34 = vadd.f32 %v855_v5, %v771_v33 }
 0x5ec   :  { %779 = vst.msk [vmem:[#allocation2] sm:$0xff] %vm214_vm4, %v778_v34 }
 0x5ed   :  { %1008 = shalt.err (!%p1005_p4)
}
 0x5ee   :  { %s1009_s29 = scalar_lea.hbm %s1312_s18, 128 }
 0x5ef   :  { %p1010_p5 = scmp.ne.s32.totalorder %s1312_s18, %s1009_s29  ;;  %p1013_p6 = scmp.lt.u32.totalorder %s1009_s29, %s1312_s18 }
 0x5f1   :  { %p1015_p7 = pnand %p1013_p6, %p1010_p5 }
 0x5f3   :  { %1018 = shalt.err (!%p1015_p7)
}
 0x5f4   :  { %812 = dma.vmem_to_hbm [thread:$0]  %s810_s7, 128, %s1312_s18, [#allocation3]  }
 0x63d   :  { %v791_v35 = vpop.xlane.xlu1 %790 }
 0x63e   :  { %v793_v36 = vmul.f32 0.25, %v791_v35 }
 0x640   :  { %995 = vrsqrt.f32 %v793_v36 }
 0x64a   :  { %v996_v37 = vpop.eup %995 }
 0x64b   :  { %v795_v38 = vmul.f32 %v996_v37, %v780_v19  ;;  %v797_v39 = vmul.f32 %v996_v37, %v781_v20  ;;  %v800_v40 = vmul.f32 %v996_v37, %v782_v21 }
 0x64d   :  { %796 = vst.msk [vmem:[%s1313_s19] sm:$0xff] %vm86_vm1, %v795_v38  ;;  %856 = vst.msk [vmem:[%s1313_s19 + $0x8] sm:$0xff] %vm86_vm1, %v797_v39 }
 0x64e   :  { %857 = vst.msk [vmem:[%s1313_s19 + $0x10] sm:$0xff] %vm86_vm1, %v800_v40 }
 0x64f   :  { %1019 = dma.done.wait [#allocation3], 128  }
 0x650   :  { %1020 = vsyncadd [#allocation3], 4294967168 }
 0x651   :  { %820 = vsyncpa [#allocation3], 1 }

// kernel: gvp_conv_layer_forward.3
= control target key start
LH: loop header
LB: loop body
LE: loop exit
PB: predicated region body
PF: predicated region fallthrough
CT: control target
= control target key end

     0   :  { %vm258_vm0 = vcmask 1044480   ;;  %vm185_vm1 = vcmask 80896   ;;  %s6755_s28 = smov 24   ;;  %s9303_s2 = inlined_call_operand.vmem [shape: bf16[10,10], index: 2, kind: input, shape index: {}]   ;;  %s9304_s1 = inlined_call_operand.vmem [shape: f32[3,128,10], index: 1, kind: input, shape index: {}]   ;;  %s9305_s4 = inlined_call_operand.vmem [shape: bf16[10,16], index: 4, kind: input, shape index: {}]   ;;  %s9306_s3 = inlined_call_operand.vmem [shape: bf16[40,16], index: 3, kind: input, shape index: {}]   ;;  %s9307_s6 = inlined_call_operand.vmem [shape: bf16[10,4], index: 6, kind: input, shape index: {}]   ;;  %s9308_s0 = inlined_call_operand.vmem [shape: f32[128,40], index: 0, kind: input, shape index: {}]   ;;  %s9309_s7 = inlined_call_operand.vmem [shape: bf16[16,4], index: 7, kind: input, shape index: {}]   ;;  %s9310_s5 = inlined_call_operand.vmem [shape: f32[1,16], index: 5, kind: input, shape index: {}]   ;;  %s9311_s9 = inlined_call_operand.vmem [shape: bf16[4,4], index: 9, kind: input, shape index: {}]   ;;  %s9312_s8 = inlined_call_operand.vmem [shape: f32[1,4], index: 8, kind: input, shape index: {}]   ;;  %s9313_s11 = inlined_call_operand.vmem [shape: bf16[4,16], index: 11, kind: input, shape index: {}]   ;;  %s9314_s13 = inlined_call_operand.vmem [shape: bf16[4,4], index: 13, kind: input, shape index: {}]   ;;  %s9315_s10 = inlined_call_operand.vmem [shape: bf16[16,16], index: 10, kind: input, shape index: {}]   ;;  %s9316_s14 = inlined_call_operand.vmem [shape: bf16[16,4], index: 14, kind: input, shape index: {}]   ;;  %s9317_s12 = inlined_call_operand.vmem [shape: f32[1,16], index: 12, kind: input, shape index: {}]   ;;  %s9318_s16 = inlined_call_operand.vmem [shape: bf16[4,4], index: 16, kind: input, shape index: {}]   ;;  %s9319_s15 = inlined_call_operand.vmem [shape: f32[1,4], index: 15, kind: input, shape index: {}]   ;;  %s9320_s18 = inlined_call_operand.vmem [shape: bf16[4,16], index: 18, kind: input, shape index: {}]   ;;  %s9321_s20 = inlined_call_operand.vmem [shape: bf16[4,4], index: 20, kind: input, shape index: {}]   ;;  %s9322_s17 = inlined_call_operand.vmem [shape: bf16[16,16], index: 17, kind: input, shape index: {}]   ;;  %s9323_s21 = inlined_call_operand.vmem [shape: bf16[16,4], index: 21, kind: input, shape index: {}]   ;;  %s9324_s19 = inlined_call_operand.vmem [shape: f32[1,16], index: 19, kind: input, shape index: {}]   ;;  %s9325_s22 = inlined_call_operand.vmem [shape: f32[1,4], index: 22, kind: input, shape index: {}]   ;;  %s9326_s23 = inlined_call_operand.vmem [shape: bf16[128,29], index: 23, kind: output, shape index: {}]  }
   0x1   :  { %9360 = sst [smem:[#allocation22_spill]] %s9303_s2 }
   0x2   :  { %9361 = sst [smem:[#allocation23_spill]] %s9304_s1  ;;  %s9368_s24 = sld [smem:[#allocation22_spill]] }
   0x3   :  { %9362 = sst [smem:[#allocation24_spill]] %s9305_s4  ;;  %s9369_s1 = sld [smem:[#allocation23_spill]] }
   0x4   :  { %9363 = sst [smem:[#allocation25_spill]] %s9306_s3  ;;  %s9370_s25 = sld [smem:[#allocation24_spill]] }
   0x5   :  { %9364 = sst [smem:[#allocation26_spill]] %s9307_s6  ;;  %s9371_s4 = sld [smem:[#allocation25_spill]] }
   0x6   :  { %9365 = sst [smem:[#allocation27_spill]] %s9308_s0 }
   0x7   :  { %9366 = sst [smem:[#allocation28_spill]] %s9309_s7  ;;  %s9386_s3 = sld [smem:[#allocation27_spill]] }
   0x8   :  { %9367 = sst [smem:[#allocation29_spill]] %s9310_s5  ;;  %v6326_v0 = vld [vmem:[%s9368_s24] sm:$0x1f]   ;;  %s9425_s26 = sld [smem:[#allocation28_spill]] }
   0x9   :  { %v75_v1 = vld [vmem:[%s9369_s1] sm:$0xff]  ;;  %v76_v2 = vld [vmem:[%s9369_s1 + $0x8] sm:$0xff]  ;;  %v77_v3 = vld [vmem:[%s9369_s1 + $0x10] sm:$0xff]  ;;  %6192 = vmatprep.subr.msk.bf16.mxu0 %vm258_vm0, %v6326_v0  ;;  %v260_v4 = vsel %vm258_vm0, %v6326_v0, 0  ;;  %s9426_s7 = sld [smem:[#allocation29_spill]]  ;;  %s6754_s5 = smov 16  }
   0xa   :  { %v156_v5 = vpack.c.bf16 %v76_v2, %v75_v1  ;;  %v78_v6 = vld [vmem:[%s9369_s1 + $0x18] sm:$0xff]  ;;  %v79_v7 = vld [vmem:[%s9369_s1 + $0x20] sm:$0xff]  ;;  %v80_v8 = vld [vmem:[%s9369_s1 + $0x28] sm:$0xff]  ;;  %5677 = vmatpush3.bf16.msra.mxu0 %v260_v4 }
   0xb   :  { %v157_v9 = vpack.c.bf16 %v78_v6, %v77_v3  ;;  %v158_v10 = vpack.c.bf16 %v80_v8, %v79_v7  ;;  %v81_v11 = vld [vmem:[%s9369_s1 + $0x30] sm:$0xff]  ;;  %v82_v12 = vld [vmem:[%s9369_s1 + $0x38] sm:$0xff]  ;;  %v83_v13 = vld [vmem:[%s9369_s1 + $0x40] sm:$0xff] }
   0xc   :  { %5678 = vmatprep.mubr.msk.bf16.mxu0 %vm185_vm1, %v156_v5  ;;  %v84_v14 = vld [vmem:[%s9369_s1 + $0x48] sm:$0xff]  ;;  %v159_v15 = vpack.c.bf16 %v82_v12, %v81_v11  ;;  %v85_v17 = vld [vmem:[%s9369_s1 + $0x50] sm:$0xff]  ;;  %v86_v18 = vld [vmem:[%s9369_s1 + $0x58] sm:$0xff] }
   0xd   :  { %5679 = vmatmul.mubr.msk.bf16.vlgmr.msra.gmra.mrb[0].mxu0 %vm185_vm1, %v157_v9  ;;  %v160_v16 = vpack.c.bf16 %v84_v14, %v83_v13  ;;  %v87_v19 = vld [vmem:[%s9369_s1 + $0x60] sm:$0xff]  ;;  %v88_v20 = vld [vmem:[%s9369_s1 + $0x68] sm:$0xff]  ;;  %v161_v21 = vpack.c.bf16 %v86_v18, %v85_v17  ;;  %v89_v23 = vld [vmem:[%s9369_s1 + $0x70] sm:$0xff] }
   0xe   :  { %5682 = vmatprep.mubr.msk.bf16.mxu0 %vm185_vm1, %v158_v10  ;;  %v162_v22 = vpack.c.bf16 %v88_v20, %v87_v19  ;;  %v90_v24 = vld [vmem:[%s9369_s1 + $0x78] sm:$0xff]  ;;  %v5066_v25 = vld [vmem:[%s9369_s1 + $0x80] sm:$0xff]  ;;  %v5067_v26 = vld [vmem:[%s9369_s1 + $0x88] sm:$0xff] }
   0xf   :  { %v163_v27 = vpack.c.bf16 %v90_v24, %v89_v23  ;;  %v164_v28 = vpack.c.bf16 %v5067_v26, %v5066_v25  ;;  %v5068_v29 = vld [vmem:[%s9369_s1 + $0x90] sm:$0xff]  ;;  %v5069_v30 = vld [vmem:[%s9369_s1 + $0x98] sm:$0xff]  ;;  %v5070_v31 = vld [vmem:[%s9369_s1 + $0xa0] sm:$0xff] }
  0x10   :  { %v5071_v32 = vld [vmem:[%s9369_s1 + $0xa8] sm:$0xff]  ;;  %v165_v33 = vpack.c.bf16 %v5069_v30, %v5068_v29  ;;  %v5072_v35 = vld [vmem:[%s9369_s1 + $0xb0] sm:$0xff]  ;;  %v5073_v36 = vld [vmem:[%s9369_s1 + $0xb8] sm:$0xff] }
  0x11   :  { %v166_v34 = vpack.c.bf16 %v5071_v32, %v5070_v31  ;;  %v5074_v37 = vld [vmem:[%s9369_s1 + $0xc0] sm:$0xff]  ;;  %v5075_v38 = vld [vmem:[%s9369_s1 + $0xc8] sm:$0xff]  ;;  %v167_v39 = vpack.c.bf16 %v5073_v36, %v5072_v35  ;;  %v5076_v41 = vld [vmem:[%s9369_s1 + $0xd0] sm:$0xff] }
  0x12   :  { %v168_v40 = vpack.c.bf16 %v5075_v38, %v5074_v37  ;;  %v5077_v42 = vld [vmem:[%s9369_s1 + $0xd8] sm:$0xff]  ;;  %v5078_v43 = vld [vmem:[%s9369_s1 + $0xe0] sm:$0xff]  ;;  %v5079_v44 = vld [vmem:[%s9369_s1 + $0xe8] sm:$0xff] }
  0x13   :  { %v169_v45 = vpack.c.bf16 %v5077_v42, %v5076_v41  ;;  %v170_v46 = vpack.c.bf16 %v5079_v44, %v5078_v43  ;;  %v5080_v47 = vld [vmem:[%s9369_s1 + $0xf0] sm:$0xff]  ;;  %v5081_v48 = vld [vmem:[%s9369_s1 + $0xf8] sm:$0xff]  ;;  %v5082_v49 = vld [vmem:[%s9369_s1 + $0x100] sm:$0xff] }
  0x14   :  { %v5083_v50 = vld [vmem:[%s9369_s1 + $0x108] sm:$0xff]  ;;  %v171_v51 = vpack.c.bf16 %v5081_v48, %v5080_v47  ;;  %v5084_v53 = vld [vmem:[%s9369_s1 + $0x110] sm:$0xff]  ;;  %v5085_v54 = vld [vmem:[%s9369_s1 + $0x118] sm:$0xff] }
  0x15   :  { %5683 = vmatmul.mubr.msk.bf16.gmra.mrb[4].mxu0 %vm185_vm1, %v159_v15  ;;  %v172_v52 = vpack.c.bf16 %v5083_v50, %v5082_v49  ;;  %v5086_v55 = vld [vmem:[%s9369_s1 + $0x120] sm:$0xff]  ;;  %v5087_v56 = vld [vmem:[%s9369_s1 + $0x128] sm:$0xff]  ;;  %v173_v57 = vpack.c.bf16 %v5085_v54, %v5084_v53  ;;  %v5088_v59 = vld [vmem:[%s9369_s1 + $0x130] sm:$0xff] }
  0x16   :  { %5686 = vmatprep.mubr.msk.bf16.mxu0 %vm185_vm1, %v160_v16  ;;  %v174_v58 = vpack.c.bf16 %v5087_v56, %v5086_v55  ;;  %v5089_v60 = vld [vmem:[%s9369_s1 + $0x138] sm:$0xff]  ;;  %v5090_v61 = vld [vmem:[%s9369_s1 + $0x140] sm:$0xff]  ;;  %v5091_v62 = vld [vmem:[%s9369_s1 + $0x148] sm:$0xff] }
  0x17   :  { %v175_v63 = vpack.c.bf16 %v5089_v60, %v5088_v59  ;;  %v176_v0 = vpack.c.bf16 %v5091_v62, %v5090_v61  ;;  %v5092_v1 = vld [vmem:[%s9369_s1 + $0x150] sm:$0xff]  ;;  %v5093_v2 = vld [vmem:[%s9369_s1 + $0x158] sm:$0xff]  ;;  %v5094_v3 = vld [vmem:[%s9369_s1 + $0x160] sm:$0xff] }
  0x18   :  { %v5095_v4 = vld [vmem:[%s9369_s1 + $0x168] sm:$0xff]  ;;  %v177_v5 = vpack.c.bf16 %v5093_v2, %v5092_v1  ;;  %v5096_v7 = vld [vmem:[%s9369_s1 + $0x170] sm:$0xff]  ;;  %v5097_v8 = vld [vmem:[%s9369_s1 + $0x178] sm:$0xff] }
  0x19   :  { %v178_v6 = vpack.c.bf16 %v5095_v4, %v5094_v3  ;;  %v179_v9 = vpack.c.bf16 %v5097_v8, %v5096_v7  ;;  %v6327_v10 = vld [vmem:[%s9370_s25] sm:$0x1f]   ;;  %s9387_s25 = sld [smem:[#allocation26_spill]] }
  0x1a   :  { %6193 = vmatprep.subr.msk.bf16.mxu0 %vm258_vm0, %v6327_v10  ;;  %v741_v11 = vsel %vm258_vm0, %v6327_v10, 0  ;;  %6194 = vmatprep.subr.msk.bf16.mxu1 %vm258_vm0, %v6327_v10  ;;  %v7058_v12 = vld [vmem:[%s9371_s4] sm:$0xff]  }
  0x1b   :  { %5727 = vmatpush3.bf16.msra.mxu0 %v741_v11  ;;  %6143 = vmatpush3.bf16.msra.mxu1 %v741_v11 }
  0x1c   :  { %5744 = vmatprep.subr.bf16.mxu1 %v7058_v12 }
  0x1d   :  { %5687 = vmatmul.mubr.msk.bf16.gmra.mrb[8].mxu0 %vm185_vm1, %v161_v21 }
  0x1e   :  { %5690 = vmatprep.mubr.msk.bf16.mxu0 %vm185_vm1, %v162_v22 }
  0x25   :  { %5691 = vmatmul.mubr.msk.bf16.gmra.mrb[12].mxu0 %vm185_vm1, %v163_v27 }
  0x26   :  { %5694 = vmatprep.mubr.msk.bf16.mxu0 %vm185_vm1, %v164_v28 }
  0x2d   :  { %5695 = vmatmul.mubr.msk.bf16.gmra.mrb[16].mxu0 %vm185_vm1, %v165_v33 }
  0x2e   :  { %5698 = vmatprep.mubr.msk.bf16.mxu0 %vm185_vm1, %v166_v34 }
  0x35   :  { %5699 = vmatmul.mubr.msk.bf16.gmra.mrb[20].mxu0 %vm185_vm1, %v167_v39 }
  0x36   :  { %5702 = vmatprep.mubr.msk.bf16.mxu0 %vm185_vm1, %v168_v40 }
  0x3d   :  { %5703 = vmatmul.mubr.msk.bf16.gmra.mrb[24].mxu0 %vm185_vm1, %v169_v45 }
  0x3e   :  { %5706 = vmatprep.mubr.msk.bf16.mxu0 %vm185_vm1, %v170_v46 }
  0x45   :  { %5707 = vmatmul.mubr.msk.bf16.gmra.mrb[28].mxu0 %vm185_vm1, %v171_v51 }
  0x46   :  { %5710 = vmatprep.mubr.msk.bf16.mxu0 %vm185_vm1, %v172_v52 }
  0x4d   :  { %5711 = vmatmul.mubr.msk.bf16.gmra.mrb[32].mxu0 %vm185_vm1, %v173_v57 }
  0x4e   :  { %5714 = vmatprep.mubr.msk.bf16.mxu0 %vm185_vm1, %v174_v58 }
  0x55   :  { %5715 = vmatmul.mubr.msk.bf16.gmra.mrb[36].mxu0 %vm185_vm1, %v175_v63 }
  0x56   :  { %5718 = vmatprep.mubr.msk.bf16.mxu0 %vm185_vm1, %v176_v0 }
  0x5d   :  { %5719 = vmatmul.mubr.msk.bf16.gmra.mrb[40].mxu0 %vm185_vm1, %v177_v5 }
  0x5e   :  { %5722 = vmatprep.mubr.msk.bf16.mxu0 %vm185_vm1, %v178_v6 }
  0x65   :  { %5723 = vmatmul.mubr.msk.bf16.gmra.mrb[44].mxu0 %vm185_vm1, %v179_v9 }
  0xe0   :  { %v7061_v13 = vpop.f32.mrb[0].mxu0 }
  0xe1   :  { %v7063_v14 = vpop.f32.mrb[1].mxu0  ;;  %v489_v38 = vmul.f32 %v7061_v13, %v7061_v13 }
  0xe2   :  { %v7065_v15 = vpop.f32.mrb[2].mxu0  ;;  %v487_v41 = vmul.f32 %v7063_v14, %v7063_v14 }
  0xe3   :  { %v7069_v17 = vpop.f32.mrb[3].mxu0  ;;  %v490_v44 = vmul.f32 %v7065_v15, %v7065_v15 }
  0xe4   :  { %v488_v49 = vmul.f32 %v7069_v17, %v7069_v17 }
  0xe8   :  { %v7073_v19 = vpop.f32.mrb[4].mxu0 }
  0xe9   :  { %v7075_v20 = vpop.f32.mrb[5].mxu0  ;;  %v493_v56 = vmul.f32 %v7073_v19, %v7073_v19 }
  0xea   :  { %v7077_v21 = vpop.f32.mrb[6].mxu0  ;;  %v491_v59 = vmul.f32 %v7075_v20, %v7075_v20 }
  0xeb   :  { %v7081_v23 = vpop.f32.mrb[7].mxu0  ;;  %v494_v62 = vmul.f32 %v7077_v21, %v7077_v21 }
  0xec   :  { %v492_v3 = vmul.f32 %v7081_v23, %v7081_v23 }
  0xf0   :  { %v7085_v25 = vpop.f32.mrb[8].mxu0 }
  0xf1   :  { %v7087_v26 = vpop.f32.mrb[9].mxu0  ;;  %v497_v10 = vmul.f32 %v7085_v25, %v7085_v25 }
  0xf2   :  { %v7089_v27 = vpop.f32.mrb[10].mxu0 }
  0xf3   :  { %v7093_v29 = vpop.f32.mrb[11].mxu0 }
  0xf8   :  { %v7097_v31 = vpop.f32.mrb[12].mxu0 }
  0xf9   :  { %v7099_v32 = vpop.f32.mrb[13].mxu0 }
  0xfa   :  { %v7101_v33 = vpop.f32.mrb[14].mxu0 }
  0xfb   :  { %v7105_v35 = vpop.f32.mrb[15].mxu0 }
  0xfc   :  { %v500_v6 = vmul.f32 %v7105_v35, %v7105_v35 }
 0x100   :  { %v7109_v37 = vpop.f32.mrb[16].mxu0 }
 0x101   :  { %v505_v39 = vmul.f32 %v7109_v37, %v7109_v37  ;;  %v7115_v40 = vpop.f32.mrb[17].mxu0 }
 0x102   :  { %v503_v42 = vmul.f32 %v7115_v40, %v7115_v40  ;;  %v7121_v43 = vpop.f32.mrb[18].mxu0 }
 0x103   :  { %v7125_v45 = vadd.f32 %v505_v39, %v489_v38  ;;  %v506_v46 = vmul.f32 %v7121_v43, %v7121_v43  ;;  %v7131_v48 = vpop.f32.mrb[19].mxu0  ;;  %v495_v39 = vmul.f32 %v7087_v26, %v7087_v26 }
 0x104   :  { %v7135_v50 = vadd.f32 %v503_v42, %v487_v41  ;;  %v504_v51 = vmul.f32 %v7131_v48, %v7131_v48 }
 0x105   :  { %v7141_v53 = vadd.f32 %v506_v46, %v490_v44  ;;  %v498_v44 = vmul.f32 %v7089_v27, %v7089_v27 }
 0x106   :  { %v7143_v54 = vadd.f32 %v504_v51, %v488_v49 }
 0x108   :  { %v7145_v55 = vpop.f32.mrb[20].mxu0 }
 0x109   :  { %v509_v57 = vmul.f32 %v7145_v55, %v7145_v55  ;;  %v7151_v58 = vpop.f32.mrb[21].mxu0 }
 0x10a   :  { %v507_v60 = vmul.f32 %v7151_v58, %v7151_v58  ;;  %v7157_v61 = vpop.f32.mrb[22].mxu0 }
 0x10b   :  { %v7161_v63 = vadd.f32 %v509_v57, %v493_v56  ;;  %v510_v0 = vmul.f32 %v7157_v61, %v7157_v61  ;;  %v7167_v2 = vpop.f32.mrb[23].mxu0  ;;  %v496_v57 = vmul.f32 %v7093_v29, %v7093_v29 }
 0x10c   :  { %v7171_v4 = vadd.f32 %v507_v60, %v491_v59  ;;  %v508_v5 = vmul.f32 %v7167_v2, %v7167_v2 }
 0x10d   :  { %v7177_v7 = vadd.f32 %v510_v0, %v494_v62 }
 0x10e   :  { %v7179_v8 = vadd.f32 %v508_v5, %v492_v3 }
 0x110   :  { %v7181_v9 = vpop.f32.mrb[24].mxu0 }
 0x111   :  { %9372 = vst [vmem:[#allocation2_spill] sm:$0xff] %v7181_v9  ;;  %v513_v11 = vmul.f32 %v7181_v9, %v7181_v9  ;;  %v7187_v38 = vpop.f32.mrb[25].mxu0 }
 0x112   :  { %v511_v41 = vmul.f32 %v7187_v38, %v7187_v38  ;;  %v7193_v42 = vpop.f32.mrb[26].mxu0 }
 0x113   :  { %9373 = vst [vmem:[#allocation3_spill] sm:$0xff] %v7193_v42  ;;  %v7197_v46 = vadd.f32 %v513_v11, %v497_v10  ;;  %v514_v49 = vmul.f32 %v7193_v42, %v7193_v42  ;;  %v7203_v56 = vpop.f32.mrb[27].mxu0  ;;  %v501_v10 = vmul.f32 %v7097_v31, %v7097_v31 }
 0x114   :  { %v7207_v59 = vadd.f32 %v511_v41, %v495_v39  ;;  %v512_v60 = vmul.f32 %v7203_v56, %v7203_v56  ;;  %v499_v41 = vmul.f32 %v7099_v32, %v7099_v32 }
 0x115   :  { %v7213_v0 = vadd.f32 %v514_v49, %v498_v44  ;;  %v502_v49 = vmul.f32 %v7101_v33, %v7101_v33 }
 0x116   :  { %v7215_v3 = vadd.f32 %v512_v60, %v496_v57 }
 0x118   :  { %v7217_v5 = vpop.f32.mrb[28].mxu0 }
 0x119   :  { %9374 = vst [vmem:[#allocation4_spill] sm:$0xff] %v7217_v5  ;;  %v517_v11 = vmul.f32 %v7217_v5, %v7217_v5  ;;  %v7223_v39 = vpop.f32.mrb[29].mxu0 }
 0x11a   :  { %9375 = vst [vmem:[#allocation5_spill] sm:$0xff] %v7223_v39  ;;  %v515_v51 = vmul.f32 %v7223_v39, %v7223_v39  ;;  %v7229_v44 = vpop.f32.mrb[30].mxu0 }
 0x11b   :  { %9376 = vst [vmem:[#allocation6_spill] sm:$0xff] %v7229_v44  ;;  %v7233_v57 = vadd.f32 %v517_v11, %v501_v10  ;;  %v518_v60 = vmul.f32 %v7229_v44, %v7229_v44  ;;  %v7239_v1 = vpop.f32.mrb[31].mxu0 }
 0x11c   :  { %9377 = vst [vmem:[#allocation7_spill] sm:$0xff] %v7239_v1  ;;  %v7243_v47 = vadd.f32 %v515_v51, %v499_v41  ;;  %v516_v52 = vmul.f32 %v7239_v1, %v7239_v1 }
 0x11d   :  { %v7249_v11 = vadd.f32 %v518_v60, %v502_v49 }
 0x11e   :  { %v7251_v34 = vadd.f32 %v516_v52, %v500_v6 }
 0x120   :  { %v7253_v36 = vpop.f32.mrb[32].mxu0 }
 0x121   :  { %9378 = vst [vmem:[#allocation8_spill] sm:$0xff] %v7253_v36  ;;  %v537_v62 = vmul.f32 %v7253_v36, %v7253_v36  ;;  %v7257_v28 = vpop.f32.mrb[33].mxu0 }
 0x122   :  { %9379 = vst [vmem:[#allocation9_spill] sm:$0xff] %v7257_v28  ;;  %v535_v51 = vmul.f32 %v7257_v28, %v7257_v28  ;;  %v7261_v41 = vpop.f32.mrb[34].mxu0 }
 0x123   :  { %9380 = vst [vmem:[#allocation10_spill] sm:$0xff] %v7261_v41  ;;  %v553_v30 = vadd.f32 %v537_v62, %v7125_v45  ;;  %v538_v49 = vmul.f32 %v7261_v41, %v7261_v41  ;;  %v7268_v6 = vpop.f32.mrb[35].mxu0 }
 0x124   :  { %9381 = vst [vmem:[#allocation11_spill] sm:$0xff] %v7268_v6  ;;  %v551_v60 = vadd.f32 %v535_v51, %v7135_v50  ;;  %v536_v10 = vmul.f32 %v7268_v6, %v7268_v6 }
 0x125   :  { %v7275_v24 = vmax.f32 %v553_v30, 1e-08  ;;  %v554_v45 = vadd.f32 %v538_v49, %v7141_v53 }
 0x126   :  { %v7278_v62 = vmax.f32 %v551_v60, 1e-08  ;;  %v552_v16 = vadd.f32 %v536_v10, %v7143_v54 }
 0x127   :  { %6337 = vrsqrt.f32 %v7275_v24  ;;  %v7282_v52 = vmax.f32 %v554_v45, 1e-08  ;;  %vm599_vm2 = vcmp.eq.f32.partialorder %v7275_v24, inf  ;;  %vm601_vm8 = vcmp.eq.f32.partialorder %v7275_v24, 0.0 }
 0x128   :  { %6339 = vrsqrt.f32 %v7278_v62  ;;  %v7285_v50 = vmax.f32 %v552_v16, 1e-08  ;;  %v7287_v51 = vpop.f32.mrb[36].mxu0  ;;  %vm585_vm3 = vcmp.eq.f32.partialorder %v7278_v62, inf  ;;  %vm587_vm5 = vcmp.eq.f32.partialorder %v7278_v62, 0.0 }
 0x129   :  { %9382 = vst [vmem:[#allocation12_spill] sm:$0xff] %v7287_v51  ;;  %6341 = vrsqrt.f32 %v7282_v52  ;;  %v541_v30 = vmul.f32 %v7287_v51, %v7287_v51  ;;  %v7292_v53 = vpop.f32.mrb[37].mxu0  ;;  %vm606_vm4 = vcmp.eq.f32.partialorder %v7282_v52, inf  ;;  %vm608_vm9 = vcmp.eq.f32.partialorder %v7282_v52, 0.0 }
 0x12a   :  { %9383 = vst [vmem:[#allocation13_spill] sm:$0xff] %v7292_v53  ;;  %6343 = vrsqrt.f32 %v7285_v50  ;;  %v539_v54 = vmul.f32 %v7292_v53, %v7292_v53  ;;  %v7297_v10 = vpop.f32.mrb[38].mxu0  ;;  %vm592_vm6 = vcmp.eq.f32.partialorder %v7285_v50, inf  ;;  %vm594_vm7 = vcmp.eq.f32.partialorder %v7285_v50, 0.0 }
 0x12b   :  { %9384 = vst [vmem:[#allocation14_spill] sm:$0xff] %v7297_v10  ;;  %v557_v49 = vadd.f32 %v541_v30, %v7161_v63  ;;  %v542_v16 = vmul.f32 %v7297_v10, %v7297_v10  ;;  %v7304_v45 = vpop.f32.mrb[39].mxu0  ;;  %v602_v30 = vand.u32 2147483648, %v7275_v24 }
 0x12c   :  { %9385 = vst [vmem:[#allocation15_spill] sm:$0xff] %v7304_v45  ;;  %v555_v22 = vadd.f32 %v539_v54, %v7171_v4  ;;  %v540_v18 = vmul.f32 %v7304_v45, %v7304_v45  ;;  %v609_v4 = vand.u32 2147483648, %v7282_v52 }
 0x12d   :  { %v7312_v41 = vmax.f32 %v557_v49, 1e-08  ;;  %v558_v63 = vadd.f32 %v542_v16, %v7177_v7  ;;  %v588_v7 = vand.u32 2147483648, %v7278_v62 }
 0x12e   :  { %v7316_v28 = vmax.f32 %v555_v22, 1e-08  ;;  %v556_v60 = vadd.f32 %v540_v18, %v7179_v8 }
 0x12f   :  { %6345 = vrsqrt.f32 %v7312_v41  ;;  %v7323_v54 = vmax.f32 %v558_v63, 1e-08  ;;  %v595_v63 = vand.u32 2147483648, %v7285_v50  ;;  %vm627_vm13 = vcmp.eq.f32.partialorder %v7312_v41, inf }
 0x130   :  { %6347 = vrsqrt.f32 %v7316_v28  ;;  %v7328_v22 = vmax.f32 %v556_v60, 1e-08  ;;  %v7330_v49 = vpop.f32.mrb[40].mxu0  ;;  %vm613_vm10 = vcmp.eq.f32.partialorder %v7316_v28, inf  ;;  %vm615_vm11 = vcmp.eq.f32.partialorder %v7316_v28, 0.0 }
 0x131   :  { %v6338_v18 = vpop.eup %6337  ;;  %6349 = vrsqrt.f32 %v7323_v54  ;;  %v545_v8 = vmul.f32 %v7330_v49, %v7330_v49  ;;  %v7337_v16 = vpop.f32.mrb[41].mxu0  ;;  %vm634_vm15 = vcmp.eq.f32.partialorder %v7323_v54, inf }
 0x132   :  { %v6340_v60 = vpop.eup %6339  ;;  %v598_v36 = vmul.f32 %v6338_v18, %v7275_v24  ;;  %6351 = vrsqrt.f32 %v7328_v22  ;;  %v543_v51 = vmul.f32 %v7337_v16, %v7337_v16  ;;  %v7345_v10 = vpop.f32.mrb[42].mxu0  ;;  %vm620_vm12 = vcmp.eq.f32.partialorder %v7328_v22, inf }
 0x133   :  { %v6342_v53 = vpop.eup %6341  ;;  %v561_v45 = vadd.f32 %v545_v8, %v7197_v46  ;;  %v546_v6 = vmul.f32 %v7345_v10, %v7345_v10  ;;  %v7353_v44 = vpop.f32.mrb[43].mxu0  ;;  %v584_v18 = vmul.f32 %v6340_v60, %v7278_v62  ;;  %v616_v46 = vand.u32 2147483648, %v7316_v28 }
 0x134   :  { %v6344_v39 = vpop.eup %6343  ;;  %v605_v1 = vmul.f32 %v6342_v53, %v7282_v52  ;;  %v559_v9 = vadd.f32 %v543_v51, %v7207_v59  ;;  %v544_v42 = vmul.f32 %v7353_v44, %v7353_v44  ;;  %v600_v51 = vsel %vm599_vm2, %v7275_v24, %v598_v36 }
 0x135   :  { %v7363_v8 = vmax.f32 %v561_v45, 1e-08  ;;  %v562_v5 = vadd.f32 %v546_v6, %v7213_v0  ;;  %v586_v60 = vsel %vm585_vm3, %v7278_v62, %v584_v18  ;;  %v591_v53 = vmul.f32 %v6344_v39, %v7285_v50 }
 0x136   :  { %v560_v59 = vadd.f32 %v544_v42, %v7215_v3  ;;  %v7378_v0 = vmax.f32 %v559_v9, 1e-08  ;;  %v589_v42 = vsel %vm587_vm5, %v588_v7, %v586_v60  ;;  %v603_v3 = vsel %vm601_vm8, %v602_v30, %v600_v51 }
 0x137   :  { %6353 = vrsqrt.f32 %v7363_v8  ;;  %v7380_v6 = vmax.f32 %v562_v5, 1e-08  ;;  %v593_v39 = vsel %vm592_vm6, %v7285_v50, %v591_v53  ;;  %v607_v9 = vsel %vm606_vm4, %v7282_v52, %v605_v1 }
 0x138   :  { %v7385_v45 = vpop.f32.mrb[44].mxu0  ;;  %v596_v36 = vsel %vm594_vm7, %v595_v63, %v593_v39  ;;  %v610_v50 = vsel %vm608_vm9, %v609_v4, %v607_v9  ;;  %v7404_v30 = vmax.f32 %v560_v59, 1e-08  ;;  %vm622_vm14 = vcmp.eq.f32.partialorder %v7328_v22, 0.0 }
 0x139   :  { %v6346_v5 = vpop.eup %6345  ;;  %6355 = vrsqrt.f32 %v7380_v6  ;;  %v549_v18 = vmul.f32 %v7385_v45, %v7385_v45  ;;  %v7400_v62 = vpop.f32.mrb[45].mxu0  ;;  %v703_v7 = vpack.c.bf16 %v596_v36, %v589_v42  ;;  %v704_v60 = vpack.c.bf16 %v610_v50, %v603_v3 }
 0x13a   :  { %v6348_v24 = vpop.eup %6347  ;;  %v547_v1 = vmul.f32 %v7400_v62, %v7400_v62  ;;  %v7408_v63 = vpop.f32.mrb[46].mxu0  ;;  %v626_v9 = vmul.f32 %v6346_v5, %v7312_v41  ;;  %vm629_vm2 = vcmp.eq.f32.partialorder %v7312_v41, 0.0  ;;  %vm636_vm3 = vcmp.eq.f32.partialorder %v7323_v54, 0.0 }
 0x13b   :  { %v6350_v53 = vpop.eup %6349  ;;  %v565_v51 = vadd.f32 %v549_v18, %v7233_v57  ;;  %v550_v39 = vmul.f32 %v7408_v63, %v7408_v63  ;;  %v7416_v4 = vpop.f32.mrb[47].mxu0  ;;  %5728 = vmatprep.mubr.msk.bf16.mxu0 %vm185_vm1, %v703_v7  ;;  %v612_v59 = vmul.f32 %v6348_v24, %v7316_v28  ;;  %vm655_vm4 = vcmp.eq.f32.partialorder %v7363_v8, inf }
 0x13c   :  { %v6352_v42 = vpop.eup %6351  ;;  %v563_v36 = vadd.f32 %v547_v1, %v7243_v47  ;;  %v548_v3 = vmul.f32 %v7416_v4, %v7416_v4  ;;  %v1025_v57 = vpack.c.bf16 %v7416_v4, %v7400_v62  ;;  %5729 = vmatmul.mubr.msk.bf16.vlgmr.msra.gmra.mrb[48].mxu0 %vm185_vm1, %v704_v60  ;;  %v623_v60 = vand.u32 2147483648, %v7328_v22 }
 0x13d   :  { %v7427_v18 = vmax.f32 %v565_v51, 1e-08  ;;  %v566_v50 = vadd.f32 %v550_v39, %v7249_v11  ;;  %v614_v7 = vsel %vm613_vm10, %v7316_v28, %v612_v59  ;;  %v619_v47 = vmul.f32 %v6352_v42, %v7328_v22 }
 0x13e   :  { %v7434_v24 = vmax.f32 %v563_v36, 1e-08  ;;  %v564_v1 = vadd.f32 %v548_v3, %v7251_v34  ;;  %v617_v52 = vsel %vm615_vm11, %v616_v46, %v614_v7  ;;  %v633_v51 = vmul.f32 %v6350_v53, %v7323_v54 }
 0x13f   :  { %6357 = vrsqrt.f32 %v7427_v18  ;;  %v7441_v5 = vmax.f32 %v566_v50, 1e-08  ;;  %v621_v11 = vsel %vm620_vm12, %v7328_v22, %v619_v47  ;;  %v628_v59 = vsel %vm627_vm13, %v7312_v41, %v626_v9 }
 0x140   :  { %6359 = vrsqrt.f32 %v7434_v24  ;;  %v7448_v39 = vmax.f32 %v564_v1, 1e-08  ;;  %v624_v28 = vsel %vm622_vm14, %v623_v60, %v621_v11  ;;  %v635_v42 = vsel %vm634_vm15, %v7323_v54, %v633_v51 }
 0x141   :  { %v6354_v34 = vpop.eup %6353  ;;  %6361 = vrsqrt.f32 %v7441_v5  ;;  %v705_v46 = vpack.c.bf16 %v624_v28, %v617_v52  ;;  %v630_v53 = vand.u32 2147483648, %v7312_v41  ;;  %v637_v36 = vand.u32 2147483648, %v7323_v54 }
 0x142   :  { %6363 = vrsqrt.f32 %v7448_v39  ;;  %v654_v9 = vmul.f32 %v6354_v34, %v7363_v8  ;;  %vm641_vm5 = vcmp.eq.f32.partialorder %v7378_v0, inf  ;;  %v644_v41 = vand.u32 2147483648, %v7378_v0 }
 0x143   :  { %v6356_v22 = vpop.eup %6355  ;;  %5732 = vmatprep.mubr.msk.bf16.mxu0 %vm185_vm1, %v705_v46  ;;  %6365 = vrsqrt.f32 %v7378_v0  ;;  %v631_v52 = vsel %vm629_vm2, %v630_v53, %v628_v59  ;;  %v638_v3 = vsel %vm636_vm3, %v637_v36, %v635_v42  ;;  %v658_v54 = vand.u32 2147483648, %v7363_v8 }
 0x144   :  { %6367 = vrsqrt.f32 %v7404_v30  ;;  %v706_v50 = vpack.c.bf16 %v638_v3, %v631_v52  ;;  %v656_v7 = vsel %vm655_vm4, %v7363_v8, %v654_v9  ;;  %v661_v47 = vmul.f32 %v6356_v22, %v7380_v6 }
 0x145   :  { %vm662_vm6 = vcmp.eq.f32.partialorder %v7380_v6, inf  ;;  %v665_v1 = vand.u32 2147483648, %v7380_v6  ;;  %vm648_vm7 = vcmp.eq.f32.partialorder %v7404_v30, inf  ;;  %vm657_vm8 = vcmp.eq.f32.partialorder %v7363_v8, 0.0 }
 0x146   :  { %5733 = vmatmul.mubr.msk.bf16.gmra.mrb[52].mxu0 %vm185_vm1, %v706_v50  ;;  %v663_v60 = vsel %vm662_vm6, %v7380_v6, %v661_v47  ;;  %vm664_vm9 = vcmp.eq.f32.partialorder %v7380_v6, 0.0  ;;  %v651_v51 = vand.u32 2147483648, %v7404_v30  ;;  %v659_v28 = vsel %vm657_vm8, %v658_v54, %v656_v7 }
 0x147   :  { %v666_v34 = vsel %vm664_vm9, %v665_v1, %v663_v60  ;;  %vm669_vm10 = vcmp.eq.f32.partialorder %v7434_v24, inf  ;;  %vm671_vm11 = vcmp.eq.f32.partialorder %v7434_v24, 0.0  ;;  %v672_v42 = vand.u32 2147483648, %v7434_v24 }
 0x148   :  { %v708_v59 = vpack.c.bf16 %v666_v34, %v659_v28  ;;  %vm676_vm12 = vcmp.eq.f32.partialorder %v7448_v39, inf  ;;  %vm678_vm13 = vcmp.eq.f32.partialorder %v7448_v39, 0.0  ;;  %vm683_vm14 = vcmp.eq.f32.partialorder %v7427_v18, inf }
 0x149   :  { %v6358_v11 = vpop.eup %6357  ;;  %v679_v22 = vand.u32 2147483648, %v7448_v39  ;;  %v686_v3 = vand.u32 2147483648, %v7427_v18  ;;  %vm690_vm15 = vcmp.eq.f32.partialorder %v7441_v5, inf  ;;  %v693_v54 = vand.u32 2147483648, %v7441_v5 }
 0x14a   :  { %v6360_v46 = vpop.eup %6359  ;;  %v682_v53 = vmul.f32 %v6358_v11, %v7427_v18  ;;  %vm685_vm2 = vcmp.eq.f32.partialorder %v7427_v18, 0.0  ;;  %vm692_vm3 = vcmp.eq.f32.partialorder %v7441_v5, 0.0  ;;  %vm643_vm4 = vcmp.eq.f32.partialorder %v7378_v0, 0.0 }
 0x14b   :  { %v6362_v8 = vpop.eup %6361  ;;  %v668_v36 = vmul.f32 %v6360_v46, %v7434_v24  ;;  %vm650_vm6 = vcmp.eq.f32.partialorder %v7404_v30, 0.0  ;;  %vm1763_vm8 = vcmask 31744  }
 0x14c   :  { %v6364_v6 = vpop.eup %6363  ;;  %v684_v52 = vsel %vm683_vm14, %v7427_v18, %v682_v53  ;;  %v689_v9 = vmul.f32 %v6362_v8, %v7441_v5 }
 0x14d   :  { %v6366_v50 = vpop.eup %6365  ;;  %v670_v7 = vsel %vm669_vm10, %v7434_v24, %v668_v36  ;;  %v675_v47 = vmul.f32 %v6364_v6, %v7448_v39  ;;  %v687_v46 = vsel %vm685_vm2, %v686_v3, %v684_v52  ;;  %v6329_v24 = vld [vmem:[%s9371_s4 + $0x8] sm:$0xff]  }
 0x14e   :  { %v6368_v1 = vpop.eup %6367  ;;  %v640_v60 = vmul.f32 %v6366_v50, %v7378_v0  ;;  %v691_v11 = vsel %vm690_vm15, %v7441_v5, %v689_v9  ;;  %v673_v36 = vsel %vm671_vm11, %v672_v42, %v670_v7  ;;  %v128_v42 = vld [vmem:[%s9386_s3 + $0x18] sm:$0xff]  ;;  %v130_v7 = vld [vmem:[%s9386_s3 + $0x28] sm:$0xff] }
 0x14f   :  { %v647_v28 = vmul.f32 %v6368_v1, %v7404_v30  ;;  %v677_v34 = vsel %vm676_vm12, %v7448_v39, %v675_v47  ;;  %v694_v53 = vsel %vm692_vm3, %v693_v54, %v691_v11  ;;  %v126_v39 = vld [vmem:[%s9386_s3 + $0x8] sm:$0xff]  ;;  %v132_v11 = vld [vmem:[%s9386_s3 + $0x38] sm:$0xff] }
 0x150   :  { %v642_v8 = vsel %vm641_vm5, %v7378_v0, %v640_v60  ;;  %v680_v18 = vsel %vm678_vm13, %v679_v22, %v677_v34  ;;  %v710_v6 = vpack.c.bf16 %v694_v53, %v687_v46  ;;  %v6330_v0 = vld [vmem:[%s9371_s4 + $0x10] ss:$0 sps:$4 sm:$0xff]   ;;  %vm880_vm5 = vcmask 1043456   ;;  %v129_v22 = vld [vmem:[%s9386_s3 + $0x20] sm:$0xff]  ;;  %v134_v34 = vld [vmem:[%s9386_s3 + $0x48] sm:$0xff] }
 0x151   :  { %v649_v5 = vsel %vm648_vm7, %v7404_v30, %v647_v28  ;;  %v709_v52 = vpack.c.bf16 %v680_v18, %v673_v36  ;;  %v645_v3 = vsel %vm643_vm4, %v644_v41, %v642_v8  ;;  %v125_v30 = vld [vmem:[%s9386_s3] sm:$0xff]  ;;  %vm855_vm7 = vcmask 326656   ;;  %v131_v60 = vld [vmem:[%s9386_s3 + $0x30] sm:$0xff]  ;;  %v136_v36 = vld [vmem:[%s9386_s3 + $0x58] sm:$0xff] }
 0x152   :  { %v652_v9 = vsel %vm650_vm6, %v651_v51, %v649_v5  ;;  %v695_v41 = vpack.c.bf16 %v126_v39, %v125_v30  ;;  %v6331_v51 = vld [vmem:[%s9387_s25] sm:$0x1f]   ;;  %v697_v54 = vpack.c.bf16 %v130_v7, %v129_v22  ;;  %v698_v46 = vpack.c.bf16 %v132_v11, %v131_v60  ;;  %v135_v8 = vld [vmem:[%s9386_s3 + $0x50] sm:$0xff] }
 0x153   :  { %v707_v50 = vpack.c.bf16 %v652_v9, %v645_v3  ;;  %v1105_v1 = vsel %vm258_vm0, %v6331_v51, 0  ;;  %v133_v28 = vld [vmem:[%s9386_s3 + $0x40] sm:$0xff]  ;;  %v700_v5 = vpack.c.bf16 %v136_v36, %v135_v8  ;;  %v139_v3 = vld [vmem:[%s9386_s3 + $0x70] sm:$0xff]  ;;  %v140_v9 = vld [vmem:[%s9386_s3 + $0x78] sm:$0xff]  ;;  %v9390_v30 = vpack.c.bf16 %v7081_v23, %v7075_v20 }
 0x154   :  { %v699_v53 = vpack.c.bf16 %v134_v34, %v133_v28  ;;  %v137_v18 = vld [vmem:[%s9386_s3 + $0x60] sm:$0xff]  ;;  %v9391_v39 = vpack.c.bf16 %v7077_v21, %v7073_v19  ;;  %v9396_v19 = vpack.c.bf16 %v7131_v48, %v7115_v40  ;;  %v9397_v20 = vpack.c.bf16 %v7121_v43, %v7109_v37  ;;  %v9408_v37 = vld [vmem:[#allocation4_spill] sm:$0xff]  ;;  %v9410_v43 = vld [vmem:[#allocation11_spill] sm:$0xff] }
 0x155   :  { %5736 = vmatprep.mubr.msk.bf16.mxu1 %vm185_vm1, %v707_v50  ;;  %v702_v50 = vpack.c.bf16 %v140_v9, %v139_v3  ;;  %v9398_v21 = vpack.c.bf16 %v7167_v2, %v7151_v58  ;;  %v9399_v23 = vpack.c.bf16 %v7157_v61, %v7145_v55  ;;  %v9411_v48 = vld [vmem:[#allocation9_spill] sm:$0xff]  ;;  %v9413_v58 = vld [vmem:[#allocation10_spill] sm:$0xff]  ;;  %v9414_v61 = vld [vmem:[#allocation8_spill] sm:$0xff]  ;;  %v9423_v22 = vpack.c.bf16 %v7345_v10, %v7330_v49 }
 0x156   :  { %5737 = vmatmul.mubr.msk.bf16.vlgmr.msra.gmra.mrb[0].mxu1 %vm185_vm1, %v708_v59  ;;  %v127_v59 = vld [vmem:[%s9386_s3 + $0x10] sm:$0xff]  ;;  %v9412_v55 = vpack.c.bf16 %v9410_v43, %v9411_v48  ;;  %v9415_v2 = vpack.c.bf16 %v9413_v58, %v9414_v61  ;;  %v9424_v7 = vpack.c.bf16 %v7408_v63, %v7385_v45  ;;  %v7693_v45 = vld [vmem:[%s9426_s7] ss:$0 sm:$0xff] }
 0x157   :  { %5745 = vmatpush3.bf16.msra.mxu1 %v7058_v12  ;;  %5740 = vmatprep.mubr.msk.bf16.mxu1 %vm185_vm1, %v709_v52  ;;  %v882_v12 = vsel %vm880_vm5, %v6330_v0, 0  ;;  %v696_v47 = vpack.c.bf16 %v128_v42, %v127_v59  ;;  %v9422_v42 = vpack.c.bf16 %v7353_v44, %v7337_v16  ;;  %v6332_v44 = vld [vmem:[%s9425_s26] sm:$0xff]  }
 0x158   :  { %5746 = vmatprep.subr.bf16.mxu1 %v6329_v24  ;;  %5816 = vmatprep.subr.bf16.mxu0 %v6332_v44 }
 0x159   :  { %5817 = vmatpush3.bf16.msra.mxu0 %v6332_v44 }
 0x15b   :  { %5747 = vmatpush3.bf16.msra.mxu1 %v6329_v24  ;;  %v9388_v24 = vpack.c.bf16 %v7069_v17, %v7063_v14  ;;  %v9392_v14 = vpack.c.bf16 %v7093_v29, %v7087_v26  ;;  %v9395_v17 = vpack.c.bf16 %v7101_v33, %v7097_v31  ;;  %v9401_v26 = vld [vmem:[#allocation3_spill] sm:$0xff] }
 0x15c   :  { %6195 = vmatprep.subr.msk.bf16.mxu1 %vm880_vm5, %v6330_v0  ;;  %v9389_v0 = vpack.c.bf16 %v7065_v15, %v7061_v13  ;;  %v9393_v13 = vpack.c.bf16 %v7089_v27, %v7085_v25  ;;  %v9394_v15 = vpack.c.bf16 %v7105_v35, %v7099_v32  ;;  %v9400_v25 = vpack.c.bf16 %v7203_v56, %v7187_v38  ;;  %v9402_v27 = vld [vmem:[#allocation2_spill] sm:$0xff]  ;;  %v9404_v31 = vld [vmem:[#allocation7_spill] sm:$0xff]  ;;  %v9405_v32 = vld [vmem:[#allocation5_spill] sm:$0xff] }
 0x15d   :  { %v9403_v29 = vpack.c.bf16 %v9401_v26, %v9402_v27  ;;  %v9406_v33 = vpack.c.bf16 %v9404_v31, %v9405_v32  ;;  %v9407_v35 = vld [vmem:[#allocation6_spill] sm:$0xff]  ;;  %v9416_v38 = vld [vmem:[#allocation15_spill] sm:$0xff]  ;;  %v9417_v56 = vld [vmem:[#allocation13_spill] sm:$0xff] }
 0x15e   :  { %5741 = vmatmul.mubr.msk.bf16.gmra.mrb[4].mxu1 %vm185_vm1, %v710_v6  ;;  %v138_v6 = vld [vmem:[%s9386_s3 + $0x68] sm:$0xff]  ;;  %v9409_v40 = vpack.c.bf16 %v9407_v35, %v9408_v37 }
 0x15f   :  { %5749 = vmatpush3.bf16.msra.mxu1 %v882_v12  ;;  %5750 = vmatprep.mubr.msk.bf16.mxu1 %vm855_vm7, %v695_v41  ;;  %v701_v52 = vpack.c.bf16 %v138_v6, %v137_v18  ;;  %v9418_v41 = vpack.c.bf16 %v9416_v38, %v9417_v56  ;;  %v9419_v12 = vld [vmem:[#allocation14_spill] sm:$0xff] }
 0x160   :  { %6196 = vmatprep.subr.msk.bf16.mxu1 %vm258_vm0, %v6331_v51  ;;  %v9420_v51 = vld [vmem:[#allocation12_spill] sm:$0xff]  ;;  %vm1448_vm0 = vcmask 130048  }
 0x161   :  { %v9421_v59 = vpack.c.bf16 %v9419_v12, %v9420_v51 }
 0x166   :  { %5751 = vmatmul.mubr.msk.bf16.vlgmr.msra.gmra.mrb[8].mxu1 %vm855_vm7, %v696_v47 }
 0x167   :  { %5754 = vmatprep.mubr.msk.bf16.mxu1 %vm855_vm7, %v697_v54  ;;  %5767 = vmatpush3.bf16.msra.mxu1 %v1105_v1 }
 0x16e   :  { %5755 = vmatmul.mubr.msk.bf16.gmra.mrb[12].mxu1 %vm855_vm7, %v698_v46 }
 0x16f   :  { %5758 = vmatprep.mubr.msk.bf16.mxu1 %vm855_vm7, %v699_v53 }
 0x176   :  { %5759 = vmatmul.mubr.msk.bf16.gmra.mrb[0].mxu1 %vm855_vm7, %v700_v5 }
 0x177   :  { %5762 = vmatprep.mubr.msk.bf16.mxu1 %vm855_vm7, %v701_v52 }
 0x17e   :  { %5763 = vmatmul.mubr.msk.bf16.gmra.mrb[4].mxu1 %vm855_vm7, %v702_v50 }
 0x17f   :  { %5768 = vmatprep.mubr.msk.bf16.mxu1 %vm185_vm1, %v9388_v24 }
 0x186   :  { %5769 = vmatmul.mubr.msk.bf16.vlgmr.msra.gmra.mrb[16].mxu1 %vm185_vm1, %v9389_v0 }
 0x187   :  { %5772 = vmatprep.mubr.msk.bf16.mxu1 %vm185_vm1, %v9390_v30 }
 0x18e   :  { %5773 = vmatmul.mubr.msk.bf16.gmra.mrb[20].mxu1 %vm185_vm1, %v9391_v39 }
 0x18f   :  { %5776 = vmatprep.mubr.msk.bf16.mxu1 %vm185_vm1, %v9392_v14 }
 0x196   :  { %5777 = vmatmul.mubr.msk.bf16.gmra.mrb[24].mxu1 %vm185_vm1, %v9393_v13 }
 0x197   :  { %5780 = vmatprep.mubr.msk.bf16.mxu1 %vm185_vm1, %v9394_v15 }
 0x19e   :  { %5781 = vmatmul.mubr.msk.bf16.gmra.mrb[28].mxu1 %vm185_vm1, %v9395_v17 }
 0x19f   :  { %5784 = vmatprep.mubr.msk.bf16.mxu1 %vm185_vm1, %v9396_v19 }
 0x1a6   :  { %5785 = vmatmul.mubr.msk.bf16.gmra.mrb[32].mxu1 %vm185_vm1, %v9397_v20 }
 0x1a7   :  { %5788 = vmatprep.mubr.msk.bf16.mxu1 %vm185_vm1, %v9398_v21 }
 0x1ae   :  { %5789 = vmatmul.mubr.msk.bf16.gmra.mrb[36].mxu1 %vm185_vm1, %v9399_v23 }
 0x1af   :  { %5792 = vmatprep.mubr.msk.bf16.mxu1 %vm185_vm1, %v9400_v25 }
 0x1b6   :  { %5793 = vmatmul.mubr.msk.bf16.gmra.mrb[40].mxu1 %vm185_vm1, %v9403_v29 }
 0x1b7   :  { %5796 = vmatprep.mubr.msk.bf16.mxu1 %vm185_vm1, %v9406_v33 }
 0x1be   :  { %5797 = vmatmul.mubr.msk.bf16.gmra.mrb[44].mxu1 %vm185_vm1, %v9409_v40 }
 0x1bf   :  { %5800 = vmatprep.mubr.msk.bf16.mxu1 %vm185_vm1, %v9412_v55 }
 0x1c6   :  { %5801 = vmatmul.mubr.msk.bf16.gmra.mrb[48].mxu1 %vm185_vm1, %v9415_v2 }
 0x1c7   :  { %5804 = vmatprep.mubr.msk.bf16.mxu1 %vm185_vm1, %v9418_v41 }
 0x1ce   :  { %5805 = vmatmul.mubr.msk.bf16.gmra.mrb[52].mxu1 %vm185_vm1, %v9421_v59 }
 0x1cf   :  { %5808 = vmatprep.mubr.msk.bf16.mxu1 %vm185_vm1, %v9422_v42 }
 0x1d6   :  { %5809 = vmatmul.mubr.msk.bf16.gmra.mrb[56].mxu1 %vm185_vm1, %v9423_v22 }
 0x1d7   :  { %5812 = vmatprep.mubr.msk.bf16.mxu1 %vm185_vm1, %v1025_v57 }
 0x1de   :  { %5813 = vmatmul.mubr.msk.bf16.gmra.mrb[60].mxu1 %vm185_vm1, %v9424_v7  ;;  %vm1836_vm1 = vcmask 1041408  }
 0x20f   :  { %v5730_v16 = vpop.f32.mrb[48].mxu0 }
 0x210   :  { %v777_v10 = vpop.f32.mrb[49].mxu0 }
 0x211   :  { %v5731_v49 = vpop.f32.mrb[50].mxu0 }
 0x212   :  { %v780_v47 = vpop.f32.mrb[51].mxu0 }
 0x219   :  { %v5734_v54 = vpop.f32.mrb[52].mxu0 }
 0x21a   :  { %v793_v1 = vpop.f32.mrb[53].mxu0 }
 0x21b   :  { %v5735_v62 = vpop.f32.mrb[54].mxu0 }
 0x21c   :  { %v796_v4 = vpop.f32.mrb[55].mxu0 }
 0x239   :  { %v5752_v63 = vpop.f32.mrb[8].mxu1 }
 0x23a   :  { %v927_v57 = vadd.f32 %v5752_v63, %v5730_v16  ;;  %v918_v60 = vpop.f32.mrb[9].mxu1 }
 0x23b   :  { %v919_v11 = vadd.f32 %v918_v60, %v777_v10  ;;  %v5753_v28 = vpop.f32.mrb[10].mxu1 }
 0x23c   :  { %v989_v34 = vadd.f32 %v7693_v45, %v927_v57  ;;  %v930_v46 = vadd.f32 %v5753_v28, %v5731_v49  ;;  %v921_v53 = vpop.f32.mrb[11].mxu1 }
 0x23d   :  { %v987_v8 = vadd.f32 %v7693_v45, %v919_v11  ;;  %v922_v36 = vadd.f32 %v921_v53, %v780_v47 }
 0x23e   :  { %v5171_v18 = vmul.f32 -1.442695, %v989_v34  ;;  %v990_v6 = vadd.f32 %v7693_v45, %v930_v46  ;;  %v1716_v3 = vmax.f32 %v989_v34, 0.0 }
 0x23f   :  { %v5169_v5 = vmul.f32 -1.442695, %v987_v8  ;;  %v988_v52 = vadd.f32 %v7693_v45, %v922_v36  ;;  %v1714_v24 = vmax.f32 %v987_v8, 0.0 }
 0x240   :  { %6369 = vpow2.f32 %v5171_v18  ;;  %v5172_v9 = vmul.f32 -1.442695, %v990_v6  ;;  %v1717_v50 = vmax.f32 %v990_v6, 0.0 }
 0x241   :  { %6371 = vpow2.f32 %v5169_v5  ;;  %v5170_v0 = vmul.f32 -1.442695, %v988_v52  ;;  %v1715_v30 = vmax.f32 %v988_v52, 0.0  ;;  %v5756_v39 = vpop.f32.mrb[12].mxu1 }
 0x242   :  { %6373 = vpow2.f32 %v5172_v9  ;;  %v7699_v14 = vpack.c.bf16 %v1717_v50, %v1716_v3  ;;  %v943_v13 = vadd.f32 %v5756_v39, %v5734_v54  ;;  %v934_v15 = vpop.f32.mrb[13].mxu1 }
 0x243   :  { %6375 = vpow2.f32 %v5170_v0  ;;  %v7701_v17 = vpack.c.bf16 %v1715_v30, %v1714_v24  ;;  %v935_v19 = vadd.f32 %v934_v15, %v793_v1  ;;  %v5757_v20 = vpop.f32.mrb[14].mxu1 }
 0x244   :  { %9427 = vst [vmem:[#allocation3_spill] sm:$0xff] %v7699_v14  ;;  %v993_v21 = vadd.f32 %v7693_v45, %v943_v13  ;;  %v946_v23 = vadd.f32 %v5757_v20, %v5735_v62  ;;  %v937_v25 = vpop.f32.mrb[15].mxu1 }
 0x245   :  { %9428 = vst [vmem:[#allocation2_spill] sm:$0xff] %v7701_v17  ;;  %v991_v26 = vadd.f32 %v7693_v45, %v935_v19  ;;  %v938_v27 = vadd.f32 %v937_v25, %v796_v4 }
 0x246   :  { %v5175_v29 = vmul.f32 -1.442695, %v993_v21  ;;  %v994_v31 = vadd.f32 %v7693_v45, %v946_v23  ;;  %v1720_v35 = vmax.f32 %v993_v21, 0.0 }
 0x247   :  { %v5173_v32 = vmul.f32 -1.442695, %v991_v26  ;;  %v992_v33 = vadd.f32 %v7693_v45, %v938_v27  ;;  %v1718_v43 = vmax.f32 %v991_v26, 0.0 }
 0x248   :  { %6377 = vpow2.f32 %v5175_v29  ;;  %v5176_v37 = vmul.f32 -1.442695, %v994_v31  ;;  %v1721_v40 = vmax.f32 %v994_v31, 0.0 }
 0x249   :  { %6379 = vpow2.f32 %v5173_v32  ;;  %v5174_v48 = vmul.f32 -1.442695, %v992_v33  ;;  %v1719_v55 = vmax.f32 %v992_v33, 0.0  ;;  %v5760_v58 = vpop.f32.mrb[0].mxu1 }
 0x24a   :  { %v6370_v61 = vpop.eup %6369  ;;  %6381 = vpow2.f32 %v5176_v37  ;;  %v7707_v2 = vpack.c.bf16 %v1721_v40, %v1720_v35  ;;  %v997_v38 = vadd.f32 %v5760_v58, %v7693_v45  ;;  %v950_v56 = vpop.f32.mrb[1].mxu1 }
 0x24b   :  { %v6372_v41 = vpop.eup %6371  ;;  %v1382_v12 = vadd.f32 1.0, %v6370_v61  ;;  %6383 = vpow2.f32 %v5174_v48  ;;  %v7710_v51 = vpack.c.bf16 %v1719_v55, %v1718_v43  ;;  %v995_v59 = vadd.f32 %v7693_v45, %v950_v56  ;;  %v5761_v42 = vpop.f32.mrb[2].mxu1 }
 0x24c   :  { %9429 = vst [vmem:[#allocation7_spill] sm:$0xff] %v7707_v2  ;;  %v6374_v22 = vpop.eup %6373  ;;  %v1380_v7 = vadd.f32 1.0, %v6372_v41  ;;  %v998_v44 = vadd.f32 %v5761_v42, %v7693_v45  ;;  %v953_v16 = vpop.f32.mrb[3].mxu1  ;;  %v5179_v47 = vmul.f32 -1.442695, %v997_v38  ;;  %v1724_v54 = vmax.f32 %v997_v38, 0.0 }
 0x24d   :  { %9430 = vst [vmem:[#allocation5_spill] sm:$0xff] %v7710_v51  ;;  %v6376_v10 = vpop.eup %6375  ;;  %6385 = vrcp.f32 %v1382_v12  ;;  %v1383_v49 = vadd.f32 1.0, %v6374_v22  ;;  %v5177_v62 = vmul.f32 -1.442695, %v995_v59  ;;  %v996_v57 = vadd.f32 %v7693_v45, %v953_v16 }
 0x24e   :  { %6387 = vrcp.f32 %v1380_v7  ;;  %v1381_v1 = vadd.f32 1.0, %v6376_v10  ;;  %v1725_v4 = vmax.f32 %v998_v44, 0.0  ;;  %v5180_v63 = vmul.f32 -1.442695, %v998_v44 }
 0x24f   :  { %6389 = vrcp.f32 %v1383_v49  ;;  %v1722_v11 = vmax.f32 %v995_v59, 0.0  ;;  %v5178_v28 = vmul.f32 -1.442695, %v996_v57  ;;  %v1723_v34 = vmax.f32 %v996_v57, 0.0 }
 0x250   :  { %6391 = vrcp.f32 %v1381_v1  ;;  %v7715_v60 = vpack.c.bf16 %v1725_v4, %v1724_v54 }
 0x251   :  { %6393 = vpow2.f32 %v5179_v47  ;;  %v5764_v46 = vpop.f32.mrb[4].mxu1  ;;  %v7718_v5 = vpack.c.bf16 %v1723_v34, %v1722_v11 }
 0x252   :  { %9431 = vst [vmem:[#allocation6_spill] sm:$0xff] %v7715_v60  ;;  %v6378_v53 = vpop.eup %6377  ;;  %6395 = vpow2.f32 %v5177_v62  ;;  %v1001_v8 = vadd.f32 %v5764_v46, %v7693_v45  ;;  %v966_v36 = vpop.f32.mrb[5].mxu1 }
 0x253   :  { %v6380_v18 = vpop.eup %6379  ;;  %v1386_v6 = vadd.f32 1.0, %v6378_v53  ;;  %6397 = vpow2.f32 %v5180_v63  ;;  %9432 = vst [vmem:[#allocation4_spill] sm:$0xff] %v7718_v5  ;;  %v999_v52 = vadd.f32 %v7693_v45, %v966_v36  ;;  %v5765_v3 = vpop.f32.mrb[6].mxu1 }
 0x254   :  { %v6382_v9 = vpop.eup %6381  ;;  %v1384_v50 = vadd.f32 1.0, %v6380_v18  ;;  %6399 = vpow2.f32 %v5178_v28  ;;  %v969_v24 = vpop.f32.mrb[7].mxu1  ;;  %v5183_v39 = vmul.f32 -1.442695, %v1001_v8  ;;  %v1002_v19 = vadd.f32 %v5765_v3, %v7693_v45 }
 0x255   :  { %v6384_v0 = vpop.eup %6383  ;;  %6401 = vrcp.f32 %v1386_v6  ;;  %v1387_v30 = vadd.f32 1.0, %v6382_v9  ;;  %v5181_v13 = vmul.f32 -1.442695, %v999_v52  ;;  %v1000_v20 = vadd.f32 %v7693_v45, %v969_v24 }
 0x256   :  { %6403 = vrcp.f32 %v1384_v50  ;;  %v1385_v15 = vadd.f32 1.0, %v6384_v0  ;;  %v1728_v23 = vmax.f32 %v1001_v8, 0.0  ;;  %v5184_v26 = vmul.f32 -1.442695, %v1002_v19 }
 0x257   :  { %v6386_v21 = vpop.eup %6385  ;;  %6405 = vrcp.f32 %v1387_v30  ;;  %v1729_v27 = vmax.f32 %v1002_v19, 0.0  ;;  %v5182_v29 = vmul.f32 -1.442695, %v1000_v20  ;;  %v1726_v32 = vmax.f32 %v999_v52, 0.0 }
 0x258   :  { %v6388_v25 = vpop.eup %6387  ;;  %6407 = vrcp.f32 %v1385_v15  ;;  %v1727_v33 = vmax.f32 %v1000_v20, 0.0 }
 0x259   :  { %v6390_v31 = vpop.eup %6389  ;;  %6409 = vpow2.f32 %v5183_v39  ;;  %v7723_v35 = vpop.f32.mrb[16].mxu1  ;;  %v7725_v40 = vpack.c.bf16 %v1729_v27, %v1728_v23 }
 0x25a   :  { %v6392_v37 = vpop.eup %6391  ;;  %6411 = vpow2.f32 %v5181_v13  ;;  %v7727_v43 = vpop.f32.mrb[17].mxu1  ;;  %v1429_v45 = vpack.c.bf16 %v6390_v31, %v6386_v21  ;;  %v7729_v55 = vpack.c.bf16 %v1727_v33, %v1726_v32 }
 0x25b   :  { %9433 = vst [vmem:[#allocation11_spill] sm:$0xff] %v7725_v40  ;;  %v6394_v48 = vpop.eup %6393  ;;  %6413 = vpow2.f32 %v5184_v26  ;;  %v7731_v58 = vpop.f32.mrb[18].mxu1  ;;  %v1428_v61 = vpack.c.bf16 %v6392_v37, %v6388_v25 }
 0x25c   :  { %9434 = vst [vmem:[#allocation9_spill] sm:$0xff] %v7729_v55  ;;  %v6396_v38 = vpop.eup %6395  ;;  %v1390_v56 = vadd.f32 1.0, %v6394_v48  ;;  %6415 = vpow2.f32 %v5182_v29  ;;  %v7733_v41 = vpop.f32.mrb[19].mxu1 }
 0x25d   :  { %v6398_v12 = vpop.eup %6397  ;;  %v1388_v59 = vadd.f32 1.0, %v6396_v38  ;;  %5818 = vmatprep.mubr.msk.bf16.mxu0 %vm1448_vm0, %v1428_v61 }
 0x25e   :  { %v6400_v42 = vpop.eup %6399  ;;  %6417 = vrcp.f32 %v1390_v56  ;;  %v1391_v22 = vadd.f32 1.0, %v6398_v12  ;;  %5819 = vmatmul.mubr.msk.bf16.vlgmr.msra.gmra.mrb[56].mxu0 %vm1448_vm0, %v1429_v45 }
 0x25f   :  { %v6402_v7 = vpop.eup %6401  ;;  %6419 = vrcp.f32 %v1388_v59  ;;  %v1389_v44 = vadd.f32 1.0, %v6400_v42 }
 0x260   :  { %v6404_v16 = vpop.eup %6403  ;;  %6421 = vrcp.f32 %v1391_v22 }
 0x261   :  { %v6406_v10 = vpop.eup %6405  ;;  %6423 = vrcp.f32 %v1389_v44  ;;  %v7737_v49 = vpop.f32.mrb[20].mxu1 }
 0x262   :  { %v6408_v47 = vpop.eup %6407  ;;  %v7739_v54 = vpop.f32.mrb[21].mxu1  ;;  %v1431_v1 = vpack.c.bf16 %v6406_v10, %v6402_v7 }
 0x263   :  { %v6410_v62 = vpop.eup %6409  ;;  %v7741_v4 = vpop.f32.mrb[22].mxu1  ;;  %v1430_v63 = vpack.c.bf16 %v6408_v47, %v6404_v16 }
 0x264   :  { %v6412_v57 = vpop.eup %6411  ;;  %v1394_v11 = vadd.f32 1.0, %v6410_v62  ;;  %v7743_v28 = vpop.f32.mrb[23].mxu1 }
 0x265   :  { %v6414_v34 = vpop.eup %6413  ;;  %v1392_v46 = vadd.f32 1.0, %v6412_v57  ;;  %5822 = vmatprep.mubr.msk.bf16.mxu0 %vm1448_vm0, %v1430_v63 }
 0x266   :  { %v6416_v53 = vpop.eup %6415  ;;  %6425 = vrcp.f32 %v1394_v11  ;;  %v1395_v8 = vadd.f32 1.0, %v6414_v34  ;;  %5823 = vmatmul.mubr.msk.bf16.gmra.mrb[60].mxu0 %vm1448_vm0, %v1431_v1 }
 0x267   :  { %6427 = vrcp.f32 %v1392_v46  ;;  %v1393_v36 = vadd.f32 1.0, %v6416_v53 }
 0x268   :  { %v6418_v18 = vpop.eup %6417  ;;  %6429 = vrcp.f32 %v1395_v8 }
 0x269   :  { %v6420_v6 = vpop.eup %6419  ;;  %6431 = vrcp.f32 %v1393_v36  ;;  %v7747_v52 = vpop.f32.mrb[24].mxu1 }
 0x26a   :  { %v6422_v3 = vpop.eup %6421  ;;  %v7749_v9 = vpop.f32.mrb[25].mxu1 }
 0x26b   :  { %v6424_v50 = vpop.eup %6423  ;;  %v7751_v24 = vpop.f32.mrb[26].mxu1  ;;  %v1433_v0 = vpack.c.bf16 %v6422_v3, %v6418_v18 }
 0x26c   :  { %v1432_v30 = vpack.c.bf16 %v6424_v50, %v6420_v6  ;;  %v7753_v39 = vpop.f32.mrb[27].mxu1 }
 0x26e   :  { %5826 = vmatprep.mubr.msk.bf16.mxu0 %vm1448_vm0, %v1432_v30 }
 0x26f   :  { %5827 = vmatmul.mubr.msk.bf16.gmra.mrb[64].mxu0 %vm1448_vm0, %v1433_v0  ;;  %v1730_v0 = vld [vmem:[%s9311_s9] sm:$0x3] }
 0x270   :  { %v6426_v13 = vpop.eup %6425  ;;  %6197 = vmatprep.subr.msk.bf16.mxu0 %vm1836_vm1, %v1730_v0  ;;  %v1838_v30 = vsel %vm1836_vm1, %v1730_v0, 0 }
 0x271   :  { %v6428_v15 = vpop.eup %6427  ;;  %v7757_v19 = vpop.f32.mrb[28].mxu1  ;;  %5835 = vmatpush3.bf16.msra.mxu0 %v1838_v30 }
 0x272   :  { %v6430_v20 = vpop.eup %6429  ;;  %v7759_v21 = vpop.f32.mrb[29].mxu1 }
 0x273   :  { %v6432_v23 = vpop.eup %6431  ;;  %v7761_v25 = vpop.f32.mrb[30].mxu1  ;;  %v1435_v26 = vpack.c.bf16 %v6430_v20, %v6426_v13  ;;  %v7839_v13 = vld [vmem:[%s9312_s8] ss:$0 sm:$0xff] }
 0x274   :  { %v1434_v27 = vpack.c.bf16 %v6432_v23, %v6428_v15  ;;  %v7763_v29 = vpop.f32.mrb[31].mxu1  ;;  %v1733_v15 = vld [vmem:[%s9313_s11] sm:$0x3] }
 0x275   :  { %6198 = vmatprep.subr.msk.bf16.mxu1 %vm1836_vm1, %v1733_v15  ;;  %v2314_v23 = vsel %vm1836_vm1, %v1733_v15, 0 }
 0x276   :  { %5830 = vmatprep.mubr.msk.bf16.mxu0 %vm1448_vm0, %v1434_v27  ;;  %5885 = vmatpush3.bf16.msra.mxu1 %v2314_v23 }
 0x277   :  { %5831 = vmatmul.mubr.msk.bf16.gmra.mrb[68].mxu0 %vm1448_vm0, %v1435_v26 }
 0x279   :  { %v7767_v31 = vpop.f32.mrb[32].mxu1 }
 0x27a   :  { %v7769_v32 = vpop.f32.mrb[33].mxu1 }
 0x27b   :  { %v7771_v33 = vpop.f32.mrb[34].mxu1 }
 0x27c   :  { %v7773_v37 = vpop.f32.mrb[35].mxu1 }
 0x281   :  { %v7775_v45 = vpop.f32.mrb[36].mxu1 }
 0x282   :  { %v7777_v48 = vpop.f32.mrb[37].mxu1 }
 0x283   :  { %v7779_v61 = vpop.f32.mrb[38].mxu1 }
 0x284   :  { %v7781_v38 = vpop.f32.mrb[39].mxu1 }
 0x289   :  { %v7783_v56 = vpop.f32.mrb[40].mxu1 }
 0x28a   :  { %v7785_v12 = vpop.f32.mrb[41].mxu1 }
 0x28b   :  { %v7787_v59 = vpop.f32.mrb[42].mxu1 }
 0x28c   :  { %v7789_v42 = vpop.f32.mrb[43].mxu1 }
 0x291   :  { %v7791_v22 = vpop.f32.mrb[44].mxu1 }
 0x292   :  { %v7793_v7 = vpop.f32.mrb[45].mxu1 }
 0x293   :  { %v7795_v44 = vpop.f32.mrb[46].mxu1 }
 0x294   :  { %v7797_v16 = vpop.f32.mrb[47].mxu1 }
 0x295   :  { %9435 = vst [vmem:[#allocation10_spill] sm:$0xff] %v7797_v16 }
 0x299   :  { %v7799_v10 = vpop.f32.mrb[48].mxu1 }
 0x29a   :  { %v7801_v47 = vpop.f32.mrb[49].mxu1 }
 0x29b   :  { %v7803_v1 = vpop.f32.mrb[50].mxu1 }
 0x29c   :  { %v7805_v62 = vpop.f32.mrb[51].mxu1 }
 0x2a1   :  { %v7807_v63 = vpop.f32.mrb[52].mxu1 }
 0x2a2   :  { %v7809_v57 = vpop.f32.mrb[53].mxu1 }
 0x2a3   :  { %v7811_v11 = vpop.f32.mrb[54].mxu1 }
 0x2a4   :  { %v7813_v34 = vpop.f32.mrb[55].mxu1 }
 0x2a9   :  { %v7815_v46 = vpop.f32.mrb[56].mxu1 }
 0x2aa   :  { %v7817_v53 = vpop.f32.mrb[57].mxu1 }
 0x2ab   :  { %v7819_v8 = vpop.f32.mrb[58].mxu1 }
 0x2ac   :  { %v7821_v36 = vpop.f32.mrb[59].mxu1 }
 0x2b1   :  { %v7823_v18 = vpop.f32.mrb[60].mxu1 }
 0x2b2   :  { %v7825_v6 = vpop.f32.mrb[61].mxu1 }
 0x2b3   :  { %v7827_v3 = vpop.f32.mrb[62].mxu1 }
 0x2b4   :  { %v7829_v50 = vpop.f32.mrb[63].mxu1 }
 0x2b5   :  { %9436 = vst [vmem:[#allocation8_spill] sm:$0xff] %v7829_v50 }
 0x331   :  { %v5820_v20 = vpop.f32.mrb[56].mxu0 }
 0x332   :  { %v1516_v26 = vadd.f32 %v5820_v20, %v7839_v13  ;;  %v1507_v27 = vpop.f32.mrb[57].mxu0 }
 0x333   :  { %v1508_v0 = vadd.f32 %v7839_v13, %v1507_v27  ;;  %v5821_v30 = vpop.f32.mrb[58].mxu0 }
 0x334   :  { %v5197_v40 = vmul.f32 -1.442695, %v1516_v26  ;;  %v1519_v55 = vadd.f32 %v5821_v30, %v7839_v13  ;;  %v1510_v60 = vpop.f32.mrb[59].mxu0 }
 0x335   :  { %v5195_v5 = vmul.f32 -1.442695, %v1508_v0  ;;  %v1511_v2 = vadd.f32 %v7839_v13, %v1510_v60 }
 0x336   :  { %6433 = vpow2.f32 %v5197_v40  ;;  %v5198_v51 = vmul.f32 -1.442695, %v1519_v55 }
 0x337   :  { %6435 = vpow2.f32 %v5195_v5  ;;  %v5196_v14 = vmul.f32 -1.442695, %v1511_v2 }
 0x338   :  { %6437 = vpow2.f32 %v5198_v51 }
 0x339   :  { %6439 = vpow2.f32 %v5196_v14  ;;  %v5824_v15 = vpop.f32.mrb[60].mxu0 }
 0x33a   :  { %v1532_v20 = vadd.f32 %v5824_v15, %v7839_v13  ;;  %v1523_v23 = vpop.f32.mrb[61].mxu0 }
 0x33b   :  { %v1524_v27 = vadd.f32 %v7839_v13, %v1523_v23  ;;  %v5825_v17 = vpop.f32.mrb[62].mxu0 }
 0x33c   :  { %v5201_v26 = vmul.f32 -1.442695, %v1532_v20  ;;  %v1535_v30 = vadd.f32 %v5825_v17, %v7839_v13  ;;  %v1526_v50 = vpop.f32.mrb[63].mxu0 }
 0x33d   :  { %v5199_v0 = vmul.f32 -1.442695, %v1524_v27  ;;  %v1527_v60 = vadd.f32 %v7839_v13, %v1526_v50 }
 0x33e   :  { %6441 = vpow2.f32 %v5201_v26  ;;  %v5202_v40 = vmul.f32 -1.442695, %v1535_v30 }
 0x33f   :  { %6443 = vpow2.f32 %v5199_v0  ;;  %v5200_v2 = vmul.f32 -1.442695, %v1527_v60 }
 0x340   :  { %v6434_v51 = vpop.eup %6433  ;;  %6445 = vpow2.f32 %v5202_v40 }
 0x341   :  { %v6436_v14 = vpop.eup %6435  ;;  %v1620_v5 = vadd.f32 1.0, %v6434_v51  ;;  %6447 = vpow2.f32 %v5200_v2 }
 0x342   :  { %v6438_v55 = vpop.eup %6437  ;;  %v1618_v15 = vadd.f32 1.0, %v6436_v14  ;;  %v5828_v23 = vpop.f32.mrb[64].mxu0 }
 0x343   :  { %v6440_v16 = vpop.eup %6439  ;;  %6449 = vrcp.f32 %v1620_v5  ;;  %v1621_v20 = vadd.f32 1.0, %v6438_v55  ;;  %v1548_v17 = vadd.f32 %v5828_v23, %v7839_v13  ;;  %v1539_v27 = vpop.f32.mrb[65].mxu0 }
 0x344   :  { %6451 = vrcp.f32 %v1618_v15  ;;  %v1619_v50 = vadd.f32 1.0, %v6440_v16  ;;  %v1540_v26 = vadd.f32 %v7839_v13, %v1539_v27  ;;  %v5829_v30 = vpop.f32.mrb[66].mxu0 }
 0x345   :  { %6453 = vrcp.f32 %v1621_v20  ;;  %v5205_v0 = vmul.f32 -1.442695, %v1548_v17  ;;  %v1551_v60 = vadd.f32 %v5829_v30, %v7839_v13  ;;  %v1542_v40 = vpop.f32.mrb[67].mxu0 }
 0x346   :  { %6455 = vrcp.f32 %v1619_v50  ;;  %v5203_v2 = vmul.f32 -1.442695, %v1540_v26  ;;  %v1543_v51 = vadd.f32 %v7839_v13, %v1542_v40 }
 0x347   :  { %6457 = vpow2.f32 %v5205_v0  ;;  %v5206_v14 = vmul.f32 -1.442695, %v1551_v60 }
 0x348   :  { %v6442_v5 = vpop.eup %6441  ;;  %6459 = vpow2.f32 %v5203_v2  ;;  %v5204_v55 = vmul.f32 -1.442695, %v1543_v51 }
 0x349   :  { %v6444_v23 = vpop.eup %6443  ;;  %v1624_v15 = vadd.f32 1.0, %v6442_v5  ;;  %6461 = vpow2.f32 %v5206_v14 }
 0x34a   :  { %v6446_v16 = vpop.eup %6445  ;;  %v1622_v27 = vadd.f32 1.0, %v6444_v23  ;;  %6463 = vpow2.f32 %v5204_v55  ;;  %v5832_v20 = vpop.f32.mrb[68].mxu0 }
 0x34b   :  { %v6448_v17 = vpop.eup %6447  ;;  %6465 = vrcp.f32 %v1624_v15  ;;  %v1625_v30 = vadd.f32 1.0, %v6446_v16  ;;  %v1564_v50 = vadd.f32 %v5832_v20, %v7839_v13  ;;  %v1555_v26 = vpop.f32.mrb[69].mxu0 }
 0x34c   :  { %6467 = vrcp.f32 %v1622_v27  ;;  %v1623_v40 = vadd.f32 1.0, %v6448_v17  ;;  %v1556_v0 = vadd.f32 %v7839_v13, %v1555_v26  ;;  %v5833_v60 = vpop.f32.mrb[70].mxu0 }
 0x34d   :  { %v6450_v2 = vpop.eup %6449  ;;  %6469 = vrcp.f32 %v1625_v30  ;;  %v5209_v51 = vmul.f32 -1.442695, %v1564_v50  ;;  %v1567_v14 = vadd.f32 %v5833_v60, %v7839_v13  ;;  %v1558_v5 = vpop.f32.mrb[71].mxu0 }
 0x34e   :  { %v6452_v55 = vpop.eup %6451  ;;  %6471 = vrcp.f32 %v1623_v40  ;;  %v5207_v23 = vmul.f32 -1.442695, %v1556_v0  ;;  %v1559_v15 = vadd.f32 %v7839_v13, %v1558_v5  ;;  %v1668_v16 = vmul.f32 %v6450_v2, %v7723_v35 }
 0x34f   :  { %v6454_v20 = vpop.eup %6453  ;;  %6473 = vpow2.f32 %v5209_v51  ;;  %v5210_v27 = vmul.f32 -1.442695, %v1567_v14  ;;  %v1666_v17 = vmul.f32 %v6452_v55, %v7727_v43  ;;  %v7865_v26 = vmul.f32 %v6452_v55, %v7769_v32 }
 0x350   :  { %v6456_v30 = vpop.eup %6455  ;;  %6475 = vpow2.f32 %v5207_v23  ;;  %v5208_v50 = vmul.f32 -1.442695, %v1559_v15  ;;  %v1669_v60 = vmul.f32 %v6454_v20, %v7731_v58  ;;  %v7869_v40 = vmul.f32 %v6450_v2, %v7767_v31 }
 0x351   :  { %v6458_v0 = vpop.eup %6457  ;;  %6477 = vpow2.f32 %v5210_v27  ;;  %v1667_v35 = vmul.f32 %v6456_v30, %v7733_v41  ;;  %v7873_v13 = vmul.f32 %v6456_v30, %v7773_v37  ;;  %v7876_v43 = vmul.f32 %v6454_v20, %v7771_v33 }
 0x352   :  { %v6460_v32 = vpop.eup %6459  ;;  %v1628_v51 = vadd.f32 1.0, %v6458_v0  ;;  %6479 = vpow2.f32 %v5208_v50  ;;  %v1740_v14 = vpack.c.bf16 %v1669_v60, %v1668_v16  ;;  %v7879_v5 = vmul.f32 %v6452_v55, %v7801_v47 }
 0x353   :  { %v6462_v58 = vpop.eup %6461  ;;  %v1626_v31 = vadd.f32 1.0, %v6460_v32  ;;  %v1739_v23 = vpack.c.bf16 %v1667_v35, %v1666_v17  ;;  %v1747_v15 = vpack.c.bf16 %v7873_v13, %v7865_v26  ;;  %v1748_v41 = vpack.c.bf16 %v7876_v43, %v7869_v40 }
 0x354   :  { %v6464_v37 = vpop.eup %6463  ;;  %6481 = vrcp.f32 %v1628_v51  ;;  %v1629_v33 = vadd.f32 1.0, %v6462_v58  ;;  %v7886_v27 = vmul.f32 %v6456_v30, %v7805_v62  ;;  %v7889_v16 = vmul.f32 %v6450_v2, %v7799_v10 }
 0x355   :  { %v6466_v47 = vpop.eup %6465  ;;  %6483 = vrcp.f32 %v1626_v31  ;;  %v1627_v55 = vadd.f32 1.0, %v6464_v37  ;;  %5836 = vmatprep.mubr.msk.bf16.mxu0 %vm1763_vm8, %v1739_v23  ;;  %v7893_v17 = vmul.f32 %v6454_v20, %v7803_v1 }
 0x356   :  { %v6468_v50 = vpop.eup %6467  ;;  %6485 = vrcp.f32 %v1629_v33  ;;  %5837 = vmatmul.mubr.msk.bf16.vlgmr.msra.gmra.mrb[72].mxu0 %vm1763_vm8, %v1740_v14  ;;  %v1672_v60 = vmul.f32 %v6466_v47, %v7737_v49  ;;  %v7898_v62 = vmul.f32 %v6466_v47, %v7775_v45  ;;  %v1755_v10 = vpack.c.bf16 %v7886_v27, %v7879_v5 }
 0x357   :  { %v6470_v2 = vpop.eup %6469  ;;  %6487 = vrcp.f32 %v1627_v55  ;;  %v1670_v30 = vmul.f32 %v6468_v50, %v7739_v54  ;;  %v7904_v0 = vmul.f32 %v6468_v50, %v7777_v48  ;;  %v1756_v1 = vpack.c.bf16 %v7893_v17, %v7889_v16 }
 0x358   :  { %v6472_v20 = vpop.eup %6471  ;;  %v1673_v35 = vmul.f32 %v6470_v2, %v7741_v4  ;;  %v7910_v49 = vmul.f32 %v6470_v2, %v7779_v61  ;;  %v7913_v45 = vmul.f32 %v6468_v50, %v7809_v57  ;;  %v7916_v32 = vmul.f32 %v6466_v47, %v7807_v63 }
 0x359   :  { %v6474_v51 = vpop.eup %6473  ;;  %v1671_v54 = vmul.f32 %v6472_v20, %v7743_v28  ;;  %v7920_v48 = vmul.f32 %v6472_v20, %v7781_v38  ;;  %v7923_v14 = vmul.f32 %v6472_v20, %v7813_v34  ;;  %v7926_v4 = vmul.f32 %v6470_v2, %v7811_v11 }
 0x35a   :  { %v6476_v61 = vpop.eup %6475  ;;  %v1632_v58 = vadd.f32 1.0, %v6474_v51  ;;  %v1742_v31 = vpack.c.bf16 %v1673_v35, %v1672_v60  ;;  %v1750_v57 = vpack.c.bf16 %v7910_v49, %v7898_v62 }
 0x35b   :  { %v6478_v63 = vpop.eup %6477  ;;  %v1630_v23 = vadd.f32 1.0, %v6476_v61  ;;  %v1741_v37 = vpack.c.bf16 %v1671_v54, %v1670_v30  ;;  %v1749_v28 = vpack.c.bf16 %v7920_v48, %v7904_v0  ;;  %v1757_v38 = vpack.c.bf16 %v7923_v14, %v7913_v45 }
 0x35c   :  { %v6480_v34 = vpop.eup %6479  ;;  %6489 = vrcp.f32 %v1632_v58  ;;  %v1633_v33 = vadd.f32 1.0, %v6478_v63  ;;  %v1758_v11 = vpack.c.bf16 %v7926_v4, %v7916_v32 }
 0x35d   :  { %6491 = vrcp.f32 %v1630_v23  ;;  %v1631_v47 = vadd.f32 1.0, %v6480_v34  ;;  %5840 = vmatprep.mubr.msk.bf16.mxu0 %vm1763_vm8, %v1741_v37 }
 0x35e   :  { %v6482_v55 = vpop.eup %6481  ;;  %6493 = vrcp.f32 %v1633_v33  ;;  %5841 = vmatmul.mubr.msk.bf16.gmra.mrb[76].mxu0 %vm1763_vm8, %v1742_v31 }
 0x35f   :  { %v6484_v50 = vpop.eup %6483  ;;  %6495 = vrcp.f32 %v1631_v47  ;;  %v1676_v60 = vmul.f32 %v6482_v55, %v7747_v52  ;;  %v1692_v2 = vmul.f32 %v6482_v55, %v7783_v56  ;;  %v1708_v30 = vmul.f32 %v6482_v55, %v7815_v46 }
 0x360   :  { %v6486_v0 = vpop.eup %6485  ;;  %v1674_v20 = vmul.f32 %v6484_v50, %v7749_v9  ;;  %v1690_v35 = vmul.f32 %v6484_v50, %v7785_v12  ;;  %v1706_v51 = vmul.f32 %v6484_v50, %v7817_v53 }
 0x361   :  { %v6488_v54 = vpop.eup %6487  ;;  %v1677_v48 = vmul.f32 %v6486_v0, %v7751_v24  ;;  %v1693_v61 = vmul.f32 %v6486_v0, %v7787_v59  ;;  %v1709_v58 = vmul.f32 %v6486_v0, %v7819_v8 }
 0x362   :  { %v1675_v52 = vmul.f32 %v6488_v54, %v7753_v39  ;;  %v1691_v56 = vmul.f32 %v6488_v54, %v7789_v42  ;;  %v1707_v46 = vmul.f32 %v6488_v54, %v7821_v36 }
 0x363   :  { %v1744_v31 = vpack.c.bf16 %v1677_v48, %v1676_v60  ;;  %v1752_v63 = vpack.c.bf16 %v1693_v61, %v1692_v2  ;;  %v1760_v9 = vpack.c.bf16 %v1709_v58, %v1708_v30  ;;  %v9437_v2 = vld [vmem:[#allocation10_spill] sm:$0xff]  ;;  %v9438_v30 = vld [vmem:[#allocation8_spill] sm:$0xff] }
 0x364   :  { %v1743_v23 = vpack.c.bf16 %v1675_v52, %v1674_v20  ;;  %v1751_v12 = vpack.c.bf16 %v1691_v56, %v1690_v35  ;;  %v1759_v37 = vpack.c.bf16 %v1707_v46, %v1706_v51 }
 0x366   :  { %v6490_v53 = vpop.eup %6489  ;;  %5844 = vmatprep.mubr.msk.bf16.mxu0 %vm1763_vm8, %v1743_v23 }
 0x367   :  { %v6492_v24 = vpop.eup %6491  ;;  %5845 = vmatmul.mubr.msk.bf16.gmra.mrb[80].mxu0 %vm1763_vm8, %v1744_v31  ;;  %v1680_v59 = vmul.f32 %v6490_v53, %v7757_v19  ;;  %v1696_v39 = vmul.f32 %v6490_v53, %v7791_v22  ;;  %v1712_v42 = vmul.f32 %v6490_v53, %v7823_v18 }
 0x368   :  { %v6494_v8 = vpop.eup %6493  ;;  %v1678_v36 = vmul.f32 %v6492_v24, %v7759_v21  ;;  %v1694_v34 = vmul.f32 %v6492_v24, %v7793_v7  ;;  %v1710_v33 = vmul.f32 %v6492_v24, %v7825_v6 }
 0x369   :  { %v6496_v47 = vpop.eup %6495  ;;  %v1681_v55 = vmul.f32 %v6494_v8, %v7761_v25  ;;  %v1697_v50 = vmul.f32 %v6494_v8, %v7795_v44  ;;  %v1713_v60 = vmul.f32 %v6494_v8, %v7827_v3  ;;  %v1735_v25 = vld [vmem:[%s9314_s13] sm:$0x3] }
 0x36a   :  { %v1679_v19 = vmul.f32 %v6496_v47, %v7763_v29  ;;  %v1695_v22 = vmul.f32 %v6496_v47, %v9437_v2  ;;  %v1711_v18 = vmul.f32 %v6496_v47, %v9438_v30  ;;  %6199 = vmatprep.subr.msk.bf16.mxu0 %vm1836_vm1, %v1735_v25  ;;  %v2659_v29 = vsel %vm1836_vm1, %v1735_v25, 0  ;;  %v8011_v44 = vld [vmem:[%s9315_s10] sm:$0xff]  }
 0x36b   :  { %v1746_v0 = vpack.c.bf16 %v1681_v55, %v1680_v59  ;;  %v1754_v20 = vpack.c.bf16 %v1697_v50, %v1696_v39  ;;  %v1762_v21 = vpack.c.bf16 %v1713_v60, %v1712_v42  ;;  %5921 = vmatpush3.bf16.msra.mxu0 %v2659_v29  ;;  %5902 = vmatprep.subr.bf16.mxu1 %v8011_v44 }
 0x36c   :  { %v1745_v35 = vpack.c.bf16 %v1679_v19, %v1678_v36  ;;  %v1753_v7 = vpack.c.bf16 %v1695_v22, %v1694_v34  ;;  %v1761_v51 = vpack.c.bf16 %v1711_v18, %v1710_v33 }
 0x36e   :  { %5848 = vmatprep.mubr.msk.bf16.mxu0 %vm1763_vm8, %v1745_v35 }
 0x36f   :  { %5849 = vmatmul.mubr.msk.bf16.gmra.mrb[84].mxu0 %vm1763_vm8, %v1746_v0 }
 0x370   :  { %5852 = vmatprep.mubr.msk.bf16.mxu0 %vm1763_vm8, %v1747_v15 }
 0x377   :  { %5853 = vmatmul.mubr.msk.bf16.gmra.mrb[88].mxu0 %vm1763_vm8, %v1748_v41 }
 0x378   :  { %5856 = vmatprep.mubr.msk.bf16.mxu0 %vm1763_vm8, %v1749_v28 }
 0x37f   :  { %5857 = vmatmul.mubr.msk.bf16.gmra.mrb[92].mxu0 %vm1763_vm8, %v1750_v57 }
 0x380   :  { %5860 = vmatprep.mubr.msk.bf16.mxu0 %vm1763_vm8, %v1751_v12 }
 0x387   :  { %5861 = vmatmul.mubr.msk.bf16.gmra.mrb[96].mxu0 %vm1763_vm8, %v1752_v63 }
 0x388   :  { %5864 = vmatprep.mubr.msk.bf16.mxu0 %vm1763_vm8, %v1753_v7 }
 0x38f   :  { %5865 = vmatmul.mubr.msk.bf16.gmra.mrb[100].mxu0 %vm1763_vm8, %v1754_v20 }
 0x390   :  { %5868 = vmatprep.mubr.msk.bf16.mxu0 %vm1763_vm8, %v1755_v10 }
 0x397   :  { %5869 = vmatmul.mubr.msk.bf16.gmra.mrb[104].mxu0 %vm1763_vm8, %v1756_v1 }
 0x398   :  { %5872 = vmatprep.mubr.msk.bf16.mxu0 %vm1763_vm8, %v1757_v38 }
 0x39f   :  { %5873 = vmatmul.mubr.msk.bf16.gmra.mrb[108].mxu0 %vm1763_vm8, %v1758_v11 }
 0x3a0   :  { %5876 = vmatprep.mubr.msk.bf16.mxu0 %vm1763_vm8, %v1759_v37 }
 0x3a7   :  { %5877 = vmatmul.mubr.msk.bf16.gmra.mrb[112].mxu0 %vm1763_vm8, %v1760_v9 }
 0x3a8   :  { %5880 = vmatprep.mubr.msk.bf16.mxu0 %vm1763_vm8, %v1761_v51 }
 0x3af   :  { %5881 = vmatmul.mubr.msk.bf16.gmra.mrb[116].mxu0 %vm1763_vm8, %v1762_v21 }
 0x429   :  { %v5838_v6 = vpop.f32.mrb[72].mxu0 }
 0x42a   :  { %v1874_v3 = vpop.f32.mrb[73].mxu0  ;;  %v2067_v48 = vmul.f32 %v5838_v6, %v5838_v6 }
 0x42b   :  { %v5839_v26 = vpop.f32.mrb[74].mxu0  ;;  %v2065_v52 = vmul.f32 %v1874_v3, %v1874_v3 }
 0x42c   :  { %v2563_v40 = vpack.c.bf16 %v5839_v26, %v5838_v6  ;;  %v1877_v13 = vpop.f32.mrb[75].mxu0  ;;  %v2068_v31 = vmul.f32 %v5839_v26, %v5839_v26 }
 0x42d   :  { %v2562_v43 = vpack.c.bf16 %v1877_v13, %v1874_v3  ;;  %v2066_v37 = vmul.f32 %v1877_v13, %v1877_v13 }
 0x42f   :  { %5922 = vmatprep.mubr.msk.bf16.mxu0 %vm1763_vm8, %v2562_v43 }
 0x430   :  { %5923 = vmatmul.mubr.msk.bf16.vlgmr.msra.gmra.mrb[120].mxu0 %vm1763_vm8, %v2563_v40 }
 0x431   :  { %v5842_v5 = vpop.f32.mrb[76].mxu0 }
 0x432   :  { %v1890_v15 = vpop.f32.mrb[77].mxu0  ;;  %v2071_v36 = vmul.f32 %v5842_v5, %v5842_v5 }
 0x433   :  { %v5843_v41 = vpop.f32.mrb[78].mxu0  ;;  %v2069_v47 = vmul.f32 %v1890_v15, %v1890_v15 }
 0x434   :  { %v2565_v27 = vpack.c.bf16 %v5843_v41, %v5842_v5  ;;  %v1893_v16 = vpop.f32.mrb[79].mxu0  ;;  %v2072_v60 = vmul.f32 %v5843_v41, %v5843_v41 }
 0x435   :  { %v2564_v17 = vpack.c.bf16 %v1893_v16, %v1890_v15  ;;  %v2070_v18 = vmul.f32 %v1893_v16, %v1893_v16 }
 0x437   :  { %5926 = vmatprep.mubr.msk.bf16.mxu0 %vm1763_vm8, %v2564_v17 }
 0x438   :  { %5927 = vmatmul.mubr.msk.bf16.gmra.mrb[124].mxu0 %vm1763_vm8, %v2565_v27 }
 0x43a   :  { %v5846_v62 = vpop.f32.mrb[80].mxu0 }
 0x43b   :  { %v1906_v10 = vpop.f32.mrb[81].mxu0  ;;  %v2075_v25 = vmul.f32 %v5846_v62, %v5846_v62 }
 0x43c   :  { %v5847_v1 = vpop.f32.mrb[82].mxu0  ;;  %v2073_v3 = vmul.f32 %v1906_v10, %v1906_v10 }
 0x43d   :  { %v2567_v49 = vpack.c.bf16 %v5847_v1, %v5846_v62  ;;  %v8018_v45 = vpop.f32.mrb[83].mxu0  ;;  %v2076_v13 = vmul.f32 %v5847_v1, %v5847_v1 }
 0x43e   :  { %v2566_v32 = vpack.c.bf16 %v8018_v45, %v1906_v10  ;;  %v2074_v27 = vmul.f32 %v8018_v45, %v8018_v45 }
 0x440   :  { %5930 = vmatprep.mubr.msk.bf16.mxu0 %vm1763_vm8, %v2566_v32 }
 0x441   :  { %5931 = vmatmul.mubr.msk.bf16.gmra.mrb[128].mxu0 %vm1763_vm8, %v2567_v49 }
 0x442   :  { %v8023_v14 = vpop.f32.mrb[84].mxu0 }
 0x443   :  { %v8025_v4 = vpop.f32.mrb[85].mxu0  ;;  %v2079_v1 = vmul.f32 %v8023_v14, %v8023_v14 }
 0x444   :  { %v8027_v57 = vpop.f32.mrb[86].mxu0  ;;  %v2077_v45 = vmul.f32 %v8025_v4, %v8025_v4 }
 0x445   :  { %v2569_v28 = vpack.c.bf16 %v8027_v57, %v8023_v14  ;;  %v8031_v38 = vpop.f32.mrb[87].mxu0 }
 0x446   :  { %v2568_v11 = vpack.c.bf16 %v8031_v38, %v8025_v4 }
 0x448   :  { %5934 = vmatprep.mubr.msk.bf16.mxu0 %vm1763_vm8, %v2568_v11 }
 0x449   :  { %5935 = vmatmul.mubr.msk.bf16.gmra.mrb[132].mxu0 %vm1763_vm8, %v2569_v28 }
 0x44a   :  { %v5854_v54 = vpop.f32.mrb[88].mxu0 }
 0x44b   :  { %v2083_v61 = vmul.f32 %v5854_v54, %v5854_v54  ;;  %v1938_v58 = vpop.f32.mrb[89].mxu0 }
 0x44c   :  { %v2081_v56 = vmul.f32 %v1938_v58, %v1938_v58  ;;  %v5855_v46 = vpop.f32.mrb[90].mxu0 }
 0x44d   :  { %v8037_v63 = vadd.f32 %v2083_v61, %v2067_v48  ;;  %v2084_v9 = vmul.f32 %v5855_v46, %v5855_v46  ;;  %v2571_v23 = vpack.c.bf16 %v5855_v46, %v5854_v54  ;;  %v1941_v12 = vpop.f32.mrb[91].mxu0  ;;  %v2080_v61 = vmul.f32 %v8027_v57, %v8027_v57 }
 0x44e   :  { %v8039_v53 = vadd.f32 %v2081_v56, %v2065_v52  ;;  %v2082_v24 = vmul.f32 %v1941_v12, %v1941_v12  ;;  %v2570_v59 = vpack.c.bf16 %v1941_v12, %v1938_v58 }
 0x44f   :  { %v8041_v39 = vadd.f32 %v2084_v9, %v2068_v31  ;;  %v2078_v31 = vmul.f32 %v8031_v38, %v8031_v38 }
 0x450   :  { %v8043_v42 = vadd.f32 %v2082_v24, %v2066_v37  ;;  %5938 = vmatprep.mubr.msk.bf16.mxu0 %vm1763_vm8, %v2570_v59 }
 0x451   :  { %5939 = vmatmul.mubr.msk.bf16.gmra.mrb[136].mxu0 %vm1763_vm8, %v2571_v23 }
 0x452   :  { %v5858_v8 = vpop.f32.mrb[92].mxu0 }
 0x453   :  { %v2087_v34 = vmul.f32 %v5858_v8, %v5858_v8  ;;  %v1954_v33 = vpop.f32.mrb[93].mxu0 }
 0x454   :  { %v2085_v55 = vmul.f32 %v1954_v33, %v1954_v33  ;;  %v5859_v50 = vpop.f32.mrb[94].mxu0 }
 0x455   :  { %v8047_v19 = vadd.f32 %v2087_v34, %v2071_v36  ;;  %v2088_v2 = vmul.f32 %v5859_v50, %v5859_v50  ;;  %v2573_v22 = vpack.c.bf16 %v5859_v50, %v5858_v8  ;;  %v1957_v30 = vpop.f32.mrb[95].mxu0 }
 0x456   :  { %v8049_v0 = vadd.f32 %v2085_v55, %v2069_v47  ;;  %v2086_v20 = vmul.f32 %v1957_v30, %v1957_v30  ;;  %v2572_v21 = vpack.c.bf16 %v1957_v30, %v1954_v33 }
 0x457   :  { %v8051_v35 = vadd.f32 %v2088_v2, %v2072_v60 }
 0x458   :  { %v8053_v7 = vadd.f32 %v2086_v20, %v2070_v18  ;;  %5942 = vmatprep.mubr.msk.bf16.mxu0 %vm1763_vm8, %v2572_v21 }
 0x459   :  { %5943 = vmatmul.mubr.msk.bf16.gmra.mrb[140].mxu0 %vm1763_vm8, %v2573_v22 }
 0x45a   :  { %v5862_v51 = vpop.f32.mrb[96].mxu0 }
 0x45b   :  { %v2091_v29 = vmul.f32 %v5862_v51, %v5862_v51  ;;  %v1970_v6 = vpop.f32.mrb[97].mxu0 }
 0x45c   :  { %v2089_v26 = vmul.f32 %v1970_v6, %v1970_v6  ;;  %v5863_v40 = vpop.f32.mrb[98].mxu0 }
 0x45d   :  { %v8057_v43 = vadd.f32 %v2091_v29, %v2075_v25  ;;  %v2092_v5 = vmul.f32 %v5863_v40, %v5863_v40  ;;  %v2575_v15 = vpack.c.bf16 %v5863_v40, %v5862_v51  ;;  %v1973_v41 = vpop.f32.mrb[99].mxu0 }
 0x45e   :  { %v8061_v16 = vadd.f32 %v2089_v26, %v2073_v3  ;;  %v2090_v17 = vmul.f32 %v1973_v41, %v1973_v41  ;;  %v2574_v49 = vpack.c.bf16 %v1973_v41, %v1970_v6 }
 0x45f   :  { %v8063_v32 = vadd.f32 %v2092_v5, %v2076_v13 }
 0x460   :  { %v8065_v62 = vadd.f32 %v2090_v17, %v2074_v27  ;;  %5946 = vmatprep.mubr.msk.bf16.mxu0 %vm1763_vm8, %v2574_v49 }
 0x461   :  { %5947 = vmatmul.mubr.msk.bf16.gmra.mrb[144].mxu0 %vm1763_vm8, %v2575_v15 }
 0x462   :  { %v5866_v10 = vpop.f32.mrb[100].mxu0 }
 0x463   :  { %v2095_v28 = vmul.f32 %v5866_v10, %v5866_v10  ;;  %v1986_v11 = vpop.f32.mrb[101].mxu0 }
 0x464   :  { %v2093_v54 = vmul.f32 %v1986_v11, %v1986_v11  ;;  %v5867_v48 = vpop.f32.mrb[102].mxu0 }
 0x465   :  { %v8075_v58 = vadd.f32 %v2095_v28, %v2079_v1  ;;  %v2096_v52 = vmul.f32 %v5867_v48, %v5867_v48  ;;  %v2577_v56 = vpack.c.bf16 %v5867_v48, %v5866_v10  ;;  %v1989_v46 = vpop.f32.mrb[103].mxu0 }
 0x466   :  { %v8079_v9 = vadd.f32 %v2093_v54, %v2077_v45  ;;  %v2094_v14 = vmul.f32 %v1989_v46, %v1989_v46  ;;  %v2576_v23 = vpack.c.bf16 %v1989_v46, %v1986_v11 }
 0x467   :  { %v8081_v12 = vadd.f32 %v2096_v52, %v2080_v61 }
 0x468   :  { %v8083_v4 = vadd.f32 %v2094_v14, %v2078_v31  ;;  %5950 = vmatprep.mubr.msk.bf16.mxu0 %vm1763_vm8, %v2576_v23 }
 0x469   :  { %5951 = vmatmul.mubr.msk.bf16.gmra.mrb[148].mxu0 %vm1763_vm8, %v2577_v56 }
 0x46a   :  { %v5870_v57 = vpop.f32.mrb[104].mxu0 }
 0x46b   :  { %v2115_v37 = vmul.f32 %v5870_v57, %v5870_v57  ;;  %v2002_v24 = vpop.f32.mrb[105].mxu0 }
 0x46c   :  { %v2113_v59 = vmul.f32 %v2002_v24, %v2002_v24  ;;  %v5871_v8 = vpop.f32.mrb[106].mxu0 }
 0x46d   :  { %v2131_v36 = vadd.f32 %v2115_v37, %v8037_v63  ;;  %v2116_v38 = vmul.f32 %v5871_v8, %v5871_v8  ;;  %v2579_v34 = vpack.c.bf16 %v5871_v8, %v5870_v57  ;;  %v2005_v33 = vpop.f32.mrb[107].mxu0 }
 0x46e   :  { %v2129_v47 = vadd.f32 %v2113_v59, %v8039_v53  ;;  %v2114_v55 = vmul.f32 %v2005_v33, %v2005_v33  ;;  %v2578_v50 = vpack.c.bf16 %v2005_v33, %v2002_v24 }
 0x46f   :  { %v8089_v60 = vmax.f32 %v2131_v36, 1e-08  ;;  %v2132_v2 = vadd.f32 %v2116_v38, %v8041_v39 }
 0x470   :  { %v8092_v22 = vmax.f32 %v2129_v47, 1e-08  ;;  %v2130_v30 = vadd.f32 %v2114_v55, %v8043_v42  ;;  %5954 = vmatprep.mubr.msk.bf16.mxu0 %vm1763_vm8, %v2578_v50 }
 0x471   :  { %6497 = vrsqrt.f32 %v8089_v60  ;;  %v8097_v63 = vmax.f32 %v2132_v2, 1e-08  ;;  %5955 = vmatmul.mubr.msk.bf16.gmra.mrb[152].mxu0 %vm1763_vm8, %v2579_v34  ;;  %vm2177_vm9 = vcmp.eq.f32.partialorder %v8089_v60, inf  ;;  %v2180_v13 = vand.u32 2147483648, %v8089_v60 }
 0x472   :  { %6499 = vrsqrt.f32 %v8092_v22  ;;  %v8101_v53 = vmax.f32 %v2130_v30, 1e-08  ;;  %v5874_v18 = vpop.f32.mrb[108].mxu0  ;;  %vm2163_vm10 = vcmp.eq.f32.partialorder %v8092_v22, inf  ;;  %vm2165_vm11 = vcmp.eq.f32.partialorder %v8092_v22, 0.0 }
 0x473   :  { %6501 = vrsqrt.f32 %v8097_v63  ;;  %v2119_v39 = vmul.f32 %v5874_v18, %v5874_v18  ;;  %v2018_v20 = vpop.f32.mrb[109].mxu0  ;;  %v2187_v41 = vand.u32 2147483648, %v8097_v63  ;;  %vm2184_vm12 = vcmp.eq.f32.partialorder %v8097_v63, inf }
 0x474   :  { %6503 = vrsqrt.f32 %v8101_v53  ;;  %v2117_v42 = vmul.f32 %v2018_v20, %v2018_v20  ;;  %v5875_v21 = vpop.f32.mrb[110].mxu0  ;;  %vm2170_vm13 = vcmp.eq.f32.partialorder %v8101_v53, inf  ;;  %vm2172_vm14 = vcmp.eq.f32.partialorder %v8101_v53, 0.0 }
 0x475   :  { %v2135_v51 = vadd.f32 %v2119_v39, %v8047_v19  ;;  %v2120_v25 = vmul.f32 %v5875_v21, %v5875_v21  ;;  %v2581_v29 = vpack.c.bf16 %v5875_v21, %v5874_v18  ;;  %v2021_v6 = vpop.f32.mrb[111].mxu0  ;;  %v2173_v49 = vand.u32 2147483648, %v8101_v53 }
 0x476   :  { %v2133_v3 = vadd.f32 %v2117_v42, %v8049_v0  ;;  %v2118_v26 = vmul.f32 %v2021_v6, %v2021_v6  ;;  %v2580_v40 = vpack.c.bf16 %v2021_v6, %v2018_v20  ;;  %vm2179_vm15 = vcmp.eq.f32.partialorder %v8089_v60, 0.0 }
 0x477   :  { %v8109_v5 = vmax.f32 %v2135_v51, 1e-08  ;;  %v2136_v15 = vadd.f32 %v2120_v25, %v8051_v35  ;;  %v2166_v35 = vand.u32 2147483648, %v8092_v22  ;;  %vm2186_vm2 = vcmp.eq.f32.partialorder %v8097_v63, 0.0 }
 0x478   :  { %v8114_v19 = vmax.f32 %v2133_v3, 1e-08  ;;  %v2134_v27 = vadd.f32 %v2118_v26, %v8053_v7  ;;  %5958 = vmatprep.mubr.msk.bf16.mxu0 %vm1763_vm8, %v2580_v40 }
 0x479   :  { %6505 = vrsqrt.f32 %v8109_v5  ;;  %v8121_v0 = vmax.f32 %v2136_v15, 1e-08  ;;  %5959 = vmatmul.mubr.msk.bf16.gmra.mrb[156].mxu0 %vm1763_vm8, %v2581_v29  ;;  %vm2205_vm5 = vcmp.eq.f32.partialorder %v8109_v5, inf }
 0x47a   :  { %6507 = vrsqrt.f32 %v8114_v19  ;;  %v8127_v17 = vmax.f32 %v2134_v27, 1e-08  ;;  %v5878_v7 = vpop.f32.mrb[112].mxu0  ;;  %v2194_v61 = vand.u32 2147483648, %v8114_v19  ;;  %vm2191_vm3 = vcmp.eq.f32.partialorder %v8114_v19, inf }
 0x47b   :  { %v6498_v10 = vpop.eup %6497  ;;  %6509 = vrsqrt.f32 %v8121_v0  ;;  %v2123_v1 = vmul.f32 %v5878_v7, %v5878_v7  ;;  %v2034_v28 = vpop.f32.mrb[113].mxu0  ;;  %vm2193_vm4 = vcmp.eq.f32.partialorder %v8114_v19, 0.0 }
 0x47c   :  { %v6500_v11 = vpop.eup %6499  ;;  %v2176_v45 = vmul.f32 %v6498_v10, %v8089_v60  ;;  %6511 = vrsqrt.f32 %v8127_v17  ;;  %v2121_v54 = vmul.f32 %v2034_v28, %v2034_v28  ;;  %v5879_v48 = vpop.f32.mrb[114].mxu0  ;;  %vm2198_vm6 = vcmp.eq.f32.partialorder %v8127_v17, inf }
 0x47d   :  { %v6502_v52 = vpop.eup %6501  ;;  %v2139_v56 = vadd.f32 %v2123_v1, %v8057_v43  ;;  %v2124_v46 = vmul.f32 %v5879_v48, %v5879_v48  ;;  %v2583_v31 = vpack.c.bf16 %v5879_v48, %v5878_v7  ;;  %v2037_v14 = vpop.f32.mrb[115].mxu0  ;;  %v2162_v23 = vmul.f32 %v6500_v11, %v8092_v22 }
 0x47e   :  { %v6504_v57 = vpop.eup %6503  ;;  %v2183_v37 = vmul.f32 %v6502_v52, %v8097_v63  ;;  %v2137_v24 = vadd.f32 %v2121_v54, %v8061_v16  ;;  %v2122_v59 = vmul.f32 %v2037_v14, %v2037_v14  ;;  %v2582_v8 = vpack.c.bf16 %v2037_v14, %v2034_v28 }
 0x47f   :  { %v8142_v36 = vmax.f32 %v2139_v56, 1e-08  ;;  %v2140_v38 = vadd.f32 %v2124_v46, %v8063_v32  ;;  %v2164_v43 = vsel %vm2163_vm10, %v8092_v22, %v2162_v23  ;;  %v2169_v34 = vmul.f32 %v6504_v57, %v8101_v53 }
 0x480   :  { %v8150_v33 = vmax.f32 %v2137_v24, 1e-08  ;;  %v2138_v16 = vadd.f32 %v2122_v59, %v8065_v62  ;;  %5962 = vmatprep.mubr.msk.bf16.mxu0 %vm1763_vm8, %v2582_v8  ;;  %v2167_v47 = vsel %vm2165_vm11, %v2166_v35, %v2164_v43  ;;  %v2178_v32 = vsel %vm2177_vm9, %v8089_v60, %v2176_v45 }
 0x481   :  { %6513 = vrsqrt.f32 %v8142_v36  ;;  %v8161_v55 = vmax.f32 %v2140_v38, 1e-08  ;;  %5963 = vmatmul.mubr.msk.bf16.gmra.mrb[160].mxu0 %vm1763_vm8, %v2583_v31  ;;  %v2171_v62 = vsel %vm2170_vm13, %v8101_v53, %v2169_v34  ;;  %v2181_v50 = vsel %vm2179_vm15, %v2180_v13, %v2178_v32 }
 0x482   :  { %6515 = vrsqrt.f32 %v8150_v33  ;;  %v8171_v2 = vmax.f32 %v2138_v16, 1e-08  ;;  %v5882_v22 = vpop.f32.mrb[116].mxu0  ;;  %v2174_v30 = vsel %vm2172_vm14, %v2173_v49, %v2171_v62  ;;  %v2185_v18 = vsel %vm2184_vm12, %v8097_v63, %v2183_v37 }
 0x483   :  { %v6506_v39 = vpop.eup %6505  ;;  %6517 = vrsqrt.f32 %v8161_v55  ;;  %v2127_v20 = vmul.f32 %v5882_v22, %v5882_v22  ;;  %v2050_v60 = vpop.f32.mrb[117].mxu0  ;;  %v2281_v42 = vpack.c.bf16 %v2174_v30, %v2167_v47  ;;  %v2188_v21 = vsel %vm2186_vm2, %v2187_v41, %v2185_v18 }
 0x484   :  { %v6508_v51 = vpop.eup %6507  ;;  %6519 = vrsqrt.f32 %v8171_v2  ;;  %v2125_v53 = vmul.f32 %v2050_v60, %v2050_v60  ;;  %v5883_v25 = vpop.f32.mrb[118].mxu0  ;;  %v2282_v29 = vpack.c.bf16 %v2188_v21, %v2181_v50  ;;  %vm2200_vm7 = vcmp.eq.f32.partialorder %v8127_v17, 0.0 }
 0x485   :  { %v6510_v6 = vpop.eup %6509  ;;  %v2143_v3 = vadd.f32 %v2127_v20, %v8075_v58  ;;  %v2128_v26 = vmul.f32 %v5883_v25, %v5883_v25  ;;  %v2585_v40 = vpack.c.bf16 %v5883_v25, %v5882_v22  ;;  %v2053_v13 = vpop.f32.mrb[119].mxu0  ;;  %5886 = vmatprep.mubr.msk.bf16.mxu1 %vm1763_vm8, %v2281_v42  ;;  %v2190_v15 = vmul.f32 %v6508_v51, %v8114_v19 }
 0x486   :  { %v6512_v63 = vpop.eup %6511  ;;  %v2141_v41 = vadd.f32 %v2125_v53, %v8079_v9  ;;  %v2126_v27 = vmul.f32 %v2053_v13, %v2053_v13  ;;  %v2584_v35 = vpack.c.bf16 %v2053_v13, %v2050_v60  ;;  %5887 = vmatmul.mubr.msk.bf16.vlgmr.msra.gmra.mrb[64].mxu1 %vm1763_vm8, %v2282_v29  ;;  %v2201_v7 = vand.u32 2147483648, %v8127_v17 }
 0x487   :  { %v8191_v49 = vmax.f32 %v2143_v3, 1e-08  ;;  %v2144_v58 = vadd.f32 %v2128_v26, %v8081_v12  ;;  %5903 = vmatpush3.bf16.msra.mxu1 %v8011_v44  ;;  %v2192_v10 = vsel %vm2191_vm3, %v8114_v19, %v2190_v15  ;;  %v2197_v1 = vmul.f32 %v6512_v63, %v8127_v17 }
 0x488   :  { %v8199_v28 = vmax.f32 %v2141_v41, 1e-08  ;;  %v2142_v9 = vadd.f32 %v2126_v27, %v8083_v4  ;;  %5966 = vmatprep.mubr.msk.bf16.mxu0 %vm1763_vm8, %v2584_v35  ;;  %v2195_v11 = vsel %vm2193_vm4, %v2194_v61, %v2192_v10  ;;  %v2204_v12 = vmul.f32 %v6506_v39, %v8109_v5  ;;  %v9439_v10 = vld [vmem:[#allocation2_spill] sm:$0xff] }
 0x489   :  { %6521 = vrsqrt.f32 %v8191_v49  ;;  %v8209_v44 = vmax.f32 %v2144_v58, 1e-08  ;;  %5967 = vmatmul.mubr.msk.bf16.gmra.mrb[164].mxu0 %vm1763_vm8, %v2585_v40  ;;  %v2199_v45 = vsel %vm2198_vm6, %v8127_v17, %v2197_v1  ;;  %v2211_v4 = vmul.f32 %v6510_v6, %v8121_v0  ;;  %v9440_v1 = vld [vmem:[#allocation3_spill] sm:$0xff] }
 0x48a   :  { %6523 = vrsqrt.f32 %v8199_v28  ;;  %v8217_v54 = vmax.f32 %v2142_v9, 1e-08  ;;  %v2202_v19 = vsel %vm2200_vm7, %v2201_v7, %v2199_v45  ;;  %v2206_v48 = vsel %vm2205_vm5, %v8109_v5, %v2204_v12  ;;  %v9443_v9 = vld [vmem:[#allocation4_spill] sm:$0xff]  ;;  %v9445_v12 = vld [vmem:[#allocation9_spill] sm:$0xff] }
 0x48b   :  { %v6514_v61 = vpop.eup %6513  ;;  %6525 = vrsqrt.f32 %v8209_v44  ;;  %v2283_v52 = vpack.c.bf16 %v2202_v19, %v2195_v11  ;;  %v2208_v56 = vand.u32 2147483648, %v8109_v5  ;;  %vm2212_vm9 = vcmp.eq.f32.partialorder %v8121_v0, inf  ;;  %v9444_v11 = vld [vmem:[#allocation6_spill] sm:$0xff] }
 0x48c   :  { %v6516_v46 = vpop.eup %6515  ;;  %6527 = vrsqrt.f32 %v8217_v54  ;;  %vm2207_vm10 = vcmp.eq.f32.partialorder %v8109_v5, 0.0  ;;  %v2213_v17 = vsel %vm2212_vm9, %v8121_v0, %v2211_v4  ;;  %v2215_v31 = vand.u32 2147483648, %v8121_v0 }
 0x48d   :  { %v6518_v14 = vpop.eup %6517  ;;  %5890 = vmatprep.mubr.msk.bf16.mxu1 %vm1763_vm8, %v2283_v52  ;;  %v2209_v23 = vsel %vm2207_vm10, %v2208_v56, %v2206_v48  ;;  %vm2214_vm11 = vcmp.eq.f32.partialorder %v8121_v0, 0.0  ;;  %v2218_v57 = vmul.f32 %v6516_v46, %v8150_v33  ;;  %vm2219_vm12 = vcmp.eq.f32.partialorder %v8150_v33, inf }
 0x48e   :  { %v6520_v37 = vpop.eup %6519  ;;  %v2216_v24 = vsel %vm2214_vm11, %v2215_v31, %v2213_v17  ;;  %vm2221_vm13 = vcmp.eq.f32.partialorder %v8150_v33, 0.0  ;;  %v2222_v5 = vand.u32 2147483648, %v8150_v33  ;;  %v2232_v43 = vmul.f32 %v6514_v61, %v8142_v36 }
 0x48f   :  { %v2284_v59 = vpack.c.bf16 %v2216_v24, %v2209_v23  ;;  %v2220_v8 = vsel %vm2219_vm12, %v8150_v33, %v2218_v57  ;;  %v2225_v38 = vmul.f32 %v6520_v37, %v8171_v2  ;;  %vm2226_vm14 = vcmp.eq.f32.partialorder %v8171_v2, inf  ;;  %v6334_v57 = vld [vmem:[%s9316_s14] sm:$0xff]  }
 0x490   :  { %vm2228_vm15 = vcmp.eq.f32.partialorder %v8171_v2, 0.0  ;;  %v2229_v0 = vand.u32 2147483648, %v8171_v2  ;;  %vm2233_vm2 = vcmp.eq.f32.partialorder %v8142_v36, inf  ;;  %v2223_v34 = vsel %vm2221_vm13, %v2222_v5, %v2220_v8  ;;  %5970 = vmatprep.subr.bf16.mxu1 %v6334_v57 }
 0x491   :  { %5891 = vmatmul.mubr.msk.bf16.gmra.mrb[68].mxu1 %vm1763_vm8, %v2284_v59  ;;  %v2227_v16 = vsel %vm2226_vm14, %v8171_v2, %v2225_v38  ;;  %v2234_v47 = vsel %vm2233_vm2, %v8142_v36, %v2232_v43  ;;  %v2239_v33 = vmul.f32 %v6518_v14, %v8161_v55  ;;  %v2236_v62 = vand.u32 2147483648, %v8142_v36 }
 0x492   :  { %v2230_v32 = vsel %vm2228_vm15, %v2229_v0, %v2227_v16  ;;  %vm2240_vm3 = vcmp.eq.f32.partialorder %v8161_v55, inf  ;;  %v2243_v50 = vand.u32 2147483648, %v8161_v55  ;;  %vm2235_vm4 = vcmp.eq.f32.partialorder %v8142_v36, 0.0 }
 0x493   :  { %v6522_v22 = vpop.eup %6521  ;;  %v2285_v30 = vpack.c.bf16 %v2230_v32, %v2223_v34  ;;  %v2241_v18 = vsel %vm2240_vm3, %v8161_v55, %v2239_v33  ;;  %vm2242_vm6 = vcmp.eq.f32.partialorder %v8161_v55, 0.0  ;;  %v2237_v39 = vsel %vm2235_vm4, %v2236_v62, %v2234_v47 }
 0x494   :  { %v6524_v2 = vpop.eup %6523  ;;  %v2244_v20 = vsel %vm2242_vm6, %v2243_v50, %v2241_v18  ;;  %v2260_v51 = vmul.f32 %v6522_v22, %v8191_v49  ;;  %vm2247_vm5 = vcmp.eq.f32.partialorder %v8199_v28, inf  ;;  %vm2249_vm7 = vcmp.eq.f32.partialorder %v8199_v28, 0.0 }
 0x495   :  { %v6526_v60 = vpop.eup %6525  ;;  %5894 = vmatprep.mubr.msk.bf16.mxu1 %vm1763_vm8, %v2285_v30  ;;  %v2286_v42 = vpack.c.bf16 %v2244_v20, %v2237_v39  ;;  %v2246_v21 = vmul.f32 %v6524_v2, %v8199_v28  ;;  %v2250_v36 = vand.u32 2147483648, %v8199_v28  ;;  %vm2261_vm9 = vcmp.eq.f32.partialorder %v8191_v49, inf }
 0x496   :  { %v6528_v53 = vpop.eup %6527  ;;  %v2267_v55 = vmul.f32 %v6526_v60, %v8209_v44  ;;  %vm2268_vm10 = vcmp.eq.f32.partialorder %v8209_v44, inf  ;;  %vm2254_vm11 = vcmp.eq.f32.partialorder %v8217_v54, inf  ;;  %v2257_v6 = vand.u32 2147483648, %v8217_v54 }
 0x497   :  { %v2248_v25 = vsel %vm2247_vm5, %v8199_v28, %v2246_v21  ;;  %v2253_v29 = vmul.f32 %v6528_v53, %v8217_v54  ;;  %v2262_v3 = vsel %vm2261_vm9, %v8191_v49, %v2260_v51  ;;  %vm2256_vm12 = vcmp.eq.f32.partialorder %v8217_v54, 0.0  ;;  %v9441_v28 = vld [vmem:[#allocation5_spill] sm:$0xff] }
 0x498   :  { %v2269_v26 = vsel %vm2268_vm10, %v8209_v44, %v2267_v55  ;;  %v2264_v13 = vand.u32 2147483648, %v8191_v49  ;;  %v2271_v15 = vand.u32 2147483648, %v8209_v44  ;;  %v2251_v63 = vsel %vm2249_vm7, %v2250_v36, %v2248_v25 }
 0x499   :  { %5895 = vmatmul.mubr.msk.bf16.gmra.mrb[72].mxu1 %vm1763_vm8, %v2286_v42  ;;  %v2255_v40 = vsel %vm2254_vm11, %v8217_v54, %v2253_v29  ;;  %vm2263_vm13 = vcmp.eq.f32.partialorder %v8191_v49, 0.0  ;;  %vm2270_vm14 = vcmp.eq.f32.partialorder %v8209_v44, 0.0  ;;  %v9442_v49 = vld [vmem:[#allocation7_spill] sm:$0xff] }
 0x49a   :  { %v2258_v41 = vsel %vm2256_vm12, %v2257_v6, %v2255_v40  ;;  %v2265_v35 = vsel %vm2263_vm13, %v2264_v13, %v2262_v3  ;;  %v2272_v7 = vsel %vm2270_vm14, %v2271_v15, %v2269_v26  ;;  %v9446_v44 = vld [vmem:[#allocation11_spill] sm:$0xff]  ;;  %v8398_v15 = vld [vmem:[%s9317_s12] ss:$0 sm:$0xff] }
 0x49b   :  { %v2287_v27 = vpack.c.bf16 %v2258_v41, %v2251_v63  ;;  %v2288_v58 = vpack.c.bf16 %v2272_v7, %v2265_v35 }
 0x49d   :  { %5898 = vmatprep.mubr.msk.bf16.mxu1 %vm1763_vm8, %v2287_v27 }
 0x4a1   :  { %5899 = vmatmul.mubr.msk.bf16.gmra.mrb[76].mxu1 %vm1763_vm8, %v2288_v58 }
 0x4a2   :  { %5904 = vmatprep.mubr.msk.bf16.mxu1 %vm1448_vm0, %v9439_v10 }
 0x4a9   :  { %5905 = vmatmul.mubr.msk.bf16.vlgmr.msra.gmra.mrb[64].mxu1 %vm1448_vm0, %v9440_v1 }
 0x4aa   :  { %5908 = vmatprep.mubr.msk.bf16.mxu1 %vm1448_vm0, %v9441_v28  ;;  %5971 = vmatpush3.bf16.msra.mxu1 %v6334_v57 }
 0x4b1   :  { %5909 = vmatmul.mubr.msk.bf16.gmra.mrb[68].mxu1 %vm1448_vm0, %v9442_v49 }
 0x4b2   :  { %5912 = vmatprep.mubr.msk.bf16.mxu1 %vm1448_vm0, %v9443_v9 }
 0x4b9   :  { %5913 = vmatmul.mubr.msk.bf16.gmra.mrb[72].mxu1 %vm1448_vm0, %v9444_v11 }
 0x4ba   :  { %5916 = vmatprep.mubr.msk.bf16.mxu1 %vm1448_vm0, %v9445_v12 }
 0x4c1   :  { %5917 = vmatmul.mubr.msk.bf16.gmra.mrb[76].mxu1 %vm1448_vm0, %v9446_v44 }
 0x503   :  { %v8296_v45 = vpop.f32.mrb[120].mxu0 }
 0x504   :  { %v8298_v4 = vpop.f32.mrb[121].mxu0 }
 0x505   :  { %v8300_v54 = vpop.f32.mrb[122].mxu0 }
 0x506   :  { %v8302_v19 = vpop.f32.mrb[123].mxu0 }
 0x50b   :  { %v8304_v48 = vpop.f32.mrb[124].mxu0 }
 0x50c   :  { %v8306_v61 = vpop.f32.mrb[125].mxu0 }
 0x50d   :  { %v8308_v52 = vpop.f32.mrb[126].mxu0 }
 0x50e   :  { %v8310_v56 = vpop.f32.mrb[127].mxu0 }
 0x514   :  { %v8312_v46 = vpop.f32.mrb[128].mxu0 }
 0x515   :  { %v8314_v17 = vpop.f32.mrb[129].mxu0 }
 0x516   :  { %v8316_v31 = vpop.f32.mrb[130].mxu0 }
 0x517   :  { %v8318_v14 = vpop.f32.mrb[131].mxu0 }
 0x51c   :  { %v8320_v23 = vpop.f32.mrb[132].mxu0 }
 0x51d   :  { %v8325_v37 = vpop.f32.mrb[133].mxu0 }
 0x51e   :  { %v8327_v24 = vpop.f32.mrb[134].mxu0 }
 0x51f   :  { %9447 = vst [vmem:[#allocation15_spill] sm:$0xff] %v8327_v24  ;;  %v8329_v5 = vpop.f32.mrb[135].mxu0 }
 0x520   :  { %9448 = vst [vmem:[#allocation13_spill] sm:$0xff] %v8329_v5 }
 0x524   :  { %v8331_v59 = vpop.f32.mrb[136].mxu0 }
 0x525   :  { %v8333_v8 = vpop.f32.mrb[137].mxu0 }
 0x526   :  { %v8335_v38 = vpop.f32.mrb[138].mxu0 }
 0x527   :  { %v8337_v43 = vpop.f32.mrb[139].mxu0 }
 0x52c   :  { %v8339_v0 = vpop.f32.mrb[140].mxu0 }
 0x52d   :  { %v8341_v34 = vpop.f32.mrb[141].mxu0 }
 0x52e   :  { %v8343_v16 = vpop.f32.mrb[142].mxu0 }
 0x52f   :  { %v8345_v47 = vpop.f32.mrb[143].mxu0 }
 0x534   :  { %v8347_v33 = vpop.f32.mrb[144].mxu0 }
 0x535   :  { %v8349_v32 = vpop.f32.mrb[145].mxu0 }
 0x536   :  { %v8351_v62 = vpop.f32.mrb[146].mxu0 }
 0x537   :  { %v8353_v50 = vpop.f32.mrb[147].mxu0 }
 0x53c   :  { %v8355_v22 = vpop.f32.mrb[148].mxu0 }
 0x53d   :  { %v8357_v30 = vpop.f32.mrb[149].mxu0 }
 0x53e   :  { %9449 = vst [vmem:[#allocation14_spill] sm:$0xff] %v8357_v30  ;;  %v8359_v18 = vpop.f32.mrb[150].mxu0 }
 0x53f   :  { %9450 = vst [vmem:[#allocation12_spill] sm:$0xff] %v8359_v18  ;;  %v8361_v2 = vpop.f32.mrb[151].mxu0 }
 0x540   :  { %9451 = vst [vmem:[#allocation10_spill] sm:$0xff] %v8361_v2 }
 0x544   :  { %v8363_v39 = vpop.f32.mrb[152].mxu0 }
 0x545   :  { %v8365_v20 = vpop.f32.mrb[153].mxu0 }
 0x546   :  { %v8367_v60 = vpop.f32.mrb[154].mxu0 }
 0x547   :  { %v8369_v42 = vpop.f32.mrb[155].mxu0 }
 0x54c   :  { %v8371_v21 = vpop.f32.mrb[156].mxu0 }
 0x54d   :  { %v8373_v51 = vpop.f32.mrb[157].mxu0 }
 0x54e   :  { %v8375_v53 = vpop.f32.mrb[158].mxu0 }
 0x54f   :  { %v8377_v36 = vpop.f32.mrb[159].mxu0 }
 0x554   :  { %v8379_v55 = vpop.f32.mrb[160].mxu0 }
 0x555   :  { %v8381_v25 = vpop.f32.mrb[161].mxu0 }
 0x556   :  { %v8383_v29 = vpop.f32.mrb[162].mxu0 }
 0x557   :  { %v8385_v6 = vpop.f32.mrb[163].mxu0 }
 0x55c   :  { %v8387_v3 = vpop.f32.mrb[164].mxu0 }
 0x55d   :  { %v8389_v26 = vpop.f32.mrb[165].mxu0 }
 0x55e   :  { %9452 = vst [vmem:[#allocation8_spill] sm:$0xff] %v8389_v26  ;;  %v8391_v40 = vpop.f32.mrb[166].mxu0 }
 0x55f   :  { %9453 = vst [vmem:[#allocation2_spill] sm:$0xff] %v8391_v40  ;;  %v8393_v13 = vpop.f32.mrb[167].mxu0 }
 0x560   :  { %9454 = vst [vmem:[#allocation3_spill] sm:$0xff] %v8393_v13 }
 0x57c   :  { %v5906_v63 = vpop.f32.mrb[64].mxu1 }
 0x57d   :  { %v2548_v41 = vadd.f32 %v5906_v63, %v8398_v15  ;;  %v2477_v27 = vpop.f32.mrb[65].mxu1 }
 0x57e   :  { %v2546_v35 = vadd.f32 %v8398_v15, %v2477_v27  ;;  %v5907_v7 = vpop.f32.mrb[66].mxu1 }
 0x57f   :  { %v5279_v58 = vmul.f32 -1.442695, %v2548_v41  ;;  %v2549_v10 = vadd.f32 %v5907_v7, %v8398_v15  ;;  %v2480_v1 = vpop.f32.mrb[67].mxu1  ;;  %v3269_v9 = vmax.f32 %v2548_v41, 0.0 }
 0x580   :  { %v5277_v28 = vmul.f32 -1.442695, %v2546_v35  ;;  %v2547_v49 = vadd.f32 %v8398_v15, %v2480_v1  ;;  %v3267_v44 = vmax.f32 %v2546_v35, 0.0 }
 0x581   :  { %6529 = vpow2.f32 %v5279_v58  ;;  %v5280_v11 = vmul.f32 -1.442695, %v2549_v10  ;;  %v3270_v12 = vmax.f32 %v2549_v10, 0.0 }
 0x582   :  { %6531 = vpow2.f32 %v5277_v28  ;;  %v5278_v57 = vmul.f32 -1.442695, %v2547_v49  ;;  %v3268_v13 = vmax.f32 %v2547_v49, 0.0 }
 0x583   :  { %6533 = vpow2.f32 %v5280_v11  ;;  %v8404_v63 = vpack.c.bf16 %v3270_v12, %v3269_v9 }
 0x584   :  { %6535 = vpow2.f32 %v5278_v57  ;;  %v8406_v27 = vpack.c.bf16 %v3268_v13, %v3267_v44  ;;  %v5910_v2 = vpop.f32.mrb[68].mxu1 }
 0x585   :  { %9455 = vst [vmem:[#allocation5_spill] sm:$0xff] %v8404_v63  ;;  %v2552_v7 = vadd.f32 %v5910_v2, %v8398_v15  ;;  %v2493_v5 = vpop.f32.mrb[69].mxu1 }
 0x586   :  { %9456 = vst [vmem:[#allocation7_spill] sm:$0xff] %v8406_v27  ;;  %v2550_v1 = vadd.f32 %v8398_v15, %v2493_v5  ;;  %v5911_v58 = vpop.f32.mrb[70].mxu1 }
 0x587   :  { %v5283_v41 = vmul.f32 -1.442695, %v2552_v7  ;;  %v2553_v10 = vadd.f32 %v5911_v58, %v8398_v15  ;;  %v2496_v28 = vpop.f32.mrb[71].mxu1  ;;  %v3273_v9 = vmax.f32 %v2552_v7, 0.0 }
 0x588   :  { %v5281_v35 = vmul.f32 -1.442695, %v2550_v1  ;;  %v2551_v49 = vadd.f32 %v8398_v15, %v2496_v28  ;;  %v3271_v13 = vmax.f32 %v2550_v1, 0.0 }
 0x589   :  { %6537 = vpow2.f32 %v5283_v41  ;;  %v5284_v11 = vmul.f32 -1.442695, %v2553_v10  ;;  %v3274_v12 = vmax.f32 %v2553_v10, 0.0 }
 0x58a   :  { %6539 = vpow2.f32 %v5281_v35  ;;  %v5282_v44 = vmul.f32 -1.442695, %v2551_v49  ;;  %v3272_v57 = vmax.f32 %v2551_v49, 0.0 }
 0x58b   :  { %v6530_v2 = vpop.eup %6529  ;;  %6541 = vpow2.f32 %v5284_v11  ;;  %v8412_v63 = vpack.c.bf16 %v3274_v12, %v3273_v9 }
 0x58c   :  { %v6532_v5 = vpop.eup %6531  ;;  %v2936_v27 = vadd.f32 1.0, %v6530_v2  ;;  %6543 = vpow2.f32 %v5282_v44  ;;  %v8414_v58 = vpack.c.bf16 %v3272_v57, %v3271_v13  ;;  %v5914_v40 = vpop.f32.mrb[72].mxu1 }
 0x58d   :  { %9457 = vst [vmem:[#allocation4_spill] sm:$0xff] %v8412_v63  ;;  %v6534_v18 = vpop.eup %6533  ;;  %v2934_v28 = vadd.f32 1.0, %v6532_v5  ;;  %v2556_v7 = vadd.f32 %v5914_v40, %v8398_v15  ;;  %v2509_v41 = vpop.f32.mrb[73].mxu1 }
 0x58e   :  { %9458 = vst [vmem:[#allocation6_spill] sm:$0xff] %v8414_v58  ;;  %v6536_v10 = vpop.eup %6535  ;;  %6545 = vrcp.f32 %v2936_v27  ;;  %v2937_v1 = vadd.f32 1.0, %v6534_v18  ;;  %v2554_v35 = vadd.f32 %v8398_v15, %v2509_v41  ;;  %v5915_v49 = vpop.f32.mrb[74].mxu1 }
 0x58f   :  { %6547 = vrcp.f32 %v2934_v28  ;;  %v2935_v9 = vadd.f32 1.0, %v6536_v10  ;;  %v5287_v11 = vmul.f32 -1.442695, %v2556_v7  ;;  %v2512_v12 = vpop.f32.mrb[75].mxu1  ;;  %v2557_v13 = vadd.f32 %v5915_v49, %v8398_v15 }
 0x590   :  { %6549 = vrcp.f32 %v2937_v1  ;;  %v5285_v44 = vmul.f32 -1.442695, %v2554_v35  ;;  %v2555_v57 = vadd.f32 %v8398_v15, %v2512_v12  ;;  %v3277_v40 = vmax.f32 %v2556_v7, 0.0 }
 0x591   :  { %6551 = vrcp.f32 %v2935_v9  ;;  %v5288_v2 = vmul.f32 -1.442695, %v2557_v13  ;;  %v3278_v5 = vmax.f32 %v2557_v13, 0.0  ;;  %v3275_v18 = vmax.f32 %v2554_v35, 0.0 }
 0x592   :  { %6553 = vpow2.f32 %v5287_v11  ;;  %v5286_v41 = vmul.f32 -1.442695, %v2555_v57  ;;  %v3276_v63 = vmax.f32 %v2555_v57, 0.0 }
 0x593   :  { %v6538_v27 = vpop.eup %6537  ;;  %6555 = vpow2.f32 %v5285_v44  ;;  %v8420_v58 = vpack.c.bf16 %v3278_v5, %v3277_v40 }
 0x594   :  { %v6540_v28 = vpop.eup %6539  ;;  %v2940_v10 = vadd.f32 1.0, %v6538_v27  ;;  %6557 = vpow2.f32 %v5288_v2  ;;  %v5918_v1 = vpop.f32.mrb[76].mxu1  ;;  %v8422_v9 = vpack.c.bf16 %v3276_v63, %v3275_v18 }
 0x595   :  { %9459 = vst [vmem:[#allocation9_spill] sm:$0xff] %v8420_v58  ;;  %v6542_v24 = vpop.eup %6541  ;;  %v2938_v49 = vadd.f32 1.0, %v6540_v28  ;;  %6559 = vpow2.f32 %v5286_v41  ;;  %v2560_v7 = vadd.f32 %v5918_v1, %v8398_v15  ;;  %v2525_v11 = vpop.f32.mrb[77].mxu1 }
 0x596   :  { %9460 = vst [vmem:[#allocation11_spill] sm:$0xff] %v8422_v9  ;;  %v6544_v12 = vpop.eup %6543  ;;  %6561 = vrcp.f32 %v2940_v10  ;;  %v2941_v44 = vadd.f32 1.0, %v6542_v24  ;;  %v2558_v35 = vadd.f32 %v8398_v15, %v2525_v11  ;;  %v5919_v13 = vpop.f32.mrb[78].mxu1 }
 0x597   :  { %6563 = vrcp.f32 %v2938_v49  ;;  %v2939_v57 = vadd.f32 1.0, %v6544_v12  ;;  %v5291_v2 = vmul.f32 -1.442695, %v2560_v7  ;;  %v2528_v40 = vpop.f32.mrb[79].mxu1  ;;  %v2561_v41 = vadd.f32 %v5919_v13, %v8398_v15 }
 0x598   :  { %v6546_v5 = vpop.eup %6545  ;;  %6565 = vrcp.f32 %v2941_v44  ;;  %v5289_v27 = vmul.f32 -1.442695, %v2558_v35  ;;  %v3281_v18 = vmax.f32 %v2560_v7, 0.0  ;;  %v2559_v28 = vadd.f32 %v8398_v15, %v2528_v40 }
 0x599   :  { %v6548_v63 = vpop.eup %6547  ;;  %6567 = vrcp.f32 %v2939_v57  ;;  %v3279_v24 = vmax.f32 %v2558_v35, 0.0  ;;  %v5292_v10 = vmul.f32 -1.442695, %v2561_v41  ;;  %v3282_v11 = vmax.f32 %v2561_v41, 0.0 }
 0x59a   :  { %v6550_v1 = vpop.eup %6549  ;;  %6569 = vpow2.f32 %v5291_v2  ;;  %v5290_v12 = vmul.f32 -1.442695, %v2559_v28  ;;  %v3280_v9 = vmax.f32 %v2559_v28, 0.0 }
 0x59b   :  { %v6552_v58 = vpop.eup %6551  ;;  %v2983_v49 = vpack.c.bf16 %v6550_v1, %v6546_v5  ;;  %6571 = vpow2.f32 %v5289_v27  ;;  %v8428_v44 = vpack.c.bf16 %v3282_v11, %v3281_v18 }
 0x59c   :  { %v6554_v26 = vpop.eup %6553  ;;  %6573 = vpow2.f32 %v5292_v10  ;;  %v2982_v13 = vpack.c.bf16 %v6552_v58, %v6548_v63  ;;  %v8430_v7 = vpack.c.bf16 %v3280_v9, %v3279_v24 }
 0x59d   :  { %v6556_v30 = vpop.eup %6555  ;;  %v2944_v57 = vadd.f32 1.0, %v6554_v26  ;;  %6575 = vpow2.f32 %v5290_v12 }
 0x59e   :  { %v6558_v15 = vpop.eup %6557  ;;  %v2942_v2 = vadd.f32 1.0, %v6556_v30  ;;  %5972 = vmatprep.mubr.msk.bf16.mxu1 %vm1448_vm0, %v2982_v13 }
 0x59f   :  { %v6560_v35 = vpop.eup %6559  ;;  %6577 = vrcp.f32 %v2944_v57  ;;  %v2945_v40 = vadd.f32 1.0, %v6558_v15  ;;  %5973 = vmatmul.mubr.msk.bf16.vlgmr.msra.gmra.mrb[80].mxu1 %vm1448_vm0, %v2983_v49 }
 0x5a0   :  { %v6562_v5 = vpop.eup %6561  ;;  %6579 = vrcp.f32 %v2942_v2  ;;  %v2943_v27 = vadd.f32 1.0, %v6560_v35 }
 0x5a1   :  { %v6564_v41 = vpop.eup %6563  ;;  %6581 = vrcp.f32 %v2945_v40 }
 0x5a2   :  { %v6566_v58 = vpop.eup %6565  ;;  %6583 = vrcp.f32 %v2943_v27 }
 0x5a3   :  { %v6568_v26 = vpop.eup %6567  ;;  %v2985_v63 = vpack.c.bf16 %v6566_v58, %v6562_v5 }
 0x5a4   :  { %v6570_v9 = vpop.eup %6569  ;;  %v2984_v18 = vpack.c.bf16 %v6568_v26, %v6564_v41 }
 0x5a5   :  { %v6572_v28 = vpop.eup %6571  ;;  %v2948_v30 = vadd.f32 1.0, %v6570_v9 }
 0x5a6   :  { %v6574_v1 = vpop.eup %6573  ;;  %v2946_v24 = vadd.f32 1.0, %v6572_v28  ;;  %5976 = vmatprep.mubr.msk.bf16.mxu1 %vm1448_vm0, %v2984_v18  ;;  %v8448_v18 = vld [vmem:[%s9319_s15] ss:$0 sm:$0xff] }
 0x5a7   :  { %v6576_v10 = vpop.eup %6575  ;;  %6585 = vrcp.f32 %v2948_v30  ;;  %v2949_v11 = vadd.f32 1.0, %v6574_v1  ;;  %5977 = vmatmul.mubr.msk.bf16.gmra.mrb[84].mxu1 %vm1448_vm0, %v2985_v63  ;;  %v3283_v63 = vld [vmem:[%s9318_s16] sm:$0x3] }
 0x5a8   :  { %6587 = vrcp.f32 %v2946_v24  ;;  %v2947_v49 = vadd.f32 1.0, %v6576_v10  ;;  %6200 = vmatprep.subr.msk.bf16.mxu1 %vm1836_vm1, %v3283_v63  ;;  %v3389_v9 = vsel %vm1836_vm1, %v3283_v63, 0  ;;  %v3286_v28 = vld [vmem:[%s9320_s18] sm:$0x3] }
 0x5a9   :  { %v6578_v12 = vpop.eup %6577  ;;  %6589 = vrcp.f32 %v2949_v11  ;;  %5989 = vmatpush3.bf16.msra.mxu1 %v3389_v9  ;;  %6201 = vmatprep.subr.msk.bf16.mxu0 %vm1836_vm1, %v3286_v28  ;;  %v3865_v1 = vsel %vm1836_vm1, %v3286_v28, 0 }
 0x5aa   :  { %v6580_v13 = vpop.eup %6579  ;;  %6591 = vrcp.f32 %v2947_v49  ;;  %6039 = vmatpush3.bf16.msra.mxu0 %v3865_v1 }
 0x5ab   :  { %v6582_v57 = vpop.eup %6581 }
 0x5ac   :  { %v6584_v15 = vpop.eup %6583  ;;  %v2987_v2 = vpack.c.bf16 %v6582_v57, %v6578_v12 }
 0x5ad   :  { %v2986_v35 = vpack.c.bf16 %v6584_v15, %v6580_v13 }
 0x5af   :  { %5980 = vmatprep.mubr.msk.bf16.mxu1 %vm1448_vm0, %v2986_v35 }
 0x5b0   :  { %5981 = vmatmul.mubr.msk.bf16.gmra.mrb[88].mxu1 %vm1448_vm0, %v2987_v2 }
 0x5b1   :  { %v6586_v40 = vpop.eup %6585 }
 0x5b2   :  { %v6588_v5 = vpop.eup %6587 }
 0x5b3   :  { %v6590_v27 = vpop.eup %6589 }
 0x5b4   :  { %v6592_v41 = vpop.eup %6591  ;;  %v2989_v58 = vpack.c.bf16 %v6590_v27, %v6586_v40 }
 0x5b5   :  { %v2988_v26 = vpack.c.bf16 %v6592_v41, %v6588_v5 }
 0x5b7   :  { %5984 = vmatprep.mubr.msk.bf16.mxu1 %vm1448_vm0, %v2988_v26 }
 0x5b8   :  { %5985 = vmatmul.mubr.msk.bf16.gmra.mrb[92].mxu1 %vm1448_vm0, %v2989_v58 }
 0x672   :  { %v5974_v30 = vpop.f32.mrb[80].mxu1 }
 0x673   :  { %v3069_v24 = vadd.f32 %v5974_v30, %v8448_v18  ;;  %v3060_v10 = vpop.f32.mrb[81].mxu1 }
 0x674   :  { %v3061_v11 = vadd.f32 %v8448_v18, %v3060_v10  ;;  %v5975_v49 = vpop.f32.mrb[82].mxu1 }
 0x675   :  { %v5305_v12 = vmul.f32 -1.442695, %v3069_v24  ;;  %v3072_v13 = vadd.f32 %v5975_v49, %v8448_v18  ;;  %v3063_v57 = vpop.f32.mrb[83].mxu1 }
 0x676   :  { %v5303_v15 = vmul.f32 -1.442695, %v3061_v11  ;;  %v3064_v2 = vadd.f32 %v8448_v18, %v3063_v57 }
 0x677   :  { %6593 = vpow2.f32 %v5305_v12  ;;  %v5306_v35 = vmul.f32 -1.442695, %v3072_v13 }
 0x678   :  { %6595 = vpow2.f32 %v5303_v15  ;;  %v5304_v40 = vmul.f32 -1.442695, %v3064_v2 }
 0x679   :  { %6597 = vpow2.f32 %v5306_v35 }
 0x67a   :  { %6599 = vpow2.f32 %v5304_v40  ;;  %v5978_v5 = vpop.f32.mrb[84].mxu1 }
 0x67b   :  { %v3085_v27 = vadd.f32 %v5978_v5, %v8448_v18  ;;  %v3076_v41 = vpop.f32.mrb[85].mxu1 }
 0x67c   :  { %v3077_v58 = vadd.f32 %v8448_v18, %v3076_v41  ;;  %v5979_v26 = vpop.f32.mrb[86].mxu1 }
 0x67d   :  { %v5309_v63 = vmul.f32 -1.442695, %v3085_v27  ;;  %v3088_v9 = vadd.f32 %v5979_v26, %v8448_v18  ;;  %v3079_v28 = vpop.f32.mrb[87].mxu1 }
 0x67e   :  { %v5307_v30 = vmul.f32 -1.442695, %v3077_v58  ;;  %v3080_v1 = vadd.f32 %v8448_v18, %v3079_v28 }
 0x67f   :  { %6601 = vpow2.f32 %v5309_v63  ;;  %v5310_v24 = vmul.f32 -1.442695, %v3088_v9 }
 0x680   :  { %6603 = vpow2.f32 %v5307_v30  ;;  %v5308_v10 = vmul.f32 -1.442695, %v3080_v1 }
 0x681   :  { %v6594_v11 = vpop.eup %6593  ;;  %6605 = vpow2.f32 %v5310_v24 }
 0x682   :  { %v6596_v49 = vpop.eup %6595  ;;  %v3173_v12 = vadd.f32 1.0, %v6594_v11  ;;  %6607 = vpow2.f32 %v5308_v10 }
 0x683   :  { %v6598_v13 = vpop.eup %6597  ;;  %v3171_v57 = vadd.f32 1.0, %v6596_v49  ;;  %v5982_v15 = vpop.f32.mrb[88].mxu1 }
 0x684   :  { %v6600_v2 = vpop.eup %6599  ;;  %6609 = vrcp.f32 %v3173_v12  ;;  %v3174_v35 = vadd.f32 1.0, %v6598_v13  ;;  %v3101_v40 = vadd.f32 %v5982_v15, %v8448_v18  ;;  %v3092_v5 = vpop.f32.mrb[89].mxu1 }
 0x685   :  { %6611 = vrcp.f32 %v3171_v57  ;;  %v3172_v27 = vadd.f32 1.0, %v6600_v2  ;;  %v3093_v41 = vadd.f32 %v8448_v18, %v3092_v5  ;;  %v5983_v58 = vpop.f32.mrb[90].mxu1 }
 0x686   :  { %6613 = vrcp.f32 %v3174_v35  ;;  %v5313_v26 = vmul.f32 -1.442695, %v3101_v40  ;;  %v3104_v63 = vadd.f32 %v5983_v58, %v8448_v18  ;;  %v3095_v9 = vpop.f32.mrb[91].mxu1 }
 0x687   :  { %6615 = vrcp.f32 %v3172_v27  ;;  %v5311_v28 = vmul.f32 -1.442695, %v3093_v41  ;;  %v3096_v30 = vadd.f32 %v8448_v18, %v3095_v9 }
 0x688   :  { %6617 = vpow2.f32 %v5313_v26  ;;  %v5314_v1 = vmul.f32 -1.442695, %v3104_v63 }
 0x689   :  { %v6602_v24 = vpop.eup %6601  ;;  %6619 = vpow2.f32 %v5311_v28  ;;  %v5312_v10 = vmul.f32 -1.442695, %v3096_v30 }
 0x68a   :  { %v6604_v11 = vpop.eup %6603  ;;  %v3177_v49 = vadd.f32 1.0, %v6602_v24  ;;  %6621 = vpow2.f32 %v5314_v1 }
 0x68b   :  { %v6606_v12 = vpop.eup %6605  ;;  %v3175_v13 = vadd.f32 1.0, %v6604_v11  ;;  %6623 = vpow2.f32 %v5312_v10  ;;  %v5986_v57 = vpop.f32.mrb[92].mxu1 }
 0x68c   :  { %v6608_v15 = vpop.eup %6607  ;;  %6625 = vrcp.f32 %v3177_v49  ;;  %v3178_v2 = vadd.f32 1.0, %v6606_v12  ;;  %v3117_v35 = vadd.f32 %v5986_v57, %v8448_v18  ;;  %v3108_v40 = vpop.f32.mrb[93].mxu1 }
 0x68d   :  { %6627 = vrcp.f32 %v3175_v13  ;;  %v3176_v5 = vadd.f32 1.0, %v6608_v15  ;;  %v3109_v27 = vadd.f32 %v8448_v18, %v3108_v40  ;;  %v5987_v41 = vpop.f32.mrb[94].mxu1 }
 0x68e   :  { %v6610_v58 = vpop.eup %6609  ;;  %6629 = vrcp.f32 %v3178_v2  ;;  %v5317_v26 = vmul.f32 -1.442695, %v3117_v35  ;;  %v3120_v63 = vadd.f32 %v5987_v41, %v8448_v18  ;;  %v3111_v9 = vpop.f32.mrb[95].mxu1 }
 0x68f   :  { %v6612_v28 = vpop.eup %6611  ;;  %6631 = vrcp.f32 %v3176_v5  ;;  %v5315_v30 = vmul.f32 -1.442695, %v3109_v27  ;;  %v3112_v1 = vadd.f32 %v8448_v18, %v3111_v9  ;;  %v3221_v24 = vmul.f32 %v6610_v58, %v8296_v45 }
 0x690   :  { %v6614_v10 = vpop.eup %6613  ;;  %6633 = vpow2.f32 %v5317_v26  ;;  %v5318_v11 = vmul.f32 -1.442695, %v3120_v63  ;;  %v3219_v49 = vmul.f32 %v6612_v28, %v8298_v4  ;;  %v8474_v12 = vmul.f32 %v6612_v28, %v8333_v8 }
 0x691   :  { %v6616_v13 = vpop.eup %6615  ;;  %6635 = vpow2.f32 %v5315_v30  ;;  %v5316_v57 = vmul.f32 -1.442695, %v3112_v1  ;;  %v3222_v15 = vmul.f32 %v6614_v10, %v8300_v54  ;;  %v8478_v2 = vmul.f32 %v6610_v58, %v8331_v59 }
 0x692   :  { %v6618_v35 = vpop.eup %6617  ;;  %6637 = vpow2.f32 %v5318_v11  ;;  %v3220_v45 = vmul.f32 %v6616_v13, %v8302_v19  ;;  %v8482_v18 = vmul.f32 %v6616_v13, %v8337_v43  ;;  %v8485_v4 = vmul.f32 %v6614_v10, %v8335_v38 }
 0x693   :  { %v6620_v8 = vpop.eup %6619  ;;  %v3181_v40 = vadd.f32 1.0, %v6618_v35  ;;  %6639 = vpow2.f32 %v5316_v57  ;;  %v3293_v5 = vpack.c.bf16 %v3222_v15, %v3221_v24  ;;  %v8488_v27 = vmul.f32 %v6612_v28, %v8365_v20 }
 0x694   :  { %v6622_v54 = vpop.eup %6621  ;;  %v3179_v59 = vadd.f32 1.0, %v6620_v8  ;;  %v3292_v41 = vpack.c.bf16 %v3220_v45, %v3219_v49  ;;  %v3300_v26 = vpack.c.bf16 %v8482_v18, %v8474_v12  ;;  %v3301_v19 = vpack.c.bf16 %v8485_v4, %v8478_v2  ;;  %v3288_v12 = vld [vmem:[%s9321_s20] sm:$0x3] }
 0x695   :  { %v6624_v43 = vpop.eup %6623  ;;  %6641 = vrcp.f32 %v3181_v40  ;;  %v3182_v38 = vadd.f32 1.0, %v6622_v54  ;;  %v8495_v63 = vmul.f32 %v6616_v13, %v8369_v42  ;;  %v8498_v9 = vmul.f32 %v6610_v58, %v8363_v39  ;;  %6202 = vmatprep.subr.msk.bf16.mxu1 %vm1836_vm1, %v3288_v12  ;;  %v8620_v18 = vld [vmem:[%s9322_s17] sm:$0xff]  }
 0x696   :  { %v6626_v20 = vpop.eup %6625  ;;  %6643 = vrcp.f32 %v3179_v59  ;;  %v3180_v28 = vadd.f32 1.0, %v6624_v43  ;;  %5990 = vmatprep.mubr.msk.bf16.mxu1 %vm1763_vm8, %v3292_v41  ;;  %v8502_v30 = vmul.f32 %v6614_v10, %v8367_v60  ;;  %v4210_v2 = vsel %vm1836_vm1, %v3288_v12, 0  ;;  %6056 = vmatprep.subr.bf16.mxu0 %v8620_v18 }
 0x697   :  { %v6628_v1 = vpop.eup %6627  ;;  %6645 = vrcp.f32 %v3182_v38  ;;  %5991 = vmatmul.mubr.msk.bf16.vlgmr.msra.gmra.mrb[96].mxu1 %vm1763_vm8, %v3293_v5  ;;  %v3225_v24 = vmul.f32 %v6626_v20, %v8304_v48  ;;  %v8507_v42 = vmul.f32 %v6626_v20, %v8339_v0  ;;  %v3308_v39 = vpack.c.bf16 %v8495_v63, %v8488_v27 }
 0x698   :  { %v6630_v58 = vpop.eup %6629  ;;  %6647 = vrcp.f32 %v3180_v28  ;;  %v3223_v11 = vmul.f32 %v6628_v1, %v8306_v61  ;;  %v8513_v49 = vmul.f32 %v6628_v1, %v8341_v34  ;;  %v3309_v60 = vpack.c.bf16 %v8502_v30, %v8498_v9  ;;  %6075 = vmatpush3.bf16.msra.mxu1 %v4210_v2 }
 0x699   :  { %v6632_v10 = vpop.eup %6631  ;;  %v3226_v13 = vmul.f32 %v6630_v58, %v8308_v52  ;;  %v8519_v48 = vmul.f32 %v6630_v58, %v8343_v16  ;;  %v8522_v0 = vmul.f32 %v6628_v1, %v8373_v51  ;;  %v8525_v57 = vmul.f32 %v6626_v20, %v8371_v21 }
 0x69a   :  { %v6634_v15 = vpop.eup %6633  ;;  %v3224_v61 = vmul.f32 %v6632_v10, %v8310_v56  ;;  %v8529_v34 = vmul.f32 %v6632_v10, %v8345_v47  ;;  %v8532_v35 = vmul.f32 %v6632_v10, %v8377_v36  ;;  %v8535_v52 = vmul.f32 %v6630_v58, %v8375_v53 }
 0x69b   :  { %v6636_v16 = vpop.eup %6635  ;;  %v3185_v45 = vadd.f32 1.0, %v6634_v15  ;;  %v3295_v8 = vpack.c.bf16 %v3226_v13, %v3225_v24  ;;  %v3303_v51 = vpack.c.bf16 %v8519_v48, %v8507_v42 }
 0x69c   :  { %v6638_v21 = vpop.eup %6637  ;;  %v3183_v40 = vadd.f32 1.0, %v6636_v16  ;;  %v3294_v5 = vpack.c.bf16 %v3224_v61, %v3223_v11  ;;  %v3302_v56 = vpack.c.bf16 %v8529_v34, %v8513_v49  ;;  %v3310_v47 = vpack.c.bf16 %v8532_v35, %v8522_v0 }
 0x69d   :  { %v6640_v36 = vpop.eup %6639  ;;  %6649 = vrcp.f32 %v3185_v45  ;;  %v3186_v54 = vadd.f32 1.0, %v6638_v21  ;;  %v3311_v53 = vpack.c.bf16 %v8535_v52, %v8525_v57 }
 0x69e   :  { %6651 = vrcp.f32 %v3183_v40  ;;  %v3184_v59 = vadd.f32 1.0, %v6640_v36  ;;  %5994 = vmatprep.mubr.msk.bf16.mxu1 %vm1763_vm8, %v3294_v5  ;;  %v9462_v40 = vld [vmem:[#allocation8_spill] sm:$0xff] }
 0x69f   :  { %v6642_v41 = vpop.eup %6641  ;;  %6653 = vrcp.f32 %v3186_v54  ;;  %5995 = vmatmul.mubr.msk.bf16.gmra.mrb[100].mxu1 %vm1763_vm8, %v3295_v8  ;;  %v9461_v8 = vld [vmem:[#allocation14_spill] sm:$0xff]  ;;  %v9463_v54 = vld [vmem:[#allocation15_spill] sm:$0xff] }
 0x6a0   :  { %v6644_v43 = vpop.eup %6643  ;;  %6655 = vrcp.f32 %v3184_v59  ;;  %v3229_v38 = vmul.f32 %v6642_v41, %v8312_v46  ;;  %v3245_v20 = vmul.f32 %v6642_v41, %v8347_v33  ;;  %v3261_v28 = vmul.f32 %v6642_v41, %v8379_v55  ;;  %v9464_v41 = vld [vmem:[#allocation12_spill] sm:$0xff] }
 0x6a1   :  { %v6646_v1 = vpop.eup %6645  ;;  %v3227_v24 = vmul.f32 %v6644_v43, %v8314_v17  ;;  %v3243_v58 = vmul.f32 %v6644_v43, %v8349_v32  ;;  %v3259_v11 = vmul.f32 %v6644_v43, %v8381_v25 }
 0x6a2   :  { %v6648_v49 = vpop.eup %6647  ;;  %v3230_v10 = vmul.f32 %v6646_v1, %v8316_v31  ;;  %v3246_v13 = vmul.f32 %v6646_v1, %v8351_v62  ;;  %v3262_v15 = vmul.f32 %v6646_v1, %v8383_v29  ;;  %v9467_v1 = vld [vmem:[#allocation10_spill] sm:$0xff] }
 0x6a3   :  { %v3228_v46 = vmul.f32 %v6648_v49, %v8318_v14  ;;  %v3244_v33 = vmul.f32 %v6648_v49, %v8353_v50  ;;  %v3260_v55 = vmul.f32 %v6648_v49, %v8385_v6 }
 0x6a4   :  { %v3297_v61 = vpack.c.bf16 %v3230_v10, %v3229_v38  ;;  %v3305_v34 = vpack.c.bf16 %v3246_v13, %v3245_v20  ;;  %v3313_v17 = vpack.c.bf16 %v3262_v15, %v3261_v28  ;;  %v9465_v38 = vld [vmem:[#allocation2_spill] sm:$0xff]  ;;  %v9466_v28 = vld [vmem:[#allocation13_spill] sm:$0xff] }
 0x6a5   :  { %v3296_v16 = vpack.c.bf16 %v3228_v46, %v3227_v24  ;;  %v3304_v32 = vpack.c.bf16 %v3244_v33, %v3243_v58  ;;  %v3312_v45 = vpack.c.bf16 %v3260_v55, %v3259_v11  ;;  %v9468_v24 = vld [vmem:[#allocation3_spill] sm:$0xff] }
 0x6a7   :  { %v6650_v25 = vpop.eup %6649  ;;  %5998 = vmatprep.mubr.msk.bf16.mxu1 %vm1763_vm8, %v3296_v16 }
 0x6a8   :  { %v6652_v31 = vpop.eup %6651  ;;  %5999 = vmatmul.mubr.msk.bf16.gmra.mrb[104].mxu1 %vm1763_vm8, %v3297_v61  ;;  %v3233_v62 = vmul.f32 %v6650_v25, %v8320_v23  ;;  %v3249_v14 = vmul.f32 %v6650_v25, %v8355_v22  ;;  %v3265_v50 = vmul.f32 %v6650_v25, %v8387_v3 }
 0x6a9   :  { %v6654_v29 = vpop.eup %6653  ;;  %v3231_v6 = vmul.f32 %v6652_v31, %v8325_v37  ;;  %v3247_v21 = vmul.f32 %v6652_v31, %v9461_v8  ;;  %v3263_v5 = vmul.f32 %v6652_v31, %v9462_v40 }
 0x6aa   :  { %v6656_v36 = vpop.eup %6655  ;;  %v3234_v59 = vmul.f32 %v6654_v29, %v9463_v54  ;;  %v3250_v43 = vmul.f32 %v6654_v29, %v9464_v41  ;;  %v3266_v20 = vmul.f32 %v6654_v29, %v9465_v38 }
 0x6ab   :  { %v3232_v23 = vmul.f32 %v6656_v36, %v9466_v28  ;;  %v3248_v22 = vmul.f32 %v6656_v36, %v9467_v1  ;;  %v3264_v3 = vmul.f32 %v6656_v36, %v9468_v24 }
 0x6ac   :  { %v3299_v58 = vpack.c.bf16 %v3234_v59, %v3233_v62  ;;  %v3307_v11 = vpack.c.bf16 %v3250_v43, %v3249_v14  ;;  %v3315_v37 = vpack.c.bf16 %v3266_v20, %v3265_v50 }
 0x6ad   :  { %v3298_v49 = vpack.c.bf16 %v3232_v23, %v3231_v6  ;;  %v3306_v10 = vpack.c.bf16 %v3248_v22, %v3247_v21  ;;  %v3314_v13 = vpack.c.bf16 %v3264_v3, %v3263_v5 }
 0x6af   :  { %6002 = vmatprep.mubr.msk.bf16.mxu1 %vm1763_vm8, %v3298_v49 }
 0x6b0   :  { %6003 = vmatmul.mubr.msk.bf16.gmra.mrb[108].mxu1 %vm1763_vm8, %v3299_v58 }
 0x6b1   :  { %6006 = vmatprep.mubr.msk.bf16.mxu1 %vm1763_vm8, %v3300_v26 }
 0x6b8   :  { %6007 = vmatmul.mubr.msk.bf16.gmra.mrb[112].mxu1 %vm1763_vm8, %v3301_v19 }
 0x6b9   :  { %6010 = vmatprep.mubr.msk.bf16.mxu1 %vm1763_vm8, %v3302_v56 }
 0x6c0   :  { %6011 = vmatmul.mubr.msk.bf16.gmra.mrb[116].mxu1 %vm1763_vm8, %v3303_v51 }
 0x6c1   :  { %6014 = vmatprep.mubr.msk.bf16.mxu1 %vm1763_vm8, %v3304_v32 }
 0x6c8   :  { %6015 = vmatmul.mubr.msk.bf16.gmra.mrb[120].mxu1 %vm1763_vm8, %v3305_v34 }
 0x6c9   :  { %6018 = vmatprep.mubr.msk.bf16.mxu1 %vm1763_vm8, %v3306_v10 }
 0x6d0   :  { %6019 = vmatmul.mubr.msk.bf16.gmra.mrb[124].mxu1 %vm1763_vm8, %v3307_v11 }
 0x6d1   :  { %6022 = vmatprep.mubr.msk.bf16.mxu1 %vm1763_vm8, %v3308_v39 }
 0x6d8   :  { %6023 = vmatmul.mubr.msk.bf16.gmra.mrb[128].mxu1 %vm1763_vm8, %v3309_v60 }
 0x6d9   :  { %6026 = vmatprep.mubr.msk.bf16.mxu1 %vm1763_vm8, %v3310_v47 }
 0x6e0   :  { %6027 = vmatmul.mubr.msk.bf16.gmra.mrb[132].mxu1 %vm1763_vm8, %v3311_v53 }
 0x6e1   :  { %6030 = vmatprep.mubr.msk.bf16.mxu1 %vm1763_vm8, %v3312_v45 }
 0x6e8   :  { %6031 = vmatmul.mubr.msk.bf16.gmra.mrb[136].mxu1 %vm1763_vm8, %v3313_v17 }
 0x6e9   :  { %6034 = vmatprep.mubr.msk.bf16.mxu1 %vm1763_vm8, %v3314_v13 }
 0x6f0   :  { %6035 = vmatmul.mubr.msk.bf16.gmra.mrb[140].mxu1 %vm1763_vm8, %v3315_v37 }
 0x76a   :  { %v5992_v4 = vpop.f32.mrb[96].mxu1 }
 0x76b   :  { %v3425_v27 = vpop.f32.mrb[97].mxu1  ;;  %v3618_v17 = vmul.f32 %v5992_v4, %v5992_v4 }
 0x76c   :  { %v5993_v26 = vpop.f32.mrb[98].mxu1  ;;  %v3616_v45 = vmul.f32 %v3425_v27, %v3425_v27 }
 0x76d   :  { %v4114_v19 = vpack.c.bf16 %v5993_v26, %v5992_v4  ;;  %v3428_v63 = vpop.f32.mrb[99].mxu1  ;;  %v3619_v62 = vmul.f32 %v5993_v26, %v5993_v26 }
 0x76e   :  { %v4113_v9 = vpack.c.bf16 %v3428_v63, %v3425_v27  ;;  %v3617_v8 = vmul.f32 %v3428_v63, %v3428_v63 }
 0x770   :  { %6076 = vmatprep.mubr.msk.bf16.mxu1 %vm1763_vm8, %v4113_v9 }
 0x771   :  { %6077 = vmatmul.mubr.msk.bf16.vlgmr.msra.gmra.mrb[144].mxu1 %vm1763_vm8, %v4114_v19 }
 0x772   :  { %v5996_v30 = vpop.f32.mrb[100].mxu1 }
 0x773   :  { %v3441_v42 = vpop.f32.mrb[101].mxu1  ;;  %v3622_v41 = vmul.f32 %v5996_v30, %v5996_v30 }
 0x774   :  { %v5997_v39 = vpop.f32.mrb[102].mxu1  ;;  %v3620_v20 = vmul.f32 %v3441_v42, %v3441_v42 }
 0x775   :  { %v4116_v60 = vpack.c.bf16 %v5997_v39, %v5996_v30  ;;  %v3444_v48 = vpop.f32.mrb[103].mxu1  ;;  %v3623_v1 = vmul.f32 %v5997_v39, %v5997_v39 }
 0x776   :  { %v4115_v0 = vpack.c.bf16 %v3444_v48, %v3441_v42  ;;  %v3621_v11 = vmul.f32 %v3444_v48, %v3444_v48 }
 0x778   :  { %6080 = vmatprep.mubr.msk.bf16.mxu1 %vm1763_vm8, %v4115_v0 }
 0x779   :  { %6081 = vmatmul.mubr.msk.bf16.gmra.mrb[148].mxu1 %vm1763_vm8, %v4116_v60 }
 0x77b   :  { %v6000_v57 = vpop.f32.mrb[104].mxu1 }
 0x77c   :  { %v3457_v35 = vpop.f32.mrb[105].mxu1  ;;  %v3626_v4 = vmul.f32 %v6000_v57, %v6000_v57 }
 0x77d   :  { %v6001_v52 = vpop.f32.mrb[106].mxu1  ;;  %v3624_v19 = vmul.f32 %v3457_v35, %v3457_v35 }
 0x77e   :  { %v4118_v51 = vpack.c.bf16 %v6001_v52, %v6000_v57  ;;  %v8627_v56 = vpop.f32.mrb[107].mxu1  ;;  %v3627_v30 = vmul.f32 %v6001_v52, %v6001_v52 }
 0x77f   :  { %v4117_v47 = vpack.c.bf16 %v8627_v56, %v3457_v35  ;;  %v3625_v0 = vmul.f32 %v8627_v56, %v8627_v56 }
 0x781   :  { %6084 = vmatprep.mubr.msk.bf16.mxu1 %vm1763_vm8, %v4117_v47 }
 0x782   :  { %6085 = vmatmul.mubr.msk.bf16.gmra.mrb[152].mxu1 %vm1763_vm8, %v4118_v51 }
 0x783   :  { %v8632_v53 = vpop.f32.mrb[108].mxu1 }
 0x784   :  { %v8634_v15 = vpop.f32.mrb[109].mxu1  ;;  %v3630_v52 = vmul.f32 %v8632_v53, %v8632_v53 }
 0x785   :  { %v8636_v46 = vpop.f32.mrb[110].mxu1  ;;  %v3628_v56 = vmul.f32 %v8634_v15, %v8634_v15 }
 0x786   :  { %v4120_v33 = vpack.c.bf16 %v8636_v46, %v8632_v53  ;;  %v8640_v55 = vpop.f32.mrb[111].mxu1 }
 0x787   :  { %v4119_v61 = vpack.c.bf16 %v8640_v55, %v8634_v15 }
 0x789   :  { %6088 = vmatprep.mubr.msk.bf16.mxu1 %vm1763_vm8, %v4119_v61 }
 0x78a   :  { %6089 = vmatmul.mubr.msk.bf16.gmra.mrb[156].mxu1 %vm1763_vm8, %v4120_v33 }
 0x78b   :  { %v6008_v34 = vpop.f32.mrb[112].mxu1 }
 0x78c   :  { %v3634_v16 = vmul.f32 %v6008_v34, %v6008_v34  ;;  %v3489_v32 = vpop.f32.mrb[113].mxu1 }
 0x78d   :  { %v3632_v25 = vmul.f32 %v3489_v32, %v3489_v32  ;;  %v6009_v31 = vpop.f32.mrb[114].mxu1 }
 0x78e   :  { %v8646_v14 = vadd.f32 %v3634_v16, %v3618_v17  ;;  %v3635_v50 = vmul.f32 %v6009_v31, %v6009_v31  ;;  %v4122_v29 = vpack.c.bf16 %v6009_v31, %v6008_v34  ;;  %v3492_v6 = vpop.f32.mrb[115].mxu1 }
 0x78f   :  { %v8648_v21 = vadd.f32 %v3632_v25, %v3616_v45  ;;  %v3633_v40 = vmul.f32 %v3492_v6, %v3492_v6  ;;  %v4121_v5 = vpack.c.bf16 %v3492_v6, %v3489_v32  ;;  %v3631_v45 = vmul.f32 %v8636_v46, %v8636_v46 }
 0x790   :  { %v8650_v36 = vadd.f32 %v3635_v50, %v3619_v62 }
 0x791   :  { %v8652_v54 = vadd.f32 %v3633_v40, %v3617_v8  ;;  %6092 = vmatprep.mubr.msk.bf16.mxu1 %vm1763_vm8, %v4121_v5 }
 0x792   :  { %6093 = vmatmul.mubr.msk.bf16.gmra.mrb[160].mxu1 %vm1763_vm8, %v4122_v29  ;;  %v3629_v29 = vmul.f32 %v8640_v55, %v8640_v55 }
 0x793   :  { %v6012_v59 = vpop.f32.mrb[116].mxu1 }
 0x794   :  { %v3638_v43 = vmul.f32 %v6012_v59, %v6012_v59  ;;  %v3505_v38 = vpop.f32.mrb[117].mxu1 }
 0x795   :  { %v3636_v28 = vmul.f32 %v3505_v38, %v3505_v38  ;;  %v6013_v23 = vpop.f32.mrb[118].mxu1 }
 0x796   :  { %v8656_v22 = vadd.f32 %v3638_v43, %v3622_v41  ;;  %v3639_v24 = vmul.f32 %v6013_v23, %v6013_v23  ;;  %v4124_v3 = vpack.c.bf16 %v6013_v23, %v6012_v59  ;;  %v3508_v58 = vpop.f32.mrb[119].mxu1 }
 0x797   :  { %v8658_v37 = vadd.f32 %v3636_v28, %v3620_v20  ;;  %v3637_v49 = vmul.f32 %v3508_v58, %v3508_v58  ;;  %v4123_v10 = vpack.c.bf16 %v3508_v58, %v3505_v38 }
 0x798   :  { %v8660_v13 = vadd.f32 %v3639_v24, %v3623_v1 }
 0x799   :  { %v8662_v12 = vadd.f32 %v3637_v49, %v3621_v11  ;;  %6096 = vmatprep.mubr.msk.bf16.mxu1 %vm1763_vm8, %v4123_v10 }
 0x79a   :  { %6097 = vmatmul.mubr.msk.bf16.gmra.mrb[164].mxu1 %vm1763_vm8, %v4124_v3 }
 0x79b   :  { %v6016_v2 = vpop.f32.mrb[120].mxu1 }
 0x79c   :  { %v3642_v27 = vmul.f32 %v6016_v2, %v6016_v2  ;;  %v3521_v26 = vpop.f32.mrb[121].mxu1 }
 0x79d   :  { %v3640_v63 = vmul.f32 %v3521_v26, %v3521_v26  ;;  %v6017_v9 = vpop.f32.mrb[122].mxu1 }
 0x79e   :  { %v8666_v42 = vadd.f32 %v3642_v27, %v3626_v4  ;;  %v3643_v39 = vmul.f32 %v6017_v9, %v6017_v9  ;;  %v4126_v60 = vpack.c.bf16 %v6017_v9, %v6016_v2  ;;  %v3524_v48 = vpop.f32.mrb[123].mxu1 }
 0x79f   :  { %v8670_v51 = vadd.f32 %v3640_v63, %v3624_v19  ;;  %v3641_v47 = vmul.f32 %v3524_v48, %v3524_v48  ;;  %v4125_v33 = vpack.c.bf16 %v3524_v48, %v3521_v26 }
 0x7a0   :  { %v8672_v61 = vadd.f32 %v3643_v39, %v3627_v30 }
 0x7a1   :  { %v8674_v57 = vadd.f32 %v3641_v47, %v3625_v0  ;;  %6100 = vmatprep.mubr.msk.bf16.mxu1 %vm1763_vm8, %v4125_v33 }
 0x7a2   :  { %6101 = vmatmul.mubr.msk.bf16.gmra.mrb[168].mxu1 %vm1763_vm8, %v4126_v60 }
 0x7a3   :  { %v6020_v35 = vpop.f32.mrb[124].mxu1 }
 0x7a4   :  { %v3646_v34 = vmul.f32 %v6020_v35, %v6020_v35  ;;  %v3537_v17 = vpop.f32.mrb[125].mxu1 }
 0x7a5   :  { %v3644_v16 = vmul.f32 %v3537_v17, %v3537_v17  ;;  %v6021_v32 = vpop.f32.mrb[126].mxu1 }
 0x7a6   :  { %v8684_v25 = vadd.f32 %v3646_v34, %v3630_v52  ;;  %v3647_v31 = vmul.f32 %v6021_v32, %v6021_v32  ;;  %v4128_v62 = vpack.c.bf16 %v6021_v32, %v6020_v35  ;;  %v3540_v50 = vpop.f32.mrb[127].mxu1 }
 0x7a7   :  { %v8688_v6 = vadd.f32 %v3644_v16, %v3628_v56  ;;  %v3645_v53 = vmul.f32 %v3540_v50, %v3540_v50  ;;  %v4127_v8 = vpack.c.bf16 %v3540_v50, %v3537_v17 }
 0x7a8   :  { %v8690_v40 = vadd.f32 %v3647_v31, %v3631_v45 }
 0x7a9   :  { %v8692_v15 = vadd.f32 %v3645_v53, %v3629_v29  ;;  %6104 = vmatprep.mubr.msk.bf16.mxu1 %vm1763_vm8, %v4127_v8 }
 0x7aa   :  { %6105 = vmatmul.mubr.msk.bf16.gmra.mrb[172].mxu1 %vm1763_vm8, %v4128_v62 }
 0x7ab   :  { %v6024_v46 = vpop.f32.mrb[128].mxu1 }
 0x7ac   :  { %v3666_v5 = vmul.f32 %v6024_v46, %v6024_v46  ;;  %v3553_v59 = vpop.f32.mrb[129].mxu1 }
 0x7ad   :  { %v3664_v41 = vmul.f32 %v3553_v59, %v3553_v59  ;;  %v6025_v43 = vpop.f32.mrb[130].mxu1 }
 0x7ae   :  { %v3682_v38 = vadd.f32 %v3666_v5, %v8646_v14  ;;  %v3667_v55 = vmul.f32 %v6025_v43, %v6025_v43  ;;  %v4130_v20 = vpack.c.bf16 %v6025_v43, %v6024_v46  ;;  %v3556_v28 = vpop.f32.mrb[131].mxu1 }
 0x7af   :  { %v3680_v23 = vadd.f32 %v3664_v41, %v8648_v21  ;;  %v3665_v1 = vmul.f32 %v3556_v28, %v3556_v28  ;;  %v4129_v24 = vpack.c.bf16 %v3556_v28, %v3553_v59 }
 0x7b0   :  { %v8698_v3 = vmax.f32 %v3682_v38, 1e-08  ;;  %v3683_v58 = vadd.f32 %v3667_v55, %v8650_v36 }
 0x7b1   :  { %v8701_v11 = vmax.f32 %v3680_v23, 1e-08  ;;  %v3681_v49 = vadd.f32 %v3665_v1, %v8652_v54  ;;  %6108 = vmatprep.mubr.msk.bf16.mxu1 %vm1763_vm8, %v4129_v24 }
 0x7b2   :  { %6657 = vrsqrt.f32 %v8698_v3  ;;  %v8706_v14 = vmax.f32 %v3683_v58, 1e-08  ;;  %6109 = vmatmul.mubr.msk.bf16.gmra.mrb[176].mxu1 %vm1763_vm8, %v4130_v20  ;;  %vm3728_vm1 = vcmp.eq.f32.partialorder %v8698_v3, inf  ;;  %v3731_v60 = vand.u32 2147483648, %v8698_v3 }
 0x7b3   :  { %6659 = vrsqrt.f32 %v8701_v11  ;;  %v8710_v21 = vmax.f32 %v3681_v49, 1e-08  ;;  %v6028_v10 = vpop.f32.mrb[132].mxu1  ;;  %vm3714_vm15 = vcmp.eq.f32.partialorder %v8701_v11, inf  ;;  %vm3716_vm2 = vcmp.eq.f32.partialorder %v8701_v11, 0.0 }
 0x7b4   :  { %6661 = vrsqrt.f32 %v8706_v14  ;;  %v3670_v36 = vmul.f32 %v6028_v10, %v6028_v10  ;;  %v3569_v2 = vpop.f32.mrb[133].mxu1  ;;  %v3738_v47 = vand.u32 2147483648, %v8706_v14  ;;  %vm3735_vm3 = vcmp.eq.f32.partialorder %v8706_v14, inf }
 0x7b5   :  { %6663 = vrsqrt.f32 %v8710_v21  ;;  %v3668_v54 = vmul.f32 %v3569_v2, %v3569_v2  ;;  %v6029_v4 = vpop.f32.mrb[134].mxu1  ;;  %vm3721_vm4 = vcmp.eq.f32.partialorder %v8710_v21, inf  ;;  %vm3723_vm6 = vcmp.eq.f32.partialorder %v8710_v21, 0.0 }
 0x7b6   :  { %v3686_v27 = vadd.f32 %v3670_v36, %v8656_v22  ;;  %v3671_v26 = vmul.f32 %v6029_v4, %v6029_v4  ;;  %v4132_v19 = vpack.c.bf16 %v6029_v4, %v6028_v10  ;;  %v3572_v63 = vpop.f32.mrb[135].mxu1  ;;  %v3724_v52 = vand.u32 2147483648, %v8710_v21 }
 0x7b7   :  { %v3684_v9 = vadd.f32 %v3668_v54, %v8658_v37  ;;  %v3669_v30 = vmul.f32 %v3572_v63, %v3572_v63  ;;  %v4131_v39 = vpack.c.bf16 %v3572_v63, %v3569_v2  ;;  %vm3730_vm5 = vcmp.eq.f32.partialorder %v8698_v3, 0.0 }
 0x7b8   :  { %v8718_v48 = vmax.f32 %v3686_v27, 1e-08  ;;  %v3687_v0 = vadd.f32 %v3671_v26, %v8660_v13  ;;  %v3717_v13 = vand.u32 2147483648, %v8701_v11  ;;  %vm3737_vm7 = vcmp.eq.f32.partialorder %v8706_v14, 0.0 }
 0x7b9   :  { %v8723_v22 = vmax.f32 %v3684_v9, 1e-08  ;;  %v3685_v33 = vadd.f32 %v3669_v30, %v8662_v12  ;;  %6112 = vmatprep.mubr.msk.bf16.mxu1 %vm1763_vm8, %v4131_v39 }
 0x7ba   :  { %6665 = vrsqrt.f32 %v8718_v48  ;;  %v8730_v37 = vmax.f32 %v3687_v0, 1e-08  ;;  %6113 = vmatmul.mubr.msk.bf16.gmra.mrb[180].mxu1 %vm1763_vm8, %v4132_v19  ;;  %vm3756_vm12 = vcmp.eq.f32.partialorder %v8718_v48, inf }
 0x7bb   :  { %6667 = vrsqrt.f32 %v8723_v22  ;;  %v8736_v35 = vmax.f32 %v3685_v33, 1e-08  ;;  %v6032_v12 = vpop.f32.mrb[136].mxu1  ;;  %v3745_v62 = vand.u32 2147483648, %v8723_v22  ;;  %vm3742_vm9 = vcmp.eq.f32.partialorder %v8723_v22, inf }
 0x7bc   :  { %v6658_v34 = vpop.eup %6657  ;;  %6669 = vrsqrt.f32 %v8730_v37  ;;  %v3674_v17 = vmul.f32 %v6032_v12, %v6032_v12  ;;  %v3585_v56 = vpop.f32.mrb[137].mxu1  ;;  %vm3744_vm10 = vcmp.eq.f32.partialorder %v8723_v22, 0.0  ;;  %vm3763_vm14 = vcmp.eq.f32.partialorder %v8730_v37, inf }
 0x7bd   :  { %v6660_v16 = vpop.eup %6659  ;;  %v3727_v32 = vmul.f32 %v6658_v34, %v8698_v3  ;;  %6671 = vrsqrt.f32 %v8736_v35  ;;  %v3672_v45 = vmul.f32 %v3585_v56, %v3585_v56  ;;  %v6033_v31 = vpop.f32.mrb[138].mxu1  ;;  %vm3749_vm11 = vcmp.eq.f32.partialorder %v8736_v35, inf }
 0x7be   :  { %v6662_v50 = vpop.eup %6661  ;;  %v3690_v29 = vadd.f32 %v3674_v17, %v8666_v42  ;;  %v3675_v53 = vmul.f32 %v6033_v31, %v6033_v31  ;;  %v4134_v8 = vpack.c.bf16 %v6033_v31, %v6032_v12  ;;  %v3588_v46 = vpop.f32.mrb[139].mxu1  ;;  %v3713_v5 = vmul.f32 %v6660_v16, %v8701_v11 }
 0x7bf   :  { %v6664_v59 = vpop.eup %6663  ;;  %v3734_v41 = vmul.f32 %v6662_v50, %v8706_v14  ;;  %v3688_v43 = vadd.f32 %v3672_v45, %v8670_v51  ;;  %v3673_v38 = vmul.f32 %v3588_v46, %v3588_v46  ;;  %v4133_v55 = vpack.c.bf16 %v3588_v46, %v3585_v56 }
 0x7c0   :  { %v8751_v20 = vmax.f32 %v3690_v29, 1e-08  ;;  %v3691_v28 = vadd.f32 %v3675_v53, %v8672_v61  ;;  %v3715_v42 = vsel %vm3714_vm15, %v8701_v11, %v3713_v5  ;;  %v3720_v23 = vmul.f32 %v6664_v59, %v8710_v21 }
 0x7c1   :  { %v8759_v1 = vmax.f32 %v3688_v43, 1e-08  ;;  %v3689_v51 = vadd.f32 %v3673_v38, %v8674_v57  ;;  %6116 = vmatprep.mubr.msk.bf16.mxu1 %vm1763_vm8, %v4133_v55  ;;  %v3718_v24 = vsel %vm3716_vm2, %v3717_v13, %v3715_v42  ;;  %v3729_v61 = vsel %vm3728_vm1, %v8698_v3, %v3727_v32 }
 0x7c2   :  { %6673 = vrsqrt.f32 %v8751_v20  ;;  %v8770_v58 = vmax.f32 %v3691_v28, 1e-08  ;;  %6117 = vmatmul.mubr.msk.bf16.gmra.mrb[184].mxu1 %vm1763_vm8, %v4134_v8  ;;  %v3722_v57 = vsel %vm3721_vm4, %v8710_v21, %v3720_v23  ;;  %v3732_v11 = vsel %vm3730_vm5, %v3731_v60, %v3729_v61 }
 0x7c3   :  { %6675 = vrsqrt.f32 %v8759_v1  ;;  %v8780_v49 = vmax.f32 %v3689_v51, 1e-08  ;;  %v6036_v10 = vpop.f32.mrb[140].mxu1  ;;  %v3725_v36 = vsel %vm3723_vm6, %v3724_v52, %v3722_v57  ;;  %v3736_v2 = vsel %vm3735_vm3, %v8706_v14, %v3734_v41 }
 0x7c4   :  { %v6666_v54 = vpop.eup %6665  ;;  %6677 = vrsqrt.f32 %v8770_v58  ;;  %v3678_v4 = vmul.f32 %v6036_v10, %v6036_v10  ;;  %v3601_v3 = vpop.f32.mrb[141].mxu1  ;;  %v3832_v27 = vpack.c.bf16 %v3725_v36, %v3718_v24  ;;  %v3739_v26 = vsel %vm3737_vm7, %v3738_v47, %v3736_v2 }
 0x7c5   :  { %v6668_v19 = vpop.eup %6667  ;;  %6679 = vrsqrt.f32 %v8780_v49  ;;  %v3676_v21 = vmul.f32 %v3601_v3, %v3601_v3  ;;  %v6037_v63 = vpop.f32.mrb[142].mxu1  ;;  %v3833_v9 = vpack.c.bf16 %v3739_v26, %v3732_v11  ;;  %vm3751_vm13 = vcmp.eq.f32.partialorder %v8736_v35, 0.0 }
 0x7c6   :  { %v6670_v30 = vpop.eup %6669  ;;  %v3694_v39 = vadd.f32 %v3678_v4, %v8684_v25  ;;  %v3679_v60 = vmul.f32 %v6037_v63, %v6037_v63  ;;  %v4136_v0 = vpack.c.bf16 %v6037_v63, %v6036_v10  ;;  %v3604_v33 = vpop.f32.mrb[143].mxu1  ;;  %6040 = vmatprep.mubr.msk.bf16.mxu0 %vm1763_vm8, %v3832_v27  ;;  %v3741_v13 = vmul.f32 %v6668_v19, %v8723_v22 }
 0x7c7   :  { %v6672_v14 = vpop.eup %6671  ;;  %v3692_v47 = vadd.f32 %v3676_v21, %v8688_v6  ;;  %v3677_v12 = vmul.f32 %v3604_v33, %v3604_v33  ;;  %v4135_v52 = vpack.c.bf16 %v3604_v33, %v3601_v3  ;;  %6041 = vmatmul.mubr.msk.bf16.vlgmr.msra.gmra.mrb[168].mxu0 %vm1763_vm8, %v3833_v9  ;;  %v3752_v34 = vand.u32 2147483648, %v8736_v35 }
 0x7c8   :  { %v8800_v17 = vmax.f32 %v3694_v39, 1e-08  ;;  %v3695_v25 = vadd.f32 %v3679_v60, %v8690_v40  ;;  %6057 = vmatpush3.bf16.msra.mxu0 %v8620_v18  ;;  %v3743_v56 = vsel %vm3742_vm9, %v8723_v22, %v3741_v13  ;;  %v3748_v16 = vmul.f32 %v6672_v14, %v8736_v35 }
 0x7c9   :  { %v8808_v32 = vmax.f32 %v3692_v47, 1e-08  ;;  %v3693_v6 = vadd.f32 %v3677_v12, %v8692_v15  ;;  %6120 = vmatprep.mubr.msk.bf16.mxu1 %vm1763_vm8, %v4135_v52  ;;  %v3746_v45 = vsel %vm3744_vm10, %v3745_v62, %v3743_v56  ;;  %v3755_v40 = vmul.f32 %v6666_v54, %v8718_v48 }
 0x7ca   :  { %6681 = vrsqrt.f32 %v8800_v17  ;;  %v8818_v18 = vmax.f32 %v3695_v25, 1e-08  ;;  %6121 = vmatmul.mubr.msk.bf16.gmra.mrb[188].mxu1 %vm1763_vm8, %v4136_v0  ;;  %v3750_v31 = vsel %vm3749_vm11, %v8736_v35, %v3748_v16  ;;  %v3762_v15 = vmul.f32 %v6670_v30, %v8730_v37 }
 0x7cb   :  { %6683 = vrsqrt.f32 %v8808_v32  ;;  %v8826_v50 = vmax.f32 %v3693_v6, 1e-08  ;;  %v3753_v22 = vsel %vm3751_vm13, %v3752_v34, %v3750_v31  ;;  %v3757_v62 = vsel %vm3756_vm12, %v8718_v48, %v3755_v40  ;;  %v9469_v6 = vld [vmem:[#allocation7_spill] sm:$0xff]  ;;  %v6336_v31 = vld [vmem:[%s9323_s21] sm:$0xff]  }
 0x7cc   :  { %v6674_v29 = vpop.eup %6673  ;;  %6685 = vrsqrt.f32 %v8818_v18  ;;  %v3834_v53 = vpack.c.bf16 %v3753_v22, %v3746_v45  ;;  %v3759_v8 = vand.u32 2147483648, %v8718_v48  ;;  %vm3758_vm1 = vcmp.eq.f32.partialorder %v8718_v48, 0.0  ;;  %v9470_v45 = vld [vmem:[#allocation5_spill] sm:$0xff]  ;;  %v9473_v40 = vld [vmem:[#allocation11_spill] sm:$0xff]  ;;  %6124 = vmatprep.subr.bf16.mxu0 %v6336_v31 }
 0x7cd   :  { %v6676_v46 = vpop.eup %6675  ;;  %6687 = vrsqrt.f32 %v8826_v50  ;;  %v3764_v35 = vsel %vm3763_vm14, %v8730_v37, %v3762_v15  ;;  %v3766_v5 = vand.u32 2147483648, %v8730_v37  ;;  %vm3765_vm15 = vcmp.eq.f32.partialorder %v8730_v37, 0.0 }
 0x7ce   :  { %v6678_v59 = vpop.eup %6677  ;;  %6044 = vmatprep.mubr.msk.bf16.mxu0 %vm1763_vm8, %v3834_v53  ;;  %v3760_v41 = vsel %vm3758_vm1, %v3759_v8, %v3757_v62  ;;  %v3769_v43 = vmul.f32 %v6676_v46, %v8759_v1  ;;  %vm3770_vm2 = vcmp.eq.f32.partialorder %v8759_v1, inf  ;;  %vm3772_vm3 = vcmp.eq.f32.partialorder %v8759_v1, 0.0 }
 0x7cf   :  { %v6680_v38 = vpop.eup %6679  ;;  %v3767_v55 = vsel %vm3765_vm15, %v3766_v5, %v3764_v35  ;;  %v3773_v48 = vand.u32 2147483648, %v8759_v1  ;;  %v3783_v51 = vmul.f32 %v6674_v29, %v8751_v20  ;;  %vm3777_vm4 = vcmp.eq.f32.partialorder %v8780_v49, inf }
 0x7d0   :  { %v3835_v28 = vpack.c.bf16 %v3767_v55, %v3760_v41  ;;  %v3771_v42 = vsel %vm3770_vm2, %v8759_v1, %v3769_v43  ;;  %v3776_v23 = vmul.f32 %v6680_v38, %v8780_v49  ;;  %vm3779_vm6 = vcmp.eq.f32.partialorder %v8780_v49, 0.0 }
 0x7d1   :  { %v3780_v37 = vand.u32 2147483648, %v8780_v49  ;;  %vm3784_vm5 = vcmp.eq.f32.partialorder %v8751_v20, inf  ;;  %v3774_v24 = vsel %vm3772_vm3, %v3773_v48, %v3771_v42  ;;  %v3790_v1 = vmul.f32 %v6678_v59, %v8770_v58 }
 0x7d2   :  { %6045 = vmatmul.mubr.msk.bf16.gmra.mrb[172].mxu0 %vm1763_vm8, %v3835_v28  ;;  %v3778_v61 = vsel %vm3777_vm4, %v8780_v49, %v3776_v23  ;;  %v3785_v57 = vsel %vm3784_vm5, %v8751_v20, %v3783_v51  ;;  %v3787_v10 = vand.u32 2147483648, %v8751_v20  ;;  %vm3791_vm7 = vcmp.eq.f32.partialorder %v8770_v58, inf }
 0x7d3   :  { %v3781_v11 = vsel %vm3779_vm6, %v3780_v37, %v3778_v61  ;;  %v3794_v36 = vand.u32 2147483648, %v8770_v58  ;;  %vm3786_vm9 = vcmp.eq.f32.partialorder %v8751_v20, 0.0  ;;  %v3792_v4 = vsel %vm3791_vm7, %v8770_v58, %v3790_v1 }
 0x7d4   :  { %v6682_v2 = vpop.eup %6681  ;;  %v3836_v54 = vpack.c.bf16 %v3781_v11, %v3774_v24  ;;  %vm3793_vm10 = vcmp.eq.f32.partialorder %v8770_v58, 0.0  ;;  %v3788_v3 = vsel %vm3786_vm9, %v3787_v10, %v3785_v57  ;;  %vm3798_vm11 = vcmp.eq.f32.partialorder %v8808_v32, inf }
 0x7d5   :  { %v6684_v49 = vpop.eup %6683  ;;  %v3795_v27 = vsel %vm3793_vm10, %v3794_v36, %v3792_v4  ;;  %v3811_v63 = vmul.f32 %v6682_v2, %v8800_v17  ;;  %vm3800_vm12 = vcmp.eq.f32.partialorder %v8808_v32, 0.0  ;;  %v3801_v20 = vand.u32 2147483648, %v8808_v32 }
 0x7d6   :  { %v6686_v26 = vpop.eup %6685  ;;  %6048 = vmatprep.mubr.msk.bf16.mxu0 %vm1763_vm8, %v3836_v54  ;;  %v3837_v19 = vpack.c.bf16 %v3795_v27, %v3788_v3  ;;  %v3797_v21 = vmul.f32 %v6684_v49, %v8808_v32  ;;  %vm3812_vm13 = vcmp.eq.f32.partialorder %v8800_v17, inf  ;;  %vm3819_vm14 = vcmp.eq.f32.partialorder %v8818_v18, inf }
 0x7d7   :  { %v6688_v9 = vpop.eup %6687  ;;  %v3818_v58 = vmul.f32 %v6686_v26, %v8818_v18  ;;  %vm3805_vm1 = vcmp.eq.f32.partialorder %v8826_v50, inf  ;;  %v3808_v60 = vand.u32 2147483648, %v8826_v50  ;;  %v3813_v0 = vsel %vm3812_vm13, %v8800_v17, %v3811_v63 }
 0x7d8   :  { %v3799_v30 = vsel %vm3798_vm11, %v8808_v32, %v3797_v21  ;;  %v3804_v39 = vmul.f32 %v6688_v9, %v8826_v50  ;;  %vm3807_vm15 = vcmp.eq.f32.partialorder %v8826_v50, 0.0  ;;  %v3815_v14 = vand.u32 2147483648, %v8800_v17  ;;  %v9471_v32 = vld [vmem:[#allocation6_spill] sm:$0xff] }
 0x7d9   :  { %v3820_v33 = vsel %vm3819_vm14, %v8818_v18, %v3818_v58  ;;  %v3822_v47 = vand.u32 2147483648, %v8818_v18  ;;  %v3802_v12 = vsel %vm3800_vm12, %v3801_v20, %v3799_v30  ;;  %vm3814_vm2 = vcmp.eq.f32.partialorder %v8800_v17, 0.0  ;;  %v9472_v17 = vld [vmem:[#allocation4_spill] sm:$0xff] }
 0x7da   :  { %6049 = vmatmul.mubr.msk.bf16.gmra.mrb[176].mxu0 %vm1763_vm8, %v3837_v19  ;;  %v3806_v13 = vsel %vm3805_vm1, %v8826_v50, %v3804_v39  ;;  %vm3821_vm3 = vcmp.eq.f32.partialorder %v8818_v18, 0.0  ;;  %v3816_v25 = vsel %vm3814_vm2, %v3815_v14, %v3813_v0  ;;  %v9474_v18 = vld [vmem:[#allocation9_spill] sm:$0xff]  ;;  %v5360_v14 = vld [vmem:[%s9324_s19] ss:$0 sm:$0xff]  ;;  %vm4947_vm4 = vcmask 195584  }
 0x7db   :  { %v3809_v52 = vsel %vm3807_vm15, %v3808_v60, %v3806_v13  ;;  %v3823_v56 = vsel %vm3821_vm3, %v3822_v47, %v3820_v33  ;;  %vm4964_vm6 = vcmask 228352   ;;  %vm5045_vm5 = vcmask 232448  }
 0x7dc   :  { %v3838_v34 = vpack.c.bf16 %v3809_v52, %v3802_v12  ;;  %v3839_v16 = vpack.c.bf16 %v3823_v56, %v3816_v25 }
 0x7de   :  { %6052 = vmatprep.mubr.msk.bf16.mxu0 %vm1763_vm8, %v3838_v34 }
 0x7e2   :  { %6053 = vmatmul.mubr.msk.bf16.gmra.mrb[180].mxu0 %vm1763_vm8, %v3839_v16  ;;  %vm4930_vm8 = vcmask 162816  }
 0x7e3   :  { %6058 = vmatprep.mubr.msk.bf16.mxu0 %vm1448_vm0, %v9469_v6 }
 0x7ea   :  { %6059 = vmatmul.mubr.msk.bf16.vlgmr.msra.gmra.mrb[168].mxu0 %vm1448_vm0, %v9470_v45 }
 0x7eb   :  { %6062 = vmatprep.mubr.msk.bf16.mxu0 %vm1448_vm0, %v9471_v32  ;;  %6125 = vmatpush3.bf16.msra.mxu0 %v6336_v31 }
 0x7f2   :  { %6063 = vmatmul.mubr.msk.bf16.gmra.mrb[172].mxu0 %vm1448_vm0, %v9472_v17 }
 0x7f3   :  { %6066 = vmatprep.mubr.msk.bf16.mxu0 %vm1448_vm0, %v9473_v40 }
 0x7fa   :  { %6067 = vmatmul.mubr.msk.bf16.gmra.mrb[176].mxu0 %vm1448_vm0, %v9474_v18 }
 0x7fb   :  { %6070 = vmatprep.mubr.msk.bf16.mxu0 %vm1448_vm0, %v8430_v7 }
 0x802   :  { %6071 = vmatmul.mubr.msk.bf16.gmra.mrb[180].mxu0 %vm1448_vm0, %v8428_v44 }
 0x844   :  { %v8908_v15 = vpop.f32.mrb[144].mxu1 }
 0x845   :  { %v8910_v50 = vpop.f32.mrb[145].mxu1 }
 0x846   :  { %v8912_v22 = vpop.f32.mrb[146].mxu1 }
 0x847   :  { %v8914_v62 = vpop.f32.mrb[147].mxu1 }
 0x84c   :  { %v8916_v29 = vpop.f32.mrb[148].mxu1 }
 0x84d   :  { %v8918_v7 = vpop.f32.mrb[149].mxu1 }
 0x84e   :  { %v8920_v53 = vpop.f32.mrb[150].mxu1 }
 0x84f   :  { %v8922_v44 = vpop.f32.mrb[151].mxu1 }
 0x855   :  { %v8924_v8 = vpop.f32.mrb[152].mxu1 }
 0x856   :  { %v8926_v46 = vpop.f32.mrb[153].mxu1 }
 0x857   :  { %v8928_v35 = vpop.f32.mrb[154].mxu1 }
 0x858   :  { %v8930_v5 = vpop.f32.mrb[155].mxu1 }
 0x85d   :  { %v8932_v59 = vpop.f32.mrb[156].mxu1 }
 0x85e   :  { %v8934_v41 = vpop.f32.mrb[157].mxu1 }
 0x85f   :  { %v8936_v43 = vpop.f32.mrb[158].mxu1 }
 0x860   :  { %v8938_v38 = vpop.f32.mrb[159].mxu1 }
 0x861   :  { %9475 = vst [vmem:[#allocation14_spill] sm:$0xff] %v8938_v38 }
 0x865   :  { %v8940_v55 = vpop.f32.mrb[160].mxu1 }
 0x866   :  { %v8942_v48 = vpop.f32.mrb[161].mxu1 }
 0x867   :  { %v8944_v28 = vpop.f32.mrb[162].mxu1 }
 0x868   :  { %v8946_v42 = vpop.f32.mrb[163].mxu1 }
 0x86d   :  { %v8948_v23 = vpop.f32.mrb[164].mxu1 }
 0x86e   :  { %v8950_v51 = vpop.f32.mrb[165].mxu1 }
 0x86f   :  { %v8952_v37 = vpop.f32.mrb[166].mxu1 }
 0x870   :  { %v8954_v24 = vpop.f32.mrb[167].mxu1 }
 0x875   :  { %v8956_v61 = vpop.f32.mrb[168].mxu1 }
 0x876   :  { %v8958_v57 = vpop.f32.mrb[169].mxu1 }
 0x877   :  { %v8960_v1 = vpop.f32.mrb[170].mxu1 }
 0x878   :  { %v8962_v11 = vpop.f32.mrb[171].mxu1 }
 0x87d   :  { %v8964_v10 = vpop.f32.mrb[172].mxu1 }
 0x87e   :  { %v8966_v36 = vpop.f32.mrb[173].mxu1 }
 0x87f   :  { %v8968_v2 = vpop.f32.mrb[174].mxu1 }
 0x880   :  { %v8970_v54 = vpop.f32.mrb[175].mxu1 }
 0x881   :  { %9476 = vst [vmem:[#allocation8_spill] sm:$0xff] %v8970_v54 }
 0x885   :  { %v8972_v4 = vpop.f32.mrb[176].mxu1 }
 0x886   :  { %v8974_v49 = vpop.f32.mrb[177].mxu1 }
 0x887   :  { %v8976_v3 = vpop.f32.mrb[178].mxu1 }
 0x888   :  { %v8978_v27 = vpop.f32.mrb[179].mxu1 }
 0x88d   :  { %v8980_v26 = vpop.f32.mrb[180].mxu1 }
 0x88e   :  { %v8982_v19 = vpop.f32.mrb[181].mxu1 }
 0x88f   :  { %v8984_v21 = vpop.f32.mrb[182].mxu1 }
 0x890   :  { %v8986_v63 = vpop.f32.mrb[183].mxu1 }
 0x895   :  { %v8988_v9 = vpop.f32.mrb[184].mxu1 }
 0x896   :  { %v8990_v20 = vpop.f32.mrb[185].mxu1 }
 0x897   :  { %v8992_v58 = vpop.f32.mrb[186].mxu1 }
 0x898   :  { %v8994_v30 = vpop.f32.mrb[187].mxu1 }
 0x89d   :  { %v8996_v39 = vpop.f32.mrb[188].mxu1 }
 0x89e   :  { %v8998_v60 = vpop.f32.mrb[189].mxu1 }
 0x89f   :  { %v9000_v0 = vpop.f32.mrb[190].mxu1 }
 0x8a0   :  { %9477 = vst [vmem:[#allocation15_spill] sm:$0xff] %v9000_v0  ;;  %v9002_v33 = vpop.f32.mrb[191].mxu1 }
 0x8a1   :  { %9478 = vst [vmem:[#allocation12_spill] sm:$0xff] %v9002_v33 }
 0x8bd   :  { %v6060_v13 = vpop.f32.mrb[168].mxu0 }
 0x8be   :  { %v4028_v47 = vpop.f32.mrb[169].mxu0  ;;  %v9013_v16 = vadd.f32 %v6060_v13, %v5360_v14 }
 0x8bf   :  { %v6061_v12 = vpop.f32.mrb[170].mxu0  ;;  %v9009_v25 = vadd.f32 %v5360_v14, %v4028_v47 }
 0x8c0   :  { %v9007_v52 = vadd.f32 %v6061_v12, %v5360_v14  ;;  %v4031_v34 = vpop.f32.mrb[171].mxu0  ;;  %9482 = vst [vmem:[#allocation3_spill] sm:$0xff] %v9013_v16 }
 0x8c1   :  { %9480 = vst [vmem:[#allocation13_spill] sm:$0xff] %v9009_v25  ;;  %v9011_v56 = vadd.f32 %v5360_v14, %v4031_v34 }
 0x8c2   :  { %9479 = vst [vmem:[#allocation2_spill] sm:$0xff] %v9007_v52  ;;  %v4438_v45 = vpack.c.bf16 %v9007_v52, %v9013_v16 }
 0x8c3   :  { %9481 = vst [vmem:[#allocation10_spill] sm:$0xff] %v9011_v56  ;;  %v4437_v6 = vpack.c.bf16 %v9011_v56, %v9009_v25 }
 0x8c5   :  { %v6064_v32 = vpop.f32.mrb[172].mxu0  ;;  %6126 = vmatprep.mubr.msk.bf16.mxu0 %vm1448_vm0, %v4437_v6 }
 0x8c6   :  { %v4044_v17 = vpop.f32.mrb[173].mxu0  ;;  %6127 = vmatmul.mubr.msk.bf16.vlgmr.msra.gmra.mrb[184].mxu0 %vm1448_vm0, %v4438_v45  ;;  %v9027_v12 = vadd.f32 %v6064_v32, %v5360_v14 }
 0x8c7   :  { %v6065_v40 = vpop.f32.mrb[174].mxu0  ;;  %v9023_v47 = vadd.f32 %v5360_v14, %v4044_v17 }
 0x8c8   :  { %v9021_v18 = vadd.f32 %v6065_v40, %v5360_v14  ;;  %v4047_v31 = vpop.f32.mrb[175].mxu0  ;;  %9486 = vst [vmem:[#allocation4_spill] sm:$0xff] %v9027_v12 }
 0x8c9   :  { %9484 = vst [vmem:[#allocation5_spill] sm:$0xff] %v9023_v47  ;;  %v9025_v13 = vadd.f32 %v5360_v14, %v4047_v31 }
 0x8ca   :  { %9483 = vst [vmem:[#allocation7_spill] sm:$0xff] %v9021_v18  ;;  %v4440_v25 = vpack.c.bf16 %v9021_v18, %v9027_v12 }
 0x8cb   :  { %9485 = vst [vmem:[#allocation6_spill] sm:$0xff] %v9025_v13  ;;  %v4439_v34 = vpack.c.bf16 %v9025_v13, %v9023_v47 }
 0x8cd   :  { %v6068_v6 = vpop.f32.mrb[176].mxu0  ;;  %6130 = vmatprep.mubr.msk.bf16.mxu0 %vm1448_vm0, %v4439_v34 }
 0x8ce   :  { %v4060_v45 = vpop.f32.mrb[177].mxu0  ;;  %6131 = vmatmul.mubr.msk.bf16.gmra.mrb[188].mxu0 %vm1448_vm0, %v4440_v25  ;;  %v9041_v16 = vadd.f32 %v6068_v6, %v5360_v14 }
 0x8cf   :  { %v6069_v40 = vpop.f32.mrb[178].mxu0  ;;  %v9037_v31 = vadd.f32 %v5360_v14, %v4060_v45 }
 0x8d0   :  { %v9035_v56 = vadd.f32 %v6069_v40, %v5360_v14  ;;  %v4063_v17 = vpop.f32.mrb[179].mxu0  ;;  %9490 = vst [vmem:[#allocation17_spill] sm:$0xff] %v9041_v16 }
 0x8d1   :  { %9488 = vst [vmem:[#allocation9_spill] sm:$0xff] %v9037_v31  ;;  %v9039_v32 = vadd.f32 %v5360_v14, %v4063_v17 }
 0x8d2   :  { %9487 = vst [vmem:[#allocation11_spill] sm:$0xff] %v9035_v56  ;;  %v4442_v13 = vpack.c.bf16 %v9035_v56, %v9041_v16 }
 0x8d3   :  { %9489 = vst [vmem:[#allocation16_spill] sm:$0xff] %v9039_v32  ;;  %v4441_v47 = vpack.c.bf16 %v9039_v32, %v9037_v31 }
 0x8d5   :  { %v6072_v34 = vpop.f32.mrb[180].mxu0  ;;  %6134 = vmatprep.mubr.msk.bf16.mxu0 %vm1448_vm0, %v4441_v47  ;;  %v9066_v47 = vld [vmem:[%s9325_s22] ss:$0 sm:$0xff]  ;;  %s6753_s22 = smov 20  }
 0x8d6   :  { %v4076_v25 = vpop.f32.mrb[181].mxu0  ;;  %6135 = vmatmul.mubr.msk.bf16.gmra.mrb[192].mxu0 %vm1448_vm0, %v4442_v13  ;;  %v9055_v18 = vadd.f32 %v6072_v34, %v5360_v14 }
 0x8d7   :  { %v6073_v40 = vpop.f32.mrb[182].mxu0  ;;  %v9051_v17 = vadd.f32 %v5360_v14, %v4076_v25 }
 0x8d8   :  { %v9049_v12 = vadd.f32 %v6073_v40, %v5360_v14  ;;  %v4079_v45 = vpop.f32.mrb[183].mxu0  ;;  %9494 = vst [vmem:[#allocation21_spill] sm:$0xff] %v9055_v18 }
 0x8d9   :  { %9492 = vst [vmem:[#allocation19_spill] sm:$0xff] %v9051_v17  ;;  %v9053_v6 = vadd.f32 %v5360_v14, %v4079_v45 }
 0x8da   :  { %9491 = vst [vmem:[#allocation18_spill] sm:$0xff] %v9049_v12  ;;  %v4444_v32 = vpack.c.bf16 %v9049_v12, %v9055_v18 }
 0x8db   :  { %9493 = vst [vmem:[#allocation20_spill] sm:$0xff] %v9053_v6  ;;  %v4443_v31 = vpack.c.bf16 %v9053_v6, %v9051_v17 }
 0x8dd   :  { %6138 = vmatprep.mubr.msk.bf16.mxu0 %vm1448_vm0, %v4443_v31 }
 0x8de   :  { %6139 = vmatmul.mubr.msk.bf16.gmra.mrb[196].mxu0 %vm1448_vm0, %v4444_v32 }
 0x999   :  { %v6128_v13 = vpop.f32.mrb[184].mxu0 }
 0x99a   :  { %v4524_v25 = vadd.f32 %v6128_v13, %v9066_v47  ;;  %v4515_v14 = vpop.f32.mrb[185].mxu0 }
 0x99b   :  { %v4516_v34 = vadd.f32 %v9066_v47, %v4515_v14  ;;  %v6129_v40 = vpop.f32.mrb[186].mxu0 }
 0x99c   :  { %v5397_v45 = vmul.f32 -1.442695, %v4524_v25  ;;  %v4527_v17 = vadd.f32 %v6129_v40, %v9066_v47  ;;  %v4518_v6 = vpop.f32.mrb[187].mxu0 }
 0x99d   :  { %v5395_v18 = vmul.f32 -1.442695, %v4516_v34  ;;  %v4519_v31 = vadd.f32 %v9066_v47, %v4518_v6 }
 0x99e   :  { %6689 = vpow2.f32 %v5397_v45  ;;  %v5398_v32 = vmul.f32 -1.442695, %v4527_v17 }
 0x99f   :  { %6691 = vpow2.f32 %v5395_v18  ;;  %v5396_v12 = vmul.f32 -1.442695, %v4519_v31 }
 0x9a0   :  { %6693 = vpow2.f32 %v5398_v32 }
 0x9a1   :  { %6695 = vpow2.f32 %v5396_v12  ;;  %v6132_v16 = vpop.f32.mrb[188].mxu0 }
 0x9a2   :  { %v4540_v13 = vadd.f32 %v6132_v16, %v9066_v47  ;;  %v4531_v56 = vpop.f32.mrb[189].mxu0 }
 0x9a3   :  { %v4532_v14 = vadd.f32 %v9066_v47, %v4531_v56  ;;  %v6133_v52 = vpop.f32.mrb[190].mxu0 }
 0x9a4   :  { %v5401_v25 = vmul.f32 -1.442695, %v4540_v13  ;;  %v4543_v40 = vadd.f32 %v6133_v52, %v9066_v47  ;;  %v4534_v33 = vpop.f32.mrb[191].mxu0 }
 0x9a5   :  { %v5399_v34 = vmul.f32 -1.442695, %v4532_v14  ;;  %v4535_v6 = vadd.f32 %v9066_v47, %v4534_v33 }
 0x9a6   :  { %6697 = vpow2.f32 %v5401_v25  ;;  %v5402_v17 = vmul.f32 -1.442695, %v4543_v40 }
 0x9a7   :  { %6699 = vpow2.f32 %v5399_v34  ;;  %v5400_v18 = vmul.f32 -1.442695, %v4535_v6 }
 0x9a8   :  { %v6690_v45 = vpop.eup %6689  ;;  %6701 = vpow2.f32 %v5402_v17 }
 0x9a9   :  { %v6692_v12 = vpop.eup %6691  ;;  %v4628_v31 = vadd.f32 1.0, %v6690_v45  ;;  %6703 = vpow2.f32 %v5400_v18  ;;  %v6136_v16 = vpop.f32.mrb[192].mxu0 }
 0x9aa   :  { %v6694_v32 = vpop.eup %6693  ;;  %v4626_v56 = vadd.f32 1.0, %v6692_v12  ;;  %v4556_v13 = vadd.f32 %v6136_v16, %v9066_v47  ;;  %v4547_v54 = vpop.f32.mrb[193].mxu0 }
 0x9ab   :  { %v6696_v52 = vpop.eup %6695  ;;  %6705 = vrcp.f32 %v4628_v31  ;;  %v4629_v14 = vadd.f32 1.0, %v6694_v32  ;;  %v4548_v33 = vadd.f32 %v9066_v47, %v4547_v54  ;;  %v6137_v25 = vpop.f32.mrb[194].mxu0 }
 0x9ac   :  { %6707 = vrcp.f32 %v4626_v56  ;;  %v4627_v40 = vadd.f32 1.0, %v6696_v52  ;;  %v5405_v34 = vmul.f32 -1.442695, %v4556_v13  ;;  %v4559_v6 = vadd.f32 %v6137_v25, %v9066_v47  ;;  %v4550_v17 = vpop.f32.mrb[195].mxu0 }
 0x9ad   :  { %6709 = vrcp.f32 %v4629_v14  ;;  %v5403_v18 = vmul.f32 -1.442695, %v4548_v33  ;;  %v4551_v45 = vadd.f32 %v9066_v47, %v4550_v17 }
 0x9ae   :  { %6711 = vrcp.f32 %v4627_v40  ;;  %v5406_v12 = vmul.f32 -1.442695, %v4559_v6 }
 0x9af   :  { %6713 = vpow2.f32 %v5405_v34  ;;  %v5404_v16 = vmul.f32 -1.442695, %v4551_v45 }
 0x9b0   :  { %v6698_v38 = vpop.eup %6697  ;;  %6715 = vpow2.f32 %v5403_v18 }
 0x9b1   :  { %v6700_v31 = vpop.eup %6699  ;;  %v4632_v32 = vadd.f32 1.0, %v6698_v38  ;;  %6717 = vpow2.f32 %v5406_v12  ;;  %v6140_v54 = vpop.f32.mrb[196].mxu0 }
 0x9b2   :  { %v6702_v56 = vpop.eup %6701  ;;  %v4630_v52 = vadd.f32 1.0, %v6700_v31  ;;  %6719 = vpow2.f32 %v5404_v16  ;;  %v4572_v13 = vadd.f32 %v6140_v54, %v9066_v47  ;;  %v4563_v25 = vpop.f32.mrb[197].mxu0 }
 0x9b3   :  { %v6704_v14 = vpop.eup %6703  ;;  %6721 = vrcp.f32 %v4632_v32  ;;  %v4633_v33 = vadd.f32 1.0, %v6702_v56  ;;  %v4564_v40 = vadd.f32 %v9066_v47, %v4563_v25  ;;  %v6141_v6 = vpop.f32.mrb[198].mxu0 }
 0x9b4   :  { %6723 = vrcp.f32 %v4630_v52  ;;  %v4631_v34 = vadd.f32 1.0, %v6704_v14  ;;  %v5409_v17 = vmul.f32 -1.442695, %v4572_v13  ;;  %v4575_v18 = vadd.f32 %v6141_v6, %v9066_v47  ;;  %v4566_v38 = vpop.f32.mrb[199].mxu0 }
 0x9b5   :  { %v6706_v45 = vpop.eup %6705  ;;  %6725 = vrcp.f32 %v4633_v33  ;;  %v5407_v12 = vmul.f32 -1.442695, %v4564_v40  ;;  %v4567_v16 = vadd.f32 %v9066_v47, %v4566_v38 }
 0x9b6   :  { %v6708_v31 = vpop.eup %6707  ;;  %6727 = vrcp.f32 %v4631_v34  ;;  %v5410_v54 = vmul.f32 -1.442695, %v4575_v18  ;;  %v4692_v32 = vmul.f32 %v6706_v45, %v8940_v55  ;;  %v4676_v56 = vmul.f32 %v6706_v45, %v8908_v15 }
 0x9b7   :  { %v6710_v25 = vpop.eup %6709  ;;  %6729 = vpow2.f32 %v5409_v17  ;;  %v5408_v52 = vmul.f32 -1.442695, %v4567_v16  ;;  %v4708_v13 = vmul.f32 %v6706_v45, %v8972_v4  ;;  %v4674_v14 = vmul.f32 %v6708_v31, %v8910_v50 }
 0x9b8   :  { %v6712_v6 = vpop.eup %6711  ;;  %6731 = vpow2.f32 %v5407_v12  ;;  %v4693_v33 = vmul.f32 %v6710_v25, %v8944_v28  ;;  %v4677_v47 = vmul.f32 %v6710_v25, %v8912_v22  ;;  %v4709_v40 = vmul.f32 %v6710_v25, %v8976_v3 }
 0x9b9   :  { %v6714_v34 = vpop.eup %6713  ;;  %6733 = vpow2.f32 %v5410_v54  ;;  %v4675_v55 = vmul.f32 %v6712_v6, %v8914_v62  ;;  %v4690_v15 = vmul.f32 %v6708_v31, %v8942_v48  ;;  %v4691_v17 = vmul.f32 %v6712_v6, %v8946_v42 }
 0x9ba   :  { %v6716_v18 = vpop.eup %6715  ;;  %v4636_v4 = vadd.f32 1.0, %v6714_v34  ;;  %6735 = vpow2.f32 %v5408_v52  ;;  %v6211_v50 = vpack.i.bf16 %v4693_v33, %v4692_v32  ;;  %v6206_v38 = vpack.i.bf16 %v4677_v47, %v4676_v56 }
 0x9bb   :  { %v6718_v45 = vpop.eup %6717  ;;  %v4634_v12 = vadd.f32 1.0, %v6716_v18  ;;  %v6216_v28 = vpack.i.bf16 %v4709_v40, %v4708_v13  ;;  %v6221_v16 = vpack.i.bf16 %v4675_v55, %v4674_v14  ;;  %v6226_v22 = vpack.i.bf16 %v4691_v17, %v4690_v15 }
 0x9bc   :  { %v6720_v0 = vpop.eup %6719  ;;  %6737 = vrcp.f32 %v4636_v4  ;;  %v4637_v3 = vadd.f32 1.0, %v6718_v45  ;;  %6212 = vrot.lane.b32.xlu1 %v6211_v50, %s6753_s22  ;;  %6207 = vrot.lane.b32.xlu0 %v6206_v38, %s6754_s5  ;;  %v4706_v62 = vmul.f32 %v6708_v31, %v8974_v49  ;;  %v4707_v48 = vmul.f32 %v6712_v6, %v8978_v27 }
 0x9bd   :  { %v6722_v42 = vpop.eup %6721  ;;  %6739 = vrcp.f32 %v4634_v12  ;;  %v4635_v54 = vadd.f32 1.0, %v6720_v0 }
 0x9be   :  { %v6724_v32 = vpop.eup %6723  ;;  %6741 = vrcp.f32 %v4637_v3  ;;  %v4680_v56 = vmul.f32 %v6722_v42, %v8916_v29  ;;  %v4696_v25 = vmul.f32 %v6722_v42, %v8948_v23  ;;  %v6231_v52 = vpack.i.bf16 %v4707_v48, %v4706_v62 }
 0x9bf   :  { %v6726_v13 = vpop.eup %6725  ;;  %6743 = vrcp.f32 %v4635_v54  ;;  %v4712_v14 = vmul.f32 %v6722_v42, %v8980_v26  ;;  %v4694_v33 = vmul.f32 %v6724_v32, %v8950_v51  ;;  %v9103_v49 = vmul.f32 %v6724_v32, %v8918_v7 }
 0x9c0   :  { %v6728_v27 = vpop.eup %6727  ;;  %6217 = vrot.lane.b32.xlu1 %v6216_v28, %s6755_s28  ;;  %6222 = vrot.lane.b32.xlu0 %v6221_v16, %s6754_s5  ;;  %v4681_v29 = vmul.f32 %v6726_v13, %v8920_v53  ;;  %v4697_v23 = vmul.f32 %v6726_v13, %v8952_v37  ;;  %v4713_v0 = vmul.f32 %v6726_v13, %v8984_v21 }
 0x9c1   :  { %v6730_v31 = vpop.eup %6729  ;;  %v4695_v26 = vmul.f32 %v6728_v27, %v8954_v24  ;;  %v4679_v51 = vmul.f32 %v6728_v27, %v8922_v44  ;;  %v4710_v7 = vmul.f32 %v6724_v32, %v8982_v19  ;;  %v4711_v6 = vmul.f32 %v6728_v27, %v8986_v63  ;;  %v9496_v27 = vld [vmem:[#allocation14_spill] sm:$0xff] }
 0x9c2   :  { %v6732_v47 = vpop.eup %6731  ;;  %v4640_v40 = vadd.f32 1.0, %v6730_v31  ;;  %v6236_v34 = vpack.i.bf16 %v4681_v29, %v4680_v56  ;;  %v6241_v55 = vpack.i.bf16 %v4697_v23, %v4696_v25  ;;  %v6246_v15 = vpack.i.bf16 %v4713_v0, %v4712_v14  ;;  %v9497_v29 = vld [vmem:[#allocation8_spill] sm:$0xff] }
 0x9c3   :  { %v6734_v17 = vpop.eup %6733  ;;  %v4638_v53 = vadd.f32 1.0, %v6732_v47  ;;  %v6256_v18 = vpack.i.bf16 %v4695_v26, %v4694_v33  ;;  %v6251_v37 = vpack.i.bf16 %v4679_v51, %v9103_v49  ;;  %v6261_v21 = vpack.i.bf16 %v4711_v6, %v4710_v7  ;;  %v9495_v49 = vld [vmem:[#allocation15_spill] sm:$0xff]  ;;  %v9498_v0 = vld [vmem:[#allocation12_spill] sm:$0xff] }
 0x9c4   :  { %v6736_v4 = vpop.eup %6735  ;;  %6745 = vrcp.f32 %v4640_v40  ;;  %v4641_v24 = vadd.f32 1.0, %v6734_v17  ;;  %6237 = vrot.lane.b32.xlu1 %v6236_v34, %s6754_s5  ;;  %6227 = vrot.lane.b32.xlu0 %v6226_v22, %s6753_s22  ;;  %v9500_v17 = vld [vmem:[#allocation3_spill] sm:$0xff] }
 0x9c5   :  { %6747 = vrcp.f32 %v4638_v53  ;;  %v4639_v44 = vadd.f32 1.0, %v6736_v4 }
 0x9c6   :  { %v6738_v19 = vpop.eup %6737  ;;  %6749 = vrcp.f32 %v4641_v24 }
 0x9c7   :  { %v6740_v63 = vpop.eup %6739  ;;  %6751 = vrcp.f32 %v4639_v44  ;;  %v4684_v50 = vmul.f32 %v6738_v19, %v8924_v8  ;;  %v4700_v38 = vmul.f32 %v6738_v19, %v8956_v61  ;;  %v4716_v45 = vmul.f32 %v6738_v19, %v8988_v9 }
 0x9c8   :  { %v6742_v12 = vpop.eup %6741  ;;  %6242 = vrot.lane.b32.xlu1 %v6241_v55, %s6753_s22  ;;  %6232 = vrot.lane.b32.xlu0 %v6231_v52, %s6755_s28  ;;  %v4682_v28 = vmul.f32 %v6740_v63, %v8926_v46  ;;  %v4698_v16 = vmul.f32 %v6740_v63, %v8958_v57  ;;  %v4714_v22 = vmul.f32 %v6740_v63, %v8990_v20  ;;  %v9499_v55 = vld [vmem:[#allocation2_spill] sm:$0xff] }
 0x9c9   :  { %v6744_v3 = vpop.eup %6743  ;;  %v4685_v62 = vmul.f32 %v6742_v12, %v8928_v35  ;;  %v4701_v8 = vmul.f32 %v6742_v12, %v8960_v1  ;;  %v4717_v61 = vmul.f32 %v6742_v12, %v8992_v58 }
 0x9ca   :  { %v4683_v9 = vmul.f32 %v6744_v3, %v8930_v5  ;;  %v4699_v48 = vmul.f32 %v6744_v3, %v8962_v11  ;;  %v4715_v42 = vmul.f32 %v6744_v3, %v8994_v30 }
 0x9cb   :  { %v6266_v54 = vpack.i.bf16 %v4685_v62, %v4684_v50  ;;  %v6271_v32 = vpack.i.bf16 %v4701_v8, %v4700_v38  ;;  %v6276_v46 = vpack.i.bf16 %v4717_v61, %v4716_v45 }
 0x9cc   :  { %6247 = vrot.lane.b32.xlu1 %v6246_v15, %s6755_s28  ;;  %6257 = vrot.lane.b32.xlu0 %v6256_v18, %s6753_s22  ;;  %v6281_v57 = vpack.i.bf16 %v4683_v9, %v4682_v28  ;;  %v6286_v20 = vpack.i.bf16 %v4699_v48, %v4698_v16  ;;  %v6291_v35 = vpack.i.bf16 %v4715_v42, %v4714_v22 }
 0x9ce   :  { %v6746_v56 = vpop.eup %6745 }
 0x9cf   :  { %v6748_v1 = vpop.eup %6747  ;;  %v4688_v58 = vmul.f32 %v6746_v56, %v8932_v59  ;;  %v4704_v5 = vmul.f32 %v6746_v56, %v8964_v10  ;;  %v4720_v11 = vmul.f32 %v6746_v56, %v8996_v39 }
 0x9d0   :  { %v6750_v25 = vpop.eup %6749  ;;  %6252 = vrot.lane.b32.xlu1 %v6251_v37, %s6754_s5  ;;  %6262 = vrot.lane.b32.xlu0 %v6261_v21, %s6755_s28  ;;  %v4686_v30 = vmul.f32 %v6748_v1, %v8934_v41  ;;  %v4702_v52 = vmul.f32 %v6748_v1, %v8966_v36  ;;  %v4718_v13 = vmul.f32 %v6748_v1, %v8998_v60 }
 0x9d1   :  { %v6752_v14 = vpop.eup %6751  ;;  %v4689_v33 = vmul.f32 %v6750_v25, %v8936_v43  ;;  %v4705_v59 = vmul.f32 %v6750_v25, %v8968_v2  ;;  %v4721_v10 = vmul.f32 %v6750_v25, %v9495_v49 }
 0x9d2   :  { %v4687_v39 = vmul.f32 %v6752_v14, %v9496_v27  ;;  %v4703_v23 = vmul.f32 %v6752_v14, %v9497_v29  ;;  %v4719_v31 = vmul.f32 %v6752_v14, %v9498_v0 }
 0x9d3   :  { %v6296_v26 = vpack.i.bf16 %v4689_v33, %v4688_v58  ;;  %v6301_v51 = vpack.i.bf16 %v4705_v59, %v4704_v5  ;;  %v6321_v41 = vpack.i.bf16 %v4721_v10, %v4720_v11 }
 0x9d4   :  { %6267 = vrot.lane.b32.xlu1 %v6266_v54, %s6754_s5  ;;  %6282 = vrot.lane.b32.xlu0 %v6281_v57, %s6754_s5  ;;  %v6306_v36 = vpack.i.bf16 %v4687_v39, %v4686_v30  ;;  %v6311_v60 = vpack.i.bf16 %v4703_v23, %v4702_v52  ;;  %v6316_v43 = vpack.i.bf16 %v4719_v31, %v4718_v13  ;;  %v9501_v54 = vld [vmem:[#allocation10_spill] sm:$0xff]  ;;  %v9503_v30 = vld [vmem:[#allocation7_spill] sm:$0xff]  ;;  %v9504_v13 = vld [vmem:[#allocation4_spill] sm:$0xff] }
 0x9d8   :  { %6272 = vrot.lane.b32.xlu1 %v6271_v32, %s6753_s22  ;;  %6287 = vrot.lane.b32.xlu0 %v6286_v20, %s6753_s22 }
 0x9dc   :  { %6277 = vrot.lane.b32.xlu1 %v6276_v46, %s6755_s28  ;;  %6292 = vrot.lane.b32.xlu0 %v6291_v35, %s6755_s28  ;;  %v9502_v46 = vld [vmem:[#allocation13_spill] sm:$0xff] }
 0x9e0   :  { %6297 = vrot.lane.b32.xlu1 %v6296_v26, %s6754_s5  ;;  %6307 = vrot.lane.b32.xlu0 %v6306_v36, %s6754_s5 }
 0x9e4   :  { %6302 = vrot.lane.b32.xlu1 %v6301_v51, %s6753_s22  ;;  %6312 = vrot.lane.b32.xlu0 %v6311_v60, %s6753_s22 }
 0x9e8   :  { %6322 = vrot.lane.b32.xlu1 %v6321_v41, %s6755_s28  ;;  %6317 = vrot.lane.b32.xlu0 %v6316_v43, %s6755_s28 }
 0xa2e   :  { %v6213_v2 = vpop.permute.xlu1 %6212  ;;  %v6208_v7 = vpop.permute.xlu0 %6207 }
 0xa2f   :  { %v6210_v6 = vunpack.i.h.bf16 %v6208_v7  ;;  %v6209_v47 = vunpack.i.l.bf16 %v6208_v7  ;;  %v6215_v40 = vunpack.i.h.bf16 %v6213_v2  ;;  %v6214_v34 = vunpack.i.l.bf16 %v6213_v2 }
 0xa31   :  { %v4917_v15 = vsel %vm1448_vm0, %v9499_v55, %v6210_v6  ;;  %v4916_v53 = vsel %vm1448_vm0, %v9500_v17, %v6209_v47  ;;  %v9505_v55 = vld [vmem:[#allocation6_spill] sm:$0xff]  ;;  %v9506_v17 = vld [vmem:[#allocation5_spill] sm:$0xff] }
 0xa32   :  { %v6218_v18 = vpop.permute.xlu1 %6217  ;;  %v6223_v37 = vpop.permute.xlu0 %6222  ;;  %v4933_v24 = vsel %vm4930_vm8, %v4916_v53, %v6214_v34  ;;  %v4934_v44 = vsel %vm4930_vm8, %v4917_v15, %v6215_v40 }
 0xa33   :  { %v6220_v21 = vunpack.i.h.bf16 %v6218_v18  ;;  %v6219_v4 = vunpack.i.l.bf16 %v6218_v18  ;;  %v6225_v22 = vunpack.i.h.bf16 %v6223_v37  ;;  %v6224_v3 = vunpack.i.l.bf16 %v6223_v37 }
 0xa35   :  { %v4950_v19 = vsel %vm4947_vm4, %v4933_v24, %v6219_v4  ;;  %v4951_v63 = vsel %vm4947_vm4, %v4934_v44, %v6220_v21  ;;  %v4915_v32 = vsel %vm1448_vm0, %v9501_v54, %v6225_v22  ;;  %v4914_v57 = vsel %vm1448_vm0, %v9502_v46, %v6224_v3  ;;  %v9507_v54 = vld [vmem:[#allocation11_spill] sm:$0xff]  ;;  %v9508_v46 = vld [vmem:[#allocation17_spill] sm:$0xff] }
 0xa36   :  { %v4967_v50 = vsel %vm4964_vm6, %v4950_v19, 1.0  ;;  %v4968_v38 = vsel %vm4964_vm6, %v4951_v63, 1.0  ;;  %v6238_v45 = vpop.permute.xlu1 %6237  ;;  %v6228_v12 = vpop.permute.xlu0 %6227 }
 0xa37   :  { %v5429_v28 = vpack.c.bf16 %v4967_v50, %v4967_v50  ;;  %v5430_v16 = vpack.c.bf16 %v4968_v38, %v4968_v38  ;;  %v6230_v62 = vunpack.i.h.bf16 %v6228_v12  ;;  %v6229_v8 = vunpack.i.l.bf16 %v6228_v12 }
 0xa38   :  { %v6240_v61 = vunpack.i.h.bf16 %v6238_v45  ;;  %v6239_v9 = vunpack.i.l.bf16 %v6238_v45 }
 0xa39   :  { %5048 = vst.msk [vmem:[%s9326_s23 + $0x8] sm:$0xf] %vm5045_vm5, %v5429_v28  ;;  %5049 = vst.msk [vmem:[%s9326_s23 + $0xc] sm:$0xf] %vm5045_vm5, %v5430_v16  ;;  %v4931_v56 = vsel %vm4930_vm8, %v4914_v57, %v6229_v8  ;;  %v4932_v1 = vsel %vm4930_vm8, %v4915_v32, %v6230_v62 }
 0xa3a   :  { %v6243_v48 = vpop.permute.xlu1 %6242  ;;  %v6233_v42 = vpop.permute.xlu0 %6232  ;;  %v4921_v52 = vsel %vm1448_vm0, %v9503_v30, %v6240_v61  ;;  %v4920_v14 = vsel %vm1448_vm0, %v9504_v13, %v6239_v9 }
 0xa3b   :  { %v6235_v20 = vunpack.i.h.bf16 %v6233_v42  ;;  %v6234_v35 = vunpack.i.l.bf16 %v6233_v42  ;;  %v6245_v58 = vunpack.i.h.bf16 %v6243_v48  ;;  %v6244_v5 = vunpack.i.l.bf16 %v6243_v48 }
 0xa3d   :  { %v4948_v11 = vsel %vm4947_vm4, %v4931_v56, %v6234_v35  ;;  %v4949_v25 = vsel %vm4947_vm4, %v4932_v1, %v6235_v20  ;;  %v4937_v0 = vsel %vm4930_vm8, %v4920_v14, %v6244_v5  ;;  %v4938_v31 = vsel %vm4930_vm8, %v4921_v52, %v6245_v58  ;;  %v9509_v20 = vld [vmem:[#allocation16_spill] sm:$0xff]  ;;  %v9510_v56 = vld [vmem:[#allocation9_spill] sm:$0xff] }
 0xa3e   :  { %v4965_v33 = vsel %vm4964_vm6, %v4948_v11, 1.0  ;;  %v4966_v59 = vsel %vm4964_vm6, %v4949_v25, 1.0  ;;  %v6248_v49 = vpop.permute.xlu1 %6247  ;;  %v6258_v10 = vpop.permute.xlu0 %6257 }
 0xa3f   :  { %v5427_v27 = vpack.c.bf16 %v4965_v33, %v4965_v33  ;;  %v5428_v39 = vpack.c.bf16 %v4966_v59, %v4966_v59  ;;  %v6250_v29 = vunpack.i.h.bf16 %v6248_v49  ;;  %v6249_v23 = vunpack.i.l.bf16 %v6248_v49 }
 0xa40   :  { %v6260_v40 = vunpack.i.h.bf16 %v6258_v10  ;;  %v6259_v34 = vunpack.i.l.bf16 %v6258_v10 }
 0xa41   :  { %5046 = vst.msk [vmem:[%s9326_s23] sm:$0xf] %vm5045_vm5, %v5427_v27  ;;  %5047 = vst.msk [vmem:[%s9326_s23 + $0x4] sm:$0xf] %vm5045_vm5, %v5428_v39  ;;  %v4954_v26 = vsel %vm4947_vm4, %v4937_v0, %v6249_v23  ;;  %v4955_v51 = vsel %vm4947_vm4, %v4938_v31, %v6250_v29 }
 0xa42   :  { %v4971_v41 = vsel %vm4964_vm6, %v4954_v26, 1.0  ;;  %v4972_v36 = vsel %vm4964_vm6, %v4955_v51, 1.0  ;;  %v6253_v60 = vpop.permute.xlu1 %6252  ;;  %v6263_v43 = vpop.permute.xlu0 %6262 }
 0xa43   :  { %v5433_v2 = vpack.c.bf16 %v4971_v41, %v4971_v41  ;;  %v5434_v7 = vpack.c.bf16 %v4972_v36, %v4972_v36  ;;  %v6255_v6 = vunpack.i.h.bf16 %v6253_v60  ;;  %v6254_v47 = vunpack.i.l.bf16 %v6253_v60 }
 0xa44   :  { %v6265_v18 = vunpack.i.h.bf16 %v6263_v43  ;;  %v6264_v37 = vunpack.i.l.bf16 %v6263_v43 }
 0xa45   :  { %5052 = vst.msk [vmem:[%s9326_s23 + $0x18] sm:$0xf] %vm5045_vm5, %v5433_v2  ;;  %5053 = vst.msk [vmem:[%s9326_s23 + $0x1c] sm:$0xf] %vm5045_vm5, %v5434_v7  ;;  %v4919_v15 = vsel %vm1448_vm0, %v9505_v55, %v6255_v6  ;;  %v4918_v53 = vsel %vm1448_vm0, %v9506_v17, %v6254_v47 }
 0xa46   :  { %v4935_v21 = vsel %vm4930_vm8, %v4918_v53, %v6259_v34  ;;  %v4936_v4 = vsel %vm4930_vm8, %v4919_v15, %v6260_v40  ;;  %v6268_v24 = vpop.permute.xlu1 %6267  ;;  %v6283_v44 = vpop.permute.xlu0 %6282 }
 0xa47   :  { %v4952_v19 = vsel %vm4947_vm4, %v4935_v21, %v6264_v37  ;;  %v4953_v63 = vsel %vm4947_vm4, %v4936_v4, %v6265_v18  ;;  %v6270_v28 = vunpack.i.h.bf16 %v6268_v24  ;;  %v6269_v16 = vunpack.i.l.bf16 %v6268_v24  ;;  %v9511_v18 = vld [vmem:[#allocation18_spill] sm:$0xff]  ;;  %v9512_v21 = vld [vmem:[#allocation21_spill] sm:$0xff]  ;;  %v9513_v24 = vld [vmem:[#allocation20_spill] sm:$0xff] }
 0xa48   :  { %v4969_v50 = vsel %vm4964_vm6, %v4952_v19, 1.0  ;;  %v4970_v38 = vsel %vm4964_vm6, %v4953_v63, 1.0  ;;  %v6285_v22 = vunpack.i.h.bf16 %v6283_v44  ;;  %v6284_v3 = vunpack.i.l.bf16 %v6283_v44  ;;  %v9514_v19 = vld [vmem:[#allocation19_spill] sm:$0xff] }
 0xa49   :  { %v5431_v45 = vpack.c.bf16 %v4969_v50, %v4969_v50  ;;  %v5432_v12 = vpack.c.bf16 %v4970_v38, %v4970_v38  ;;  %v4925_v32 = vsel %vm1448_vm0, %v9507_v54, %v6270_v28  ;;  %v4924_v57 = vsel %vm1448_vm0, %v9508_v46, %v6269_v16 }
 0xa4a   :  { %v6273_v62 = vpop.permute.xlu1 %6272  ;;  %v6288_v8 = vpop.permute.xlu0 %6287  ;;  %v4923_v35 = vsel %vm1448_vm0, %v9509_v20, %v6285_v22  ;;  %v4922_v1 = vsel %vm1448_vm0, %v9510_v56, %v6284_v3 }
 0xa4b   :  { %5050 = vst.msk [vmem:[%s9326_s23 + $0x10] sm:$0xf] %vm5045_vm5, %v5431_v45  ;;  %5051 = vst.msk [vmem:[%s9326_s23 + $0x14] sm:$0xf] %vm5045_vm5, %v5432_v12  ;;  %v6275_v61 = vunpack.i.h.bf16 %v6273_v62  ;;  %v6274_v9 = vunpack.i.l.bf16 %v6273_v62  ;;  %v6290_v48 = vunpack.i.h.bf16 %v6288_v8  ;;  %v6289_v42 = vunpack.i.l.bf16 %v6288_v8 }
 0xa4d   :  { %v4941_v13 = vsel %vm4930_vm8, %v4924_v57, %v6274_v9  ;;  %v4942_v14 = vsel %vm4930_vm8, %v4925_v32, %v6275_v61  ;;  %v4939_v33 = vsel %vm4930_vm8, %v4922_v1, %v6289_v42  ;;  %v4940_v59 = vsel %vm4930_vm8, %v4923_v35, %v6290_v48 }
 0xa4e   :  { %v6278_v58 = vpop.permute.xlu1 %6277  ;;  %v6293_v5 = vpop.permute.xlu0 %6292 }
 0xa4f   :  { %v6280_v11 = vunpack.i.h.bf16 %v6278_v58  ;;  %v6279_v25 = vunpack.i.l.bf16 %v6278_v58  ;;  %v6295_v30 = vunpack.i.h.bf16 %v6293_v5  ;;  %v6294_v52 = vunpack.i.l.bf16 %v6293_v5 }
 0xa51   :  { %v4958_v49 = vsel %vm4947_vm4, %v4941_v13, %v6279_v25  ;;  %v4959_v10 = vsel %vm4947_vm4, %v4942_v14, %v6280_v11  ;;  %v4956_v27 = vsel %vm4947_vm4, %v4939_v33, %v6294_v52  ;;  %v4957_v39 = vsel %vm4947_vm4, %v4940_v59, %v6295_v30 }
 0xa52   :  { %v4975_v29 = vsel %vm4964_vm6, %v4958_v49, 1.0  ;;  %v4976_v23 = vsel %vm4964_vm6, %v4959_v10, 1.0  ;;  %v4973_v0 = vsel %vm4964_vm6, %v4956_v27, 1.0  ;;  %v4974_v31 = vsel %vm4964_vm6, %v4957_v39, 1.0  ;;  %v6298_v26 = vpop.permute.xlu1 %6297  ;;  %v6308_v51 = vpop.permute.xlu0 %6307 }
 0xa53   :  { %v5437_v41 = vpack.c.bf16 %v4975_v29, %v4975_v29  ;;  %v5438_v36 = vpack.c.bf16 %v4976_v23, %v4976_v23  ;;  %v5435_v60 = vpack.c.bf16 %v4973_v0, %v4973_v0  ;;  %v5436_v43 = vpack.c.bf16 %v4974_v31, %v4974_v31 }
 0xa54   :  { %v6300_v2 = vunpack.i.h.bf16 %v6298_v26  ;;  %v6299_v7 = vunpack.i.l.bf16 %v6298_v26  ;;  %v6310_v6 = vunpack.i.h.bf16 %v6308_v51  ;;  %v6309_v47 = vunpack.i.l.bf16 %v6308_v51 }
 0xa55   :  { %5056 = vst.msk [vmem:[%s9326_s23 + $0x28] sm:$0xf] %vm5045_vm5, %v5437_v41  ;;  %5057 = vst.msk [vmem:[%s9326_s23 + $0x2c] sm:$0xf] %vm5045_vm5, %v5438_v36 }
 0xa56   :  { %5054 = vst.msk [vmem:[%s9326_s23 + $0x20] sm:$0xf] %vm5045_vm5, %v5435_v60  ;;  %5055 = vst.msk [vmem:[%s9326_s23 + $0x24] sm:$0xf] %vm5045_vm5, %v5436_v43  ;;  %v6303_v40 = vpop.permute.xlu1 %6302  ;;  %v6313_v34 = vpop.permute.xlu0 %6312  ;;  %v4929_v37 = vsel %vm1448_vm0, %v9511_v18, %v6300_v2  ;;  %v4928_v4 = vsel %vm1448_vm0, %v9512_v21, %v6299_v7  ;;  %v4927_v44 = vsel %vm1448_vm0, %v9513_v24, %v6310_v6 }
 0xa57   :  { %v6305_v55 = vunpack.i.h.bf16 %v6303_v40  ;;  %v6304_v15 = vunpack.i.l.bf16 %v6303_v40  ;;  %v6315_v17 = vunpack.i.h.bf16 %v6313_v34  ;;  %v6314_v53 = vunpack.i.l.bf16 %v6313_v34 }
 0xa58   :  { %v4926_v63 = vsel %vm1448_vm0, %v9514_v19, %v6309_v47 }
 0xa59   :  { %v4945_v22 = vsel %vm4930_vm8, %v4928_v4, %v6304_v15  ;;  %v4946_v3 = vsel %vm4930_vm8, %v4929_v37, %v6305_v55  ;;  %v4943_v62 = vsel %vm4930_vm8, %v4926_v63, %v6314_v53  ;;  %v4944_v8 = vsel %vm4930_vm8, %v4927_v44, %v6315_v17 }
 0xa5a   :  { %v6323_v50 = vpop.permute.xlu1 %6322  ;;  %v6318_v38 = vpop.permute.xlu0 %6317 }
 0xa5b   :  { %v6325_v45 = vunpack.i.h.bf16 %v6323_v50  ;;  %v6324_v12 = vunpack.i.l.bf16 %v6323_v50  ;;  %v6320_v28 = vunpack.i.h.bf16 %v6318_v38  ;;  %v6319_v16 = vunpack.i.l.bf16 %v6318_v38 }
 0xa5d   :  { %v4962_v61 = vsel %vm4947_vm4, %v4945_v22, %v6324_v12  ;;  %v4963_v9 = vsel %vm4947_vm4, %v4946_v3, %v6325_v45  ;;  %v4960_v48 = vsel %vm4947_vm4, %v4943_v62, %v6319_v16  ;;  %v4961_v42 = vsel %vm4947_vm4, %v4944_v8, %v6320_v28 }
 0xa5e   :  { %v4979_v54 = vsel %vm4964_vm6, %v4962_v61, 1.0  ;;  %v4980_v32 = vsel %vm4964_vm6, %v4963_v9, 1.0  ;;  %v4977_v46 = vsel %vm4964_vm6, %v4960_v48, 1.0  ;;  %v4978_v57 = vsel %vm4964_vm6, %v4961_v42, 1.0 }
 0xa5f   :  { %v5441_v20 = vpack.c.bf16 %v4979_v54, %v4979_v54  ;;  %v5442_v35 = vpack.c.bf16 %v4980_v32, %v4980_v32  ;;  %v5439_v56 = vpack.c.bf16 %v4977_v46, %v4977_v46  ;;  %v5440_v1 = vpack.c.bf16 %v4978_v57, %v4978_v57 }
 0xa61   :  { %5060 = vst.msk [vmem:[%s9326_s23 + $0x38] sm:$0xf] %vm5045_vm5, %v5441_v20  ;;  %5061 = vst.msk [vmem:[%s9326_s23 + $0x3c] sm:$0xf] %vm5045_vm5, %v5442_v35 }
 0xa62   :  { %5058 = vst.msk [vmem:[%s9326_s23 + $0x30] sm:$0xf] %vm5045_vm5, %v5439_v56  ;;  %5059 = vst.msk [vmem:[%s9326_s23 + $0x34] sm:$0xf] %vm5045_vm5, %v5440_v1 }

</bundles_post_ra>
